<compile_context>
chip_gen: v7x
topology: tpu7x:2x2x1
jax: 0.10.0
libtpu: 0.0.40
codegen_flags: <defaults>
</compile_context>

<pallas_src>
import functools

import jax
import jax.numpy as jnp
from jax.experimental import pallas as pl
from jax.experimental.pallas import tpu as pltpu

IN_FEATURES = 98 * 116          # 11368, fixed by the module definition
PADDED_FEATURES = 4 * 2944      # 11776 = 128*92; divides evenly into 2944-wide tiles

_VMEM_LIMIT_BYTES = 32 * 1024 * 1024   # plenty for ~6 MB of double-buffered weight
                                       # tiles; fits v7x's 64 MiB VMEM with headroom


def _round_up(v, m):
    return ((v + m - 1) // m) * m


# ----------------------------------------------------------------------------
# Kernel 1: generic tiled (M, K) @ (K, N) + bias, optional fused ReLU epilogue.
# Grid = (M_blocks, N_blocks, K_blocks); K is the last ("arbitrary") axis, so
# the output block stays VMEM-resident across the reduction and we accumulate
# directly into o_ref (no scratch accumulator, no final copy).
# ----------------------------------------------------------------------------
def _linear_kernel(x_ref, w_ref, b_ref, o_ref, *, relu):
    k = pl.program_id(2)

    @pl.when(k == 0)
    def _():
        o_ref[...] = jnp.zeros_like(o_ref)

    o_ref[...] += jnp.dot(
        x_ref[...], w_ref[...], preferred_element_type=jnp.float32
    )

    @pl.when(k == pl.num_programs(2) - 1)
    def _():
        out = o_ref[...] + b_ref[...]
        if relu:
            out = jnp.maximum(out, 0.0)
        o_ref[...] = out


def linear_pallas(x, w, b2d, *, relu, tm, tk, tn):
    """y = x @ w + b (optionally ReLU). Operands must already be tile-aligned."""
    M, K = x.shape
    Kw, N = w.shape
    assert K == Kw and b2d.shape == (1, N)
    assert M % tm == 0 and K % tk == 0 and N % tn == 0

    grid = (M // tm, N // tn, K // tk)
    return pl.pallas_call(
        functools.partial(_linear_kernel, relu=relu),
        out_shape=jax.ShapeDtypeStruct((M, N), jnp.float32),
        grid_spec=pltpu.PrefetchScalarGridSpec(
            num_scalar_prefetch=0,
            grid=grid,
            in_specs=[
                pl.BlockSpec((tm, tk), lambda i, j, k: (i, k)),
                pl.BlockSpec((tk, tn), lambda i, j, k: (k, j)),
                pl.BlockSpec((1, tn), lambda i, j, k: (0, j)),
            ],
            out_specs=pl.BlockSpec((tm, tn), lambda i, j, k: (i, j)),
        ),
        compiler_params=pltpu.CompilerParams(
            dimension_semantics=("parallel", "parallel", "arbitrary"),
            vmem_limit_bytes=_VMEM_LIMIT_BYTES,
        ),
    )(x, w, b2d)


# ----------------------------------------------------------------------------
# Kernel 2: the four tiny middle layers (512->64->16->128->256, all + ReLU)
# fused into a single pallas_call.  All weights (~170 KB) are VMEM-resident and
# the hidden activations never touch HBM.
# ----------------------------------------------------------------------------
def _mid_kernel(h_ref, w2_ref, b2_ref, w3_ref, b3_ref,
                w4_ref, b4_ref, w5_ref, b5_ref, o_ref):
    h = h_ref[...]
    for w_ref, b_ref in ((w2_ref, b2_ref), (w3_ref, b3_ref),
                         (w4_ref, b4_ref), (w5_ref, b5_ref)):
        h = jnp.dot(h, w_ref[...], preferred_element_type=jnp.float32) + b_ref[...]
        h = jnp.maximum(h, 0.0)
    o_ref[...] = h


def mid_layers_pallas(h, mid_params):
    M = h.shape[0]
    args = [h]
    in_specs = [pl.BlockSpec(h.shape, lambda i: (0, 0))]
    for w, b2d in mid_params:
        args += [w, b2d]
        in_specs += [pl.BlockSpec(w.shape, lambda i: (0, 0)),
                     pl.BlockSpec(b2d.shape, lambda i: (0, 0))]
    n_out = mid_params[-1][0].shape[1]
    return pl.pallas_call(
        _mid_kernel,
        out_shape=jax.ShapeDtypeStruct((M, n_out), jnp.float32),
        grid_spec=pltpu.PrefetchScalarGridSpec(
            num_scalar_prefetch=0,
            grid=(1,),
            in_specs=in_specs,
            out_specs=pl.BlockSpec((M, n_out), lambda i: (0, 0)),
        ),
        compiler_params=pltpu.CompilerParams(
            dimension_semantics=("arbitrary",),
            vmem_limit_bytes=_VMEM_LIMIT_BYTES,
        ),
    )(*args)


# ----------------------------------------------------------------------------
# Deterministic parameter init (matches torch.nn.Linear default init scheme:
# U(-1/sqrt(fan_in), 1/sqrt(fan_in)) for both weight and bias), synthetic values.
# ----------------------------------------------------------------------------
def init_linear(key, in_features, out_features):
    kw, kb = jax.random.split(key)
    bound = 1.0 / jnp.sqrt(jnp.float32(in_features))
    # stored as (in, out) == transpose of torch's (out, in)
    w = jax.random.uniform(kw, (in_features, out_features), jnp.float32,
                           minval=-bound, maxval=bound)
    b = jax.random.uniform(kb, (out_features,), jnp.float32,
                           minval=-bound, maxval=bound)
    return w, b


def init_autoencoder_params(key):
    dims = [
        (IN_FEATURES, 512),  # encoder
        (512, 64),
        (64, 16),
        (16, 128),           # decoder
        (128, 256),
        (256, IN_FEATURES),
    ]
    keys = jax.random.split(key, len(dims))
    return [init_linear(k, i, o) for k, (i, o) in zip(keys, dims)]


def prepare_params(params):
    """One-time padding of parameters to tile-aligned shapes (outside hot path)."""
    w1, b1 = params[0]
    w6, b6 = params[5]
    w1p = (jnp.zeros((PADDED_FEATURES, w1.shape[1]), jnp.float32)
           .at[:w1.shape[0], :].set(w1))
    b1p = b1.reshape(1, -1)
    midp = [(w, b.reshape(1, -1)) for (w, b) in params[1:5]]
    w6p = (jnp.zeros((w6.shape[0], PADDED_FEATURES), jnp.float32)
           .at[:, :w6.shape[1]].set(w6))
    b6p = (jnp.zeros((1, PADDED_FEATURES), jnp.float32)
           .at[0, :b6.shape[0]].set(b6))
    return {"w1": w1p, "b1": b1p, "mid": midp, "w6": w6p, "b6": b6p}


@jax.jit
def _autoencoder_apply(prepared, x):
    M = x.shape[0]
    pM = _round_up(M, 8)
    xp = jnp.zeros((pM, PADDED_FEATURES), jnp.float32).at[:M, :IN_FEATURES].set(x)
    # encoder layer 1: 11368 -> 512 (+ReLU). tk=2944 -> 4 K steps, ~3 MB weight
    # DMAs; tn=256 -> 2 parallel N blocks (both v7x TensorCores stream weights).
    h = linear_pallas(xp, prepared["w1"], prepared["b1"], relu=True,
                      tm=pM, tk=2944, tn=256)
    # encoder layers 2-3 + decoder layers 4-5, fused (launch-overhead dominated)
    h = mid_layers_pallas(h, prepared["mid"])
    # decoder layer 6: 256 -> 11368 (no activation). tk=K=256 (no K inflation),
    # tn=2944 -> 4 lane-dense N blocks, ~3 MB weight DMAs.
    h = linear_pallas(h, prepared["w6"], prepared["b6"], relu=False,
                      tm=pM, tk=256, tn=2944)
    return h[:M, :IN_FEATURES]


def autoencoder_forward(prepared, x):
    """Forward pass of the Autoencoder module. x: (batch, 11368) float32."""
    in_size = x.shape[0]
    print(in_size)  # mirrors `print(in_size)` in the PyTorch forward (kept outside jit)
    return _autoencoder_apply(prepared, x)


def autoencoder_reference(params, x):
    """Pure-XLA reference for a loose numerical sanity check."""
    h = x
    for idx, (w, b) in enumerate(params):
        h = h @ w + b
        if idx < 5:
            h = jnp.maximum(h, 0.0)
    return h


if __name__ == "__main__":
    key = jax.random.PRNGKey(0)
    k_params, k_x = jax.random.split(key)

    params = init_autoencoder_params(k_params)
    prepared = prepare_params(params)   # pad weights ONCE, tile-aligned

    batch = 8  # small batch; feature dim 98*116 is fixed by the module
    x = jax.random.normal(k_x, (batch, IN_FEATURES), jnp.float32)

    y = autoencoder_forward(prepared, x)
    y = jax.block_until_ready(y)

    assert y.shape == (batch, IN_FEATURES), y.shape
    assert y.dtype == jnp.float32
    assert bool(jnp.all(jnp.isfinite(y)))

    # loose sanity check vs. plain XLA (MXU vs XLA matmul rounding differs slightly)
    y_ref = autoencoder_reference(params, x)
    rel_err = float(jnp.max(jnp.abs(y - y_ref)) / (jnp.max(jnp.abs(y_ref)) + 1e-6))
    assert rel_err < 5e-2, rel_err

    print("KERNEL_OK")
</pallas_src>

<mosaic_0001>
module attributes {stable_mosaic.version = 11 : i64} {
  func.func @_linear_kernel(%arg0: i32, %arg1: i32, %arg2: i32, %arg3: memref<8x2944xf32, #tpu.memory_space<vmem>>, %arg4: memref<2944x256xf32, #tpu.memory_space<vmem>>, %arg5: memref<1x256xf32, #tpu.memory_space<vmem>>, %arg6: memref<8x256xf32, #tpu.memory_space<vmem>>) attributes {dimension_semantics = [#tpu.dimension_semantics<parallel>, #tpu.dimension_semantics<parallel>, #tpu.dimension_semantics<arbitrary>], iteration_bounds = array<i64: 1, 2, 4>, scalar_prefetch = 0 : i64, scratch_operands = 0 : i64, tpu.core_type = #tpu.core_type<tc>, window_params = [{transform_indices = @transform_0, window_bounds = array<i64: 8, 2944>}, {transform_indices = @transform_1, window_bounds = array<i64: 2944, 256>}, {transform_indices = @transform_2, window_bounds = array<i64: 1, 256>}, {transform_indices = @transform_3, window_bounds = array<i64: 8, 256>}]} {
    %c0_i32 = arith.constant 0 : i32
    %0 = arith.cmpi eq, %arg2, %c0_i32 : i32
    %1 = arith.extui %0 : i1 to i32
    %c0_i32_0 = arith.constant 0 : i32
    %2 = arith.cmpi ne, %1, %c0_i32_0 : i32
    scf.if %2 {
      %cst_9 = arith.constant 0.000000e+00 : f32
      %12 = vector.broadcast %cst_9 : f32 to vector<8x256xf32>
      %c0_10 = arith.constant 0 : index
      %c0_11 = arith.constant 0 : index
      %13 = vector.load %arg6[%c0_10, %c0_11] : memref<8x256xf32, #tpu.memory_space<vmem>>, vector<8x256xf32>
      tpu.vector_store %arg6[%c0_10, %c0_11], %12 {strides = array<i32>} : memref<8x256xf32, #tpu.memory_space<vmem>>, vector<8x256xf32>,
    } else {
    }
    %c0 = arith.constant 0 : index
    %c0_1 = arith.constant 0 : index
    %3 = vector.load %arg6[%c0, %c0_1] : memref<8x256xf32, #tpu.memory_space<vmem>>, vector<8x256xf32>
    %c0_2 = arith.constant 0 : index
    %c0_3 = arith.constant 0 : index
    %4 = vector.load %arg3[%c0_2, %c0_3] : memref<8x2944xf32, #tpu.memory_space<vmem>>, vector<8x2944xf32>
    %c0_4 = arith.constant 0 : index
    %c0_5 = arith.constant 0 : index
    %5 = vector.load %arg4[%c0_4, %c0_5] : memref<2944x256xf32, #tpu.memory_space<vmem>>, vector<2944x256xf32>
    %cst = arith.constant dense<0.000000e+00> : vector<8x256xf32>
    %6 = tpu.matmul %4, %5, %cst {dimension_numbers = #tpu.dot_dimension_numbers<[1], [0], [0], [1], [0, 0, 1, 1], [], []>} : vector<8x2944xf32>, vector<2944x256xf32>, vector<8x256xf32> -> vector<8x256xf32>
    %7 = arith.addf %3, %6 : vector<8x256xf32>
    %c0_6 = arith.constant 0 : index
    %c0_7 = arith.constant 0 : index
    %8 = vector.load %arg6[%c0_6, %c0_7] : memref<8x256xf32, #tpu.memory_space<vmem>>, vector<8x256xf32>
    tpu.vector_store %arg6[%c0_6, %c0_7], %7 {strides = array<i32>} : memref<8x256xf32, #tpu.memory_space<vmem>>, vector<8x256xf32>,
    %c3_i32 = arith.constant 3 : i32
    %9 = arith.cmpi eq, %arg2, %c3_i32 : i32
    %10 = arith.extui %9 : i1 to i32
    %c0_i32_8 = arith.constant 0 : i32
    %11 = arith.cmpi ne, %10, %c0_i32_8 : i32
    scf.if %11 {
      %c0_9 = arith.constant 0 : index
      %c0_10 = arith.constant 0 : index
      %12 = vector.load %arg6[%c0_9, %c0_10] : memref<8x256xf32, #tpu.memory_space<vmem>>, vector<8x256xf32>
      %c0_11 = arith.constant 0 : index
      %c0_12 = arith.constant 0 : index
      %13 = vector.load %arg5[%c0_11, %c0_12] : memref<1x256xf32, #tpu.memory_space<vmem>>, vector<1x256xf32>
      %14 = vector.broadcast %13 : vector<1x256xf32> to vector<8x256xf32>
      %15 = arith.addf %12, %14 : vector<8x256xf32>
      %cst_13 = arith.constant 0.000000e+00 : f32
      %16 = vector.broadcast %cst_13 : f32 to vector<8x256xf32>
      %17 = arith.maximumf %15, %16 : vector<8x256xf32>
      %c0_14 = arith.constant 0 : index
      %c0_15 = arith.constant 0 : index
      %18 = vector.load %arg6[%c0_14, %c0_15] : memref<8x256xf32, #tpu.memory_space<vmem>>, vector<8x256xf32>
      tpu.vector_store %arg6[%c0_14, %c0_15], %17 {strides = array<i32>} : memref<8x256xf32, #tpu.memory_space<vmem>>, vector<8x256xf32>,
    } else {
    }
    return
  }
  func.func @transform_0(%arg0: i32, %arg1: i32, %arg2: i32) -> (i32, i32) {
    %c0_i32 = arith.constant 0 : i32
    return %arg0, %arg2 : i32, i32
  }
  func.func @transform_1(%arg0: i32, %arg1: i32, %arg2: i32) -> (i32, i32) {
    %c0_i32 = arith.constant 0 : i32
    return %arg2, %arg1 : i32, i32
  }
  func.func @transform_2(%arg0: i32, %arg1: i32, %arg2: i32) -> (i32, i32) {
    %c0_i32 = arith.constant 0 : i32
    %c0_i32_0 = arith.constant 0 : i32
    return %c0_i32, %arg1 : i32, i32
  }
  func.func @transform_3(%arg0: i32, %arg1: i32, %arg2: i32) -> (i32, i32) {
    %c0_i32 = arith.constant 0 : i32
    return %arg0, %arg1 : i32, i32
  }
}

module attributes {stable_mosaic.version = 11 : i64} {
  func.func @_linear_kernel(%arg0: i32, %arg1: i32, %arg2: i32, %arg3: memref<8x256xf32, #tpu.memory_space<vmem>>, %arg4: memref<256x2944xf32, #tpu.memory_space<vmem>>, %arg5: memref<1x2944xf32, #tpu.memory_space<vmem>>, %arg6: memref<8x2944xf32, #tpu.memory_space<vmem>>) attributes {dimension_semantics = [#tpu.dimension_semantics<parallel>, #tpu.dimension_semantics<parallel>, #tpu.dimension_semantics<arbitrary>], iteration_bounds = array<i64: 1, 4, 1>, scalar_prefetch = 0 : i64, scratch_operands = 0 : i64, tpu.core_type = #tpu.core_type<tc>, window_params = [{transform_indices = @transform_0, window_bounds = array<i64: 8, 256>}, {transform_indices = @transform_1, window_bounds = array<i64: 256, 2944>}, {transform_indices = @transform_2, window_bounds = array<i64: 1, 2944>}, {transform_indices = @transform_3, window_bounds = array<i64: 8, 2944>}]} {
    %c0_i32 = arith.constant 0 : i32
    %0 = arith.cmpi eq, %arg2, %c0_i32 : i32
    %1 = arith.extui %0 : i1 to i32
    %c0_i32_0 = arith.constant 0 : i32
    %2 = arith.cmpi ne, %1, %c0_i32_0 : i32
    scf.if %2 {
      %cst_10 = arith.constant 0.000000e+00 : f32
      %12 = vector.broadcast %cst_10 : f32 to vector<8x2944xf32>
      %c0_11 = arith.constant 0 : index
      %c0_12 = arith.constant 0 : index
      %13 = vector.load %arg6[%c0_11, %c0_12] : memref<8x2944xf32, #tpu.memory_space<vmem>>, vector<8x2944xf32>
      tpu.vector_store %arg6[%c0_11, %c0_12], %12 {strides = array<i32>} : memref<8x2944xf32, #tpu.memory_space<vmem>>, vector<8x2944xf32>,
    } else {
    }
    %c0 = arith.constant 0 : index
    %c0_1 = arith.constant 0 : index
    %3 = vector.load %arg6[%c0, %c0_1] : memref<8x2944xf32, #tpu.memory_space<vmem>>, vector<8x2944xf32>
    %c0_2 = arith.constant 0 : index
    %c0_3 = arith.constant 0 : index
    %4 = vector.load %arg3[%c0_2, %c0_3] : memref<8x256xf32, #tpu.memory_space<vmem>>, vector<8x256xf32>
    %c0_4 = arith.constant 0 : index
    %c0_5 = arith.constant 0 : index
    %5 = vector.load %arg4[%c0_4, %c0_5] : memref<256x2944xf32, #tpu.memory_space<vmem>>, vector<256x2944xf32>
    %cst = arith.constant dense<0.000000e+00> : vector<8x2944xf32>
    %6 = tpu.matmul %4, %5, %cst {dimension_numbers = #tpu.dot_dimension_numbers<[1], [0], [0], [1], [0, 0, 1, 1], [], []>} : vector<8x256xf32>, vector<256x2944xf32>, vector<8x2944xf32> -> vector<8x2944xf32>
    %7 = arith.addf %3, %6 : vector<8x2944xf32>
    %c0_6 = arith.constant 0 : index
    %c0_7 = arith.constant 0 : index
    %8 = vector.load %arg6[%c0_6, %c0_7] : memref<8x2944xf32, #tpu.memory_space<vmem>>, vector<8x2944xf32>
    tpu.vector_store %arg6[%c0_6, %c0_7], %7 {strides = array<i32>} : memref<8x2944xf32, #tpu.memory_space<vmem>>, vector<8x2944xf32>,
    %c0_i32_8 = arith.constant 0 : i32
    %9 = arith.cmpi eq, %arg2, %c0_i32_8 : i32
    %10 = arith.extui %9 : i1 to i32
    %c0_i32_9 = arith.constant 0 : i32
    %11 = arith.cmpi ne, %10, %c0_i32_9 : i32
    scf.if %11 {
      %c0_10 = arith.constant 0 : index
      %c0_11 = arith.constant 0 : index
      %12 = vector.load %arg6[%c0_10, %c0_11] : memref<8x2944xf32, #tpu.memory_space<vmem>>, vector<8x2944xf32>
      %c0_12 = arith.constant 0 : index
      %c0_13 = arith.constant 0 : index
      %13 = vector.load %arg5[%c0_12, %c0_13] : memref<1x2944xf32, #tpu.memory_space<vmem>>, vector<1x2944xf32>
      %14 = vector.broadcast %13 : vector<1x2944xf32> to vector<8x2944xf32>
      %15 = arith.addf %12, %14 : vector<8x2944xf32>
      %c0_14 = arith.constant 0 : index
      %c0_15 = arith.constant 0 : index
      %16 = vector.load %arg6[%c0_14, %c0_15] : memref<8x2944xf32, #tpu.memory_space<vmem>>, vector<8x2944xf32>
      tpu.vector_store %arg6[%c0_14, %c0_15], %15 {strides = array<i32>} : memref<8x2944xf32, #tpu.memory_space<vmem>>, vector<8x2944xf32>,
    } else {
    }
    return
  }
  func.func @transform_0(%arg0: i32, %arg1: i32, %arg2: i32) -> (i32, i32) {
    %c0_i32 = arith.constant 0 : i32
    return %arg0, %arg2 : i32, i32
  }
  func.func @transform_1(%arg0: i32, %arg1: i32, %arg2: i32) -> (i32, i32) {
    %c0_i32 = arith.constant 0 : i32
    return %arg2, %arg1 : i32, i32
  }
  func.func @transform_2(%arg0: i32, %arg1: i32, %arg2: i32) -> (i32, i32) {
    %c0_i32 = arith.constant 0 : i32
    %c0_i32_0 = arith.constant 0 : i32
    return %c0_i32, %arg1 : i32, i32
  }
  func.func @transform_3(%arg0: i32, %arg1: i32, %arg2: i32) -> (i32, i32) {
    %c0_i32 = arith.constant 0 : i32
    return %arg0, %arg1 : i32, i32
  }
}

module attributes {stable_mosaic.version = 11 : i64} {
  func.func @_mid_kernel(%arg0: i32, %arg1: memref<8x512xf32, #tpu.memory_space<vmem>>, %arg2: memref<512x64xf32, #tpu.memory_space<vmem>>, %arg3: memref<1x64xf32, #tpu.memory_space<vmem>>, %arg4: memref<64x16xf32, #tpu.memory_space<vmem>>, %arg5: memref<1x16xf32, #tpu.memory_space<vmem>>, %arg6: memref<16x128xf32, #tpu.memory_space<vmem>>, %arg7: memref<1x128xf32, #tpu.memory_space<vmem>>, %arg8: memref<128x256xf32, #tpu.memory_space<vmem>>, %arg9: memref<1x256xf32, #tpu.memory_space<vmem>>, %arg10: memref<8x256xf32, #tpu.memory_space<vmem>>) attributes {dimension_semantics = [#tpu.dimension_semantics<arbitrary>], iteration_bounds = array<i64: 1>, scalar_prefetch = 0 : i64, scratch_operands = 0 : i64, tpu.core_type = #tpu.core_type<tc>, window_params = [{pipeline_mode = #tpu.pipeline_mode<synchronous>, transform_indices = @transform_0, window_bounds = array<i64: 8, 512>}, {pipeline_mode = #tpu.pipeline_mode<synchronous>, transform_indices = @transform_1, window_bounds = array<i64: 512, 64>}, {pipeline_mode = #tpu.pipeline_mode<synchronous>, transform_indices = @transform_2, window_bounds = array<i64: 1, 64>}, {pipeline_mode = #tpu.pipeline_mode<synchronous>, transform_indices = @transform_3, window_bounds = array<i64: 64, 16>}, {pipeline_mode = #tpu.pipeline_mode<synchronous>, transform_indices = @transform_4, window_bounds = array<i64: 1, 16>}, {pipeline_mode = #tpu.pipeline_mode<synchronous>, transform_indices = @transform_5, window_bounds = array<i64: 16, 128>}, {pipeline_mode = #tpu.pipeline_mode<synchronous>, transform_indices = @transform_6, window_bounds = array<i64: 1, 128>}, {pipeline_mode = #tpu.pipeline_mode<synchronous>, transform_indices = @transform_7, window_bounds = array<i64: 128, 256>}, {pipeline_mode = #tpu.pipeline_mode<synchronous>, transform_indices = @transform_8, window_bounds = array<i64: 1, 256>}, {pipeline_mode = #tpu.pipeline_mode<synchronous>, transform_indices = @transform_9, window_bounds = array<i64: 8, 256>}]} {
    %c0 = arith.constant 0 : index
    %c0_0 = arith.constant 0 : index
    %0 = vector.load %arg1[%c0, %c0_0] : memref<8x512xf32, #tpu.memory_space<vmem>>, vector<8x512xf32>
    %c0_1 = arith.constant 0 : index
    %c0_2 = arith.constant 0 : index
    %1 = vector.load %arg2[%c0_1, %c0_2] : memref<512x64xf32, #tpu.memory_space<vmem>>, vector<512x64xf32>
    %cst = arith.constant dense<0.000000e+00> : vector<8x64xf32>
    %2 = tpu.matmul %0, %1, %cst {dimension_numbers = #tpu.dot_dimension_numbers<[1], [0], [0], [1], [0, 0, 1, 1], [], []>} : vector<8x512xf32>, vector<512x64xf32>, vector<8x64xf32> -> vector<8x64xf32>
    %c0_3 = arith.constant 0 : index
    %c0_4 = arith.constant 0 : index
    %3 = vector.load %arg3[%c0_3, %c0_4] : memref<1x64xf32, #tpu.memory_space<vmem>>, vector<1x64xf32>
    %4 = vector.broadcast %3 : vector<1x64xf32> to vector<8x64xf32>
    %5 = arith.addf %2, %4 : vector<8x64xf32>
    %cst_5 = arith.constant 0.000000e+00 : f32
    %6 = vector.broadcast %cst_5 : f32 to vector<8x64xf32>
    %7 = arith.maximumf %5, %6 : vector<8x64xf32>
    %c0_6 = arith.constant 0 : index
    %c0_7 = arith.constant 0 : index
    %8 = vector.load %arg4[%c0_6, %c0_7] : memref<64x16xf32, #tpu.memory_space<vmem>>, vector<64x16xf32>
    %cst_8 = arith.constant dense<0.000000e+00> : vector<8x16xf32>
    %9 = tpu.matmul %7, %8, %cst_8 {dimension_numbers = #tpu.dot_dimension_numbers<[1], [0], [0], [1], [0, 0, 1, 1], [], []>} : vector<8x64xf32>, vector<64x16xf32>, vector<8x16xf32> -> vector<8x16xf32>
    %c0_9 = arith.constant 0 : index
    %c0_10 = arith.constant 0 : index
    %10 = vector.load %arg5[%c0_9, %c0_10] : memref<1x16xf32, #tpu.memory_space<vmem>>, vector<1x16xf32>
    %11 = vector.broadcast %10 : vector<1x16xf32> to vector<8x16xf32>
    %12 = arith.addf %9, %11 : vector<8x16xf32>
    %cst_11 = arith.constant 0.000000e+00 : f32
    %13 = vector.broadcast %cst_11 : f32 to vector<8x16xf32>
    %14 = arith.maximumf %12, %13 : vector<8x16xf32>
    %c0_12 = arith.constant 0 : index
    %c0_13 = arith.constant 0 : index
    %15 = vector.load %arg6[%c0_12, %c0_13] : memref<16x128xf32, #tpu.memory_space<vmem>>, vector<16x128xf32>
    %cst_14 = arith.constant dense<0.000000e+00> : vector<8x128xf32>
    %16 = tpu.matmul %14, %15, %cst_14 {dimension_numbers = #tpu.dot_dimension_numbers<[1], [0], [0], [1], [0, 0, 1, 1], [], []>} : vector<8x16xf32>, vector<16x128xf32>, vector<8x128xf32> -> vector<8x128xf32>
    %c0_15 = arith.constant 0 : index
    %c0_16 = arith.constant 0 : index
    %17 = vector.load %arg7[%c0_15, %c0_16] : memref<1x128xf32, #tpu.memory_space<vmem>>, vector<1x128xf32>
    %18 = vector.broadcast %17 : vector<1x128xf32> to vector<8x128xf32>
    %19 = arith.addf %16, %18 : vector<8x128xf32>
    %cst_17 = arith.constant 0.000000e+00 : f32
    %20 = vector.broadcast %cst_17 : f32 to vector<8x128xf32>
    %21 = arith.maximumf %19, %20 : vector<8x128xf32>
    %c0_18 = arith.constant 0 : index
    %c0_19 = arith.constant 0 : index
    %22 = vector.load %arg8[%c0_18, %c0_19] : memref<128x256xf32, #tpu.memory_space<vmem>>, vector<128x256xf32>
    %cst_20 = arith.constant dense<0.000000e+00> : vector<8x256xf32>
    %23 = tpu.matmul %21, %22, %cst_20 {dimension_numbers = #tpu.dot_dimension_numbers<[1], [0], [0], [1], [0, 0, 1, 1], [], []>} : vector<8x128xf32>, vector<128x256xf32>, vector<8x256xf32> -> vector<8x256xf32>
    %c0_21 = arith.constant 0 : index
    %c0_22 = arith.constant 0 : index
    %24 = vector.load %arg9[%c0_21, %c0_22] : memref<1x256xf32, #tpu.memory_space<vmem>>, vector<1x256xf32>
    %25 = vector.broadcast %24 : vector<1x256xf32> to vector<8x256xf32>
    %26 = arith.addf %23, %25 : vector<8x256xf32>
    %cst_23 = arith.constant 0.000000e+00 : f32
    %27 = vector.broadcast %cst_23 : f32 to vector<8x256xf32>
    %28 = arith.maximumf %26, %27 : vector<8x256xf32>
    %c0_24 = arith.constant 0 : index
    %c0_25 = arith.constant 0 : index
    %29 = vector.load %arg10[%c0_24, %c0_25] : memref<8x256xf32, #tpu.memory_space<vmem>>, vector<8x256xf32>
    tpu.vector_store %arg10[%c0_24, %c0_25], %28 {strides = array<i32>} : memref<8x256xf32, #tpu.memory_space<vmem>>, vector<8x256xf32>,
    return
  }
  func.func @transform_0(%arg0: i32) -> (i32, i32) {
    %c0_i32 = arith.constant 0 : i32
    %c0_i32_0 = arith.constant 0 : i32
    %c0_i32_1 = arith.constant 0 : i32
    return %c0_i32, %c0_i32_0 : i32, i32
  }
  func.func @transform_1(%arg0: i32) -> (i32, i32) {
    %c0_i32 = arith.constant 0 : i32
    %c0_i32_0 = arith.constant 0 : i32
    %c0_i32_1 = arith.constant 0 : i32
    return %c0_i32, %c0_i32_0 : i32, i32
  }
  func.func @transform_2(%arg0: i32) -> (i32, i32) {
    %c0_i32 = arith.constant 0 : i32
    %c0_i32_0 = arith.constant 0 : i32
    %c0_i32_1 = arith.constant 0 : i32
    return %c0_i32, %c0_i32_0 : i32, i32
  }
  func.func @transform_3(%arg0: i32) -> (i32, i32) {
    %c0_i32 = arith.constant 0 : i32
    %c0_i32_0 = arith.constant 0 : i32
    %c0_i32_1 = arith.constant 0 : i32
    return %c0_i32, %c0_i32_0 : i32, i32
  }
  func.func @transform_4(%arg0: i32) -> (i32, i32) {
    %c0_i32 = arith.constant 0 : i32
    %c0_i32_0 = arith.constant 0 : i32
    %c0_i32_1 = arith.constant 0 : i32
    return %c0_i32, %c0_i32_0 : i32, i32
  }
  func.func @transform_5(%arg0: i32) -> (i32, i32) {
    %c0_i32 = arith.constant 0 : i32
    %c0_i32_0 = arith.constant 0 : i32
    %c0_i32_1 = arith.constant 0 : i32
    return %c0_i32, %c0_i32_0 : i32, i32
  }
  func.func @transform_6(%arg0: i32) -> (i32, i32) {
    %c0_i32 = arith.constant 0 : i32
    %c0_i32_0 = arith.constant 0 : i32
    %c0_i32_1 = arith.constant 0 : i32
    return %c0_i32, %c0_i32_0 : i32, i32
  }
  func.func @transform_7(%arg0: i32) -> (i32, i32) {
    %c0_i32 = arith.constant 0 : i32
    %c0_i32_0 = arith.constant 0 : i32
    %c0_i32_1 = arith.constant 0 : i32
    return %c0_i32, %c0_i32_0 : i32, i32
  }
  func.func @transform_8(%arg0: i32) -> (i32, i32) {
    %c0_i32 = arith.constant 0 : i32
    %c0_i32_0 = arith.constant 0 : i32
    %c0_i32_1 = arith.constant 0 : i32
    return %c0_i32, %c0_i32_0 : i32, i32
  }
  func.func @transform_9(%arg0: i32) -> (i32, i32) {
    %c0_i32 = arith.constant 0 : i32
    %c0_i32_0 = arith.constant 0 : i32
    %c0_i32_1 = arith.constant 0 : i32
    return %c0_i32, %c0_i32_0 : i32, i32
  }
}

</mosaic_0001>

<bundles_post_ra>
// kernel: _autoencoder_apply.4
= control target key start
LH: loop header
LB: loop body
LE: loop exit
PB: predicated region body
PF: predicated region fallthrough
CT: control target
= control target key end

     0   :  { %vm773_vm0 = vmmov 0   ;;  %vm263_vm1 = vcmask 523264   ;;  %vm347_vm2 = vcmask 130048   ;;  %s1175_s1 = inlined_call_operand.vmem [shape: f32[512,64], index: 1, kind: input, shape index: {}]   ;;  %s1176_s0 = inlined_call_operand.vmem [shape: f32[8,512], index: 0, kind: input, shape index: {}]   ;;  %s1177_s3 = inlined_call_operand.vmem [shape: f32[64,16], index: 3, kind: input, shape index: {}]   ;;  %s1178_s2 = inlined_call_operand.vmem [shape: f32[1,64], index: 2, kind: input, shape index: {}]   ;;  %s1179_s5 = inlined_call_operand.vmem [shape: f32[16,128], index: 5, kind: input, shape index: {}]   ;;  %s1180_s7 = inlined_call_operand.vmem [shape: f32[128,256], index: 7, kind: input, shape index: {}]   ;;  %s1181_s4 = inlined_call_operand.vmem [shape: f32[1,16], index: 4, kind: input, shape index: {}]   ;;  %s1182_s6 = inlined_call_operand.vmem [shape: f32[1,128], index: 6, kind: input, shape index: {}]   ;;  %s1183_s8 = inlined_call_operand.vmem [shape: f32[1,256], index: 8, kind: input, shape index: {}]   ;;  %s1184_s9 = inlined_call_operand.vmem [shape: f32[8,256], index: 9, kind: output, shape index: {}]  }
   0x1   :  { %v52_v0 = vld [vmem:[%s1175_s1 + $0x80] sm:$0xff]  ;;  %v53_v1 = vld [vmem:[%s1175_s1 + $0x88] sm:$0xff]  ;;  %v54_v11 = vld [vmem:[%s1175_s1 + $0x90] sm:$0xff] }
   0x2   :  { %v36_v2 = vld [vmem:[%s1175_s1] sm:$0xff]  ;;  %v658_v3 = vpack.c.bf16 %v53_v1, %v52_v0  ;;  %v37_v4 = vld [vmem:[%s1175_s1 + $0x8] sm:$0xff]  ;;  %v55_v13 = vld [vmem:[%s1175_s1 + $0x98] sm:$0xff] }
   0x3   :  { %v84_v5 = vld [vmem:[%s1175_s1 + $0x180] sm:$0xff]  ;;  %v85_v6 = vld [vmem:[%s1175_s1 + $0x188] sm:$0xff]  ;;  %v660_v7 = vpack.c.bf16 %v37_v4, %v36_v2  ;;  %v38_v14 = vld [vmem:[%s1175_s1 + $0x10] sm:$0xff]  ;;  %v662_v16 = vpack.c.bf16 %v55_v13, %v54_v11 }
   0x4   :  { %v690_v8 = vpack.c.bf16 %v85_v6, %v84_v5  ;;  %v68_v9 = vld [vmem:[%s1175_s1 + $0x100] sm:$0xff]  ;;  %v69_v10 = vld [vmem:[%s1175_s1 + $0x108] sm:$0xff]  ;;  %659 = vmatprep.subr.bf16.mxu0 %v658_v3  ;;  %v39_v15 = vld [vmem:[%s1175_s1 + $0x18] sm:$0xff] }
   0x5   :  { %v692_v12 = vpack.c.bf16 %v69_v10, %v68_v9  ;;  %661 = vmatpush3.bf16.msra.mxu0 %v660_v7  ;;  %v664_v17 = vpack.c.bf16 %v39_v15, %v38_v14  ;;  %v86_v18 = vld [vmem:[%s1175_s1 + $0x190] sm:$0xff]  ;;  %v87_v19 = vld [vmem:[%s1175_s1 + $0x198] sm:$0xff]  ;;  %v56_v23 = vld [vmem:[%s1175_s1 + $0xa0] sm:$0xff] }
   0x6   :  { %691 = vmatprep.subr.bf16.mxu1 %v690_v8  ;;  %v70_v20 = vld [vmem:[%s1175_s1 + $0x110] sm:$0xff]  ;;  %v694_v21 = vpack.c.bf16 %v87_v19, %v86_v18  ;;  %v71_v22 = vld [vmem:[%s1175_s1 + $0x118] sm:$0xff]  ;;  %v57_v24 = vld [vmem:[%s1175_s1 + $0xa8] sm:$0xff]  ;;  %663 = vmatprep.subr.bf16.mxu0 %v662_v16 }
   0x7   :  { %693 = vmatpush3.bf16.msra.mxu1 %v692_v12  ;;  %v696_v25 = vpack.c.bf16 %v71_v22, %v70_v20  ;;  %v666_v26 = vpack.c.bf16 %v57_v24, %v56_v23  ;;  %v40_v27 = vld [vmem:[%s1175_s1 + $0x20] sm:$0xff]  ;;  %v41_v28 = vld [vmem:[%s1175_s1 + $0x28] sm:$0xff]  ;;  %v58_v35 = vld [vmem:[%s1175_s1 + $0xb0] sm:$0xff] }
   0x8   :  { %v88_v29 = vld [vmem:[%s1175_s1 + $0x1a0] sm:$0xff]  ;;  %695 = vmatprep.subr.bf16.mxu1 %v694_v21  ;;  %v89_v30 = vld [vmem:[%s1175_s1 + $0x1a8] sm:$0xff]  ;;  %v668_v33 = vpack.c.bf16 %v41_v28, %v40_v27  ;;  %v59_v36 = vld [vmem:[%s1175_s1 + $0xb8] sm:$0xff] }
   0x9   :  { %v72_v31 = vld [vmem:[%s1175_s1 + $0x120] sm:$0xff]  ;;  %v73_v32 = vld [vmem:[%s1175_s1 + $0x128] sm:$0xff]  ;;  %665 = vmatpush3.bf16.msra.mxu0 %v664_v17  ;;  %v698_v34 = vpack.c.bf16 %v89_v30, %v88_v29  ;;  %v42_v37 = vld [vmem:[%s1175_s1 + $0x30] sm:$0xff]  ;;  %v670_v39 = vpack.c.bf16 %v59_v36, %v58_v35 }
   0xa   :  { %667 = vmatprep.subr.bf16.mxu0 %v666_v26  ;;  %v700_v38 = vpack.c.bf16 %v73_v32, %v72_v31  ;;  %v43_v40 = vld [vmem:[%s1175_s1 + $0x38] sm:$0xff]  ;;  %v90_v41 = vld [vmem:[%s1175_s1 + $0x1b0] sm:$0xff]  ;;  %v60_v46 = vld [vmem:[%s1175_s1 + $0xc0] sm:$0xff] }
   0xb   :  { %697 = vmatpush3.bf16.msra.mxu1 %v696_v25  ;;  %v91_v42 = vld [vmem:[%s1175_s1 + $0x1b8] sm:$0xff]  ;;  %v74_v44 = vld [vmem:[%s1175_s1 + $0x130] sm:$0xff]  ;;  %v61_v47 = vld [vmem:[%s1175_s1 + $0xc8] sm:$0xff]  ;;  %v672_v48 = vpack.c.bf16 %v43_v40, %v42_v37 }
   0xc   :  { %699 = vmatprep.subr.bf16.mxu1 %v698_v34  ;;  %v702_v43 = vpack.c.bf16 %v91_v42, %v90_v41  ;;  %v75_v45 = vld [vmem:[%s1175_s1 + $0x138] sm:$0xff]  ;;  %v92_v49 = vld [vmem:[%s1175_s1 + $0x1c0] sm:$0xff]  ;;  %v93_v50 = vld [vmem:[%s1175_s1 + $0x1c8] sm:$0xff]  ;;  %v674_v52 = vpack.c.bf16 %v61_v47, %v60_v46 }
   0xd   :  { %669 = vmatpush3.bf16.msra.mxu0 %v668_v33  ;;  %v704_v51 = vpack.c.bf16 %v75_v45, %v74_v44  ;;  %v44_v53 = vld [vmem:[%s1175_s1 + $0x40] sm:$0xff]  ;;  %v45_v54 = vld [vmem:[%s1175_s1 + $0x48] sm:$0xff]  ;;  %v706_v56 = vpack.c.bf16 %v93_v50, %v92_v49  ;;  %v62_v58 = vld [vmem:[%s1175_s1 + $0xd0] sm:$0xff]  ;;  %v774_v49 = vmov 0.0  }
   0xe   :  { %671 = vmatprep.subr.bf16.mxu0 %v670_v39  ;;  %v76_v55 = vld [vmem:[%s1175_s1 + $0x140] sm:$0xff]  ;;  %v77_v57 = vld [vmem:[%s1175_s1 + $0x148] sm:$0xff]  ;;  %v63_v59 = vld [vmem:[%s1175_s1 + $0xd8] sm:$0xff]  ;;  %v676_v62 = vpack.c.bf16 %v45_v54, %v44_v53  ;;  %v772_v39 = vmov 0.0|0.0  }
   0xf   :  { %701 = vmatpush3.bf16.msra.mxu1 %v700_v38  ;;  %v94_v60 = vld [vmem:[%s1175_s1 + $0x1d0] sm:$0xff]  ;;  %v95_v61 = vld [vmem:[%s1175_s1 + $0x1d8] sm:$0xff]  ;;  %v708_v63 = vpack.c.bf16 %v77_v57, %v76_v55  ;;  %v678_v0 = vpack.c.bf16 %v63_v59, %v62_v58  ;;  %v64_v6 = vld [vmem:[%s1175_s1 + $0xe0] sm:$0xff] }
  0x10   :  { %703 = vmatprep.subr.bf16.mxu1 %v702_v43  ;;  %v46_v1 = vld [vmem:[%s1175_s1 + $0x50] sm:$0xff]  ;;  %v47_v2 = vld [vmem:[%s1175_s1 + $0x58] sm:$0xff]  ;;  %v710_v4 = vpack.c.bf16 %v95_v61, %v94_v60  ;;  %v65_v7 = vld [vmem:[%s1175_s1 + $0xe8] sm:$0xff] }
  0x11   :  { %673 = vmatpush3.bf16.msra.mxu0 %v672_v48  ;;  %v78_v3 = vld [vmem:[%s1175_s1 + $0x150] sm:$0xff]  ;;  %v79_v5 = vld [vmem:[%s1175_s1 + $0x158] sm:$0xff]  ;;  %v96_v8 = vld [vmem:[%s1175_s1 + $0x1e0] sm:$0xff]  ;;  %v680_v10 = vpack.c.bf16 %v47_v2, %v46_v1  ;;  %v682_v14 = vpack.c.bf16 %v65_v7, %v64_v6 }
  0x12   :  { %675 = vmatprep.subr.bf16.mxu0 %v674_v52  ;;  %v97_v9 = vld [vmem:[%s1175_s1 + $0x1e8] sm:$0xff]  ;;  %v48_v11 = vld [vmem:[%s1175_s1 + $0x60] sm:$0xff]  ;;  %v712_v13 = vpack.c.bf16 %v79_v5, %v78_v3  ;;  %v66_v19 = vld [vmem:[%s1175_s1 + $0xf0] sm:$0xff] }
  0x13   :  { %705 = vmatpush3.bf16.msra.mxu1 %v704_v51  ;;  %v49_v12 = vld [vmem:[%s1175_s1 + $0x68] sm:$0xff]  ;;  %v80_v15 = vld [vmem:[%s1175_s1 + $0x160] sm:$0xff]  ;;  %v714_v18 = vpack.c.bf16 %v97_v9, %v96_v8  ;;  %v67_v20 = vld [vmem:[%s1175_s1 + $0xf8] sm:$0xff] }
  0x14   :  { %707 = vmatprep.subr.bf16.mxu1 %v706_v56  ;;  %v81_v16 = vld [vmem:[%s1175_s1 + $0x168] sm:$0xff]  ;;  %v35_v21 = vld [vmem:[%s1176_s0 + $0x18] sm:$0xff]  ;;  %v98_v22 = vld [vmem:[%s1175_s1 + $0x1f0] sm:$0xff]  ;;  %v684_v24 = vpack.c.bf16 %v49_v12, %v48_v11  ;;  %v686_v26 = vpack.c.bf16 %v67_v20, %v66_v19 }
  0x15   :  { %677 = vmatpush3.bf16.msra.mxu0 %v676_v62  ;;  %v33_v17 = vld [vmem:[%s1176_s0 + $0x8] sm:$0xff]  ;;  %v99_v23 = vld [vmem:[%s1175_s1 + $0x1f8] sm:$0xff]  ;;  %241 = vmatprep.mubr.f32.mxu1 %v35_v21  ;;  %v716_v25 = vpack.c.bf16 %v81_v16, %v80_v15  ;;  %v50_v27 = vld [vmem:[%s1175_s1 + $0x70] sm:$0xff] }
  0x16   :  { %679 = vmatprep.subr.bf16.mxu0 %v678_v0  ;;  %171 = vmatprep.mubr.f32.mxu0 %v33_v17  ;;  %v51_v28 = vld [vmem:[%s1175_s1 + $0x78] sm:$0xff]  ;;  %v718_v29 = vpack.c.bf16 %v99_v23, %v98_v22  ;;  %v82_v30 = vld [vmem:[%s1175_s1 + $0x170] sm:$0xff]  ;;  %v248_v34 = vld [vmem:[%s1177_s3] sm:$0xff] }
  0x17   :  { %709 = vmatpush3.bf16.msra.mxu1 %v708_v63  ;;  %v83_v31 = vld [vmem:[%s1175_s1 + $0x178] sm:$0xff]  ;;  %v688_v32 = vpack.c.bf16 %v51_v28, %v50_v27  ;;  %v249_v35 = vld [vmem:[%s1177_s3 + $0x8] sm:$0xff]  ;;  %v32_v36 = vld [vmem:[%s1176_s0] sm:$0xff] }
  0x18   :  { %711 = vmatprep.subr.bf16.mxu1 %v710_v4  ;;  %v720_v33 = vpack.c.bf16 %v83_v31, %v82_v30  ;;  %v723_v37 = vpack.c.bf16 %v249_v35, %v248_v34  ;;  %v34_v38 = vld [vmem:[%s1176_s0 + $0x10] sm:$0xff]  ;;  %v251_v41 = vld [vmem:[%s1177_s3 + $0x18] sm:$0xff]  ;;  %v252_v43 = vld [vmem:[%s1177_s3 + $0x20] sm:$0xff] }
  0x19   :  { %681 = vmatpush3.bf16.msra.mxu0 %v680_v10  ;;  %v250_v40 = vld [vmem:[%s1177_s3 + $0x10] sm:$0xff]  ;;  %v253_v44 = vld [vmem:[%s1177_s3 + $0x28] sm:$0xff]  ;;  %v255_v47 = vld [vmem:[%s1177_s3 + $0x38] sm:$0xff] }
  0x1a   :  { %683 = vmatprep.subr.bf16.mxu0 %v682_v14  ;;  %v726_v42 = vpack.c.bf16 %v251_v41, %v250_v40  ;;  %v729_v45 = vpack.c.bf16 %v253_v44, %v252_v43  ;;  %v254_v46 = vld [vmem:[%s1177_s3 + $0x30] sm:$0xff]  ;;  %v545_v51 = vld [vmem:[%s1178_s2] ss:$0 sm:$0xff]  ;;  %v339_v61 = vld [vmem:[%s1179_s5 + $0x8] sm:$0xff] }
  0x1b   :  { %713 = vmatpush3.bf16.msra.mxu1 %v712_v13  ;;  %v732_v48 = vpack.c.bf16 %v255_v47, %v254_v46  ;;  %v338_v60 = vld [vmem:[%s1179_s5] sm:$0xff]  ;;  %v423_v63 = vld [vmem:[%s1180_s7 + $0x8] sm:$0xff]  ;;  %v425_v0 = vld [vmem:[%s1180_s7 + $0x18] sm:$0xff] }
  0x1c   :  { %715 = vmatprep.subr.bf16.mxu1 %v714_v18  ;;  %v735_v62 = vpack.c.bf16 %v339_v61, %v338_v60  ;;  %v422_v1 = vld [vmem:[%s1180_s7] sm:$0xff]  ;;  %v737_v2 = vpack.c.bf16 %v425_v0, %v423_v63  ;;  %v424_v3 = vld [vmem:[%s1180_s7 + $0x10] sm:$0xff]  ;;  %v427_v4 = vld [vmem:[%s1180_s7 + $0x28] sm:$0xff] }
  0x1d   :  { %685 = vmatpush3.bf16.msra.mxu0 %v684_v24  ;;  %v429_v5 = vld [vmem:[%s1180_s7 + $0x38] sm:$0xff]  ;;  %v739_v6 = vpack.c.bf16 %v424_v3, %v422_v1  ;;  %v426_v8 = vld [vmem:[%s1180_s7 + $0x20] sm:$0xff]  ;;  %v428_v9 = vld [vmem:[%s1180_s7 + $0x30] sm:$0xff] }
  0x1e   :  { %687 = vmatprep.subr.bf16.mxu0 %v686_v26  ;;  %v741_v7 = vpack.c.bf16 %v429_v5, %v427_v4  ;;  %v431_v10 = vld [vmem:[%s1180_s7 + $0x48] sm:$0xff]  ;;  %v433_v11 = vld [vmem:[%s1180_s7 + $0x58] sm:$0xff]  ;;  %v743_v12 = vpack.c.bf16 %v428_v9, %v426_v8  ;;  %v430_v14 = vld [vmem:[%s1180_s7 + $0x40] sm:$0xff] }
  0x1f   :  { %717 = vmatpush3.bf16.msra.mxu1 %v716_v25  ;;  %v745_v13 = vpack.c.bf16 %v433_v11, %v431_v10  ;;  %v432_v15 = vld [vmem:[%s1180_s7 + $0x50] sm:$0xff]  ;;  %v435_v16 = vld [vmem:[%s1180_s7 + $0x68] sm:$0xff]  ;;  %v437_v17 = vld [vmem:[%s1180_s7 + $0x78] sm:$0xff] }
  0x20   :  { %719 = vmatprep.subr.bf16.mxu1 %v718_v29  ;;  %v747_v18 = vpack.c.bf16 %v432_v15, %v430_v14  ;;  %v749_v19 = vpack.c.bf16 %v437_v17, %v435_v16  ;;  %v434_v20 = vld [vmem:[%s1180_s7 + $0x60] sm:$0xff]  ;;  %v436_v21 = vld [vmem:[%s1180_s7 + $0x70] sm:$0xff]  ;;  %v439_v22 = vld [vmem:[%s1180_s7 + $0x88] sm:$0xff] }
  0x21   :  { %689 = vmatpush3.bf16.msra.mxu0 %v688_v32  ;;  %v441_v23 = vld [vmem:[%s1180_s7 + $0x98] sm:$0xff]  ;;  %v751_v24 = vpack.c.bf16 %v436_v21, %v434_v20  ;;  %v438_v26 = vld [vmem:[%s1180_s7 + $0x80] sm:$0xff]  ;;  %v440_v27 = vld [vmem:[%s1180_s7 + $0x90] sm:$0xff] }
  0x22   :  { %722 = vmatprep.subr.bf16.mxu0 %v772_v39  ;;  %v753_v25 = vpack.c.bf16 %v441_v23, %v439_v22  ;;  %v443_v28 = vld [vmem:[%s1180_s7 + $0xa8] sm:$0xff]  ;;  %v445_v29 = vld [vmem:[%s1180_s7 + $0xb8] sm:$0xff]  ;;  %v755_v30 = vpack.c.bf16 %v440_v27, %v438_v26  ;;  %v442_v32 = vld [vmem:[%s1180_s7 + $0xa0] sm:$0xff] }
  0x23   :  { %721 = vmatpush3.bf16.msra.mxu1 %v720_v33  ;;  %v757_v31 = vpack.c.bf16 %v445_v29, %v443_v28  ;;  %v444_v33 = vld [vmem:[%s1180_s7 + $0xb0] sm:$0xff]  ;;  %v447_v34 = vld [vmem:[%s1180_s7 + $0xc8] sm:$0xff]  ;;  %v449_v35 = vld [vmem:[%s1180_s7 + $0xd8] sm:$0xff] }
  0x24   :  { %172 = vmatmul.mubr.f32.vlgmr.msra.gmra.mrb[0].mxu0 %v32_v36  ;;  %738 = vmatprep.subr.bf16.mxu1 %v737_v2  ;;  %v759_v36 = vpack.c.bf16 %v444_v33, %v442_v32  ;;  %v546_v41 = vld [vmem:[%s1181_s4] ss:$0 sm:$0xff]  ;;  %v451_v46 = vld [vmem:[%s1180_s7 + $0xe8] sm:$0xff]  ;;  %v453_v47 = vld [vmem:[%s1180_s7 + $0xf8] sm:$0xff] }
  0x25   :  { %724 = vmatpush3.bf16.msra.mxu0 %v723_v37  ;;  %648 = vmatprep.mubr.msk.f32.mxu0 %vm773_vm0, %v774_v49  ;;  %v761_v37 = vpack.c.bf16 %v449_v35, %v447_v34  ;;  %v454_v60 = vld [vmem:[%s1183_s8] sm:$0x3] }
  0x26   :  { %242 = vmatmul.mubr.f32.vlgmr.msra.gmra.mrb[0].mxu1 %v34_v38  ;;  %725 = vmatprep.subr.bf16.mxu0 %v772_v39  ;;  %v446_v38 = vld [vmem:[%s1180_s7 + $0xc0] sm:$0xff] }
  0x27   :  { %530 = vmatprep.mubr.f32.mxu1 %v774_v49  ;;  %740 = vmatpush1.bf16.msra.mxu1 %v739_v6 }
  0x28   :  { %742 = vmatprep.subr.bf16.mxu1 %v741_v7 }
  0x29   :  { %727 = vmatpush3.bf16.msra.mxu0 %v726_v42 }
  0x2a   :  { %728 = vmatprep.subr.bf16.mxu0 %v772_v39 }
  0x2b   :  { %744 = vmatpush1.bf16.msra.mxu1 %v743_v12 }
  0x2c   :  { %746 = vmatprep.subr.bf16.mxu1 %v745_v13 }
  0x2d   :  { %730 = vmatpush3.bf16.msra.mxu0 %v729_v45 }
  0x2e   :  { %731 = vmatprep.subr.bf16.mxu0 %v772_v39 }
  0x2f   :  { %748 = vmatpush1.bf16.msra.mxu1 %v747_v18 }
  0x30   :  { %750 = vmatprep.subr.bf16.mxu1 %v749_v19 }
  0x31   :  { %733 = vmatpush3.bf16.msra.mxu0 %v732_v48  ;;  %v765_v48 = vpack.c.bf16 %v453_v47, %v451_v46 }
  0x32   :  { %734 = vmatprep.subr.bf16.mxu0 %v772_v39  ;;  %v448_v39 = vld [vmem:[%s1180_s7 + $0xd0] sm:$0xff] }
  0x33   :  { %752 = vmatpush1.bf16.msra.mxu1 %v751_v24  ;;  %v763_v40 = vpack.c.bf16 %v448_v39, %v446_v38 }
  0x34   :  { %754 = vmatprep.subr.bf16.mxu1 %v753_v25 }
  0x37   :  { %756 = vmatpush1.bf16.msra.mxu1 %v755_v30 }
  0x38   :  { %758 = vmatprep.subr.bf16.mxu1 %v757_v31 }
  0x3b   :  { %760 = vmatpush1.bf16.msra.mxu1 %v759_v36 }
  0x3c   :  { %762 = vmatprep.subr.bf16.mxu1 %v761_v37 }
  0x3f   :  { %764 = vmatpush1.bf16.msra.mxu1 %v763_v40 }
  0x40   :  { %766 = vmatprep.subr.bf16.mxu1 %v765_v48 }
  0xf7   :  { %v582_v50 = vpop.f32.mrb[0].mxu0 }
  0xf8   :  { %v583_v52 = vpop.f32.mrb[1].mxu0 }
  0xf9   :  { %v617_v53 = vpop.f32.mrb[0].mxu1  ;;  %v584_v54 = vadd.f32 %v583_v52, %v582_v50  ;;  %v452_v50 = vld [vmem:[%s1180_s7 + $0xf0] sm:$0xff]  ;;  %v548_v52 = vld [vmem:[%s1182_s6] ss:$0 sm:$0xff] }
  0xfa   :  { %v618_v55 = vpop.f32.mrb[1].mxu1 }
  0xfb   :  { %v619_v56 = vadd.f32 %v618_v55, %v617_v53  ;;  %v174_v57 = vadd.f32 %v584_v54, %v545_v51 }
  0xfd   :  { %v244_v58 = vadd.f32 %v619_v56, %v174_v57  ;;  %v456_v57 = vlaneseq }
  0xff   :  { %v247_v59 = vmax.f32 %v244_v58, 0.0  ;;  %v457_v58 = vshrl.u32 %v456_v57, 7 }
 0x101   :  { %649 = vmatmul.mubr.msk.f32.vlgmr.msra.gmra.mrb[2].mxu0 %vm263_vm1, %v247_v59  ;;  %v458_v59 = vsub.s32 0, %v457_v58  ;;  %v462_v61 = vsub.s32 1, %v457_v58 }
 0x102   :  { %655 = vmatprep.mubr.msk.f32.mxu0 %vm773_vm0, %v774_v49  ;;  %736 = vmatpush3.bf16.msra.mxu0 %v735_v62  ;;  %v450_v49 = vld [vmem:[%s1180_s7 + $0xe0] sm:$0xff] }
 0x103   :  { %v767_v51 = vpack.c.bf16 %v452_v50, %v450_v49  ;;  %v459_v62 = vrot.slane %v454_v60, %v458_v59  ;;  %v463_v63 = vrot.slane %v454_v60, %v462_v61 }
 0x105   :  { %768 = vmatpush1.bf16.msra.mxu1 %v767_v51 }
 0x1d4   :  { %v333_v42 = vpop.f32.mrb[2].mxu0 }
 0x1d5   :  { %v334_v43 = vadd.f32 %v546_v41, %v333_v42  ;;  %v650_v44 = vpop.f32.mrb[3].mxu0 }
 0x1d7   :  { %v337_v45 = vmax.f32 %v334_v43, 0.0 }
 0x1d9   :  { %656 = vmatmul.mubr.msk.f32.vlgmr.msra.gmra.mrb[4].mxu0 %vm347_vm2, %v337_v45 }
 0x2ac   :  { %v417_v53 = vpop.f32.mrb[4].mxu0 }
 0x2ad   :  { %v418_v54 = vadd.f32 %v548_v52, %v417_v53  ;;  %v657_v55 = vpop.f32.mrb[5].mxu0 }
 0x2af   :  { %v421_v56 = vmax.f32 %v418_v54, 0.0 }
 0x2b1   :  { %531 = vmatmul.mubr.f32.vlgmr.msra.gmra.mrb[2].mxu1 %v421_v56 }
 0x384   :  { %v532_v0 = vpop.f32.mrb[2].mxu1 }
 0x385   :  { %v533_v1 = vadd.f32 %v532_v0, %v459_v62  ;;  %v534_v2 = vpop.f32.mrb[3].mxu1 }
 0x386   :  { %v535_v3 = vadd.f32 %v534_v2, %v463_v63 }
 0x387   :  { %v537_v4 = vmax.f32 %v533_v1, 0.0 }
 0x388   :  { %v538_v5 = vmax.f32 %v535_v3, 0.0 }
 0x389   :  { %539 = vst [vmem:[%s1184_s9] sm:$0xff] %v537_v4 }
 0x38a   :  { %540 = vst [vmem:[%s1184_s9 + $0x8] sm:$0xff] %v538_v5 }

// kernel: _autoencoder_apply.3
= control target key start
LH: loop header
LB: loop body
LE: loop exit
PB: predicated region body
PF: predicated region fallthrough
CT: control target
= control target key end

     0   :  { %s4212_s0 = inlined_call_operand.vmem [shape: f32[8,11776], index: 0, kind: input, shape index: {}]   ;;  %s4213_s1 = inlined_call_operand.hbm [shape: f32[11776,512], index: 1, kind: input, shape index: {}]   ;;  %s4214_s2 = inlined_call_operand.hbm [shape: f32[1,512], index: 2, kind: input, shape index: {}]   ;;  %s4215_s3 = inlined_call_operand.vmem [shape: f32[8,512], index: 3, kind: output, shape index: {}]  }
   0x1   :  { %4221 = sst [smem:[#allocation9_spill]] %s4213_s1 }
   0x2   :  { %8 = vsyncpa [#allocation3], 0 }
   0x3   :  { %10 = vsyncpa [#allocation3 + $0x1], 0 }
   0x4   :  { %11 = vsyncpa [#allocation5], 0 }
   0x5   :  { %13 = vsyncpa [#allocation5 + $0x1], 0  ;;  %s3161_s12 = smov 0   ;;  %s3163_s13 = smov 0  }
   0x6   :  { %s3165_s14 = smov 0   ;;  %s3167_s15 = smov 0  }
   0x7   :  { %s3169_s16 = smov 0   ;;  %s3171_s17 = smov 0  }
   0x8   :  { %s3173_s18 = smov 0   ;;  %s3175_s19 = smov 0  }
   0x9   :  { %s3177_s20 = smov 0   ;;  %s3179_s21 = smov 0  }
   0xa   :  { %s3181_s22 = smov 0  }
   0xb LB: > { %s31_s23 = sadd.s32 1, %s3124_s20  ;;  %p82_p1 = scmp.ne.s32.totalorder %s3112_s17, %s3108_s16  ;;  %s3132_s22 = sphi %s3181_s22, %s19_s22   ;;  %s3128_s21 = sphi %s3179_s21, %s4249_s21   ;;  %s3124_s20 = sphi %s3177_s20, %s4248_s20   ;;  %s3120_s19 = sphi %s3175_s19, %s4247_s19   ;;  %s3116_s18 = sphi %s3173_s18, %s4246_s18   ;;  %s3112_s17 = sphi %s3171_s17, %s4245_s17   ;;  %s3108_s16 = sphi %s3169_s16, %s4244_s16   ;;  %s3104_s15 = sphi %s3167_s15, %s4243_s15   ;;  %s3100_s14 = sphi %s3165_s14, %s4242_s14   ;;  %s3096_s13 = sphi %s3163_s13, %s4241_s13   ;;  %s3092_s12 = sphi %s3161_s12, %s4240_s12  }
   0xc   : > { %p3218_p0 = scmp.ge.s32.totalorder %s31_s23, 4  ;;  %p4217_p2 = scmp.eq.s32.totalorder %s3132_s22, 0 }
   0xd   : > { %p4216_p4 = scmp.lt.s32.totalorder %s3132_s22, 8  ;;  %s179_s27 = sand.u32 1, %s3112_s17  }
   0xe   : > { %s4251_s23 = smov (%p3218_p0, %s31_s23), 0  ;;  %p84_p3 = por %p4217_p2, %p82_p1 }
   0xf   : > { %s2871_s28 = smul.u32 5888, %s179_s27  ;;  %s2096_s29 = sshll.u32 %s3128_s21, 1 }
  0x10   : > { %s2111_s30 = smul.u32 1472, %s3124_s20  ;;  %p3239_p5 = pnand %p4216_p4, %p84_p3 }
  0x11   : > { %s183_s6 = scalar_lea.vmem [#allocation2], %s2871_s28  ;;  %s4224_s1 = sld [smem:[#allocation9_spill]] }
  0x12   : > { %s190_s5 = sadd.s32 %s2111_s30, %s2096_s29  ;;  %s193_s7 = sshll.u32 %s183_s6, 4  ;;  %s3243_s7 = int_to_ptr.vmem [resolvable:$true] %s193_s7 }
  0x13   : > { %s2098_s8 = sshll.u32 %s190_s5, 7  ;;  %s3251_s24 = scalar_lea.sflag [#allocation3], %s179_s27 }
  0x14   : > { %p2980_p8 = pneg %p3239_p5 }
  0x17   : > { %s3248_s11 = scalar_lea.hbm %s4224_s1, %s2098_s8  ;;  %s2983_s30 = scalar_lea.hbm %s4224_s1, 753664 }
  0x18   : > { %s2978_s26 = scalar_lea.hbm %s3248_s11, 94208  ;;  %p2984_p11 = scmp.lt.u32.totalorder %s3248_s11, %s4224_s1 }
  0x19   : > { %p2979_p7 = scmp.ne.s32.totalorder %s3248_s11, %s2978_s26  ;;  %p2985_p12 = scmp.lt.u32.totalorder %s2983_s30, %s2978_s26 }
  0x1a   : > { %p2987_p1 = scmp.lt.u32.totalorder %s2978_s26, %s3248_s11 }
  0x1b   : > { %p2981_p9 = pnand %p2980_p8, %p2979_p7  ;;  %p2986_p13 = por %p2985_p12, %p2984_p11 }
  0x1d   : > { %p2982_p10 = pneg %p2981_p9  ;;  %p2988_p3 = por %p2987_p1, %p2986_p13 }
  0x1f   : > { %p2989_p4 = pnand %p2988_p3, %p2982_p10 }
  0x21   : > { %2992 = shalt.err (!%p2989_p4)
}
  0x22   : > { %s2993_s27 = scalar_lea.vmem %s3243_s7, 94208  ;;  %s3134_s8 = smov [#allocation2]  }
  0x23   : > { %p2994_p7 = scmp.ne.s32.totalorder %s3243_s7, %s2993_s27  ;;  %s2998_s9 = sshll.u32 %s3134_s8, 4  ;;  %s2999_s9 = int_to_ptr.vmem [resolvable:$false] %s2998_s9 }
  0x24   : > { %s3000_s10 = scalar_lea.vmem %s2999_s9, 188416  ;;  %p3001_p6 = scmp.lt.s32.totalorder %s3243_s7, %s2999_s9 }
  0x25   : > { %p2996_p9 = pnand %p2994_p7, %p2980_p8  ;;  %p3002_p11 = scmp.lt.s32.totalorder %s3000_s10, %s2993_s27 }
  0x27   : > { %p2997_p2 = pneg %p2996_p9  ;;  %p3003_p12 = por %p3002_p11, %p3001_p6 }
  0x29   : > { %p3004_p13 = pnand %p3003_p12, %p2997_p2 }
  0x2b   : > { %3007 = shalt.err (!%p3004_p13)
}
  0x2c   : > { %s3135_s26 = smov 512   ;;  %s3136_s28 = smov 256  }
  0x2d   : > { %s3137_s29 = smov 16   ;;  %p220_p2 = scmp.lt.s32.totalorder %s3132_s22, 9 }
  0x2e   : > { %2880 = dma.hbm_to_vmem [thread:$0]  (!%p3239_p5), %s3248_s11, 94208, %s3243_s7, %s3251_s24, %s3135_s26, %s3136_s28, %s3137_s29  }
  0x2f   : > { %p4225_p4 = scmp.ge.s32.totalorder %s3132_s22, 1  ;;  %s2092_s5 = sadd.s32 4294967295, %s3132_s22  }
  0x30   : > { %s34_s6 = sadd.s32 1, %s3128_s21  ;;  %p88_p8 = scmp.ne.s32.totalorder %s3108_s16, %s3104_s15 }
  0x31   : > { %p3282_p6 = pnand %p4225_p4, %p220_p2  ;;  %s4253_s6 = smov (!%p3218_p0, %s34_s6), %s3128_s21 }
  0x32   : > { %p3293_p10 = scmp.eq.s32.totalorder %s2092_s5, 0  ;;  %p36_p5 = scmp.ge.s32.totalorder %s4253_s6, 2 }
  0x33   : > { %s101_s24 = sadd.s32 1, %s3100_s14  ;;  %p108_p3 = scmp.ne.s32.totalorder %s3100_s14, %s3096_s13 }
  0x34   : > { %p3300_p1 = por %p3293_p10, %p88_p8  ;;  %s4255_s6 = smov (%p36_p5, %s4253_s6), 0 }
  0x35   : > { %4229 = sst [smem:[#allocation8_spill]] %s4255_s6  ;;  %p4230_p0 = scmp.eq.s32.totalorder %s3132_s22, 0 }
  0x36   : > { %s4228_s7 = scalar_select %p3300_p1, 1, 0 }
  0x37   : > { %p3310_p7 = por %p108_p3, %p4230_p0  ;;  %p114_p9 = scmp.ne.s32.totalorder %s3096_s13, %s3092_s12 }
  0x38   : > { %s71_s25 = ssub.s32 %s3128_s21, %s4255_s6  ;;  %s203_s11 = sand.u32 1, %s3100_s14  }
  0x39   : > { %s4232_s27 = ssub.s32 %s3124_s20, %s4251_s23  ;;  %p99_p11 = scmp.eq.s32.totalorder %s71_s25, 0 }
  0x3a   : > { %s72_s8 = sor.u32 %s71_s25, %s4232_s27  ;;  %p3324_p13 = por %p114_p9, %p3293_p10 }
  0x3b   : > { %p73_p12 = scmp.eq.s32.totalorder %s72_s8, 0  ;;  %s4234_s26 = sadd.s32 1, %s3112_s17 }
  0x3c   : > { %s4233_s9 = scalar_select %p3324_p13, 1, 0 }
  0x3d   : > { %s3329_s10 = scalar_select %p99_p11, %s3100_s14, %s101_s24  }
  0x3e   : > { %s3334_s28 = scalar_select %p73_p12, %s3112_s17, %s4234_s26  }
  0x3f   : > { %s2099_s29 = sshll.u32 %s203_s11, 1  ;;  %s2112_s5 = sshll.u32 %s3128_s21, 5 }
  0x40   : > { %s3340_s6 = scalar_lea.hbm %s4214_s2, %s2112_s5  ;;  %s207_s4 = scalar_lea.vmem [#allocation4], %s2099_s29 }
  0x41   : > { %s215_s25 = sshll.u32 %s207_s4, 4  ;;  %p4235_p2 = scmp.lt.s32.totalorder %s3132_s22, 8  ;;  %s3342_s25 = int_to_ptr.vmem [resolvable:$true] %s215_s25 }
  0x42   : > { %s204_s27 = scalar_lea.sflag [#allocation5], %s203_s11  ;;  %s3008_s1 = scalar_lea.hbm %s3340_s6, 32 }
  0x43   : > { %p3348_p4 = pnand %p4235_p2, %p3310_p7  ;;  %p3009_p8 = scmp.ne.s32.totalorder %s3340_s6, %s3008_s1 }
  0x44   : > { %s3013_s15 = scalar_lea.hbm %s4214_s2, 64  ;;  %p3014_p0 = scmp.lt.u32.totalorder %s3340_s6, %s4214_s2 }
  0x45   : > { %p3010_p10 = pneg %p3348_p4  ;;  %p3015_p7 = scmp.lt.u32.totalorder %s3013_s15, %s3008_s1 }
  0x46   : > { %p3017_p11 = scmp.lt.u32.totalorder %s3008_s1, %s3340_s6 }
  0x47   : > { %p3011_p5 = pnand %p3010_p10, %p3009_p8  ;;  %p3016_p9 = por %p3015_p7, %p3014_p0 }
  0x49   : > { %p3012_p3 = pneg %p3011_p5  ;;  %p3018_p12 = por %p3017_p11, %p3016_p9 }
  0x4b   : > { %p3019_p2 = pnand %p3018_p12, %p3012_p3 }
  0x4d   : > { %3022 = shalt.err (!%p3019_p2)
}
  0x4e   : > { %s3023_s11 = scalar_lea.vmem %s3342_s25, 32  ;;  %s3138_s12 = smov [#allocation4]  }
  0x4f   : > { %p3024_p8 = scmp.ne.s32.totalorder %s3342_s25, %s3023_s11  ;;  %s3028_s4 = sshll.u32 %s3138_s12, 4  ;;  %s3029_s4 = int_to_ptr.vmem [resolvable:$false] %s3028_s4 }
  0x50   : > { %s3030_s8 = scalar_lea.vmem %s3029_s4, 64  ;;  %p3031_p1 = scmp.lt.s32.totalorder %s3342_s25, %s3029_s4 }
  0x51   : > { %p3026_p5 = pnand %p3024_p8, %p3010_p10  ;;  %p3032_p0 = scmp.lt.s32.totalorder %s3030_s8, %s3023_s11 }
  0x53   : > { %p3027_p13 = pneg %p3026_p5  ;;  %p3033_p7 = por %p3032_p0, %p3031_p1 }
  0x55   : > { %p3034_p9 = pnand %p3033_p7, %p3027_p13 }
  0x57   : > { %3037 = shalt.err (!%p3034_p9)
}
  0x58   : > { %2883 = dma.hbm_to_vmem [thread:$0]  (!%p3348_p4), %s3340_s6, 32, %s3342_s25, %s204_s27  }
  0x59   : > { %224 = sbr.rel (%p3282_p6) target bundleno = 728 (0x2d8), region = 32  ;;  %s226_s1 = sand.u32 (!%p3282_p6), 1, %s3108_s16  }
  0x5a   : > { %s2872_s26 = smul.u32 (!%p3282_p6), 5888, %s226_s1  ;;  %s227_s15 = scalar_lea.sflag (!%p3282_p6), [#allocation3], %s226_s1 }
  0x5b   : > { %p4237_p10 = scmp.ne.s32.totalorder (!%p3282_p6), %s4228_s7, 0 }
  0x5c   : > { %s3380_s29 = scalar_lea.vmem (!%p3282_p6), [#allocation2], %s2872_s26 }
  0x60   : > { %3083 = dma.done.wait (%p4237_p10), %s227_s15, 94208  }
  0x61   : > { %3085 = vsyncadd (%p4237_p10), %s227_s15, 4294873088  ;;  %s235_s24 = sand.u32 1, %s3096_s13   ;;  %p4238_p6 = scmp.ne.s32.totalorder %s4233_s9, 0 }
  0x62   : > { %s3387_s5 = sshll.u32 %s235_s24, 1  ;;  %s236_s30 = scalar_lea.sflag [#allocation5], %s235_s24 }
  0x63   : > { %s239_s6 = scalar_lea.vmem [#allocation4], %s3387_s5 }
  0x64   : > { %3087 = dma.done.wait (%p4238_p6), %s236_s30, 32  }
  0x65   : > { %3089 = vsyncadd (%p4238_p6), %s236_s30, 4294967264  ;;  %s280_s25 = smul.u32 23, %s3116_s18  ;;  %s2105_s27 = sshll.u32 %s3120_s19, 1 }
  0x66   : > { %p296_p1 = scmp.lt.s32.totalorder %s2105_s27, 3  ;;  %p2107_p4 = scmp.ne.s32.totalorder %s3116_s18, 0 }
  0x67   : > { %p283_p13 = scmp.lt.s32.totalorder %s280_s25, 91  ;;  %v3139_v0 = vmov (!%p2107_p4), 0.0  }
  0x68   : > { %s4257_s27 = smov (!%p296_p1, %s2105_s27), 3  ;;  %306 = sbr.rel (%p2107_p4) target bundleno = 111 (0x6f), region = 44 }
  0x69   : > { %s4259_s25 = smov (!%p283_p13, %s280_s25), 91  ;;  %s2106_s7 = sshll.u32 %s4257_s27, 3 }
  0x6a   : > { %s2104_s11 = sshll.u32 %s4259_s25, 3  ;;  %s3399_s8 = scalar_lea.vmem %s4215_s3, %s2106_s7 }
  0x6b   : > { %s3404_s9 = scalar_lea.vmem %s4212_s0, %s2104_s11  ;;  %307 = vst [vmem:[%s3399_s8] sm:$0xff] (!%p2107_p4), %v3139_v0  ;;  %308 = vst [vmem:[%s3399_s8 + $0x8] sm:$0xff] (!%p2107_p4), %v3139_v0 }
  0x6f PF: > { %v335_v1 = vld [vmem:[%s3380_s29 + $0x8] sm:$0xff]  ;;  %v337_v2 = vld [vmem:[%s3380_s29 + $0x18] sm:$0xff]  ;;  %v334_v6 = vld [vmem:[%s3380_s29] sm:$0xff]  ;;  %p2108_p3 = scmp.ne.s32.totalorder %s3116_s18, 3 }
  0x70   : > { %v719_v3 = vld [vmem:[%s3380_s29 + $0xc08] sm:$0xff]  ;;  %v2113_v4 = vpack.c.bf16 %v337_v2, %v335_v1  ;;  %v721_v5 = vld [vmem:[%s3380_s29 + $0xc18] sm:$0xff]  ;;  %v336_v7 = vld [vmem:[%s3380_s29 + $0x10] sm:$0xff] }
  0x71   : > { %v2497_v8 = vpack.c.bf16 %v721_v5, %v719_v3  ;;  %v2115_v9 = vpack.c.bf16 %v336_v7, %v334_v6  ;;  %v718_v10 = vld [vmem:[%s3380_s29 + $0xc00] sm:$0xff]  ;;  %v720_v11 = vld [vmem:[%s3380_s29 + $0xc10] sm:$0xff]  ;;  %v339_v12 = vld [vmem:[%s3380_s29 + $0x28] sm:$0xff] }
  0x72   : > { %2114 = vmatprep.subr.bf16.mxu1 %v2113_v4  ;;  %v2499_v13 = vpack.c.bf16 %v720_v11, %v718_v10  ;;  %v341_v14 = vld [vmem:[%s3380_s29 + $0x38] sm:$0xff]  ;;  %v723_v15 = vld [vmem:[%s3380_s29 + $0xc28] sm:$0xff]  ;;  %v338_v19 = vld [vmem:[%s3380_s29 + $0x20] sm:$0xff] }
  0x73   : > { %v725_v16 = vld [vmem:[%s3380_s29 + $0xc38] sm:$0xff]  ;;  %2498 = vmatprep.subr.bf16.mxu0 %v2497_v8  ;;  %2116 = vmatpush1.bf16.msra.mxu1 %v2115_v9  ;;  %v2117_v17 = vpack.c.bf16 %v341_v14, %v339_v12  ;;  %v340_v20 = vld [vmem:[%s3380_s29 + $0x30] sm:$0xff]  ;;  %v722_v21 = vld [vmem:[%s3380_s29 + $0xc20] sm:$0xff] }
  0x74   : > { %v2501_v18 = vpack.c.bf16 %v725_v16, %v723_v15  ;;  %2500 = vmatpush1.bf16.msra.mxu0 %v2499_v13  ;;  %v2119_v22 = vpack.c.bf16 %v340_v20, %v338_v19  ;;  %v724_v23 = vld [vmem:[%s3380_s29 + $0xc30] sm:$0xff]  ;;  %v343_v24 = vld [vmem:[%s3380_s29 + $0x48] sm:$0xff]  ;;  %v345_v25 = vld [vmem:[%s3380_s29 + $0x58] sm:$0xff] }
  0x75   : > { %2118 = vmatprep.subr.bf16.mxu1 %v2117_v17  ;;  %v2503_v26 = vpack.c.bf16 %v724_v23, %v722_v21  ;;  %v2121_v27 = vpack.c.bf16 %v345_v25, %v343_v24  ;;  %v727_v28 = vld [vmem:[%s3380_s29 + $0xc48] sm:$0xff]  ;;  %v729_v29 = vld [vmem:[%s3380_s29 + $0xc58] sm:$0xff]  ;;  %v342_v30 = vld [vmem:[%s3380_s29 + $0x40] sm:$0xff] }
  0x76   : > { %2502 = vmatprep.subr.bf16.mxu0 %v2501_v18  ;;  %v2505_v31 = vpack.c.bf16 %v729_v29, %v727_v28  ;;  %v344_v32 = vld [vmem:[%s3380_s29 + $0x50] sm:$0xff]  ;;  %v726_v33 = vld [vmem:[%s3380_s29 + $0xc40] sm:$0xff]  ;;  %v347_v36 = vld [vmem:[%s3380_s29 + $0x68] sm:$0xff] }
  0x77   : > { %v728_v34 = vld [vmem:[%s3380_s29 + $0xc50] sm:$0xff]  ;;  %2120 = vmatpush1.bf16.msra.mxu1 %v2119_v22  ;;  %v2123_v35 = vpack.c.bf16 %v344_v32, %v342_v30  ;;  %v349_v37 = vld [vmem:[%s3380_s29 + $0x78] sm:$0xff]  ;;  %v731_v38 = vld [vmem:[%s3380_s29 + $0xc68] sm:$0xff] }
  0x78   : > { %2504 = vmatpush1.bf16.msra.mxu0 %v2503_v26  ;;  %2122 = vmatprep.subr.bf16.mxu1 %v2121_v27  ;;  %v2507_v39 = vpack.c.bf16 %v728_v34, %v726_v33  ;;  %v2125_v40 = vpack.c.bf16 %v349_v37, %v347_v36  ;;  %v733_v41 = vld [vmem:[%s3380_s29 + $0xc78] sm:$0xff]  ;;  %v346_v42 = vld [vmem:[%s3380_s29 + $0x60] sm:$0xff]  ;;  %v348_v43 = vld [vmem:[%s3380_s29 + $0x70] sm:$0xff] }
  0x79   : > { %2506 = vmatprep.subr.bf16.mxu0 %v2505_v31  ;;  %v2509_v44 = vpack.c.bf16 %v733_v41, %v731_v38  ;;  %v730_v45 = vld [vmem:[%s3380_s29 + $0xc60] sm:$0xff]  ;;  %v732_v46 = vld [vmem:[%s3380_s29 + $0xc70] sm:$0xff]  ;;  %v351_v47 = vld [vmem:[%s3380_s29 + $0x88] sm:$0xff]  ;;  %v2127_v51 = vpack.c.bf16 %v348_v43, %v346_v42 }
  0x7a   : > { %v353_v48 = vld [vmem:[%s3380_s29 + $0x98] sm:$0xff]  ;;  %v735_v49 = vld [vmem:[%s3380_s29 + $0xc88] sm:$0xff]  ;;  %v2511_v52 = vpack.c.bf16 %v732_v46, %v730_v45  ;;  %v350_v54 = vld [vmem:[%s3380_s29 + $0x80] sm:$0xff] }
  0x7b   : > { %v737_v50 = vld [vmem:[%s3380_s29 + $0xc98] sm:$0xff]  ;;  %2124 = vmatpush1.bf16.msra.mxu1 %v2123_v35  ;;  %v2129_v53 = vpack.c.bf16 %v353_v48, %v351_v47  ;;  %v352_v55 = vld [vmem:[%s3380_s29 + $0x90] sm:$0xff]  ;;  %v734_v56 = vld [vmem:[%s3380_s29 + $0xc80] sm:$0xff] }
  0x7c   : > { %2508 = vmatpush1.bf16.msra.mxu0 %v2507_v39  ;;  %2126 = vmatprep.subr.bf16.mxu1 %v2125_v40  ;;  %v2513_v57 = vpack.c.bf16 %v737_v50, %v735_v49  ;;  %v736_v58 = vld [vmem:[%s3380_s29 + $0xc90] sm:$0xff]  ;;  %v355_v59 = vld [vmem:[%s3380_s29 + $0xa8] sm:$0xff]  ;;  %v357_v60 = vld [vmem:[%s3380_s29 + $0xb8] sm:$0xff]  ;;  %v2131_v63 = vpack.c.bf16 %v352_v55, %v350_v54 }
  0x7d   : > { %2510 = vmatprep.subr.bf16.mxu0 %v2509_v44  ;;  %v739_v61 = vld [vmem:[%s3380_s29 + $0xca8] sm:$0xff]  ;;  %v741_v62 = vld [vmem:[%s3380_s29 + $0xcb8] sm:$0xff]  ;;  %v2515_v0 = vpack.c.bf16 %v736_v58, %v734_v56  ;;  %v2133_v1 = vpack.c.bf16 %v357_v60, %v355_v59  ;;  %v354_v2 = vld [vmem:[%s3380_s29 + $0xa0] sm:$0xff] }
  0x7e   : > { %v356_v3 = vld [vmem:[%s3380_s29 + $0xb0] sm:$0xff]  ;;  %v738_v4 = vld [vmem:[%s3380_s29 + $0xca0] sm:$0xff]  ;;  %v2517_v5 = vpack.c.bf16 %v741_v62, %v739_v61  ;;  %v359_v7 = vld [vmem:[%s3380_s29 + $0xc8] sm:$0xff] }
  0x7f   : > { %2128 = vmatpush1.bf16.msra.mxu1 %v2127_v51  ;;  %v740_v6 = vld [vmem:[%s3380_s29 + $0xcb0] sm:$0xff]  ;;  %v361_v8 = vld [vmem:[%s3380_s29 + $0xd8] sm:$0xff]  ;;  %v743_v9 = vld [vmem:[%s3380_s29 + $0xcc8] sm:$0xff]  ;;  %v2135_v11 = vpack.c.bf16 %v356_v3, %v354_v2 }
  0x80   : > { %2512 = vmatpush1.bf16.msra.mxu0 %v2511_v52  ;;  %2130 = vmatprep.subr.bf16.mxu1 %v2129_v53  ;;  %v745_v10 = vld [vmem:[%s3380_s29 + $0xcd8] sm:$0xff]  ;;  %v2519_v12 = vpack.c.bf16 %v740_v6, %v738_v4  ;;  %v2137_v13 = vpack.c.bf16 %v361_v8, %v359_v7  ;;  %v358_v14 = vld [vmem:[%s3380_s29 + $0xc0] sm:$0xff]  ;;  %v360_v15 = vld [vmem:[%s3380_s29 + $0xd0] sm:$0xff] }
  0x81   : > { %2514 = vmatprep.subr.bf16.mxu0 %v2513_v57  ;;  %v742_v16 = vld [vmem:[%s3380_s29 + $0xcc0] sm:$0xff]  ;;  %v2521_v17 = vpack.c.bf16 %v745_v10, %v743_v9  ;;  %v744_v18 = vld [vmem:[%s3380_s29 + $0xcd0] sm:$0xff]  ;;  %v363_v19 = vld [vmem:[%s3380_s29 + $0xe8] sm:$0xff]  ;;  %v2139_v23 = vpack.c.bf16 %v360_v15, %v358_v14 }
  0x82   : > { %v365_v20 = vld [vmem:[%s3380_s29 + $0xf8] sm:$0xff]  ;;  %v747_v21 = vld [vmem:[%s3380_s29 + $0xce8] sm:$0xff]  ;;  %v2523_v24 = vpack.c.bf16 %v744_v18, %v742_v16  ;;  %v362_v26 = vld [vmem:[%s3380_s29 + $0xe0] sm:$0xff] }
  0x83   : > { %2132 = vmatpush1.bf16.msra.mxu1 %v2131_v63  ;;  %v749_v22 = vld [vmem:[%s3380_s29 + $0xcf8] sm:$0xff]  ;;  %v2141_v25 = vpack.c.bf16 %v365_v20, %v363_v19  ;;  %v364_v27 = vld [vmem:[%s3380_s29 + $0xf0] sm:$0xff]  ;;  %v746_v28 = vld [vmem:[%s3380_s29 + $0xce0] sm:$0xff] }
  0x84   : > { %2516 = vmatpush1.bf16.msra.mxu0 %v2515_v0  ;;  %2134 = vmatprep.subr.bf16.mxu1 %v2133_v1  ;;  %v2525_v29 = vpack.c.bf16 %v749_v22, %v747_v21  ;;  %v748_v30 = vld [vmem:[%s3380_s29 + $0xcf0] sm:$0xff]  ;;  %v367_v31 = vld [vmem:[%s3380_s29 + $0x108] sm:$0xff]  ;;  %v369_v32 = vld [vmem:[%s3380_s29 + $0x118] sm:$0xff]  ;;  %v2143_v35 = vpack.c.bf16 %v364_v27, %v362_v26 }
  0x85   : > { %2518 = vmatprep.subr.bf16.mxu0 %v2517_v5  ;;  %v751_v33 = vld [vmem:[%s3380_s29 + $0xd08] sm:$0xff]  ;;  %v753_v34 = vld [vmem:[%s3380_s29 + $0xd18] sm:$0xff]  ;;  %v2527_v36 = vpack.c.bf16 %v748_v30, %v746_v28  ;;  %v2145_v37 = vpack.c.bf16 %v369_v32, %v367_v31  ;;  %v366_v38 = vld [vmem:[%s3380_s29 + $0x100] sm:$0xff] }
  0x86   : > { %v368_v39 = vld [vmem:[%s3380_s29 + $0x110] sm:$0xff]  ;;  %v750_v40 = vld [vmem:[%s3380_s29 + $0xd00] sm:$0xff]  ;;  %v2529_v41 = vpack.c.bf16 %v753_v34, %v751_v33  ;;  %v371_v43 = vld [vmem:[%s3380_s29 + $0x128] sm:$0xff] }
  0x87   : > { %2136 = vmatpush1.bf16.msra.mxu1 %v2135_v11  ;;  %v752_v42 = vld [vmem:[%s3380_s29 + $0xd10] sm:$0xff]  ;;  %v373_v44 = vld [vmem:[%s3380_s29 + $0x138] sm:$0xff]  ;;  %v755_v45 = vld [vmem:[%s3380_s29 + $0xd28] sm:$0xff]  ;;  %v2147_v47 = vpack.c.bf16 %v368_v39, %v366_v38 }
  0x88   : > { %2520 = vmatpush1.bf16.msra.mxu0 %v2519_v12  ;;  %2138 = vmatprep.subr.bf16.mxu1 %v2137_v13  ;;  %v757_v46 = vld [vmem:[%s3380_s29 + $0xd38] sm:$0xff]  ;;  %v2531_v48 = vpack.c.bf16 %v752_v42, %v750_v40  ;;  %v2149_v49 = vpack.c.bf16 %v373_v44, %v371_v43  ;;  %v370_v50 = vld [vmem:[%s3380_s29 + $0x120] sm:$0xff]  ;;  %v372_v51 = vld [vmem:[%s3380_s29 + $0x130] sm:$0xff] }
  0x89   : > { %2522 = vmatprep.subr.bf16.mxu0 %v2521_v17  ;;  %v754_v52 = vld [vmem:[%s3380_s29 + $0xd20] sm:$0xff]  ;;  %v2533_v53 = vpack.c.bf16 %v757_v46, %v755_v45  ;;  %v756_v54 = vld [vmem:[%s3380_s29 + $0xd30] sm:$0xff]  ;;  %v375_v55 = vld [vmem:[%s3380_s29 + $0x148] sm:$0xff]  ;;  %v2151_v59 = vpack.c.bf16 %v372_v51, %v370_v50 }
  0x8a   : > { %v377_v56 = vld [vmem:[%s3380_s29 + $0x158] sm:$0xff]  ;;  %v759_v57 = vld [vmem:[%s3380_s29 + $0xd48] sm:$0xff]  ;;  %v2535_v60 = vpack.c.bf16 %v756_v54, %v754_v52  ;;  %v374_v62 = vld [vmem:[%s3380_s29 + $0x140] sm:$0xff] }
  0x8b   : > { %2140 = vmatpush1.bf16.msra.mxu1 %v2139_v23  ;;  %v761_v58 = vld [vmem:[%s3380_s29 + $0xd58] sm:$0xff]  ;;  %v2153_v61 = vpack.c.bf16 %v377_v56, %v375_v55  ;;  %v376_v63 = vld [vmem:[%s3380_s29 + $0x150] sm:$0xff]  ;;  %v758_v0 = vld [vmem:[%s3380_s29 + $0xd40] sm:$0xff] }
  0x8c   : > { %2524 = vmatpush1.bf16.msra.mxu0 %v2523_v24  ;;  %2142 = vmatprep.subr.bf16.mxu1 %v2141_v25  ;;  %v2537_v1 = vpack.c.bf16 %v761_v58, %v759_v57  ;;  %v760_v2 = vld [vmem:[%s3380_s29 + $0xd50] sm:$0xff]  ;;  %v379_v3 = vld [vmem:[%s3380_s29 + $0x168] sm:$0xff]  ;;  %v381_v4 = vld [vmem:[%s3380_s29 + $0x178] sm:$0xff]  ;;  %v2155_v7 = vpack.c.bf16 %v376_v63, %v374_v62 }
  0x8d   : > { %2526 = vmatprep.subr.bf16.mxu0 %v2525_v29  ;;  %v763_v5 = vld [vmem:[%s3380_s29 + $0xd68] sm:$0xff]  ;;  %v765_v6 = vld [vmem:[%s3380_s29 + $0xd78] sm:$0xff]  ;;  %v378_v8 = vld [vmem:[%s3380_s29 + $0x160] sm:$0xff]  ;;  %v2539_v9 = vpack.c.bf16 %v760_v2, %v758_v0  ;;  %v2157_v10 = vpack.c.bf16 %v381_v4, %v379_v3 }
  0x8e   : > { %v380_v11 = vld [vmem:[%s3380_s29 + $0x170] sm:$0xff]  ;;  %v762_v12 = vld [vmem:[%s3380_s29 + $0xd60] sm:$0xff]  ;;  %v2541_v14 = vpack.c.bf16 %v765_v6, %v763_v5  ;;  %v383_v15 = vld [vmem:[%s3380_s29 + $0x188] sm:$0xff] }
  0x8f   : > { %2144 = vmatpush1.bf16.msra.mxu1 %v2143_v35  ;;  %v764_v13 = vld [vmem:[%s3380_s29 + $0xd70] sm:$0xff]  ;;  %v385_v16 = vld [vmem:[%s3380_s29 + $0x198] sm:$0xff]  ;;  %v312_v17 = vld [vmem:[%s3404_s9 + $0x8] sm:$0xff]  ;;  %v2159_v21 = vpack.c.bf16 %v380_v11, %v378_v8 }
  0x90   : > { %2528 = vmatpush1.bf16.msra.mxu0 %v2527_v36  ;;  %2146 = vmatprep.subr.bf16.mxu1 %v2145_v37  ;;  %v767_v18 = vld [vmem:[%s3380_s29 + $0xd88] sm:$0xff]  ;;  %v769_v19 = vld [vmem:[%s3380_s29 + $0xd98] sm:$0xff]  ;;  %v2543_v22 = vpack.c.bf16 %v764_v13, %v762_v12  ;;  %v2161_v23 = vpack.c.bf16 %v385_v16, %v383_v15  ;;  %v382_v24 = vld [vmem:[%s3380_s29 + $0x180] sm:$0xff] }
  0x91   : > { %2530 = vmatprep.subr.bf16.mxu0 %v2529_v41  ;;  %1134 = vmatprep.mubr.f32.mxu1 %v312_v17  ;;  %v324_v20 = vld [vmem:[%s3404_s9 + $0x68] sm:$0xff]  ;;  %v384_v25 = vld [vmem:[%s3380_s29 + $0x190] sm:$0xff]  ;;  %v766_v26 = vld [vmem:[%s3380_s29 + $0xd80] sm:$0xff]  ;;  %v2545_v27 = vpack.c.bf16 %v769_v19, %v767_v18 }
  0x92   : > { %1560 = vmatprep.mubr.f32.mxu0 %v324_v20  ;;  %v768_v28 = vld [vmem:[%s3380_s29 + $0xd90] sm:$0xff]  ;;  %v387_v29 = vld [vmem:[%s3380_s29 + $0x1a8] sm:$0xff]  ;;  %v389_v30 = vld [vmem:[%s3380_s29 + $0x1b8] sm:$0xff]  ;;  %v2163_v33 = vpack.c.bf16 %v384_v25, %v382_v24 }
  0x93   : > { %2148 = vmatpush1.bf16.msra.mxu1 %v2147_v47  ;;  %v771_v31 = vld [vmem:[%s3380_s29 + $0xda8] sm:$0xff]  ;;  %v773_v32 = vld [vmem:[%s3380_s29 + $0xdb8] sm:$0xff]  ;;  %v2547_v34 = vpack.c.bf16 %v768_v28, %v766_v26  ;;  %v2165_v35 = vpack.c.bf16 %v389_v30, %v387_v29  ;;  %v386_v36 = vld [vmem:[%s3380_s29 + $0x1a0] sm:$0xff] }
  0x94   : > { %2532 = vmatpush1.bf16.msra.mxu0 %v2531_v48  ;;  %2150 = vmatprep.subr.bf16.mxu1 %v2149_v49  ;;  %v388_v37 = vld [vmem:[%s3380_s29 + $0x1b0] sm:$0xff]  ;;  %v770_v38 = vld [vmem:[%s3380_s29 + $0xda0] sm:$0xff]  ;;  %v2549_v39 = vpack.c.bf16 %v773_v32, %v771_v31  ;;  %v391_v41 = vld [vmem:[%s3380_s29 + $0x1c8] sm:$0xff] }
  0x95   : > { %2534 = vmatprep.subr.bf16.mxu0 %v2533_v53  ;;  %v772_v40 = vld [vmem:[%s3380_s29 + $0xdb0] sm:$0xff]  ;;  %v393_v42 = vld [vmem:[%s3380_s29 + $0x1d8] sm:$0xff]  ;;  %v775_v43 = vld [vmem:[%s3380_s29 + $0xdc8] sm:$0xff]  ;;  %v2167_v45 = vpack.c.bf16 %v388_v37, %v386_v36 }
  0x96   : > { %v777_v44 = vld [vmem:[%s3380_s29 + $0xdd8] sm:$0xff]  ;;  %v2551_v46 = vpack.c.bf16 %v772_v40, %v770_v38  ;;  %v2169_v47 = vpack.c.bf16 %v393_v42, %v391_v41  ;;  %v390_v48 = vld [vmem:[%s3380_s29 + $0x1c0] sm:$0xff]  ;;  %v392_v49 = vld [vmem:[%s3380_s29 + $0x1d0] sm:$0xff] }
  0x97   : > { %2152 = vmatpush1.bf16.msra.mxu1 %v2151_v59  ;;  %v774_v50 = vld [vmem:[%s3380_s29 + $0xdc0] sm:$0xff]  ;;  %v2553_v51 = vpack.c.bf16 %v777_v44, %v775_v43  ;;  %v776_v52 = vld [vmem:[%s3380_s29 + $0xdd0] sm:$0xff]  ;;  %v395_v53 = vld [vmem:[%s3380_s29 + $0x1e8] sm:$0xff]  ;;  %v2171_v57 = vpack.c.bf16 %v392_v49, %v390_v48 }
  0x98   : > { %2536 = vmatpush1.bf16.msra.mxu0 %v2535_v60  ;;  %2154 = vmatprep.subr.bf16.mxu1 %v2153_v61  ;;  %v397_v54 = vld [vmem:[%s3380_s29 + $0x1f8] sm:$0xff]  ;;  %v779_v55 = vld [vmem:[%s3380_s29 + $0xde8] sm:$0xff]  ;;  %v2555_v58 = vpack.c.bf16 %v776_v52, %v774_v50  ;;  %v394_v60 = vld [vmem:[%s3380_s29 + $0x1e0] sm:$0xff] }
  0x99   : > { %2538 = vmatprep.subr.bf16.mxu0 %v2537_v1  ;;  %v781_v56 = vld [vmem:[%s3380_s29 + $0xdf8] sm:$0xff]  ;;  %v2173_v59 = vpack.c.bf16 %v397_v54, %v395_v53  ;;  %v396_v61 = vld [vmem:[%s3380_s29 + $0x1f0] sm:$0xff]  ;;  %v778_v62 = vld [vmem:[%s3380_s29 + $0xde0] sm:$0xff] }
  0x9a   : > { %v2557_v63 = vpack.c.bf16 %v781_v56, %v779_v55  ;;  %v780_v0 = vld [vmem:[%s3380_s29 + $0xdf0] sm:$0xff]  ;;  %v399_v1 = vld [vmem:[%s3380_s29 + $0x208] sm:$0xff]  ;;  %v401_v2 = vld [vmem:[%s3380_s29 + $0x218] sm:$0xff]  ;;  %v2175_v5 = vpack.c.bf16 %v396_v61, %v394_v60 }
  0x9b   : > { %2156 = vmatpush1.bf16.msra.mxu1 %v2155_v7  ;;  %v783_v3 = vld [vmem:[%s3380_s29 + $0xe08] sm:$0xff]  ;;  %v785_v4 = vld [vmem:[%s3380_s29 + $0xe18] sm:$0xff]  ;;  %v2559_v6 = vpack.c.bf16 %v780_v0, %v778_v62  ;;  %v2177_v7 = vpack.c.bf16 %v401_v2, %v399_v1  ;;  %v398_v8 = vld [vmem:[%s3380_s29 + $0x200] sm:$0xff] }
  0x9c   : > { %2540 = vmatpush1.bf16.msra.mxu0 %v2539_v9  ;;  %2158 = vmatprep.subr.bf16.mxu1 %v2157_v10  ;;  %v400_v9 = vld [vmem:[%s3380_s29 + $0x210] sm:$0xff]  ;;  %v782_v10 = vld [vmem:[%s3380_s29 + $0xe00] sm:$0xff]  ;;  %v2561_v11 = vpack.c.bf16 %v785_v4, %v783_v3  ;;  %v403_v13 = vld [vmem:[%s3380_s29 + $0x228] sm:$0xff] }
  0x9d   : > { %2542 = vmatprep.subr.bf16.mxu0 %v2541_v14  ;;  %v784_v12 = vld [vmem:[%s3380_s29 + $0xe10] sm:$0xff]  ;;  %v405_v14 = vld [vmem:[%s3380_s29 + $0x238] sm:$0xff]  ;;  %v787_v15 = vld [vmem:[%s3380_s29 + $0xe28] sm:$0xff]  ;;  %v2179_v18 = vpack.c.bf16 %v400_v9, %v398_v8 }
  0x9e   : > { %v789_v16 = vld [vmem:[%s3380_s29 + $0xe38] sm:$0xff]  ;;  %v311_v17 = vld [vmem:[%s3404_s9] sm:$0xff]  ;;  %v2563_v20 = vpack.c.bf16 %v784_v12, %v782_v10  ;;  %v788_v26 = vld [vmem:[%s3380_s29 + $0xe30] sm:$0xff] }
  0x9f   : > { %2160 = vmatpush1.bf16.msra.mxu1 %v2159_v21  ;;  %v323_v19 = vld [vmem:[%s3404_s9 + $0x60] sm:$0xff]  ;;  %v2181_v21 = vpack.c.bf16 %v405_v14, %v403_v13  ;;  %v2565_v25 = vpack.c.bf16 %v789_v16, %v787_v15  ;;  %v409_v28 = vld [vmem:[%s3380_s29 + $0x258] sm:$0xff]  ;;  %v791_v29 = vld [vmem:[%s3380_s29 + $0xe48] sm:$0xff] }
  0xa0   : > { %2544 = vmatpush1.bf16.msra.mxu0 %v2543_v22  ;;  %2162 = vmatprep.subr.bf16.mxu1 %v2161_v23  ;;  %v402_v22 = vld [vmem:[%s3380_s29 + $0x220] sm:$0xff]  ;;  %v404_v23 = vld [vmem:[%s3380_s29 + $0x230] sm:$0xff]  ;;  %v793_v30 = vld [vmem:[%s3380_s29 + $0xe58] sm:$0xff] }
  0xa1   : > { %2546 = vmatprep.subr.bf16.mxu0 %v2545_v27  ;;  %v786_v24 = vld [vmem:[%s3380_s29 + $0xe20] sm:$0xff]  ;;  %v407_v27 = vld [vmem:[%s3380_s29 + $0x248] sm:$0xff]  ;;  %v2183_v31 = vpack.c.bf16 %v404_v23, %v402_v22  ;;  %v2569_v37 = vpack.c.bf16 %v793_v30, %v791_v29  ;;  %v792_v38 = vld [vmem:[%s3380_s29 + $0xe50] sm:$0xff] }
  0xa2   : > { %v2567_v32 = vpack.c.bf16 %v788_v26, %v786_v24  ;;  %v790_v36 = vld [vmem:[%s3380_s29 + $0xe40] sm:$0xff]  ;;  %v413_v40 = vld [vmem:[%s3380_s29 + $0x278] sm:$0xff]  ;;  %v795_v41 = vld [vmem:[%s3380_s29 + $0xe68] sm:$0xff] }
  0xa3   : > { %2164 = vmatpush1.bf16.msra.mxu1 %v2163_v33  ;;  %v2185_v33 = vpack.c.bf16 %v409_v28, %v407_v27  ;;  %v797_v42 = vld [vmem:[%s3380_s29 + $0xe78] sm:$0xff]  ;;  %v2571_v44 = vpack.c.bf16 %v792_v38, %v790_v36  ;;  %v794_v48 = vld [vmem:[%s3380_s29 + $0xe60] sm:$0xff]  ;;  %v796_v50 = vld [vmem:[%s3380_s29 + $0xe70] sm:$0xff] }
  0xa4   : > { %2548 = vmatpush1.bf16.msra.mxu0 %v2547_v34  ;;  %2166 = vmatprep.subr.bf16.mxu1 %v2165_v35  ;;  %v406_v34 = vld [vmem:[%s3380_s29 + $0x240] sm:$0xff]  ;;  %v408_v35 = vld [vmem:[%s3380_s29 + $0x250] sm:$0xff]  ;;  %v2573_v49 = vpack.c.bf16 %v797_v42, %v795_v41  ;;  %v417_v52 = vld [vmem:[%s3380_s29 + $0x298] sm:$0xff]  ;;  %v2575_v56 = vpack.c.bf16 %v796_v50, %v794_v48 }
  0xa5   : > { %2550 = vmatprep.subr.bf16.mxu0 %v2549_v39  ;;  %v411_v39 = vld [vmem:[%s3380_s29 + $0x268] sm:$0xff]  ;;  %v2187_v43 = vpack.c.bf16 %v408_v35, %v406_v34  ;;  %v801_v54 = vld [vmem:[%s3380_s29 + $0xe98] sm:$0xff]  ;;  %v798_v60 = vld [vmem:[%s3380_s29 + $0xe80] sm:$0xff] }
  0xa6   : > { %v799_v53 = vld [vmem:[%s3380_s29 + $0xe88] sm:$0xff]  ;;  %v800_v62 = vld [vmem:[%s3380_s29 + $0xe90] sm:$0xff]  ;;  %v421_v0 = vld [vmem:[%s3380_s29 + $0x2b8] sm:$0xff] }
  0xa7   : > { %2168 = vmatpush1.bf16.msra.mxu1 %v2167_v45  ;;  %v2189_v45 = vpack.c.bf16 %v413_v40, %v411_v39  ;;  %v2577_v61 = vpack.c.bf16 %v801_v54, %v799_v53  ;;  %v803_v1 = vld [vmem:[%s3380_s29 + $0xea8] sm:$0xff]  ;;  %v805_v2 = vld [vmem:[%s3380_s29 + $0xeb8] sm:$0xff]  ;;  %v2579_v4 = vpack.c.bf16 %v800_v62, %v798_v60  ;;  %v802_v8 = vld [vmem:[%s3380_s29 + $0xea0] sm:$0xff] }
  0xa8   : > { %2552 = vmatpush1.bf16.msra.mxu0 %v2551_v46  ;;  %2170 = vmatprep.subr.bf16.mxu1 %v2169_v47  ;;  %v410_v46 = vld [vmem:[%s3380_s29 + $0x260] sm:$0xff]  ;;  %v412_v47 = vld [vmem:[%s3380_s29 + $0x270] sm:$0xff]  ;;  %v2581_v9 = vpack.c.bf16 %v805_v2, %v803_v1  ;;  %v425_v12 = vld [vmem:[%s3380_s29 + $0x2d8] sm:$0xff] }
  0xa9   : > { %2554 = vmatprep.subr.bf16.mxu0 %v2553_v51  ;;  %v415_v51 = vld [vmem:[%s3380_s29 + $0x288] sm:$0xff]  ;;  %v2191_v55 = vpack.c.bf16 %v412_v47, %v410_v46  ;;  %v804_v10 = vld [vmem:[%s3380_s29 + $0xeb0] sm:$0xff]  ;;  %v809_v14 = vld [vmem:[%s3380_s29 + $0xed8] sm:$0xff] }
  0xaa   : > { %v807_v13 = vld [vmem:[%s3380_s29 + $0xec8] sm:$0xff]  ;;  %v422_v16 = vld [vmem:[%s3380_s29 + $0x2c0] sm:$0xff]  ;;  %v429_v24 = vld [vmem:[%s3380_s29 + $0x2f8] sm:$0xff] }
  0xab   : > { %2172 = vmatpush1.bf16.msra.mxu1 %v2171_v57  ;;  %v2193_v57 = vpack.c.bf16 %v417_v52, %v415_v51  ;;  %v2585_v22 = vpack.c.bf16 %v809_v14, %v807_v13  ;;  %v427_v23 = vld [vmem:[%s3380_s29 + $0x2e8] sm:$0xff]  ;;  %v813_v27 = vld [vmem:[%s3380_s29 + $0xef8] sm:$0xff]  ;;  %v810_v34 = vld [vmem:[%s3380_s29 + $0xee0] sm:$0xff] }
  0xac   : > { %2556 = vmatpush1.bf16.msra.mxu0 %v2555_v58  ;;  %2174 = vmatprep.subr.bf16.mxu1 %v2173_v59  ;;  %v414_v58 = vld [vmem:[%s3380_s29 + $0x280] sm:$0xff]  ;;  %v416_v59 = vld [vmem:[%s3380_s29 + $0x290] sm:$0xff]  ;;  %v811_v26 = vld [vmem:[%s3380_s29 + $0xee8] sm:$0xff] }
  0xad   : > { %2558 = vmatprep.subr.bf16.mxu0 %v2557_v63  ;;  %v419_v63 = vld [vmem:[%s3380_s29 + $0x2a8] sm:$0xff]  ;;  %v2195_v3 = vpack.c.bf16 %v416_v59, %v414_v58  ;;  %v326_v28 = vld [vmem:[%s3404_s9 + $0x78] sm:$0xff]  ;;  %v2589_v35 = vpack.c.bf16 %v813_v27, %v811_v26  ;;  %v812_v36 = vld [vmem:[%s3380_s29 + $0xef0] sm:$0xff] }
  0xae   : > { %v433_v38 = vld [vmem:[%s3380_s29 + $0x318] sm:$0xff]  ;;  %v815_v39 = vld [vmem:[%s3380_s29 + $0xf08] sm:$0xff]  ;;  %v2591_v42 = vpack.c.bf16 %v812_v36, %v810_v34  ;;  %v814_v46 = vld [vmem:[%s3380_s29 + $0xf00] sm:$0xff] }
  0xaf   : > { %2176 = vmatpush1.bf16.msra.mxu1 %v2175_v5  ;;  %v2197_v5 = vpack.c.bf16 %v421_v0, %v419_v63  ;;  %v817_v40 = vld [vmem:[%s3380_s29 + $0xf18] sm:$0xff]  ;;  %v816_v48 = vld [vmem:[%s3380_s29 + $0xf10] sm:$0xff]  ;;  %v819_v51 = vld [vmem:[%s3380_s29 + $0xf28] sm:$0xff] }
  0xb0   : > { %2560 = vmatpush1.bf16.msra.mxu0 %v2559_v6  ;;  %2178 = vmatprep.subr.bf16.mxu1 %v2177_v7  ;;  %v418_v6 = vld [vmem:[%s3380_s29 + $0x2a0] sm:$0xff]  ;;  %v420_v7 = vld [vmem:[%s3380_s29 + $0x2b0] sm:$0xff]  ;;  %v2593_v47 = vpack.c.bf16 %v817_v40, %v815_v39  ;;  %v437_v50 = vld [vmem:[%s3380_s29 + $0x338] sm:$0xff]  ;;  %v2595_v54 = vpack.c.bf16 %v816_v48, %v814_v46 }
  0xb1   : > { %2562 = vmatprep.subr.bf16.mxu0 %v2561_v11  ;;  %v423_v11 = vld [vmem:[%s3380_s29 + $0x2c8] sm:$0xff]  ;;  %v2199_v15 = vpack.c.bf16 %v420_v7, %v418_v6  ;;  %v821_v52 = vld [vmem:[%s3380_s29 + $0xf38] sm:$0xff]  ;;  %v818_v58 = vld [vmem:[%s3380_s29 + $0xf20] sm:$0xff] }
  0xb2   : > { %1135 = vmatmul.mubr.f32.vlgmr.msra.gmra.mrb[0].mxu1 %v311_v17  ;;  %v2583_v17 = vpack.c.bf16 %v804_v10, %v802_v8  ;;  %v2597_v59 = vpack.c.bf16 %v821_v52, %v819_v51  ;;  %v820_v60 = vld [vmem:[%s3380_s29 + $0xf30] sm:$0xff]  ;;  %v441_v62 = vld [vmem:[%s3380_s29 + $0x358] sm:$0xff]  ;;  %v823_v63 = vld [vmem:[%s3380_s29 + $0xf48] sm:$0xff] }
  0xb3   : > { %2180 = vmatpush1.bf16.msra.mxu1 %v2179_v18  ;;  %1561 = vmatmul.mubr.f32.vlgmr.msra.gmra.mrb[0].mxu0 %v323_v19  ;;  %v2201_v18 = vpack.c.bf16 %v425_v12, %v423_v11  ;;  %v424_v19 = vld [vmem:[%s3380_s29 + $0x2d0] sm:$0xff]  ;;  %v825_v0 = vld [vmem:[%s3380_s29 + $0xf58] sm:$0xff]  ;;  %v2599_v2 = vpack.c.bf16 %v820_v60, %v818_v58  ;;  %v822_v6 = vld [vmem:[%s3380_s29 + $0xf40] sm:$0xff] }
  0xb4   : > { %2564 = vmatpush1.bf16.msra.mxu0 %v2563_v20  ;;  %2182 = vmatprep.subr.bf16.mxu1 %v2181_v21  ;;  %v806_v20 = vld [vmem:[%s3380_s29 + $0xec0] sm:$0xff]  ;;  %v808_v21 = vld [vmem:[%s3380_s29 + $0xed0] sm:$0xff]  ;;  %v2203_v29 = vpack.c.bf16 %v424_v19, %v422_v16  ;;  %v2601_v7 = vpack.c.bf16 %v825_v0, %v823_v63  ;;  %v445_v10 = vld [vmem:[%s3380_s29 + $0x378] sm:$0xff] }
  0xb5   : > { %2566 = vmatprep.subr.bf16.mxu0 %v2565_v25  ;;  %v314_v25 = vld [vmem:[%s3404_s9 + $0x18] sm:$0xff]  ;;  %1631 = vmatprep.mubr.f32.mxu0 %v326_v28  ;;  %v2587_v30 = vpack.c.bf16 %v808_v21, %v806_v20  ;;  %v824_v8 = vld [vmem:[%s3380_s29 + $0xf50] sm:$0xff]  ;;  %v827_v11 = vld [vmem:[%s3380_s29 + $0xf68] sm:$0xff] }
  0xb6   : > { %1205 = vmatprep.mubr.f32.mxu1 %v314_v25  ;;  %v829_v12 = vld [vmem:[%s3380_s29 + $0xf78] sm:$0xff]  ;;  %v2603_v14 = vpack.c.bf16 %v824_v8, %v822_v6  ;;  %v442_v16 = vld [vmem:[%s3380_s29 + $0x360] sm:$0xff]  ;;  %v828_v20 = vld [vmem:[%s3380_s29 + $0xf70] sm:$0xff] }
  0xb7   : > { %2184 = vmatpush1.bf16.msra.mxu1 %v2183_v31  ;;  %v2205_v31 = vpack.c.bf16 %v429_v24, %v427_v23  ;;  %v2605_v19 = vpack.c.bf16 %v829_v12, %v827_v11  ;;  %v447_v21 = vld [vmem:[%s3380_s29 + $0x388] sm:$0xff]  ;;  %v833_v24 = vld [vmem:[%s3380_s29 + $0xf98] sm:$0xff]  ;;  %v446_v28 = vld [vmem:[%s3380_s29 + $0x380] sm:$0xff] }
  0xb8   : > { %2568 = vmatpush1.bf16.msra.mxu0 %v2567_v32  ;;  %2186 = vmatprep.subr.bf16.mxu1 %v2185_v33  ;;  %v426_v32 = vld [vmem:[%s3380_s29 + $0x2e0] sm:$0xff]  ;;  %v428_v33 = vld [vmem:[%s3380_s29 + $0x2f0] sm:$0xff]  ;;  %v831_v23 = vld [vmem:[%s3380_s29 + $0xf88] sm:$0xff] }
  0xb9   : > { %2570 = vmatprep.subr.bf16.mxu0 %v2569_v37  ;;  %v431_v37 = vld [vmem:[%s3380_s29 + $0x308] sm:$0xff]  ;;  %v2207_v41 = vpack.c.bf16 %v428_v33, %v426_v32  ;;  %v832_v32 = vld [vmem:[%s3380_s29 + $0xf90] sm:$0xff]  ;;  %v453_v34 = vld [vmem:[%s3380_s29 + $0x3b8] sm:$0xff] }
  0xba   : > { %v451_v33 = vld [vmem:[%s3380_s29 + $0x3a8] sm:$0xff]  ;;  %v837_v36 = vld [vmem:[%s3380_s29 + $0xfb8] sm:$0xff]  ;;  %v450_v40 = vld [vmem:[%s3380_s29 + $0x3a0] sm:$0xff] }
  0xbb   : > { %2188 = vmatpush1.bf16.msra.mxu1 %v2187_v43  ;;  %v2209_v43 = vpack.c.bf16 %v433_v38, %v431_v37  ;;  %v2229_v39 = vpack.c.bf16 %v453_v34, %v451_v33  ;;  %v457_v46 = vld [vmem:[%s3380_s29 + $0x3d8] sm:$0xff]  ;;  %v454_v52 = vld [vmem:[%s3380_s29 + $0x3c0] sm:$0xff]  ;;  %v855_v33 = vld [vmem:[%s3380_s29 + $0x1048] sm:$0xff] }
  0xbc   : > { %2572 = vmatpush1.bf16.msra.mxu0 %v2571_v44  ;;  %2190 = vmatprep.subr.bf16.mxu1 %v2189_v45  ;;  %v430_v44 = vld [vmem:[%s3380_s29 + $0x300] sm:$0xff]  ;;  %v432_v45 = vld [vmem:[%s3380_s29 + $0x310] sm:$0xff]  ;;  %v841_v48 = vld [vmem:[%s3380_s29 + $0xfd8] sm:$0xff] }
  0xbd   : > { %2574 = vmatprep.subr.bf16.mxu0 %v2573_v49  ;;  %v435_v49 = vld [vmem:[%s3380_s29 + $0x328] sm:$0xff]  ;;  %v2211_v53 = vpack.c.bf16 %v432_v45, %v430_v44  ;;  %v836_v44 = vld [vmem:[%s3380_s29 + $0xfb0] sm:$0xff]  ;;  %v461_v58 = vld [vmem:[%s3380_s29 + $0x3f8] sm:$0xff] }
  0xbe   : > { %v455_v45 = vld [vmem:[%s3380_s29 + $0x3c8] sm:$0xff]  ;;  %v845_v60 = vld [vmem:[%s3380_s29 + $0xff8] sm:$0xff]  ;;  %v458_v0 = vld [vmem:[%s3380_s29 + $0x3e0] sm:$0xff] }
  0xbf   : > { %2192 = vmatpush1.bf16.msra.mxu1 %v2191_v55  ;;  %v2213_v55 = vpack.c.bf16 %v437_v50, %v435_v49  ;;  %v2233_v51 = vpack.c.bf16 %v457_v46, %v455_v45  ;;  %v465_v6 = vld [vmem:[%s3380_s29 + $0x418] sm:$0xff]  ;;  %v462_v12 = vld [vmem:[%s3380_s29 + $0x400] sm:$0xff]  ;;  %v475_v45 = vld [vmem:[%s3380_s29 + $0x468] sm:$0xff] }
  0xc0   : > { %2576 = vmatpush1.bf16.msra.mxu0 %v2575_v56  ;;  %2194 = vmatprep.subr.bf16.mxu1 %v2193_v57  ;;  %v434_v56 = vld [vmem:[%s3380_s29 + $0x320] sm:$0xff]  ;;  %v436_v57 = vld [vmem:[%s3380_s29 + $0x330] sm:$0xff]  ;;  %v849_v8 = vld [vmem:[%s3380_s29 + $0x1018] sm:$0xff] }
  0xc1   : > { %2578 = vmatprep.subr.bf16.mxu0 %v2577_v61  ;;  %v439_v61 = vld [vmem:[%s3380_s29 + $0x348] sm:$0xff]  ;;  %v2215_v1 = vpack.c.bf16 %v436_v57, %v434_v56  ;;  %v840_v56 = vld [vmem:[%s3380_s29 + $0xfd0] sm:$0xff]  ;;  %v857_v34 = vld [vmem:[%s3380_s29 + $0x1058] sm:$0xff] }
  0xc2   : > { %v459_v57 = vld [vmem:[%s3380_s29 + $0x3e8] sm:$0xff]  ;;  %v477_v46 = vld [vmem:[%s3380_s29 + $0x478] sm:$0xff] }
  0xc3   : > { %2196 = vmatpush1.bf16.msra.mxu1 %v2195_v3  ;;  %v2217_v3 = vpack.c.bf16 %v441_v62, %v439_v61  ;;  %v2237_v63 = vpack.c.bf16 %v461_v58, %v459_v57  ;;  %v479_v57 = vld [vmem:[%s3380_s29 + $0x488] sm:$0xff]  ;;  %v481_v58 = vld [vmem:[%s3380_s29 + $0x498] sm:$0xff] }
  0xc4   : > { %2580 = vmatpush1.bf16.msra.mxu0 %v2579_v4  ;;  %2198 = vmatprep.subr.bf16.mxu1 %v2197_v5  ;;  %v438_v4 = vld [vmem:[%s3380_s29 + $0x340] sm:$0xff]  ;;  %v440_v5 = vld [vmem:[%s3380_s29 + $0x350] sm:$0xff] }
  0xc5   : > { %2582 = vmatprep.subr.bf16.mxu0 %v2581_v9  ;;  %v443_v9 = vld [vmem:[%s3380_s29 + $0x368] sm:$0xff]  ;;  %v2219_v13 = vpack.c.bf16 %v440_v5, %v438_v4  ;;  %v844_v4 = vld [vmem:[%s3380_s29 + $0xff0] sm:$0xff] }
  0xc6   : > { %v463_v5 = vld [vmem:[%s3380_s29 + $0x408] sm:$0xff] }
  0xc7   : > { %2200 = vmatpush1.bf16.msra.mxu1 %v2199_v15  ;;  %v2221_v15 = vpack.c.bf16 %v445_v10, %v443_v9  ;;  %v2241_v11 = vpack.c.bf16 %v465_v6, %v463_v5  ;;  %v483_v5 = vld [vmem:[%s3380_s29 + $0x4a8] sm:$0xff]  ;;  %v485_v6 = vld [vmem:[%s3380_s29 + $0x4b8] sm:$0xff] }
  0xc8   : > { %2584 = vmatpush1.bf16.msra.mxu0 %v2583_v17  ;;  %2202 = vmatprep.subr.bf16.mxu1 %v2201_v18  ;;  %v444_v17 = vld [vmem:[%s3380_s29 + $0x370] sm:$0xff]  ;;  %v826_v18 = vld [vmem:[%s3380_s29 + $0xf60] sm:$0xff] }
  0xc9   : > { %2586 = vmatprep.subr.bf16.mxu0 %v2585_v22  ;;  %v449_v22 = vld [vmem:[%s3380_s29 + $0x398] sm:$0xff]  ;;  %v2223_v25 = vpack.c.bf16 %v444_v17, %v442_v16  ;;  %v2607_v26 = vpack.c.bf16 %v828_v20, %v826_v18  ;;  %v848_v16 = vld [vmem:[%s3380_s29 + $0x1010] sm:$0xff]  ;;  %v467_v17 = vld [vmem:[%s3380_s29 + $0x428] sm:$0xff] }
  0xca   : > { %v2225_v27 = vpack.c.bf16 %v449_v22, %v447_v21  ;;  %v469_v18 = vld [vmem:[%s3380_s29 + $0x438] sm:$0xff]  ;;  %v313_v21 = vld [vmem:[%s3404_s9 + $0x10] sm:$0xff] }
  0xcb   : > { %2204 = vmatpush1.bf16.msra.mxu1 %v2203_v29  ;;  %v448_v29 = vld [vmem:[%s3380_s29 + $0x390] sm:$0xff]  ;;  %v853_v20 = vld [vmem:[%s3380_s29 + $0x1038] sm:$0xff] }
  0xcc   : > { %2588 = vmatpush1.bf16.msra.mxu0 %v2587_v30  ;;  %2206 = vmatprep.subr.bf16.mxu1 %v2205_v31  ;;  %v830_v30 = vld [vmem:[%s3380_s29 + $0xf80] sm:$0xff]  ;;  %v2609_v31 = vpack.c.bf16 %v833_v24, %v831_v23  ;;  %v2227_v37 = vpack.c.bf16 %v448_v29, %v446_v28  ;;  %v325_v23 = vld [vmem:[%s3404_s9 + $0x70] sm:$0xff] }
  0xcd   : > { %2590 = vmatprep.subr.bf16.mxu0 %v2589_v35  ;;  %v835_v35 = vld [vmem:[%s3380_s29 + $0xfa8] sm:$0xff]  ;;  %v2611_v38 = vpack.c.bf16 %v832_v32, %v830_v30  ;;  %v850_v28 = vld [vmem:[%s3380_s29 + $0x1020] sm:$0xff]  ;;  %v852_v30 = vld [vmem:[%s3380_s29 + $0x1030] sm:$0xff] }
  0xce   : > { %v473_v32 = vld [vmem:[%s3380_s29 + $0x458] sm:$0xff] }
  0xcf   : > { %2208 = vmatpush1.bf16.msra.mxu1 %v2207_v41  ;;  %v452_v41 = vld [vmem:[%s3380_s29 + $0x3b0] sm:$0xff] }
  0xd0   : > { %2592 = vmatpush1.bf16.msra.mxu0 %v2591_v42  ;;  %2210 = vmatprep.subr.bf16.mxu1 %v2209_v43  ;;  %v834_v42 = vld [vmem:[%s3380_s29 + $0xfa0] sm:$0xff]  ;;  %v2613_v43 = vpack.c.bf16 %v837_v36, %v835_v35  ;;  %v2231_v49 = vpack.c.bf16 %v452_v41, %v450_v40  ;;  %v316_v35 = vld [vmem:[%s3404_s9 + $0x28] sm:$0xff]  ;;  %v472_v41 = vld [vmem:[%s3380_s29 + $0x450] sm:$0xff] }
  0xd1   : > { %2594 = vmatprep.subr.bf16.mxu0 %v2593_v47  ;;  %v839_v47 = vld [vmem:[%s3380_s29 + $0xfc8] sm:$0xff]  ;;  %v2615_v50 = vpack.c.bf16 %v836_v44, %v834_v42  ;;  %v470_v40 = vld [vmem:[%s3380_s29 + $0x440] sm:$0xff]  ;;  %v856_v44 = vld [vmem:[%s3380_s29 + $0x1050] sm:$0xff] }
  0xd2   : > { %v854_v42 = vld [vmem:[%s3380_s29 + $0x1040] sm:$0xff] }
  0xd3   : > { %2212 = vmatpush1.bf16.msra.mxu1 %v2211_v53  ;;  %v456_v53 = vld [vmem:[%s3380_s29 + $0x3d0] sm:$0xff] }
  0xd4   : > { %2596 = vmatpush1.bf16.msra.mxu0 %v2595_v54  ;;  %2214 = vmatprep.subr.bf16.mxu1 %v2213_v55  ;;  %v838_v54 = vld [vmem:[%s3380_s29 + $0xfc0] sm:$0xff]  ;;  %v2617_v55 = vpack.c.bf16 %v841_v48, %v839_v47  ;;  %v2235_v61 = vpack.c.bf16 %v456_v53, %v454_v52  ;;  %v859_v47 = vld [vmem:[%s3380_s29 + $0x1068] sm:$0xff]  ;;  %v861_v48 = vld [vmem:[%s3380_s29 + $0x1078] sm:$0xff] }
  0xd5   : > { %2598 = vmatprep.subr.bf16.mxu0 %v2597_v59  ;;  %v843_v59 = vld [vmem:[%s3380_s29 + $0xfe8] sm:$0xff]  ;;  %v2619_v62 = vpack.c.bf16 %v840_v56, %v838_v54  ;;  %v474_v52 = vld [vmem:[%s3380_s29 + $0x460] sm:$0xff]  ;;  %v476_v53 = vld [vmem:[%s3380_s29 + $0x470] sm:$0xff] }
  0xd6   : > { %v858_v54 = vld [vmem:[%s3380_s29 + $0x1060] sm:$0xff]  ;;  %v860_v56 = vld [vmem:[%s3380_s29 + $0x1070] sm:$0xff] }
  0xd7   : > { %2216 = vmatpush1.bf16.msra.mxu1 %v2215_v1  ;;  %v460_v1 = vld [vmem:[%s3380_s29 + $0x3f0] sm:$0xff] }
  0xd8   : > { %2600 = vmatpush1.bf16.msra.mxu0 %v2599_v2  ;;  %2218 = vmatprep.subr.bf16.mxu1 %v2217_v3  ;;  %v842_v2 = vld [vmem:[%s3380_s29 + $0xfe0] sm:$0xff]  ;;  %v2621_v3 = vpack.c.bf16 %v845_v60, %v843_v59  ;;  %v2239_v9 = vpack.c.bf16 %v460_v1, %v458_v0  ;;  %v863_v59 = vld [vmem:[%s3380_s29 + $0x1088] sm:$0xff]  ;;  %v865_v60 = vld [vmem:[%s3380_s29 + $0x1098] sm:$0xff] }
  0xd9   : > { %2602 = vmatprep.subr.bf16.mxu0 %v2601_v7  ;;  %v847_v7 = vld [vmem:[%s3380_s29 + $0x1008] sm:$0xff]  ;;  %v2623_v10 = vpack.c.bf16 %v844_v4, %v842_v2  ;;  %v478_v0 = vld [vmem:[%s3380_s29 + $0x480] sm:$0xff]  ;;  %v480_v1 = vld [vmem:[%s3380_s29 + $0x490] sm:$0xff] }
  0xda   : > { %v862_v2 = vld [vmem:[%s3380_s29 + $0x1080] sm:$0xff]  ;;  %v864_v4 = vld [vmem:[%s3380_s29 + $0x1090] sm:$0xff] }
  0xdb   : > { %2220 = vmatpush1.bf16.msra.mxu1 %v2219_v13  ;;  %v464_v13 = vld [vmem:[%s3380_s29 + $0x410] sm:$0xff] }
  0xdc   : > { %2604 = vmatpush1.bf16.msra.mxu0 %v2603_v14  ;;  %2222 = vmatprep.subr.bf16.mxu1 %v2221_v15  ;;  %v846_v14 = vld [vmem:[%s3380_s29 + $0x1000] sm:$0xff]  ;;  %v2625_v15 = vpack.c.bf16 %v849_v8, %v847_v7  ;;  %v2243_v22 = vpack.c.bf16 %v464_v13, %v462_v12  ;;  %v867_v7 = vld [vmem:[%s3380_s29 + $0x10a8] sm:$0xff]  ;;  %v869_v8 = vld [vmem:[%s3380_s29 + $0x10b8] sm:$0xff] }
  0xdd   : > { %2606 = vmatprep.subr.bf16.mxu0 %v2605_v19  ;;  %v851_v19 = vld [vmem:[%s3380_s29 + $0x1028] sm:$0xff]  ;;  %v2627_v24 = vpack.c.bf16 %v848_v16, %v846_v14  ;;  %v482_v12 = vld [vmem:[%s3380_s29 + $0x4a0] sm:$0xff]  ;;  %v484_v13 = vld [vmem:[%s3380_s29 + $0x4b0] sm:$0xff] }
  0xde   : > { %v2629_v29 = vpack.c.bf16 %v853_v20, %v851_v19  ;;  %v866_v14 = vld [vmem:[%s3380_s29 + $0x10a0] sm:$0xff]  ;;  %v868_v16 = vld [vmem:[%s3380_s29 + $0x10b0] sm:$0xff]  ;;  %v871_v19 = vld [vmem:[%s3380_s29 + $0x10c8] sm:$0xff] }
  0xdf   : > { %2224 = vmatpush1.bf16.msra.mxu1 %v2223_v25  ;;  %v2245_v25 = vpack.c.bf16 %v469_v18, %v467_v17  ;;  %v487_v17 = vld [vmem:[%s3380_s29 + $0x4c8] sm:$0xff]  ;;  %v489_v18 = vld [vmem:[%s3380_s29 + $0x4d8] sm:$0xff] }
  0xe0   : > { %2608 = vmatpush1.bf16.msra.mxu0 %v2607_v26  ;;  %2226 = vmatprep.subr.bf16.mxu1 %v2225_v27  ;;  %v466_v26 = vld [vmem:[%s3380_s29 + $0x420] sm:$0xff]  ;;  %v468_v27 = vld [vmem:[%s3380_s29 + $0x430] sm:$0xff]  ;;  %v873_v20 = vld [vmem:[%s3380_s29 + $0x10d8] sm:$0xff] }
  0xe1   : > { %2610 = vmatprep.subr.bf16.mxu0 %v2609_v31  ;;  %v471_v31 = vld [vmem:[%s3380_s29 + $0x448] sm:$0xff]  ;;  %v2247_v36 = vpack.c.bf16 %v468_v27, %v466_v26  ;;  %v870_v26 = vld [vmem:[%s3380_s29 + $0x10c0] sm:$0xff]  ;;  %v2649_v27 = vpack.c.bf16 %v873_v20, %v871_v19 }
  0xe2   : > { %v506_v20 = vld [vmem:[%s3380_s29 + $0x560] sm:$0xff] }
  0xe3   : > { %2228 = vmatpush1.bf16.msra.mxu1 %v2227_v37  ;;  %v328_v37 = vld [vmem:[%s3404_s9 + $0x88] sm:$0xff] }
  0xe4   : > { %2612 = vmatpush1.bf16.msra.mxu0 %v2611_v38  ;;  %2230 = vmatprep.subr.bf16.mxu1 %v2229_v39  ;;  %v2631_v38 = vpack.c.bf16 %v852_v30, %v850_v28  ;;  %v2249_v39 = vpack.c.bf16 %v473_v32, %v471_v31  ;;  %v872_v28 = vld [vmem:[%s3380_s29 + $0x10d0] sm:$0xff]  ;;  %v493_v30 = vld [vmem:[%s3380_s29 + $0x4f8] sm:$0xff]  ;;  %v875_v31 = vld [vmem:[%s3380_s29 + $0x10e8] sm:$0xff] }
  0xe5   : > { %2614 = vmatprep.subr.bf16.mxu0 %v2613_v43  ;;  %v2633_v43 = vpack.c.bf16 %v857_v34, %v855_v33  ;;  %v877_v32 = vld [vmem:[%s3380_s29 + $0x10f8] sm:$0xff]  ;;  %v2651_v34 = vpack.c.bf16 %v872_v28, %v870_v26 }
  0xe6   : > { %v513_v26 = vld [vmem:[%s3380_s29 + $0x598] sm:$0xff] }
  0xe7   : > { %2232 = vmatpush1.bf16.msra.mxu1 %v2231_v49  ;;  %v2251_v49 = vpack.c.bf16 %v472_v41, %v470_v40  ;;  %v876_v40 = vld [vmem:[%s3380_s29 + $0x10f0] sm:$0xff]  ;;  %v495_v41 = vld [vmem:[%s3380_s29 + $0x508] sm:$0xff]  ;;  %v897_v28 = vld [vmem:[%s3380_s29 + $0x1198] sm:$0xff] }
  0xe8   : > { %2616 = vmatpush1.bf16.msra.mxu0 %v2615_v50  ;;  %2234 = vmatprep.subr.bf16.mxu1 %v2233_v51  ;;  %v2635_v50 = vpack.c.bf16 %v856_v44, %v854_v42  ;;  %v2253_v51 = vpack.c.bf16 %v477_v46, %v475_v45  ;;  %v497_v42 = vld [vmem:[%s3380_s29 + $0x518] sm:$0xff] }
  0xe9   : > { %2618 = vmatprep.subr.bf16.mxu0 %v2617_v55  ;;  %v2637_v55 = vpack.c.bf16 %v861_v48, %v859_v47  ;;  %v881_v44 = vld [vmem:[%s3380_s29 + $0x1118] sm:$0xff]  ;;  %v2273_v47 = vpack.c.bf16 %v497_v42, %v495_v41  ;;  %v494_v48 = vld [vmem:[%s3380_s29 + $0x500] sm:$0xff] }
  0xeb   : > { %2236 = vmatpush1.bf16.msra.mxu1 %v2235_v61  ;;  %v2255_v61 = vpack.c.bf16 %v476_v53, %v474_v52  ;;  %v880_v52 = vld [vmem:[%s3380_s29 + $0x1110] sm:$0xff]  ;;  %v499_v53 = vld [vmem:[%s3380_s29 + $0x528] sm:$0xff] }
  0xec   : > { %2620 = vmatpush1.bf16.msra.mxu0 %v2619_v62  ;;  %2238 = vmatprep.subr.bf16.mxu1 %v2237_v63  ;;  %v2639_v62 = vpack.c.bf16 %v860_v56, %v858_v54  ;;  %v2257_v63 = vpack.c.bf16 %v481_v58, %v479_v57  ;;  %v501_v54 = vld [vmem:[%s3380_s29 + $0x538] sm:$0xff] }
  0xed   : > { %2622 = vmatprep.subr.bf16.mxu0 %v2621_v3  ;;  %v2641_v3 = vpack.c.bf16 %v865_v60, %v863_v59  ;;  %v885_v56 = vld [vmem:[%s3380_s29 + $0x1138] sm:$0xff]  ;;  %v2277_v59 = vpack.c.bf16 %v501_v54, %v499_v53  ;;  %v498_v60 = vld [vmem:[%s3380_s29 + $0x520] sm:$0xff] }
  0xef   : > { %2240 = vmatpush1.bf16.msra.mxu1 %v2239_v9  ;;  %v2259_v9 = vpack.c.bf16 %v480_v1, %v478_v0  ;;  %v884_v0 = vld [vmem:[%s3380_s29 + $0x1130] sm:$0xff]  ;;  %v503_v1 = vld [vmem:[%s3380_s29 + $0x548] sm:$0xff] }
  0xf0   : > { %2624 = vmatpush1.bf16.msra.mxu0 %v2623_v10  ;;  %2242 = vmatprep.subr.bf16.mxu1 %v2241_v11  ;;  %v2643_v10 = vpack.c.bf16 %v864_v4, %v862_v2  ;;  %v2261_v11 = vpack.c.bf16 %v485_v6, %v483_v5  ;;  %v505_v2 = vld [vmem:[%s3380_s29 + $0x558] sm:$0xff] }
  0xf1   : > { %2626 = vmatprep.subr.bf16.mxu0 %v2625_v15  ;;  %v2645_v15 = vpack.c.bf16 %v869_v8, %v867_v7  ;;  %v889_v4 = vld [vmem:[%s3380_s29 + $0x1158] sm:$0xff]  ;;  %v2281_v7 = vpack.c.bf16 %v505_v2, %v503_v1  ;;  %v502_v8 = vld [vmem:[%s3380_s29 + $0x540] sm:$0xff] }
  0xf2   : > { %1206 = vmatmul.mubr.f32.vlgmr.msra.gmra.mrb[0].mxu1 %v313_v21  ;;  %v2263_v21 = vpack.c.bf16 %v484_v13, %v482_v12  ;;  %v888_v12 = vld [vmem:[%s3380_s29 + $0x1150] sm:$0xff]  ;;  %v507_v13 = vld [vmem:[%s3380_s29 + $0x568] sm:$0xff] }
  0xf3   : > { %2244 = vmatpush1.bf16.msra.mxu1 %v2243_v22  ;;  %1632 = vmatmul.mubr.f32.vlgmr.msra.gmra.mrb[0].mxu0 %v325_v23  ;;  %v2647_v22 = vpack.c.bf16 %v868_v16, %v866_v14  ;;  %v2265_v23 = vpack.c.bf16 %v489_v18, %v487_v17  ;;  %v509_v14 = vld [vmem:[%s3380_s29 + $0x578] sm:$0xff] }
  0xf4   : > { %2628 = vmatpush1.bf16.msra.mxu0 %v2627_v24  ;;  %2246 = vmatprep.subr.bf16.mxu1 %v2245_v25  ;;  %v486_v24 = vld [vmem:[%s3380_s29 + $0x4c0] sm:$0xff]  ;;  %v488_v25 = vld [vmem:[%s3380_s29 + $0x4d0] sm:$0xff]  ;;  %v893_v16 = vld [vmem:[%s3380_s29 + $0x1178] sm:$0xff]  ;;  %v2285_v19 = vpack.c.bf16 %v509_v14, %v507_v13 }
  0xf5   : > { %2630 = vmatprep.subr.bf16.mxu0 %v2629_v29  ;;  %1276 = vmatprep.mubr.f32.mxu1 %v316_v35  ;;  %v491_v29 = vld [vmem:[%s3380_s29 + $0x4e8] sm:$0xff]  ;;  %v2267_v33 = vpack.c.bf16 %v488_v25, %v486_v24  ;;  %v892_v24 = vld [vmem:[%s3380_s29 + $0x1170] sm:$0xff] }
  0xf6   : > { %1702 = vmatprep.mubr.f32.mxu0 %v328_v37  ;;  %v2269_v35 = vpack.c.bf16 %v493_v30, %v491_v29  ;;  %v492_v37 = vld [vmem:[%s3380_s29 + $0x4f0] sm:$0xff]  ;;  %v511_v25 = vld [vmem:[%s3380_s29 + $0x588] sm:$0xff] }
  0xf7   : > { %2248 = vmatpush1.bf16.msra.mxu1 %v2247_v36  ;;  %v490_v36 = vld [vmem:[%s3380_s29 + $0x4e0] sm:$0xff] }
  0xf8   : > { %2632 = vmatpush1.bf16.msra.mxu0 %v2631_v38  ;;  %2250 = vmatprep.subr.bf16.mxu1 %v2249_v39  ;;  %v874_v38 = vld [vmem:[%s3380_s29 + $0x10e0] sm:$0xff]  ;;  %v2653_v39 = vpack.c.bf16 %v877_v32, %v875_v31  ;;  %v2271_v45 = vpack.c.bf16 %v492_v37, %v490_v36  ;;  %v2289_v31 = vpack.c.bf16 %v513_v26, %v511_v25  ;;  %v896_v36 = vld [vmem:[%s3380_s29 + $0x1190] sm:$0xff]  ;;  %v515_v37 = vld [vmem:[%s3380_s29 + $0x5a8] sm:$0xff] }
  0xf9   : > { %2634 = vmatprep.subr.bf16.mxu0 %v2633_v43  ;;  %v879_v43 = vld [vmem:[%s3380_s29 + $0x1108] sm:$0xff]  ;;  %v2655_v46 = vpack.c.bf16 %v876_v40, %v874_v38  ;;  %v510_v32 = vld [vmem:[%s3380_s29 + $0x580] sm:$0xff]  ;;  %v517_v38 = vld [vmem:[%s3380_s29 + $0x5b8] sm:$0xff] }
  0xfa   : > { %v901_v40 = vld [vmem:[%s3380_s29 + $0x11b8] sm:$0xff]  ;;  %v315_v25 = vld [vmem:[%s3404_s9 + $0x20] sm:$0xff] }
  0xfb   : > { %2252 = vmatpush1.bf16.msra.mxu1 %v2251_v49  ;;  %v496_v49 = vld [vmem:[%s3380_s29 + $0x510] sm:$0xff] }
  0xfc   : > { %2636 = vmatpush1.bf16.msra.mxu0 %v2635_v50  ;;  %2254 = vmatprep.subr.bf16.mxu1 %v2253_v51  ;;  %v878_v50 = vld [vmem:[%s3380_s29 + $0x1100] sm:$0xff]  ;;  %v2657_v51 = vpack.c.bf16 %v881_v44, %v879_v43  ;;  %v2275_v57 = vpack.c.bf16 %v496_v49, %v494_v48  ;;  %v2293_v43 = vpack.c.bf16 %v517_v38, %v515_v37  ;;  %v900_v48 = vld [vmem:[%s3380_s29 + $0x11b0] sm:$0xff]  ;;  %v519_v49 = vld [vmem:[%s3380_s29 + $0x5c8] sm:$0xff] }
  0xfd   : > { %2638 = vmatprep.subr.bf16.mxu0 %v2637_v55  ;;  %v883_v55 = vld [vmem:[%s3380_s29 + $0x1128] sm:$0xff]  ;;  %v2659_v58 = vpack.c.bf16 %v880_v52, %v878_v50  ;;  %v514_v44 = vld [vmem:[%s3380_s29 + $0x5a0] sm:$0xff]  ;;  %v521_v50 = vld [vmem:[%s3380_s29 + $0x5d8] sm:$0xff] }
  0xfe   : > { %v905_v52 = vld [vmem:[%s3380_s29 + $0x11d8] sm:$0xff]  ;;  %v919_v37 = vld [vmem:[%s3380_s29 + $0x1248] sm:$0xff] }
  0xff   : > { %2256 = vmatpush1.bf16.msra.mxu1 %v2255_v61  ;;  %v500_v61 = vld [vmem:[%s3380_s29 + $0x530] sm:$0xff]  ;;  %v921_v38 = vld [vmem:[%s3380_s29 + $0x1258] sm:$0xff] }
 0x100   : > { %2640 = vmatpush1.bf16.msra.mxu0 %v2639_v62  ;;  %2258 = vmatprep.subr.bf16.mxu1 %v2257_v63  ;;  %v882_v62 = vld [vmem:[%s3380_s29 + $0x1120] sm:$0xff]  ;;  %v2661_v63 = vpack.c.bf16 %v885_v56, %v883_v55  ;;  %v2279_v5 = vpack.c.bf16 %v500_v61, %v498_v60  ;;  %v2297_v55 = vpack.c.bf16 %v521_v50, %v519_v49  ;;  %v904_v60 = vld [vmem:[%s3380_s29 + $0x11d0] sm:$0xff]  ;;  %v523_v61 = vld [vmem:[%s3380_s29 + $0x5e8] sm:$0xff] }
 0x101   : > { %2642 = vmatprep.subr.bf16.mxu0 %v2641_v3  ;;  %v887_v3 = vld [vmem:[%s3380_s29 + $0x1148] sm:$0xff]  ;;  %v2663_v6 = vpack.c.bf16 %v884_v0, %v882_v62  ;;  %v518_v56 = vld [vmem:[%s3380_s29 + $0x5c0] sm:$0xff]  ;;  %v525_v62 = vld [vmem:[%s3380_s29 + $0x5f8] sm:$0xff] }
 0x102   : > { %v909_v0 = vld [vmem:[%s3380_s29 + $0x11f8] sm:$0xff]  ;;  %v539_v49 = vld [vmem:[%s3380_s29 + $0x668] sm:$0xff] }
 0x103   : > { %2260 = vmatpush1.bf16.msra.mxu1 %v2259_v9  ;;  %v504_v9 = vld [vmem:[%s3380_s29 + $0x550] sm:$0xff]  ;;  %v541_v50 = vld [vmem:[%s3380_s29 + $0x678] sm:$0xff] }
 0x104   : > { %2644 = vmatpush1.bf16.msra.mxu0 %v2643_v10  ;;  %2262 = vmatprep.subr.bf16.mxu1 %v2261_v11  ;;  %v886_v10 = vld [vmem:[%s3380_s29 + $0x1140] sm:$0xff]  ;;  %v2665_v11 = vpack.c.bf16 %v889_v4, %v887_v3  ;;  %v2283_v17 = vpack.c.bf16 %v504_v9, %v502_v8  ;;  %v2301_v3 = vpack.c.bf16 %v525_v62, %v523_v61  ;;  %v908_v8 = vld [vmem:[%s3380_s29 + $0x11f0] sm:$0xff]  ;;  %v527_v9 = vld [vmem:[%s3380_s29 + $0x608] sm:$0xff] }
 0x105   : > { %2646 = vmatprep.subr.bf16.mxu0 %v2645_v15  ;;  %v891_v15 = vld [vmem:[%s3380_s29 + $0x1168] sm:$0xff]  ;;  %v2667_v18 = vpack.c.bf16 %v888_v12, %v886_v10  ;;  %v522_v4 = vld [vmem:[%s3380_s29 + $0x5e0] sm:$0xff]  ;;  %v529_v10 = vld [vmem:[%s3380_s29 + $0x618] sm:$0xff] }
 0x106   : > { %v913_v12 = vld [vmem:[%s3380_s29 + $0x1218] sm:$0xff]  ;;  %v543_v61 = vld [vmem:[%s3380_s29 + $0x688] sm:$0xff] }
 0x107   : > { %2264 = vmatpush1.bf16.msra.mxu1 %v2263_v21  ;;  %v508_v21 = vld [vmem:[%s3380_s29 + $0x570] sm:$0xff]  ;;  %v545_v62 = vld [vmem:[%s3380_s29 + $0x698] sm:$0xff] }
 0x108   : > { %2648 = vmatpush1.bf16.msra.mxu0 %v2647_v22  ;;  %2266 = vmatprep.subr.bf16.mxu1 %v2265_v23  ;;  %v890_v22 = vld [vmem:[%s3380_s29 + $0x1160] sm:$0xff]  ;;  %v2669_v23 = vpack.c.bf16 %v893_v16, %v891_v15  ;;  %v2287_v29 = vpack.c.bf16 %v508_v21, %v506_v20  ;;  %v2305_v15 = vpack.c.bf16 %v529_v10, %v527_v9  ;;  %v912_v20 = vld [vmem:[%s3380_s29 + $0x1210] sm:$0xff]  ;;  %v531_v21 = vld [vmem:[%s3380_s29 + $0x628] sm:$0xff] }
 0x109   : > { %2650 = vmatprep.subr.bf16.mxu0 %v2649_v27  ;;  %v895_v27 = vld [vmem:[%s3380_s29 + $0x1188] sm:$0xff]  ;;  %v2671_v30 = vpack.c.bf16 %v892_v24, %v890_v22  ;;  %v526_v16 = vld [vmem:[%s3380_s29 + $0x600] sm:$0xff]  ;;  %v533_v22 = vld [vmem:[%s3380_s29 + $0x638] sm:$0xff] }
 0x10a   : > { %v917_v24 = vld [vmem:[%s3380_s29 + $0x1238] sm:$0xff]  ;;  %v547_v9 = vld [vmem:[%s3380_s29 + $0x6a8] sm:$0xff] }
 0x10b   : > { %2268 = vmatpush1.bf16.msra.mxu1 %v2267_v33  ;;  %v512_v33 = vld [vmem:[%s3380_s29 + $0x590] sm:$0xff]  ;;  %v549_v10 = vld [vmem:[%s3380_s29 + $0x6b8] sm:$0xff] }
 0x10c   : > { %2652 = vmatpush1.bf16.msra.mxu0 %v2651_v34  ;;  %2270 = vmatprep.subr.bf16.mxu1 %v2269_v35  ;;  %v894_v34 = vld [vmem:[%s3380_s29 + $0x1180] sm:$0xff]  ;;  %v2673_v35 = vpack.c.bf16 %v897_v28, %v895_v27  ;;  %v2291_v41 = vpack.c.bf16 %v512_v33, %v510_v32 }
 0x10d   : > { %2654 = vmatprep.subr.bf16.mxu0 %v2653_v39  ;;  %v899_v39 = vld [vmem:[%s3380_s29 + $0x11a8] sm:$0xff]  ;;  %v2675_v42 = vpack.c.bf16 %v896_v36, %v894_v34  ;;  %v327_v27 = vld [vmem:[%s3404_s9 + $0x80] sm:$0xff]  ;;  %v916_v34 = vld [vmem:[%s3380_s29 + $0x1230] sm:$0xff] }
 0x10e   : > { %v914_v32 = vld [vmem:[%s3380_s29 + $0x1220] sm:$0xff]  ;;  %v537_v36 = vld [vmem:[%s3380_s29 + $0x658] sm:$0xff] }
 0x10f   : > { %2272 = vmatpush1.bf16.msra.mxu1 %v2271_v45  ;;  %v516_v45 = vld [vmem:[%s3380_s29 + $0x5b0] sm:$0xff] }
 0x110   : > { %2656 = vmatpush1.bf16.msra.mxu0 %v2655_v46  ;;  %2274 = vmatprep.subr.bf16.mxu1 %v2273_v47  ;;  %v898_v46 = vld [vmem:[%s3380_s29 + $0x11a0] sm:$0xff]  ;;  %v2677_v47 = vpack.c.bf16 %v901_v40, %v899_v39  ;;  %v2295_v53 = vpack.c.bf16 %v516_v45, %v514_v44  ;;  %v318_v39 = vld [vmem:[%s3404_s9 + $0x38] sm:$0xff]  ;;  %v536_v45 = vld [vmem:[%s3380_s29 + $0x650] sm:$0xff] }
 0x111   : > { %2658 = vmatprep.subr.bf16.mxu0 %v2657_v51  ;;  %v903_v51 = vld [vmem:[%s3380_s29 + $0x11c8] sm:$0xff]  ;;  %v2679_v54 = vpack.c.bf16 %v900_v48, %v898_v46  ;;  %v534_v44 = vld [vmem:[%s3380_s29 + $0x640] sm:$0xff]  ;;  %v920_v48 = vld [vmem:[%s3380_s29 + $0x1250] sm:$0xff] }
 0x112   : > { %v918_v46 = vld [vmem:[%s3380_s29 + $0x1240] sm:$0xff] }
 0x113   : > { %2276 = vmatpush1.bf16.msra.mxu1 %v2275_v57  ;;  %v520_v57 = vld [vmem:[%s3380_s29 + $0x5d0] sm:$0xff] }
 0x114   : > { %2660 = vmatpush1.bf16.msra.mxu0 %v2659_v58  ;;  %2278 = vmatprep.subr.bf16.mxu1 %v2277_v59  ;;  %v902_v58 = vld [vmem:[%s3380_s29 + $0x11c0] sm:$0xff]  ;;  %v2681_v59 = vpack.c.bf16 %v905_v52, %v903_v51  ;;  %v2299_v1 = vpack.c.bf16 %v520_v57, %v518_v56  ;;  %v923_v51 = vld [vmem:[%s3380_s29 + $0x1268] sm:$0xff]  ;;  %v925_v52 = vld [vmem:[%s3380_s29 + $0x1278] sm:$0xff] }
 0x115   : > { %2662 = vmatprep.subr.bf16.mxu0 %v2661_v63  ;;  %v907_v63 = vld [vmem:[%s3380_s29 + $0x11e8] sm:$0xff]  ;;  %v2683_v2 = vpack.c.bf16 %v904_v60, %v902_v58  ;;  %v538_v56 = vld [vmem:[%s3380_s29 + $0x660] sm:$0xff]  ;;  %v540_v57 = vld [vmem:[%s3380_s29 + $0x670] sm:$0xff] }
 0x116   : > { %v922_v58 = vld [vmem:[%s3380_s29 + $0x1260] sm:$0xff]  ;;  %v924_v60 = vld [vmem:[%s3380_s29 + $0x1270] sm:$0xff] }
 0x117   : > { %2280 = vmatpush1.bf16.msra.mxu1 %v2279_v5  ;;  %v524_v5 = vld [vmem:[%s3380_s29 + $0x5f0] sm:$0xff] }
 0x118   : > { %2664 = vmatpush1.bf16.msra.mxu0 %v2663_v6  ;;  %2282 = vmatprep.subr.bf16.mxu1 %v2281_v7  ;;  %v906_v6 = vld [vmem:[%s3380_s29 + $0x11e0] sm:$0xff]  ;;  %v2685_v7 = vpack.c.bf16 %v909_v0, %v907_v63  ;;  %v2303_v13 = vpack.c.bf16 %v524_v5, %v522_v4  ;;  %v927_v63 = vld [vmem:[%s3380_s29 + $0x1288] sm:$0xff]  ;;  %v929_v0 = vld [vmem:[%s3380_s29 + $0x1298] sm:$0xff] }
 0x119   : > { %2666 = vmatprep.subr.bf16.mxu0 %v2665_v11  ;;  %v911_v11 = vld [vmem:[%s3380_s29 + $0x1208] sm:$0xff]  ;;  %v2687_v14 = vpack.c.bf16 %v908_v8, %v906_v6  ;;  %v542_v4 = vld [vmem:[%s3380_s29 + $0x680] sm:$0xff]  ;;  %v544_v5 = vld [vmem:[%s3380_s29 + $0x690] sm:$0xff] }
 0x11a   : > { %v926_v6 = vld [vmem:[%s3380_s29 + $0x1280] sm:$0xff]  ;;  %v928_v8 = vld [vmem:[%s3380_s29 + $0x1290] sm:$0xff] }
 0x11b   : > { %2284 = vmatpush1.bf16.msra.mxu1 %v2283_v17  ;;  %v528_v17 = vld [vmem:[%s3380_s29 + $0x610] sm:$0xff] }
 0x11c   : > { %2668 = vmatpush1.bf16.msra.mxu0 %v2667_v18  ;;  %2286 = vmatprep.subr.bf16.mxu1 %v2285_v19  ;;  %v910_v18 = vld [vmem:[%s3380_s29 + $0x1200] sm:$0xff]  ;;  %v2689_v19 = vpack.c.bf16 %v913_v12, %v911_v11  ;;  %v2307_v26 = vpack.c.bf16 %v528_v17, %v526_v16  ;;  %v931_v11 = vld [vmem:[%s3380_s29 + $0x12a8] sm:$0xff]  ;;  %v933_v12 = vld [vmem:[%s3380_s29 + $0x12b8] sm:$0xff] }
 0x11d   : > { %2670 = vmatprep.subr.bf16.mxu0 %v2669_v23  ;;  %v915_v23 = vld [vmem:[%s3380_s29 + $0x1228] sm:$0xff]  ;;  %v2691_v28 = vpack.c.bf16 %v912_v20, %v910_v18  ;;  %v546_v16 = vld [vmem:[%s3380_s29 + $0x6a0] sm:$0xff]  ;;  %v548_v17 = vld [vmem:[%s3380_s29 + $0x6b0] sm:$0xff] }
 0x11e   : > { %v2693_v33 = vpack.c.bf16 %v917_v24, %v915_v23  ;;  %v930_v18 = vld [vmem:[%s3380_s29 + $0x12a0] sm:$0xff]  ;;  %v932_v20 = vld [vmem:[%s3380_s29 + $0x12b0] sm:$0xff]  ;;  %v935_v23 = vld [vmem:[%s3380_s29 + $0x12c8] sm:$0xff] }
 0x11f   : > { %2288 = vmatpush1.bf16.msra.mxu1 %v2287_v29  ;;  %v2309_v29 = vpack.c.bf16 %v533_v22, %v531_v21  ;;  %v551_v21 = vld [vmem:[%s3380_s29 + $0x6c8] sm:$0xff]  ;;  %v553_v22 = vld [vmem:[%s3380_s29 + $0x6d8] sm:$0xff] }
 0x120   : > { %2672 = vmatpush1.bf16.msra.mxu0 %v2671_v30  ;;  %2290 = vmatprep.subr.bf16.mxu1 %v2289_v31  ;;  %v530_v30 = vld [vmem:[%s3380_s29 + $0x620] sm:$0xff]  ;;  %v532_v31 = vld [vmem:[%s3380_s29 + $0x630] sm:$0xff]  ;;  %v937_v24 = vld [vmem:[%s3380_s29 + $0x12d8] sm:$0xff] }
 0x121   : > { %2674 = vmatprep.subr.bf16.mxu0 %v2673_v35  ;;  %v535_v35 = vld [vmem:[%s3380_s29 + $0x648] sm:$0xff]  ;;  %v2311_v40 = vpack.c.bf16 %v532_v31, %v530_v30  ;;  %v934_v30 = vld [vmem:[%s3380_s29 + $0x12c0] sm:$0xff]  ;;  %v2713_v31 = vpack.c.bf16 %v937_v24, %v935_v23 }
 0x122   : > { %v570_v24 = vld [vmem:[%s3380_s29 + $0x760] sm:$0xff] }
 0x123   : > { %2292 = vmatpush1.bf16.msra.mxu1 %v2291_v41  ;;  %v330_v41 = vld [vmem:[%s3404_s9 + $0x98] sm:$0xff] }
 0x124   : > { %2676 = vmatpush1.bf16.msra.mxu0 %v2675_v42  ;;  %2294 = vmatprep.subr.bf16.mxu1 %v2293_v43  ;;  %v2695_v42 = vpack.c.bf16 %v916_v34, %v914_v32  ;;  %v2313_v43 = vpack.c.bf16 %v537_v36, %v535_v35  ;;  %v936_v32 = vld [vmem:[%s3380_s29 + $0x12d0] sm:$0xff]  ;;  %v557_v34 = vld [vmem:[%s3380_s29 + $0x6f8] sm:$0xff]  ;;  %v939_v35 = vld [vmem:[%s3380_s29 + $0x12e8] sm:$0xff] }
 0x125   : > { %2678 = vmatprep.subr.bf16.mxu0 %v2677_v47  ;;  %v2697_v47 = vpack.c.bf16 %v921_v38, %v919_v37  ;;  %v941_v36 = vld [vmem:[%s3380_s29 + $0x12f8] sm:$0xff]  ;;  %v2715_v38 = vpack.c.bf16 %v936_v32, %v934_v30 }
 0x126   : > { %v577_v30 = vld [vmem:[%s3380_s29 + $0x798] sm:$0xff] }
 0x127   : > { %2296 = vmatpush1.bf16.msra.mxu1 %v2295_v53  ;;  %v2315_v53 = vpack.c.bf16 %v536_v45, %v534_v44  ;;  %v940_v44 = vld [vmem:[%s3380_s29 + $0x12f0] sm:$0xff]  ;;  %v559_v45 = vld [vmem:[%s3380_s29 + $0x708] sm:$0xff]  ;;  %v961_v32 = vld [vmem:[%s3380_s29 + $0x1398] sm:$0xff] }
 0x128   : > { %2680 = vmatpush1.bf16.msra.mxu0 %v2679_v54  ;;  %2298 = vmatprep.subr.bf16.mxu1 %v2297_v55  ;;  %v2699_v54 = vpack.c.bf16 %v920_v48, %v918_v46  ;;  %v2317_v55 = vpack.c.bf16 %v541_v50, %v539_v49  ;;  %v561_v46 = vld [vmem:[%s3380_s29 + $0x718] sm:$0xff] }
 0x129   : > { %2682 = vmatprep.subr.bf16.mxu0 %v2681_v59  ;;  %v2701_v59 = vpack.c.bf16 %v925_v52, %v923_v51  ;;  %v945_v48 = vld [vmem:[%s3380_s29 + $0x1318] sm:$0xff]  ;;  %v2337_v51 = vpack.c.bf16 %v561_v46, %v559_v45  ;;  %v558_v52 = vld [vmem:[%s3380_s29 + $0x700] sm:$0xff] }
 0x12b   : > { %2300 = vmatpush1.bf16.msra.mxu1 %v2299_v1  ;;  %v2319_v1 = vpack.c.bf16 %v540_v57, %v538_v56  ;;  %v944_v56 = vld [vmem:[%s3380_s29 + $0x1310] sm:$0xff]  ;;  %v563_v57 = vld [vmem:[%s3380_s29 + $0x728] sm:$0xff] }
 0x12c   : > { %2684 = vmatpush1.bf16.msra.mxu0 %v2683_v2  ;;  %2302 = vmatprep.subr.bf16.mxu1 %v2301_v3  ;;  %v2703_v2 = vpack.c.bf16 %v924_v60, %v922_v58  ;;  %v2321_v3 = vpack.c.bf16 %v545_v62, %v543_v61  ;;  %v565_v58 = vld [vmem:[%s3380_s29 + $0x738] sm:$0xff] }
 0x12d   : > { %2686 = vmatprep.subr.bf16.mxu0 %v2685_v7  ;;  %v2705_v7 = vpack.c.bf16 %v929_v0, %v927_v63  ;;  %v949_v60 = vld [vmem:[%s3380_s29 + $0x1338] sm:$0xff]  ;;  %v2341_v63 = vpack.c.bf16 %v565_v58, %v563_v57  ;;  %v562_v0 = vld [vmem:[%s3380_s29 + $0x720] sm:$0xff] }
 0x12f   : > { %2304 = vmatpush1.bf16.msra.mxu1 %v2303_v13  ;;  %v2323_v13 = vpack.c.bf16 %v544_v5, %v542_v4  ;;  %v948_v4 = vld [vmem:[%s3380_s29 + $0x1330] sm:$0xff]  ;;  %v567_v5 = vld [vmem:[%s3380_s29 + $0x748] sm:$0xff] }
 0x130   : > { %2688 = vmatpush1.bf16.msra.mxu0 %v2687_v14  ;;  %2306 = vmatprep.subr.bf16.mxu1 %v2305_v15  ;;  %v2707_v14 = vpack.c.bf16 %v928_v8, %v926_v6  ;;  %v2325_v15 = vpack.c.bf16 %v549_v10, %v547_v9  ;;  %v569_v6 = vld [vmem:[%s3380_s29 + $0x758] sm:$0xff] }
 0x131   : > { %2690 = vmatprep.subr.bf16.mxu0 %v2689_v19  ;;  %v2709_v19 = vpack.c.bf16 %v933_v12, %v931_v11  ;;  %v953_v8 = vld [vmem:[%s3380_s29 + $0x1358] sm:$0xff]  ;;  %v2345_v11 = vpack.c.bf16 %v569_v6, %v567_v5  ;;  %v566_v12 = vld [vmem:[%s3380_s29 + $0x740] sm:$0xff] }
 0x132   : > { %1277 = vmatmul.mubr.f32.vlgmr.msra.gmra.mrb[0].mxu1 %v315_v25  ;;  %v2327_v25 = vpack.c.bf16 %v548_v17, %v546_v16  ;;  %v952_v16 = vld [vmem:[%s3380_s29 + $0x1350] sm:$0xff]  ;;  %v571_v17 = vld [vmem:[%s3380_s29 + $0x768] sm:$0xff] }
 0x133   : > { %2308 = vmatpush1.bf16.msra.mxu1 %v2307_v26  ;;  %1703 = vmatmul.mubr.f32.vlgmr.msra.gmra.mrb[0].mxu0 %v327_v27  ;;  %v2711_v26 = vpack.c.bf16 %v932_v20, %v930_v18  ;;  %v2329_v27 = vpack.c.bf16 %v553_v22, %v551_v21  ;;  %v573_v18 = vld [vmem:[%s3380_s29 + $0x778] sm:$0xff] }
 0x134   : > { %2692 = vmatpush1.bf16.msra.mxu0 %v2691_v28  ;;  %2310 = vmatprep.subr.bf16.mxu1 %v2309_v29  ;;  %v550_v28 = vld [vmem:[%s3380_s29 + $0x6c0] sm:$0xff]  ;;  %v552_v29 = vld [vmem:[%s3380_s29 + $0x6d0] sm:$0xff]  ;;  %v957_v20 = vld [vmem:[%s3380_s29 + $0x1378] sm:$0xff]  ;;  %v2349_v23 = vpack.c.bf16 %v573_v18, %v571_v17 }
 0x135   : > { %2694 = vmatprep.subr.bf16.mxu0 %v2693_v33  ;;  %1347 = vmatprep.mubr.f32.mxu1 %v318_v39  ;;  %v555_v33 = vld [vmem:[%s3380_s29 + $0x6e8] sm:$0xff]  ;;  %v2331_v37 = vpack.c.bf16 %v552_v29, %v550_v28  ;;  %v956_v28 = vld [vmem:[%s3380_s29 + $0x1370] sm:$0xff] }
 0x136   : > { %1773 = vmatprep.mubr.f32.mxu0 %v330_v41  ;;  %v2333_v39 = vpack.c.bf16 %v557_v34, %v555_v33  ;;  %v556_v41 = vld [vmem:[%s3380_s29 + $0x6f0] sm:$0xff]  ;;  %v575_v29 = vld [vmem:[%s3380_s29 + $0x788] sm:$0xff] }
 0x137   : > { %2312 = vmatpush1.bf16.msra.mxu1 %v2311_v40  ;;  %v554_v40 = vld [vmem:[%s3380_s29 + $0x6e0] sm:$0xff] }
 0x138   : > { %2696 = vmatpush1.bf16.msra.mxu0 %v2695_v42  ;;  %2314 = vmatprep.subr.bf16.mxu1 %v2313_v43  ;;  %v938_v42 = vld [vmem:[%s3380_s29 + $0x12e0] sm:$0xff]  ;;  %v2717_v43 = vpack.c.bf16 %v941_v36, %v939_v35  ;;  %v2335_v49 = vpack.c.bf16 %v556_v41, %v554_v40  ;;  %v2353_v35 = vpack.c.bf16 %v577_v30, %v575_v29  ;;  %v960_v40 = vld [vmem:[%s3380_s29 + $0x1390] sm:$0xff]  ;;  %v579_v41 = vld [vmem:[%s3380_s29 + $0x7a8] sm:$0xff] }
 0x139   : > { %2698 = vmatprep.subr.bf16.mxu0 %v2697_v47  ;;  %v943_v47 = vld [vmem:[%s3380_s29 + $0x1308] sm:$0xff]  ;;  %v2719_v50 = vpack.c.bf16 %v940_v44, %v938_v42  ;;  %v574_v36 = vld [vmem:[%s3380_s29 + $0x780] sm:$0xff]  ;;  %v581_v42 = vld [vmem:[%s3380_s29 + $0x7b8] sm:$0xff] }
 0x13a   : > { %v965_v44 = vld [vmem:[%s3380_s29 + $0x13b8] sm:$0xff]  ;;  %v317_v29 = vld [vmem:[%s3404_s9 + $0x30] sm:$0xff] }
 0x13b   : > { %2316 = vmatpush1.bf16.msra.mxu1 %v2315_v53  ;;  %v560_v53 = vld [vmem:[%s3380_s29 + $0x710] sm:$0xff] }
 0x13c   : > { %2700 = vmatpush1.bf16.msra.mxu0 %v2699_v54  ;;  %2318 = vmatprep.subr.bf16.mxu1 %v2317_v55  ;;  %v942_v54 = vld [vmem:[%s3380_s29 + $0x1300] sm:$0xff]  ;;  %v2721_v55 = vpack.c.bf16 %v945_v48, %v943_v47  ;;  %v2339_v61 = vpack.c.bf16 %v560_v53, %v558_v52  ;;  %v2357_v47 = vpack.c.bf16 %v581_v42, %v579_v41  ;;  %v964_v52 = vld [vmem:[%s3380_s29 + $0x13b0] sm:$0xff]  ;;  %v583_v53 = vld [vmem:[%s3380_s29 + $0x7c8] sm:$0xff] }
 0x13d   : > { %2702 = vmatprep.subr.bf16.mxu0 %v2701_v59  ;;  %v947_v59 = vld [vmem:[%s3380_s29 + $0x1328] sm:$0xff]  ;;  %v2723_v62 = vpack.c.bf16 %v944_v56, %v942_v54  ;;  %v578_v48 = vld [vmem:[%s3380_s29 + $0x7a0] sm:$0xff]  ;;  %v585_v54 = vld [vmem:[%s3380_s29 + $0x7d8] sm:$0xff] }
 0x13e   : > { %v969_v56 = vld [vmem:[%s3380_s29 + $0x13d8] sm:$0xff]  ;;  %v983_v41 = vld [vmem:[%s3380_s29 + $0x1448] sm:$0xff] }
 0x13f   : > { %2320 = vmatpush1.bf16.msra.mxu1 %v2319_v1  ;;  %v564_v1 = vld [vmem:[%s3380_s29 + $0x730] sm:$0xff]  ;;  %v985_v42 = vld [vmem:[%s3380_s29 + $0x1458] sm:$0xff] }
 0x140   : > { %2704 = vmatpush1.bf16.msra.mxu0 %v2703_v2  ;;  %2322 = vmatprep.subr.bf16.mxu1 %v2321_v3  ;;  %v946_v2 = vld [vmem:[%s3380_s29 + $0x1320] sm:$0xff]  ;;  %v2725_v3 = vpack.c.bf16 %v949_v60, %v947_v59  ;;  %v2343_v9 = vpack.c.bf16 %v564_v1, %v562_v0  ;;  %v2361_v59 = vpack.c.bf16 %v585_v54, %v583_v53  ;;  %v968_v0 = vld [vmem:[%s3380_s29 + $0x13d0] sm:$0xff]  ;;  %v587_v1 = vld [vmem:[%s3380_s29 + $0x7e8] sm:$0xff] }
 0x141   : > { %2706 = vmatprep.subr.bf16.mxu0 %v2705_v7  ;;  %v951_v7 = vld [vmem:[%s3380_s29 + $0x1348] sm:$0xff]  ;;  %v2727_v10 = vpack.c.bf16 %v948_v4, %v946_v2  ;;  %v582_v60 = vld [vmem:[%s3380_s29 + $0x7c0] sm:$0xff]  ;;  %v589_v2 = vld [vmem:[%s3380_s29 + $0x7f8] sm:$0xff] }
 0x142   : > { %v973_v4 = vld [vmem:[%s3380_s29 + $0x13f8] sm:$0xff]  ;;  %v603_v53 = vld [vmem:[%s3380_s29 + $0x868] sm:$0xff] }
 0x143   : > { %2324 = vmatpush1.bf16.msra.mxu1 %v2323_v13  ;;  %v568_v13 = vld [vmem:[%s3380_s29 + $0x750] sm:$0xff]  ;;  %v605_v54 = vld [vmem:[%s3380_s29 + $0x878] sm:$0xff] }
 0x144   : > { %2708 = vmatpush1.bf16.msra.mxu0 %v2707_v14  ;;  %2326 = vmatprep.subr.bf16.mxu1 %v2325_v15  ;;  %v950_v14 = vld [vmem:[%s3380_s29 + $0x1340] sm:$0xff]  ;;  %v2729_v15 = vpack.c.bf16 %v953_v8, %v951_v7  ;;  %v2347_v21 = vpack.c.bf16 %v568_v13, %v566_v12  ;;  %v2365_v7 = vpack.c.bf16 %v589_v2, %v587_v1  ;;  %v972_v12 = vld [vmem:[%s3380_s29 + $0x13f0] sm:$0xff]  ;;  %v591_v13 = vld [vmem:[%s3380_s29 + $0x808] sm:$0xff] }
 0x145   : > { %2710 = vmatprep.subr.bf16.mxu0 %v2709_v19  ;;  %v955_v19 = vld [vmem:[%s3380_s29 + $0x1368] sm:$0xff]  ;;  %v2731_v22 = vpack.c.bf16 %v952_v16, %v950_v14  ;;  %v586_v8 = vld [vmem:[%s3380_s29 + $0x7e0] sm:$0xff]  ;;  %v593_v14 = vld [vmem:[%s3380_s29 + $0x818] sm:$0xff] }
 0x146   : > { %v977_v16 = vld [vmem:[%s3380_s29 + $0x1418] sm:$0xff]  ;;  %v607_v1 = vld [vmem:[%s3380_s29 + $0x888] sm:$0xff] }
 0x147   : > { %2328 = vmatpush1.bf16.msra.mxu1 %v2327_v25  ;;  %v572_v25 = vld [vmem:[%s3380_s29 + $0x770] sm:$0xff]  ;;  %v609_v2 = vld [vmem:[%s3380_s29 + $0x898] sm:$0xff] }
 0x148   : > { %2712 = vmatpush1.bf16.msra.mxu0 %v2711_v26  ;;  %2330 = vmatprep.subr.bf16.mxu1 %v2329_v27  ;;  %v954_v26 = vld [vmem:[%s3380_s29 + $0x1360] sm:$0xff]  ;;  %v2733_v27 = vpack.c.bf16 %v957_v20, %v955_v19  ;;  %v2351_v33 = vpack.c.bf16 %v572_v25, %v570_v24  ;;  %v2369_v19 = vpack.c.bf16 %v593_v14, %v591_v13  ;;  %v976_v24 = vld [vmem:[%s3380_s29 + $0x1410] sm:$0xff]  ;;  %v595_v25 = vld [vmem:[%s3380_s29 + $0x828] sm:$0xff] }
 0x149   : > { %2714 = vmatprep.subr.bf16.mxu0 %v2713_v31  ;;  %v959_v31 = vld [vmem:[%s3380_s29 + $0x1388] sm:$0xff]  ;;  %v2735_v34 = vpack.c.bf16 %v956_v28, %v954_v26  ;;  %v590_v20 = vld [vmem:[%s3380_s29 + $0x800] sm:$0xff]  ;;  %v597_v26 = vld [vmem:[%s3380_s29 + $0x838] sm:$0xff] }
 0x14a   : > { %v981_v28 = vld [vmem:[%s3380_s29 + $0x1438] sm:$0xff]  ;;  %v611_v13 = vld [vmem:[%s3380_s29 + $0x8a8] sm:$0xff] }
 0x14b   : > { %2332 = vmatpush1.bf16.msra.mxu1 %v2331_v37  ;;  %v576_v37 = vld [vmem:[%s3380_s29 + $0x790] sm:$0xff]  ;;  %v613_v14 = vld [vmem:[%s3380_s29 + $0x8b8] sm:$0xff] }
 0x14c   : > { %2716 = vmatpush1.bf16.msra.mxu0 %v2715_v38  ;;  %2334 = vmatprep.subr.bf16.mxu1 %v2333_v39  ;;  %v958_v38 = vld [vmem:[%s3380_s29 + $0x1380] sm:$0xff]  ;;  %v2737_v39 = vpack.c.bf16 %v961_v32, %v959_v31  ;;  %v2355_v45 = vpack.c.bf16 %v576_v37, %v574_v36  ;;  %v329_v31 = vld [vmem:[%s3404_s9 + $0x90] sm:$0xff] }
 0x14d   : > { %2718 = vmatprep.subr.bf16.mxu0 %v2717_v43  ;;  %v963_v43 = vld [vmem:[%s3380_s29 + $0x13a8] sm:$0xff]  ;;  %v2739_v46 = vpack.c.bf16 %v960_v40, %v958_v38  ;;  %v978_v36 = vld [vmem:[%s3380_s29 + $0x1420] sm:$0xff]  ;;  %v980_v38 = vld [vmem:[%s3380_s29 + $0x1430] sm:$0xff] }
 0x14e   : > { %v601_v40 = vld [vmem:[%s3380_s29 + $0x858] sm:$0xff] }
 0x14f   : > { %2336 = vmatpush1.bf16.msra.mxu1 %v2335_v49  ;;  %v580_v49 = vld [vmem:[%s3380_s29 + $0x7b0] sm:$0xff] }
 0x150   : > { %2720 = vmatpush1.bf16.msra.mxu0 %v2719_v50  ;;  %2338 = vmatprep.subr.bf16.mxu1 %v2337_v51  ;;  %v962_v50 = vld [vmem:[%s3380_s29 + $0x13a0] sm:$0xff]  ;;  %v2741_v51 = vpack.c.bf16 %v965_v44, %v963_v43  ;;  %v2359_v57 = vpack.c.bf16 %v580_v49, %v578_v48  ;;  %v320_v43 = vld [vmem:[%s3404_s9 + $0x48] sm:$0xff]  ;;  %v600_v49 = vld [vmem:[%s3380_s29 + $0x850] sm:$0xff] }
 0x151   : > { %2722 = vmatprep.subr.bf16.mxu0 %v2721_v55  ;;  %v967_v55 = vld [vmem:[%s3380_s29 + $0x13c8] sm:$0xff]  ;;  %v2743_v58 = vpack.c.bf16 %v964_v52, %v962_v50  ;;  %v598_v48 = vld [vmem:[%s3380_s29 + $0x840] sm:$0xff]  ;;  %v984_v52 = vld [vmem:[%s3380_s29 + $0x1450] sm:$0xff] }
 0x152   : > { %v982_v50 = vld [vmem:[%s3380_s29 + $0x1440] sm:$0xff] }
 0x153   : > { %2340 = vmatpush1.bf16.msra.mxu1 %v2339_v61  ;;  %v584_v61 = vld [vmem:[%s3380_s29 + $0x7d0] sm:$0xff] }
 0x154   : > { %2724 = vmatpush1.bf16.msra.mxu0 %v2723_v62  ;;  %2342 = vmatprep.subr.bf16.mxu1 %v2341_v63  ;;  %v966_v62 = vld [vmem:[%s3380_s29 + $0x13c0] sm:$0xff]  ;;  %v2745_v63 = vpack.c.bf16 %v969_v56, %v967_v55  ;;  %v2363_v5 = vpack.c.bf16 %v584_v61, %v582_v60  ;;  %v987_v55 = vld [vmem:[%s3380_s29 + $0x1468] sm:$0xff]  ;;  %v989_v56 = vld [vmem:[%s3380_s29 + $0x1478] sm:$0xff] }
 0x155   : > { %2726 = vmatprep.subr.bf16.mxu0 %v2725_v3  ;;  %v971_v3 = vld [vmem:[%s3380_s29 + $0x13e8] sm:$0xff]  ;;  %v2747_v6 = vpack.c.bf16 %v968_v0, %v966_v62  ;;  %v602_v60 = vld [vmem:[%s3380_s29 + $0x860] sm:$0xff]  ;;  %v604_v61 = vld [vmem:[%s3380_s29 + $0x870] sm:$0xff] }
 0x156   : > { %v986_v62 = vld [vmem:[%s3380_s29 + $0x1460] sm:$0xff]  ;;  %v988_v0 = vld [vmem:[%s3380_s29 + $0x1470] sm:$0xff] }
 0x157   : > { %2344 = vmatpush1.bf16.msra.mxu1 %v2343_v9  ;;  %v588_v9 = vld [vmem:[%s3380_s29 + $0x7f0] sm:$0xff] }
 0x158   : > { %2728 = vmatpush1.bf16.msra.mxu0 %v2727_v10  ;;  %2346 = vmatprep.subr.bf16.mxu1 %v2345_v11  ;;  %v970_v10 = vld [vmem:[%s3380_s29 + $0x13e0] sm:$0xff]  ;;  %v2749_v11 = vpack.c.bf16 %v973_v4, %v971_v3  ;;  %v2367_v17 = vpack.c.bf16 %v588_v9, %v586_v8  ;;  %v991_v3 = vld [vmem:[%s3380_s29 + $0x1488] sm:$0xff]  ;;  %v993_v4 = vld [vmem:[%s3380_s29 + $0x1498] sm:$0xff] }
 0x159   : > { %2730 = vmatprep.subr.bf16.mxu0 %v2729_v15  ;;  %v975_v15 = vld [vmem:[%s3380_s29 + $0x1408] sm:$0xff]  ;;  %v2751_v18 = vpack.c.bf16 %v972_v12, %v970_v10  ;;  %v606_v8 = vld [vmem:[%s3380_s29 + $0x880] sm:$0xff]  ;;  %v608_v9 = vld [vmem:[%s3380_s29 + $0x890] sm:$0xff] }
 0x15a   : > { %v990_v10 = vld [vmem:[%s3380_s29 + $0x1480] sm:$0xff]  ;;  %v992_v12 = vld [vmem:[%s3380_s29 + $0x1490] sm:$0xff] }
 0x15b   : > { %2348 = vmatpush1.bf16.msra.mxu1 %v2347_v21  ;;  %v592_v21 = vld [vmem:[%s3380_s29 + $0x810] sm:$0xff] }
 0x15c   : > { %2732 = vmatpush1.bf16.msra.mxu0 %v2731_v22  ;;  %2350 = vmatprep.subr.bf16.mxu1 %v2349_v23  ;;  %v974_v22 = vld [vmem:[%s3380_s29 + $0x1400] sm:$0xff]  ;;  %v2753_v23 = vpack.c.bf16 %v977_v16, %v975_v15  ;;  %v2371_v30 = vpack.c.bf16 %v592_v21, %v590_v20  ;;  %v995_v15 = vld [vmem:[%s3380_s29 + $0x14a8] sm:$0xff]  ;;  %v997_v16 = vld [vmem:[%s3380_s29 + $0x14b8] sm:$0xff] }
 0x15d   : > { %2734 = vmatprep.subr.bf16.mxu0 %v2733_v27  ;;  %v979_v27 = vld [vmem:[%s3380_s29 + $0x1428] sm:$0xff]  ;;  %v2755_v32 = vpack.c.bf16 %v976_v24, %v974_v22  ;;  %v610_v20 = vld [vmem:[%s3380_s29 + $0x8a0] sm:$0xff]  ;;  %v612_v21 = vld [vmem:[%s3380_s29 + $0x8b0] sm:$0xff] }
 0x15e   : > { %v2757_v37 = vpack.c.bf16 %v981_v28, %v979_v27  ;;  %v994_v22 = vld [vmem:[%s3380_s29 + $0x14a0] sm:$0xff]  ;;  %v996_v24 = vld [vmem:[%s3380_s29 + $0x14b0] sm:$0xff]  ;;  %v999_v27 = vld [vmem:[%s3380_s29 + $0x14c8] sm:$0xff] }
 0x15f   : > { %2352 = vmatpush1.bf16.msra.mxu1 %v2351_v33  ;;  %v2373_v33 = vpack.c.bf16 %v597_v26, %v595_v25  ;;  %v615_v25 = vld [vmem:[%s3380_s29 + $0x8c8] sm:$0xff]  ;;  %v617_v26 = vld [vmem:[%s3380_s29 + $0x8d8] sm:$0xff] }
 0x160   : > { %2736 = vmatpush1.bf16.msra.mxu0 %v2735_v34  ;;  %2354 = vmatprep.subr.bf16.mxu1 %v2353_v35  ;;  %v594_v34 = vld [vmem:[%s3380_s29 + $0x820] sm:$0xff]  ;;  %v596_v35 = vld [vmem:[%s3380_s29 + $0x830] sm:$0xff]  ;;  %v1001_v28 = vld [vmem:[%s3380_s29 + $0x14d8] sm:$0xff] }
 0x161   : > { %2738 = vmatprep.subr.bf16.mxu0 %v2737_v39  ;;  %v599_v39 = vld [vmem:[%s3380_s29 + $0x848] sm:$0xff]  ;;  %v2375_v44 = vpack.c.bf16 %v596_v35, %v594_v34  ;;  %v998_v34 = vld [vmem:[%s3380_s29 + $0x14c0] sm:$0xff]  ;;  %v2777_v35 = vpack.c.bf16 %v1001_v28, %v999_v27 }
 0x162   : > { %v634_v28 = vld [vmem:[%s3380_s29 + $0x960] sm:$0xff] }
 0x163   : > { %2356 = vmatpush1.bf16.msra.mxu1 %v2355_v45  ;;  %v332_v45 = vld [vmem:[%s3404_s9 + $0xa8] sm:$0xff] }
 0x164   : > { %2740 = vmatpush1.bf16.msra.mxu0 %v2739_v46  ;;  %2358 = vmatprep.subr.bf16.mxu1 %v2357_v47  ;;  %v2759_v46 = vpack.c.bf16 %v980_v38, %v978_v36  ;;  %v2377_v47 = vpack.c.bf16 %v601_v40, %v599_v39  ;;  %v1000_v36 = vld [vmem:[%s3380_s29 + $0x14d0] sm:$0xff]  ;;  %v621_v38 = vld [vmem:[%s3380_s29 + $0x8f8] sm:$0xff]  ;;  %v1003_v39 = vld [vmem:[%s3380_s29 + $0x14e8] sm:$0xff] }
 0x165   : > { %2742 = vmatprep.subr.bf16.mxu0 %v2741_v51  ;;  %v2761_v51 = vpack.c.bf16 %v985_v42, %v983_v41  ;;  %v1005_v40 = vld [vmem:[%s3380_s29 + $0x14f8] sm:$0xff]  ;;  %v2779_v42 = vpack.c.bf16 %v1000_v36, %v998_v34 }
 0x166   : > { %v641_v34 = vld [vmem:[%s3380_s29 + $0x998] sm:$0xff] }
 0x167   : > { %2360 = vmatpush1.bf16.msra.mxu1 %v2359_v57  ;;  %v2379_v57 = vpack.c.bf16 %v600_v49, %v598_v48  ;;  %v1004_v48 = vld [vmem:[%s3380_s29 + $0x14f0] sm:$0xff]  ;;  %v623_v49 = vld [vmem:[%s3380_s29 + $0x908] sm:$0xff]  ;;  %v1025_v36 = vld [vmem:[%s3380_s29 + $0x1598] sm:$0xff] }
 0x168   : > { %2744 = vmatpush1.bf16.msra.mxu0 %v2743_v58  ;;  %2362 = vmatprep.subr.bf16.mxu1 %v2361_v59  ;;  %v2763_v58 = vpack.c.bf16 %v984_v52, %v982_v50  ;;  %v2381_v59 = vpack.c.bf16 %v605_v54, %v603_v53  ;;  %v625_v50 = vld [vmem:[%s3380_s29 + $0x918] sm:$0xff] }
 0x169   : > { %2746 = vmatprep.subr.bf16.mxu0 %v2745_v63  ;;  %v2765_v63 = vpack.c.bf16 %v989_v56, %v987_v55  ;;  %v1009_v52 = vld [vmem:[%s3380_s29 + $0x1518] sm:$0xff]  ;;  %v2401_v55 = vpack.c.bf16 %v625_v50, %v623_v49  ;;  %v622_v56 = vld [vmem:[%s3380_s29 + $0x900] sm:$0xff] }
 0x16b   : > { %2364 = vmatpush1.bf16.msra.mxu1 %v2363_v5  ;;  %v2383_v5 = vpack.c.bf16 %v604_v61, %v602_v60  ;;  %v1008_v60 = vld [vmem:[%s3380_s29 + $0x1510] sm:$0xff]  ;;  %v627_v61 = vld [vmem:[%s3380_s29 + $0x928] sm:$0xff] }
 0x16c   : > { %2748 = vmatpush1.bf16.msra.mxu0 %v2747_v6  ;;  %2366 = vmatprep.subr.bf16.mxu1 %v2365_v7  ;;  %v2767_v6 = vpack.c.bf16 %v988_v0, %v986_v62  ;;  %v2385_v7 = vpack.c.bf16 %v609_v2, %v607_v1  ;;  %v629_v62 = vld [vmem:[%s3380_s29 + $0x938] sm:$0xff] }
 0x16d   : > { %2750 = vmatprep.subr.bf16.mxu0 %v2749_v11  ;;  %v2769_v11 = vpack.c.bf16 %v993_v4, %v991_v3  ;;  %v1013_v0 = vld [vmem:[%s3380_s29 + $0x1538] sm:$0xff]  ;;  %v2405_v3 = vpack.c.bf16 %v629_v62, %v627_v61  ;;  %v626_v4 = vld [vmem:[%s3380_s29 + $0x920] sm:$0xff] }
 0x16f   : > { %2368 = vmatpush1.bf16.msra.mxu1 %v2367_v17  ;;  %v2387_v17 = vpack.c.bf16 %v608_v9, %v606_v8  ;;  %v1012_v8 = vld [vmem:[%s3380_s29 + $0x1530] sm:$0xff]  ;;  %v631_v9 = vld [vmem:[%s3380_s29 + $0x948] sm:$0xff] }
 0x170   : > { %2752 = vmatpush1.bf16.msra.mxu0 %v2751_v18  ;;  %2370 = vmatprep.subr.bf16.mxu1 %v2369_v19  ;;  %v2771_v18 = vpack.c.bf16 %v992_v12, %v990_v10  ;;  %v2389_v19 = vpack.c.bf16 %v613_v14, %v611_v13  ;;  %v633_v10 = vld [vmem:[%s3380_s29 + $0x958] sm:$0xff] }
 0x171   : > { %2754 = vmatprep.subr.bf16.mxu0 %v2753_v23  ;;  %v2773_v23 = vpack.c.bf16 %v997_v16, %v995_v15  ;;  %v1017_v12 = vld [vmem:[%s3380_s29 + $0x1558] sm:$0xff]  ;;  %v2409_v15 = vpack.c.bf16 %v633_v10, %v631_v9  ;;  %v630_v16 = vld [vmem:[%s3380_s29 + $0x940] sm:$0xff] }
 0x172   : > { %1348 = vmatmul.mubr.f32.vlgmr.msra.gmra.mrb[0].mxu1 %v317_v29  ;;  %v2391_v29 = vpack.c.bf16 %v612_v21, %v610_v20  ;;  %v1016_v20 = vld [vmem:[%s3380_s29 + $0x1550] sm:$0xff]  ;;  %v635_v21 = vld [vmem:[%s3380_s29 + $0x968] sm:$0xff] }
 0x173   : > { %2372 = vmatpush1.bf16.msra.mxu1 %v2371_v30  ;;  %1774 = vmatmul.mubr.f32.vlgmr.msra.gmra.mrb[0].mxu0 %v329_v31  ;;  %v2775_v30 = vpack.c.bf16 %v996_v24, %v994_v22  ;;  %v2393_v31 = vpack.c.bf16 %v617_v26, %v615_v25  ;;  %v637_v22 = vld [vmem:[%s3380_s29 + $0x978] sm:$0xff] }
 0x174   : > { %2756 = vmatpush1.bf16.msra.mxu0 %v2755_v32  ;;  %2374 = vmatprep.subr.bf16.mxu1 %v2373_v33  ;;  %v614_v32 = vld [vmem:[%s3380_s29 + $0x8c0] sm:$0xff]  ;;  %v616_v33 = vld [vmem:[%s3380_s29 + $0x8d0] sm:$0xff]  ;;  %v1021_v24 = vld [vmem:[%s3380_s29 + $0x1578] sm:$0xff]  ;;  %v2413_v27 = vpack.c.bf16 %v637_v22, %v635_v21 }
 0x175   : > { %2758 = vmatprep.subr.bf16.mxu0 %v2757_v37  ;;  %1418 = vmatprep.mubr.f32.mxu1 %v320_v43  ;;  %v619_v37 = vld [vmem:[%s3380_s29 + $0x8e8] sm:$0xff]  ;;  %v2395_v41 = vpack.c.bf16 %v616_v33, %v614_v32  ;;  %v1020_v32 = vld [vmem:[%s3380_s29 + $0x1570] sm:$0xff] }
 0x176   : > { %1844 = vmatprep.mubr.f32.mxu0 %v332_v45  ;;  %v2397_v43 = vpack.c.bf16 %v621_v38, %v619_v37  ;;  %v620_v45 = vld [vmem:[%s3380_s29 + $0x8f0] sm:$0xff]  ;;  %v639_v33 = vld [vmem:[%s3380_s29 + $0x988] sm:$0xff] }
 0x177   : > { %2376 = vmatpush1.bf16.msra.mxu1 %v2375_v44  ;;  %v618_v44 = vld [vmem:[%s3380_s29 + $0x8e0] sm:$0xff] }
 0x178   : > { %2760 = vmatpush1.bf16.msra.mxu0 %v2759_v46  ;;  %2378 = vmatprep.subr.bf16.mxu1 %v2377_v47  ;;  %v1002_v46 = vld [vmem:[%s3380_s29 + $0x14e0] sm:$0xff]  ;;  %v2781_v47 = vpack.c.bf16 %v1005_v40, %v1003_v39  ;;  %v2399_v53 = vpack.c.bf16 %v620_v45, %v618_v44  ;;  %v2417_v39 = vpack.c.bf16 %v641_v34, %v639_v33  ;;  %v1024_v44 = vld [vmem:[%s3380_s29 + $0x1590] sm:$0xff]  ;;  %v643_v45 = vld [vmem:[%s3380_s29 + $0x9a8] sm:$0xff] }
 0x179   : > { %2762 = vmatprep.subr.bf16.mxu0 %v2761_v51  ;;  %v1007_v51 = vld [vmem:[%s3380_s29 + $0x1508] sm:$0xff]  ;;  %v2783_v54 = vpack.c.bf16 %v1004_v48, %v1002_v46  ;;  %v638_v40 = vld [vmem:[%s3380_s29 + $0x980] sm:$0xff]  ;;  %v645_v46 = vld [vmem:[%s3380_s29 + $0x9b8] sm:$0xff] }
 0x17a   : > { %v1029_v48 = vld [vmem:[%s3380_s29 + $0x15b8] sm:$0xff]  ;;  %v319_v33 = vld [vmem:[%s3404_s9 + $0x40] sm:$0xff] }
 0x17b   : > { %2380 = vmatpush1.bf16.msra.mxu1 %v2379_v57  ;;  %v624_v57 = vld [vmem:[%s3380_s29 + $0x910] sm:$0xff] }
 0x17c   : > { %2764 = vmatpush1.bf16.msra.mxu0 %v2763_v58  ;;  %2382 = vmatprep.subr.bf16.mxu1 %v2381_v59  ;;  %v1006_v58 = vld [vmem:[%s3380_s29 + $0x1500] sm:$0xff]  ;;  %v2785_v59 = vpack.c.bf16 %v1009_v52, %v1007_v51  ;;  %v2403_v1 = vpack.c.bf16 %v624_v57, %v622_v56  ;;  %v2421_v51 = vpack.c.bf16 %v645_v46, %v643_v45  ;;  %v1028_v56 = vld [vmem:[%s3380_s29 + $0x15b0] sm:$0xff]  ;;  %v647_v57 = vld [vmem:[%s3380_s29 + $0x9c8] sm:$0xff] }
 0x17d   : > { %2766 = vmatprep.subr.bf16.mxu0 %v2765_v63  ;;  %v1011_v63 = vld [vmem:[%s3380_s29 + $0x1528] sm:$0xff]  ;;  %v2787_v2 = vpack.c.bf16 %v1008_v60, %v1006_v58  ;;  %v642_v52 = vld [vmem:[%s3380_s29 + $0x9a0] sm:$0xff]  ;;  %v649_v58 = vld [vmem:[%s3380_s29 + $0x9d8] sm:$0xff] }
 0x17e   : > { %v1033_v60 = vld [vmem:[%s3380_s29 + $0x15d8] sm:$0xff]  ;;  %v1047_v45 = vld [vmem:[%s3380_s29 + $0x1648] sm:$0xff] }
 0x17f   : > { %2384 = vmatpush1.bf16.msra.mxu1 %v2383_v5  ;;  %v628_v5 = vld [vmem:[%s3380_s29 + $0x930] sm:$0xff]  ;;  %v1049_v46 = vld [vmem:[%s3380_s29 + $0x1658] sm:$0xff] }
 0x180   : > { %2768 = vmatpush1.bf16.msra.mxu0 %v2767_v6  ;;  %2386 = vmatprep.subr.bf16.mxu1 %v2385_v7  ;;  %v1010_v6 = vld [vmem:[%s3380_s29 + $0x1520] sm:$0xff]  ;;  %v2789_v7 = vpack.c.bf16 %v1013_v0, %v1011_v63  ;;  %v2407_v13 = vpack.c.bf16 %v628_v5, %v626_v4  ;;  %v2425_v63 = vpack.c.bf16 %v649_v58, %v647_v57  ;;  %v1032_v4 = vld [vmem:[%s3380_s29 + $0x15d0] sm:$0xff]  ;;  %v651_v5 = vld [vmem:[%s3380_s29 + $0x9e8] sm:$0xff]  ;;  %v3140_v58 = vmov 0.0  }
 0x181   : > { %2770 = vmatprep.subr.bf16.mxu0 %v2769_v11  ;;  %v1015_v11 = vld [vmem:[%s3380_s29 + $0x1548] sm:$0xff]  ;;  %v2791_v14 = vpack.c.bf16 %v1012_v8, %v1010_v6  ;;  %v646_v0 = vld [vmem:[%s3380_s29 + $0x9c0] sm:$0xff]  ;;  %v653_v6 = vld [vmem:[%s3380_s29 + $0x9f8] sm:$0xff] }
 0x182   : > { %v1037_v8 = vld [vmem:[%s3380_s29 + $0x15f8] sm:$0xff] }
 0x183   : > { %2388 = vmatpush1.bf16.msra.mxu1 %v2387_v17  ;;  %v632_v17 = vld [vmem:[%s3380_s29 + $0x950] sm:$0xff]  ;;  %v669_v57 = vld [vmem:[%s3380_s29 + $0xa78] sm:$0xff] }
 0x184   : > { %2772 = vmatpush1.bf16.msra.mxu0 %v2771_v18  ;;  %2390 = vmatprep.subr.bf16.mxu1 %v2389_v19  ;;  %v1014_v18 = vld [vmem:[%s3380_s29 + $0x1540] sm:$0xff]  ;;  %v2793_v19 = vpack.c.bf16 %v1017_v12, %v1015_v11  ;;  %v2411_v25 = vpack.c.bf16 %v632_v17, %v630_v16  ;;  %v2429_v11 = vpack.c.bf16 %v653_v6, %v651_v5  ;;  %v1036_v16 = vld [vmem:[%s3380_s29 + $0x15f0] sm:$0xff]  ;;  %v655_v17 = vld [vmem:[%s3380_s29 + $0xa08] sm:$0xff] }
 0x185   : > { %2774 = vmatprep.subr.bf16.mxu0 %v2773_v23  ;;  %v1019_v23 = vld [vmem:[%s3380_s29 + $0x1568] sm:$0xff]  ;;  %v2795_v26 = vpack.c.bf16 %v1016_v20, %v1014_v18  ;;  %v650_v12 = vld [vmem:[%s3380_s29 + $0x9e0] sm:$0xff]  ;;  %v657_v18 = vld [vmem:[%s3380_s29 + $0xa18] sm:$0xff] }
 0x186   : > { %v1041_v20 = vld [vmem:[%s3380_s29 + $0x1618] sm:$0xff]  ;;  %v671_v5 = vld [vmem:[%s3380_s29 + $0xa88] sm:$0xff] }
 0x187   : > { %2392 = vmatpush1.bf16.msra.mxu1 %v2391_v29  ;;  %v636_v29 = vld [vmem:[%s3380_s29 + $0x970] sm:$0xff]  ;;  %v673_v6 = vld [vmem:[%s3380_s29 + $0xa98] sm:$0xff] }
 0x188   : > { %2776 = vmatpush1.bf16.msra.mxu0 %v2775_v30  ;;  %2394 = vmatprep.subr.bf16.mxu1 %v2393_v31  ;;  %v1018_v30 = vld [vmem:[%s3380_s29 + $0x1560] sm:$0xff]  ;;  %v2797_v31 = vpack.c.bf16 %v1021_v24, %v1019_v23  ;;  %v2415_v37 = vpack.c.bf16 %v636_v29, %v634_v28  ;;  %v2433_v23 = vpack.c.bf16 %v657_v18, %v655_v17  ;;  %v1040_v28 = vld [vmem:[%s3380_s29 + $0x1610] sm:$0xff]  ;;  %v659_v29 = vld [vmem:[%s3380_s29 + $0xa28] sm:$0xff] }
 0x189   : > { %2778 = vmatprep.subr.bf16.mxu0 %v2777_v35  ;;  %v1023_v35 = vld [vmem:[%s3380_s29 + $0x1588] sm:$0xff]  ;;  %v2799_v38 = vpack.c.bf16 %v1020_v32, %v1018_v30  ;;  %v654_v24 = vld [vmem:[%s3380_s29 + $0xa00] sm:$0xff]  ;;  %v661_v30 = vld [vmem:[%s3380_s29 + $0xa38] sm:$0xff] }
 0x18a   : > { %v1045_v32 = vld [vmem:[%s3380_s29 + $0x1638] sm:$0xff]  ;;  %v675_v17 = vld [vmem:[%s3380_s29 + $0xaa8] sm:$0xff] }
 0x18b   : > { %2396 = vmatpush1.bf16.msra.mxu1 %v2395_v41  ;;  %v640_v41 = vld [vmem:[%s3380_s29 + $0x990] sm:$0xff]  ;;  %v677_v18 = vld [vmem:[%s3380_s29 + $0xab8] sm:$0xff] }
 0x18c   : > { %2780 = vmatpush1.bf16.msra.mxu0 %v2779_v42  ;;  %2398 = vmatprep.subr.bf16.mxu1 %v2397_v43  ;;  %v1022_v42 = vld [vmem:[%s3380_s29 + $0x1580] sm:$0xff]  ;;  %v2801_v43 = vpack.c.bf16 %v1025_v36, %v1023_v35  ;;  %v2419_v49 = vpack.c.bf16 %v640_v41, %v638_v40 }
 0x18d   : > { %2782 = vmatprep.subr.bf16.mxu0 %v2781_v47  ;;  %v1027_v47 = vld [vmem:[%s3380_s29 + $0x15a8] sm:$0xff]  ;;  %v2803_v50 = vpack.c.bf16 %v1024_v44, %v1022_v42  ;;  %v331_v35 = vld [vmem:[%s3404_s9 + $0xa0] sm:$0xff]  ;;  %v1044_v42 = vld [vmem:[%s3380_s29 + $0x1630] sm:$0xff] }
 0x18e   : > { %v1042_v40 = vld [vmem:[%s3380_s29 + $0x1620] sm:$0xff]  ;;  %v665_v44 = vld [vmem:[%s3380_s29 + $0xa58] sm:$0xff] }
 0x18f   : > { %2400 = vmatpush1.bf16.msra.mxu1 %v2399_v53  ;;  %v644_v53 = vld [vmem:[%s3380_s29 + $0x9b0] sm:$0xff] }
 0x190   : > { %2784 = vmatpush1.bf16.msra.mxu0 %v2783_v54  ;;  %2402 = vmatprep.subr.bf16.mxu1 %v2401_v55  ;;  %v1026_v54 = vld [vmem:[%s3380_s29 + $0x15a0] sm:$0xff]  ;;  %v2805_v55 = vpack.c.bf16 %v1029_v48, %v1027_v47  ;;  %v2423_v61 = vpack.c.bf16 %v644_v53, %v642_v52  ;;  %v322_v48 = vld [vmem:[%s3404_s9 + $0x58] sm:$0xff]  ;;  %v664_v52 = vld [vmem:[%s3380_s29 + $0xa50] sm:$0xff] }
 0x191   : > { %2786 = vmatprep.subr.bf16.mxu0 %v2785_v59  ;;  %v1031_v59 = vld [vmem:[%s3380_s29 + $0x15c8] sm:$0xff]  ;;  %v2807_v62 = vpack.c.bf16 %v1028_v56, %v1026_v54  ;;  %v1046_v53 = vld [vmem:[%s3380_s29 + $0x1640] sm:$0xff]  ;;  %v2825_v54 = vpack.c.bf16 %v1049_v46, %v1047_v45 }
 0x192   : > { %v667_v56 = vld [vmem:[%s3380_s29 + $0xa68] sm:$0xff] }
 0x193   : > { %2404 = vmatpush1.bf16.msra.mxu1 %v2403_v1  ;;  %v648_v1 = vld [vmem:[%s3380_s29 + $0x9d0] sm:$0xff] }
 0x194   : > { %2788 = vmatpush1.bf16.msra.mxu0 %v2787_v2  ;;  %2406 = vmatprep.subr.bf16.mxu1 %v2405_v3  ;;  %v1030_v2 = vld [vmem:[%s3380_s29 + $0x15c0] sm:$0xff]  ;;  %v2809_v3 = vpack.c.bf16 %v1033_v60, %v1031_v59  ;;  %v2427_v9 = vpack.c.bf16 %v648_v1, %v646_v0  ;;  %v1051_v59 = vld [vmem:[%s3380_s29 + $0x1668] sm:$0xff]  ;;  %v1053_v60 = vld [vmem:[%s3380_s29 + $0x1678] sm:$0xff] }
 0x195   : > { %2790 = vmatprep.subr.bf16.mxu0 %v2789_v7  ;;  %v1035_v7 = vld [vmem:[%s3380_s29 + $0x15e8] sm:$0xff]  ;;  %v2811_v10 = vpack.c.bf16 %v1032_v4, %v1030_v2  ;;  %v666_v0 = vld [vmem:[%s3380_s29 + $0xa60] sm:$0xff]  ;;  %v668_v1 = vld [vmem:[%s3380_s29 + $0xa70] sm:$0xff] }
 0x196   : > { %v1050_v2 = vld [vmem:[%s3380_s29 + $0x1660] sm:$0xff]  ;;  %v1052_v4 = vld [vmem:[%s3380_s29 + $0x1670] sm:$0xff] }
 0x197   : > { %2408 = vmatpush1.bf16.msra.mxu1 %v2407_v13  ;;  %v652_v13 = vld [vmem:[%s3380_s29 + $0x9f0] sm:$0xff] }
 0x198   : > { %2792 = vmatpush1.bf16.msra.mxu0 %v2791_v14  ;;  %2410 = vmatprep.subr.bf16.mxu1 %v2409_v15  ;;  %v1034_v14 = vld [vmem:[%s3380_s29 + $0x15e0] sm:$0xff]  ;;  %v2813_v15 = vpack.c.bf16 %v1037_v8, %v1035_v7  ;;  %v2431_v21 = vpack.c.bf16 %v652_v13, %v650_v12  ;;  %v1055_v7 = vld [vmem:[%s3380_s29 + $0x1688] sm:$0xff]  ;;  %v1057_v8 = vld [vmem:[%s3380_s29 + $0x1698] sm:$0xff] }
 0x199   : > { %2794 = vmatprep.subr.bf16.mxu0 %v2793_v19  ;;  %v1039_v19 = vld [vmem:[%s3380_s29 + $0x1608] sm:$0xff]  ;;  %v2815_v22 = vpack.c.bf16 %v1036_v16, %v1034_v14  ;;  %v670_v12 = vld [vmem:[%s3380_s29 + $0xa80] sm:$0xff]  ;;  %v672_v13 = vld [vmem:[%s3380_s29 + $0xa90] sm:$0xff] }
 0x19a   : > { %v1054_v14 = vld [vmem:[%s3380_s29 + $0x1680] sm:$0xff]  ;;  %v1056_v16 = vld [vmem:[%s3380_s29 + $0x1690] sm:$0xff] }
 0x19b   : > { %2412 = vmatpush1.bf16.msra.mxu1 %v2411_v25  ;;  %v656_v25 = vld [vmem:[%s3380_s29 + $0xa10] sm:$0xff] }
 0x19c   : > { %2796 = vmatpush1.bf16.msra.mxu0 %v2795_v26  ;;  %2414 = vmatprep.subr.bf16.mxu1 %v2413_v27  ;;  %v1038_v26 = vld [vmem:[%s3380_s29 + $0x1600] sm:$0xff]  ;;  %v2817_v27 = vpack.c.bf16 %v1041_v20, %v1039_v19  ;;  %v2435_v34 = vpack.c.bf16 %v656_v25, %v654_v24  ;;  %v1059_v19 = vld [vmem:[%s3380_s29 + $0x16a8] sm:$0xff]  ;;  %v1061_v20 = vld [vmem:[%s3380_s29 + $0x16b8] sm:$0xff] }
 0x19d   : > { %2798 = vmatprep.subr.bf16.mxu0 %v2797_v31  ;;  %v1043_v31 = vld [vmem:[%s3380_s29 + $0x1628] sm:$0xff]  ;;  %v2819_v36 = vpack.c.bf16 %v1040_v28, %v1038_v26  ;;  %v674_v24 = vld [vmem:[%s3380_s29 + $0xaa0] sm:$0xff]  ;;  %v676_v25 = vld [vmem:[%s3380_s29 + $0xab0] sm:$0xff] }
 0x19e   : > { %v2821_v41 = vpack.c.bf16 %v1045_v32, %v1043_v31  ;;  %v1058_v26 = vld [vmem:[%s3380_s29 + $0x16a0] sm:$0xff]  ;;  %v1060_v28 = vld [vmem:[%s3380_s29 + $0x16b0] sm:$0xff]  ;;  %v1063_v31 = vld [vmem:[%s3380_s29 + $0x16c8] sm:$0xff] }
 0x19f   : > { %2416 = vmatpush1.bf16.msra.mxu1 %v2415_v37  ;;  %v2437_v37 = vpack.c.bf16 %v661_v30, %v659_v29  ;;  %v679_v29 = vld [vmem:[%s3380_s29 + $0xac8] sm:$0xff]  ;;  %v681_v30 = vld [vmem:[%s3380_s29 + $0xad8] sm:$0xff] }
 0x1a0   : > { %2800 = vmatpush1.bf16.msra.mxu0 %v2799_v38  ;;  %2418 = vmatprep.subr.bf16.mxu1 %v2417_v39  ;;  %v658_v38 = vld [vmem:[%s3380_s29 + $0xa20] sm:$0xff]  ;;  %v660_v39 = vld [vmem:[%s3380_s29 + $0xa30] sm:$0xff]  ;;  %v1065_v32 = vld [vmem:[%s3380_s29 + $0x16d8] sm:$0xff] }
 0x1a1   : > { %2802 = vmatprep.subr.bf16.mxu0 %v2801_v43  ;;  %v663_v43 = vld [vmem:[%s3380_s29 + $0xa48] sm:$0xff]  ;;  %v2439_v47 = vpack.c.bf16 %v660_v39, %v658_v38  ;;  %v1062_v38 = vld [vmem:[%s3380_s29 + $0x16c0] sm:$0xff]  ;;  %v2841_v39 = vpack.c.bf16 %v1065_v32, %v1063_v31  ;;  %v712_v32 = vld [vmem:[%s3380_s29 + $0xbd0] sm:$0xff] }
 0x1a2   : > { %v710_v31 = vld [vmem:[%s3380_s29 + $0xbc0] sm:$0xff] }
 0x1a3   : > { %2420 = vmatpush1.bf16.msra.mxu1 %v2419_v49  ;;  %v2823_v49 = vpack.c.bf16 %v1044_v42, %v1042_v40  ;;  %v1064_v40 = vld [vmem:[%s3380_s29 + $0x16d0] sm:$0xff]  ;;  %v685_v42 = vld [vmem:[%s3380_s29 + $0xaf8] sm:$0xff] }
 0x1a4   : > { %2804 = vmatpush1.bf16.msra.mxu0 %v2803_v50  ;;  %2422 = vmatprep.subr.bf16.mxu1 %v2421_v51  ;;  %v2441_v50 = vpack.c.bf16 %v665_v44, %v663_v43  ;;  %v662_v51 = vld [vmem:[%s3380_s29 + $0xa40] sm:$0xff]  ;;  %v1067_v43 = vld [vmem:[%s3380_s29 + $0x16e8] sm:$0xff]  ;;  %v1069_v44 = vld [vmem:[%s3380_s29 + $0x16f8] sm:$0xff]  ;;  %v2843_v46 = vpack.c.bf16 %v1064_v40, %v1062_v38 }
 0x1a5   : > { %2806 = vmatprep.subr.bf16.mxu0 %v2805_v55  ;;  %v1048_v55 = vld [vmem:[%s3380_s29 + $0x1650] sm:$0xff] }
 0x1a6   : > { %v716_v38 = vld [vmem:[%s3380_s29 + $0xbf0] sm:$0xff] }
 0x1a7   : > { %2424 = vmatpush1.bf16.msra.mxu1 %v2423_v61  ;;  %v2443_v61 = vpack.c.bf16 %v664_v52, %v662_v51  ;;  %v2845_v51 = vpack.c.bf16 %v1069_v44, %v1067_v43  ;;  %v1068_v52 = vld [vmem:[%s3380_s29 + $0x16f0] sm:$0xff]  ;;  %v309_v43 = vld [vmem:[%s3399_s8] sm:$0xff] }
 0x1a8   : > { %2808 = vmatpush1.bf16.msra.mxu0 %v2807_v62  ;;  %2426 = vmatprep.subr.bf16.mxu1 %v2425_v63  ;;  %v2827_v62 = vpack.c.bf16 %v1048_v55, %v1046_v53  ;;  %v2445_v63 = vpack.c.bf16 %v669_v57, %v667_v56  ;;  %v687_v53 = vld [vmem:[%s3380_s29 + $0xb08] sm:$0xff]  ;;  %v321_v40 = vld [vmem:[%s3404_s9 + $0x50] sm:$0xff] }
 0x1a9   : > { %2810 = vmatprep.subr.bf16.mxu0 %v2809_v3  ;;  %v2829_v3 = vpack.c.bf16 %v1053_v60, %v1051_v59  ;;  %v688_v59 = vld [vmem:[%s3380_s29 + $0xb10] sm:$0xff]  ;;  %v691_v60 = vld [vmem:[%s3380_s29 + $0xb28] sm:$0xff] }
 0x1ab   : > { %2428 = vmatpush1.bf16.msra.mxu1 %v2427_v9  ;;  %v2447_v9 = vpack.c.bf16 %v668_v1, %v666_v0  ;;  %v690_v1 = vld [vmem:[%s3380_s29 + $0xb20] sm:$0xff] }
 0x1ac   : > { %2812 = vmatpush1.bf16.msra.mxu0 %v2811_v10  ;;  %2430 = vmatprep.subr.bf16.mxu1 %v2429_v11  ;;  %v2831_v10 = vpack.c.bf16 %v1052_v4, %v1050_v2  ;;  %v2449_v11 = vpack.c.bf16 %v673_v6, %v671_v5  ;;  %v692_v2 = vld [vmem:[%s3380_s29 + $0xb30] sm:$0xff]  ;;  %v697_v4 = vld [vmem:[%s3380_s29 + $0xb58] sm:$0xff] }
 0x1ad   : > { %2814 = vmatprep.subr.bf16.mxu0 %v2813_v15  ;;  %v2833_v15 = vpack.c.bf16 %v1057_v8, %v1055_v7  ;;  %v2471_v5 = vpack.c.bf16 %v692_v2, %v690_v1  ;;  %v694_v7 = vld [vmem:[%s3380_s29 + $0xb40] sm:$0xff]  ;;  %v696_v8 = vld [vmem:[%s3380_s29 + $0xb50] sm:$0xff] }
 0x1af   : > { %2432 = vmatpush1.bf16.msra.mxu1 %v2431_v21  ;;  %v2451_v21 = vpack.c.bf16 %v672_v13, %v670_v12  ;;  %v698_v13 = vld [vmem:[%s3380_s29 + $0xb60] sm:$0xff] }
 0x1b0   : > { %2816 = vmatpush1.bf16.msra.mxu0 %v2815_v22  ;;  %2434 = vmatprep.subr.bf16.mxu1 %v2433_v23  ;;  %v2835_v22 = vpack.c.bf16 %v1056_v16, %v1054_v14  ;;  %v2453_v23 = vpack.c.bf16 %v677_v18, %v675_v17  ;;  %v700_v14 = vld [vmem:[%s3380_s29 + $0xb70] sm:$0xff]  ;;  %v705_v16 = vld [vmem:[%s3380_s29 + $0xb98] sm:$0xff] }
 0x1b1   : > { %2818 = vmatprep.subr.bf16.mxu0 %v2817_v27  ;;  %v2837_v27 = vpack.c.bf16 %v1061_v20, %v1059_v19  ;;  %v2479_v17 = vpack.c.bf16 %v700_v14, %v698_v13  ;;  %v702_v19 = vld [vmem:[%s3380_s29 + $0xb80] sm:$0xff]  ;;  %v704_v20 = vld [vmem:[%s3380_s29 + $0xb90] sm:$0xff] }
 0x1b2   : > { %1419 = vmatmul.mubr.f32.vlgmr.msra.gmra.mrb[0].mxu1 %v319_v33  ;;  %v2455_v33 = vpack.c.bf16 %v676_v25, %v674_v24  ;;  %v706_v25 = vld [vmem:[%s3380_s29 + $0xba0] sm:$0xff] }
 0x1b3   : > { %2436 = vmatpush1.bf16.msra.mxu1 %v2435_v34  ;;  %1845 = vmatmul.mubr.f32.vlgmr.msra.gmra.mrb[0].mxu0 %v331_v35  ;;  %v2839_v34 = vpack.c.bf16 %v1060_v28, %v1058_v26  ;;  %v2457_v35 = vpack.c.bf16 %v681_v30, %v679_v29  ;;  %v708_v26 = vld [vmem:[%s3380_s29 + $0xbb0] sm:$0xff]  ;;  %v713_v28 = vld [vmem:[%s3380_s29 + $0xbd8] sm:$0xff] }
 0x1b4   : > { %2820 = vmatpush1.bf16.msra.mxu0 %v2819_v36  ;;  %2438 = vmatprep.subr.bf16.mxu1 %v2437_v37  ;;  %v678_v36 = vld [vmem:[%s3380_s29 + $0xac0] sm:$0xff]  ;;  %v680_v37 = vld [vmem:[%s3380_s29 + $0xad0] sm:$0xff]  ;;  %v2487_v29 = vpack.c.bf16 %v708_v26, %v706_v25 }
 0x1b5   : > { %2822 = vmatprep.subr.bf16.mxu0 %v2821_v41  ;;  %1915 = vmatprep.mubr.f32.mxu0 %v3140_v58  ;;  %v683_v41 = vld [vmem:[%s3380_s29 + $0xae8] sm:$0xff]  ;;  %v2459_v45 = vpack.c.bf16 %v680_v37, %v678_v36  ;;  %v686_v58 = vld [vmem:[%s3380_s29 + $0xb00] sm:$0xff] }
 0x1b6   : > { %1489 = vmatprep.mubr.f32.mxu1 %v322_v48  ;;  %v682_v48 = vld [vmem:[%s3380_s29 + $0xae0] sm:$0xff] }
 0x1b7   : > { %2440 = vmatpush1.bf16.msra.mxu1 %v2439_v47  ;;  %v2461_v47 = vpack.c.bf16 %v685_v42, %v683_v41  ;;  %v714_v37 = vld [vmem:[%s3380_s29 + $0xbe0] sm:$0xff] }
 0x1b8   : > { %2824 = vmatpush1.bf16.msra.mxu0 %v2823_v49  ;;  %2442 = vmatprep.subr.bf16.mxu1 %v2441_v50  ;;  %v684_v49 = vld [vmem:[%s3380_s29 + $0xaf0] sm:$0xff]  ;;  %v1066_v50 = vld [vmem:[%s3380_s29 + $0x16e0] sm:$0xff] }
 0x1b9   : > { %2826 = vmatprep.subr.bf16.mxu0 %v2825_v54  ;;  %v689_v54 = vld [vmem:[%s3380_s29 + $0xb18] sm:$0xff]  ;;  %v2463_v55 = vpack.c.bf16 %v684_v49, %v682_v48  ;;  %v2847_v56 = vpack.c.bf16 %v1068_v52, %v1066_v50 }
 0x1ba   : > { %v2465_v57 = vpack.c.bf16 %v689_v54, %v687_v53  ;;  %v1932_v53 = vld [vmem:[%s239_s6] sm:$0x3] (!%p2108_p3) }
 0x1bb   : > { %2444 = vmatpush1.bf16.msra.mxu1 %v2443_v61  ;;  %v693_v61 = vld [vmem:[%s3380_s29 + $0xb38] sm:$0xff] }
 0x1bc   : > { %2828 = vmatpush1.bf16.msra.mxu0 %v2827_v62  ;;  %2446 = vmatprep.subr.bf16.mxu1 %v2445_v63  ;;  %v2467_v62 = vpack.c.bf16 %v688_v59, %v686_v58  ;;  %v333_v63 = vld [vmem:[%s3404_s9 + $0xb0] sm:$0xff]  ;;  %v2469_v0 = vpack.c.bf16 %v693_v61, %v691_v60 }
 0x1bd   : > { %2830 = vmatprep.subr.bf16.mxu0 %v2829_v3  ;;  %v695_v3 = vld [vmem:[%s3380_s29 + $0xb48] sm:$0xff] }
 0x1be   : > { %v2473_v6 = vpack.c.bf16 %v697_v4, %v695_v3 }
 0x1bf   : > { %2448 = vmatpush1.bf16.msra.mxu1 %v2447_v9  ;;  %v699_v9 = vld [vmem:[%s3380_s29 + $0xb68] sm:$0xff] }
 0x1c0   : > { %2832 = vmatpush1.bf16.msra.mxu0 %v2831_v10  ;;  %2450 = vmatprep.subr.bf16.mxu1 %v2449_v11  ;;  %v701_v10 = vld [vmem:[%s3380_s29 + $0xb78] sm:$0xff]  ;;  %v2475_v11 = vpack.c.bf16 %v696_v8, %v694_v7 }
 0x1c1   : > { %2834 = vmatprep.subr.bf16.mxu0 %v2833_v15  ;;  %v2477_v12 = vpack.c.bf16 %v701_v10, %v699_v9  ;;  %v703_v15 = vld [vmem:[%s3380_s29 + $0xb88] sm:$0xff] }
 0x1c2   : > { %v2481_v18 = vpack.c.bf16 %v705_v16, %v703_v15 }
 0x1c3   : > { %2452 = vmatpush1.bf16.msra.mxu1 %v2451_v21  ;;  %v707_v21 = vld [vmem:[%s3380_s29 + $0xba8] sm:$0xff] }
 0x1c4   : > { %2836 = vmatpush1.bf16.msra.mxu0 %v2835_v22  ;;  %2454 = vmatprep.subr.bf16.mxu1 %v2453_v23  ;;  %v709_v22 = vld [vmem:[%s3380_s29 + $0xbb8] sm:$0xff]  ;;  %v2483_v23 = vpack.c.bf16 %v704_v20, %v702_v19 }
 0x1c5   : > { %2838 = vmatprep.subr.bf16.mxu0 %v2837_v27  ;;  %v2485_v24 = vpack.c.bf16 %v709_v22, %v707_v21  ;;  %v711_v27 = vld [vmem:[%s3380_s29 + $0xbc8] sm:$0xff] }
 0x1c6   : > { %v2489_v30 = vpack.c.bf16 %v713_v28, %v711_v27 }
 0x1c7   : > { %2456 = vmatpush1.bf16.msra.mxu1 %v2455_v33  ;;  %v715_v33 = vld [vmem:[%s3380_s29 + $0xbe8] sm:$0xff] }
 0x1c8   : > { %2840 = vmatpush1.bf16.msra.mxu0 %v2839_v34  ;;  %2458 = vmatprep.subr.bf16.mxu1 %v2457_v35  ;;  %v717_v34 = vld [vmem:[%s3380_s29 + $0xbf8] sm:$0xff]  ;;  %v2491_v35 = vpack.c.bf16 %v712_v32, %v710_v31 }
 0x1c9   : > { %2842 = vmatprep.subr.bf16.mxu0 %v2841_v39  ;;  %v2493_v36 = vpack.c.bf16 %v717_v34, %v715_v33  ;;  %v2495_v39 = vpack.c.bf16 %v716_v38, %v714_v37 }
 0x1cb   : > { %2460 = vmatpush1.bf16.msra.mxu1 %v2459_v45 }
 0x1cc   : > { %2844 = vmatpush1.bf16.msra.mxu0 %v2843_v46  ;;  %2462 = vmatprep.subr.bf16.mxu1 %v2461_v47  ;;  %v310_v46 = vld [vmem:[%s3399_s8 + $0x8] sm:$0xff] }
 0x1cd   : > { %2846 = vmatprep.subr.bf16.mxu0 %v2845_v51  ;;  %v1934_v51 = vlaneseq (!%p2108_p3) }
 0x1cf   : > { %2464 = vmatpush1.bf16.msra.mxu1 %v2463_v55  ;;  %v1935_v52 = vshrl.u32 (!%p2108_p3), %v1934_v51, 7 }
 0x1d0   : > { %2848 = vmatpush1.bf16.msra.mxu0 %v2847_v56  ;;  %2466 = vmatprep.subr.bf16.mxu1 %v2465_v57 }
 0x1d1   : > { %v1936_v54 = vsub.s32 (!%p2108_p3), 0, %v1935_v52  ;;  %v1940_v55 = vsub.s32 (!%p2108_p3), 1, %v1935_v52 }
 0x1d3   : > { %1916 = vmatmul.mubr.f32.vlgmr.msra.gmra.mrb[0].mxu0 %v333_v63  ;;  %2468 = vmatpush1.bf16.msra.mxu1 %v2467_v62  ;;  %v1937_v58 = vrot.slane (!%p2108_p3), %v1932_v53, %v1936_v54  ;;  %v1941_v59 = vrot.slane (!%p2108_p3), %v1932_v53, %v1940_v55 }
 0x1d4   : > { %2470 = vmatprep.subr.bf16.mxu1 %v2469_v0 }
 0x1d7   : > { %2472 = vmatpush1.bf16.msra.mxu1 %v2471_v5 }
 0x1d8   : > { %2474 = vmatprep.subr.bf16.mxu1 %v2473_v6 }
 0x1db   : > { %2476 = vmatpush1.bf16.msra.mxu1 %v2475_v11 }
 0x1dc   : > { %2478 = vmatprep.subr.bf16.mxu1 %v2477_v12 }
 0x1df   : > { %2480 = vmatpush1.bf16.msra.mxu1 %v2479_v17 }
 0x1e0   : > { %2482 = vmatprep.subr.bf16.mxu1 %v2481_v18 }
 0x1e3   : > { %2484 = vmatpush1.bf16.msra.mxu1 %v2483_v23 }
 0x1e4   : > { %2486 = vmatprep.subr.bf16.mxu1 %v2485_v24 }
 0x1e7   : > { %2488 = vmatpush1.bf16.msra.mxu1 %v2487_v29 }
 0x1e8   : > { %2490 = vmatprep.subr.bf16.mxu1 %v2489_v30 }
 0x1eb   : > { %2492 = vmatpush1.bf16.msra.mxu1 %v2491_v35 }
 0x1ec   : > { %2494 = vmatprep.subr.bf16.mxu1 %v2493_v36 }
 0x1ef   : > { %2496 = vmatpush1.bf16.msra.mxu1 %v2495_v39 }
 0x1f2   : > { %1490 = vmatmul.mubr.f32.vlgmr.msra.gmra.mrb[0].mxu1 %v321_v40 }
 0x2a6   : > { %v1917_v41 = vpop.f32.mrb[0].mxu0 }
 0x2a7   : > { %v1919_v42 = vpop.f32.mrb[1].mxu0 }
 0x2c5   : > { %v1491_v44 = vpop.f32.mrb[0].mxu1  ;;  %1929 = sbr.rel (%p2108_p3) target bundleno = 728 (0x2d8), region = 48 }
 0x2c6   : > { %v2849_v45 = vadd.f32 %v1917_v41, %v1491_v44  ;;  %v1493_v47 = vpop.f32.mrb[1].mxu1 }
 0x2c7   : > { %v2850_v48 = vadd.f32 %v1919_v42, %v1493_v47 }
 0x2c8   : > { %v1922_v49 = vadd.f32 %v2849_v45, %v309_v43 }
 0x2c9   : > { %v1923_v50 = vadd.f32 %v2850_v48, %v310_v46 }
 0x2ca   : > { %1924 = vst [vmem:[%s3399_s8] sm:$0xff] %v1922_v49 }
 0x2cb   : > { %1925 = vst [vmem:[%s3399_s8 + $0x8] sm:$0xff] %v1923_v50 }
 0x2d1   : > { %v1930_v56 = vld [vmem:[%s3399_s8] sm:$0xff] }
 0x2d2   : > { %v1931_v57 = vld [vmem:[%s3399_s8 + $0x8] sm:$0xff]  ;;  %v1944_v60 = vadd.f32 %v1937_v58, %v1930_v56 }
 0x2d3   : > { %v1945_v61 = vadd.f32 %v1941_v59, %v1931_v57 }
 0x2d4   : > { %v1946_v62 = vmax.f32 %v1944_v60, 0.0 }
 0x2d5   : > { %v1947_v63 = vmax.f32 %v1945_v61, 0.0 }
 0x2d6   : > { %1948 = vst [vmem:[%s3399_s8] sm:$0xff] %v1946_v62 }
 0x2d7   : > { %1949 = vst [vmem:[%s3399_s8 + $0x8] sm:$0xff] %v1947_v63 }
 0x2d8 PF: > { %s19_s22 = sadd.s32 1, %s3132_s22   ;;  %s4239_s29 = sld [smem:[#allocation8_spill]] }
 0x2d9   : > { %p16_p11 = scmp.ge.s32.totalorder %s19_s22, 10   ;;  %s4240_s12 = smov %s3096_s13 }
 0x2da   : > { %s4241_s13 = smov %s3100_s14  ;;  %s4242_s14 = smov %s3329_s10 }
 0x2db   : > { %s4243_s15 = smov %s3108_s16  ;;  %s4244_s16 = smov %s3112_s17 }
 0x2dc   : > { %s4245_s17 = smov %s3334_s28  ;;  %s4246_s18 = smov %s3124_s20 }
 0x2dd   : > { %s4247_s19 = smov %s3128_s21  ;;  %s4248_s20 = smov %s4251_s23 }
 0x2de   : > { %s4249_s21 = smov %s4239_s29  ;;  %18 = sbr.rel (!%p16_p11) target bundleno = 11 (0xb), region = 96 }
 0x2e5   :  { %1980 = vsyncpa [#allocation3], 1 }
 0x2e6   :  { %1982 = vsyncpa [#allocation3 + $0x1], 1 }
 0x2e7   :  { %1983 = vsyncpa [#allocation5], 1 }
 0x2e8   :  { %1985 = vsyncpa [#allocation5 + $0x1], 1 }

// kernel: _autoencoder_apply.5
= control target key start
LH: loop header
LB: loop body
LE: loop exit
PB: predicated region body
PF: predicated region fallthrough
CT: control target
= control target key end

     0   :  { %s4643_s12 = smov 0   ;;  %s4645_s13 = smov 0   ;;  %s7082_s0 = inlined_call_operand.vmem [shape: f32[8,256], index: 0, kind: input, shape index: {}]   ;;  %s7083_s1 = inlined_call_operand.vmem [shape: f32[256,11776], index: 1, kind: input, shape index: {}]   ;;  %s7084_s2 = inlined_call_operand.vmem [shape: f32[1,11776], index: 2, kind: input, shape index: {}]   ;;  %s7085_s3 = inlined_call_operand.vmem [shape: f32[8,11776], index: 3, kind: output, shape index: {}]  }
   0x1   :  { %s4647_s14 = smov 0   ;;  %s4649_s15 = smov 0  }
   0x2   :  { %s4651_s16 = smov 0  }
   0x3 LB: > { %s28_s17 = sadd.s32 1, %s4617_s15  ;;  %p76_p1 = scmp.ne.s32.totalorder %s4609_s13, %s4605_s12  ;;  %s4621_s16 = sphi %s4651_s16, %s13_s16   ;;  %s4617_s15 = sphi %s4649_s15, %s7090_s15   ;;  %s4613_s14 = sphi %s4647_s14, %s7089_s14   ;;  %s4609_s13 = sphi %s4645_s13, %s7088_s13   ;;  %s4605_s12 = sphi %s4643_s12, %s7087_s12  }
   0x4   : > { %p30_p0 = scmp.ge.s32.totalorder %s28_s17, 4  ;;  %p77_p2 = scmp.eq.s32.totalorder %s4621_s16, 0 }
   0x5   : > { %s69_s19 = sadd.s32 1, %s4609_s13  ;;  %p3758_p5 = scmp.ge.s32.totalorder %s4621_s16, 4 }
   0x6   : > { %s7092_s17 = smov (%p30_p0, %s28_s17), 0  ;;  %p78_p3 = por %p77_p2, %p76_p1 }
   0x7   : > { %s65_s18 = ssub.s32 %s4617_s15, %s7092_s17  ;;  %169 = sbr.rel (%p3758_p5) target bundleno = 387 (0x183), region = 20 }
   0x8   : > { %p67_p4 = scmp.eq.s32.totalorder %s65_s18, 0 }
   0xa   : > { %s4678_s20 = scalar_select %p67_p4, %s4609_s13, %s69_s19  }
   0xe   : > { %172 = sbr.rel (!%p78_p3) target bundleno = 387 (0x183), region = 24  ;;  %s174_s21 = sand.u32 (%p78_p3), 1, %s4609_s13  }
   0xf   : > { %s3764_s22 = smul.u32 (%p78_p3), 184, %s4617_s15 }
  0x10   : > { %s4536_s23 = smul.u32 (%p78_p3), 5888, %s174_s21 }
  0x11   : > { %s4686_s26 = scalar_lea.vmem (%p78_p3), %s7083_s1, %s3764_s22 }
  0x12   : > { %v195_v0 = vld [vmem:[%s4686_s26] sm:$0xff] (%p78_p3)  ;;  %v197_v1 = vld [vmem:[%s4686_s26 + $0x8] sm:$0xff] (%p78_p3)  ;;  %v199_v2 = vld [vmem:[%s4686_s26 + $0x10] sm:$0xff] (%p78_p3)  ;;  %s4691_s27 = scalar_lea.vmem (%p78_p3), [#allocation2], %s4536_s23 }
  0x13   : > { %196 = vst [vmem:[%s4691_s27] sm:$0xff] (%p78_p3), %v195_v0  ;;  %198 = vst [vmem:[%s4691_s27 + $0x8] sm:$0xff] (%p78_p3), %v197_v1  ;;  %v201_v3 = vld [vmem:[%s4686_s26 + $0x18] sm:$0xff] (%p78_p3)  ;;  %v203_v4 = vld [vmem:[%s4686_s26 + $0x20] sm:$0xff] (%p78_p3) }
  0x14   : > { %200 = vst [vmem:[%s4691_s27 + $0x10] sm:$0xff] (%p78_p3), %v199_v2  ;;  %v205_v5 = vld [vmem:[%s4686_s26 + $0x28] sm:$0xff] (%p78_p3)  ;;  %202 = vst [vmem:[%s4691_s27 + $0x18] sm:$0xff] (%p78_p3), %v201_v3  ;;  %v207_v6 = vld [vmem:[%s4686_s26 + $0x30] sm:$0xff] (%p78_p3) }
  0x15   : > { %204 = vst [vmem:[%s4691_s27 + $0x20] sm:$0xff] %v203_v4  ;;  %206 = vst [vmem:[%s4691_s27 + $0x28] sm:$0xff] %v205_v5  ;;  %v209_v7 = vld [vmem:[%s4686_s26 + $0x38] sm:$0xff]  ;;  %v211_v8 = vld [vmem:[%s4686_s26 + $0x40] sm:$0xff] }
  0x16   : > { %208 = vst [vmem:[%s4691_s27 + $0x30] sm:$0xff] %v207_v6  ;;  %210 = vst [vmem:[%s4691_s27 + $0x38] sm:$0xff] %v209_v7  ;;  %v213_v9 = vld [vmem:[%s4686_s26 + $0x48] sm:$0xff]  ;;  %v215_v10 = vld [vmem:[%s4686_s26 + $0x50] sm:$0xff] }
  0x17   : > { %212 = vst [vmem:[%s4691_s27 + $0x40] sm:$0xff] %v211_v8  ;;  %v217_v11 = vld [vmem:[%s4686_s26 + $0x58] sm:$0xff]  ;;  %214 = vst [vmem:[%s4691_s27 + $0x48] sm:$0xff] %v213_v9  ;;  %v219_v12 = vld [vmem:[%s4686_s26 + $0x60] sm:$0xff] }
  0x18   : > { %216 = vst [vmem:[%s4691_s27 + $0x50] sm:$0xff] %v215_v10  ;;  %218 = vst [vmem:[%s4691_s27 + $0x58] sm:$0xff] %v217_v11  ;;  %v221_v13 = vld [vmem:[%s4686_s26 + $0x68] sm:$0xff]  ;;  %v223_v14 = vld [vmem:[%s4686_s26 + $0x70] sm:$0xff] }
  0x19   : > { %220 = vst [vmem:[%s4691_s27 + $0x60] sm:$0xff] %v219_v12  ;;  %222 = vst [vmem:[%s4691_s27 + $0x68] sm:$0xff] %v221_v13  ;;  %v225_v15 = vld [vmem:[%s4686_s26 + $0x78] sm:$0xff]  ;;  %v227_v16 = vld [vmem:[%s4686_s26 + $0x80] sm:$0xff] }
  0x1a   : > { %224 = vst [vmem:[%s4691_s27 + $0x70] sm:$0xff] %v223_v14  ;;  %v229_v17 = vld [vmem:[%s4686_s26 + $0x88] sm:$0xff]  ;;  %226 = vst [vmem:[%s4691_s27 + $0x78] sm:$0xff] %v225_v15  ;;  %v231_v18 = vld [vmem:[%s4686_s26 + $0x90] sm:$0xff] }
  0x1b   : > { %228 = vst [vmem:[%s4691_s27 + $0x80] sm:$0xff] %v227_v16  ;;  %230 = vst [vmem:[%s4691_s27 + $0x88] sm:$0xff] %v229_v17  ;;  %v233_v19 = vld [vmem:[%s4686_s26 + $0x98] sm:$0xff]  ;;  %v235_v20 = vld [vmem:[%s4686_s26 + $0xa0] sm:$0xff] }
  0x1c   : > { %232 = vst [vmem:[%s4691_s27 + $0x90] sm:$0xff] %v231_v18  ;;  %234 = vst [vmem:[%s4691_s27 + $0x98] sm:$0xff] %v233_v19  ;;  %v237_v21 = vld [vmem:[%s4686_s26 + $0xa8] sm:$0xff]  ;;  %v239_v22 = vld [vmem:[%s4686_s26 + $0xb0] sm:$0xff] }
  0x1d   : > { %236 = vst [vmem:[%s4691_s27 + $0xa0] sm:$0xff] %v235_v20  ;;  %v241_v23 = vld [vmem:[%s4686_s26 + $0x2e0] sm:$0xff]  ;;  %238 = vst [vmem:[%s4691_s27 + $0xa8] sm:$0xff] %v237_v21  ;;  %v243_v24 = vld [vmem:[%s4686_s26 + $0x2e8] sm:$0xff] }
  0x1e   : > { %240 = vst [vmem:[%s4691_s27 + $0xb0] sm:$0xff] %v239_v22  ;;  %242 = vst [vmem:[%s4691_s27 + $0xb8] sm:$0xff] %v241_v23  ;;  %v245_v25 = vld [vmem:[%s4686_s26 + $0x2f0] sm:$0xff]  ;;  %v247_v26 = vld [vmem:[%s4686_s26 + $0x2f8] sm:$0xff] }
  0x1f   : > { %244 = vst [vmem:[%s4691_s27 + $0xc0] sm:$0xff] %v243_v24  ;;  %246 = vst [vmem:[%s4691_s27 + $0xc8] sm:$0xff] %v245_v25  ;;  %v249_v27 = vld [vmem:[%s4686_s26 + $0x300] sm:$0xff]  ;;  %v251_v28 = vld [vmem:[%s4686_s26 + $0x308] sm:$0xff] }
  0x20   : > { %248 = vst [vmem:[%s4691_s27 + $0xd0] sm:$0xff] %v247_v26  ;;  %v253_v29 = vld [vmem:[%s4686_s26 + $0x310] sm:$0xff]  ;;  %250 = vst [vmem:[%s4691_s27 + $0xd8] sm:$0xff] %v249_v27  ;;  %v255_v30 = vld [vmem:[%s4686_s26 + $0x318] sm:$0xff] }
  0x21   : > { %252 = vst [vmem:[%s4691_s27 + $0xe0] sm:$0xff] %v251_v28  ;;  %254 = vst [vmem:[%s4691_s27 + $0xe8] sm:$0xff] %v253_v29  ;;  %v257_v31 = vld [vmem:[%s4686_s26 + $0x320] sm:$0xff]  ;;  %v259_v32 = vld [vmem:[%s4686_s26 + $0x328] sm:$0xff] }
  0x22   : > { %256 = vst [vmem:[%s4691_s27 + $0xf0] sm:$0xff] %v255_v30  ;;  %258 = vst [vmem:[%s4691_s27 + $0xf8] sm:$0xff] %v257_v31  ;;  %v261_v33 = vld [vmem:[%s4686_s26 + $0x330] sm:$0xff]  ;;  %v263_v34 = vld [vmem:[%s4686_s26 + $0x338] sm:$0xff] }
  0x23   : > { %260 = vst [vmem:[%s4691_s27 + $0x100] sm:$0xff] %v259_v32  ;;  %v265_v35 = vld [vmem:[%s4686_s26 + $0x340] sm:$0xff]  ;;  %262 = vst [vmem:[%s4691_s27 + $0x108] sm:$0xff] %v261_v33  ;;  %v267_v36 = vld [vmem:[%s4686_s26 + $0x348] sm:$0xff] }
  0x24   : > { %264 = vst [vmem:[%s4691_s27 + $0x110] sm:$0xff] %v263_v34  ;;  %266 = vst [vmem:[%s4691_s27 + $0x118] sm:$0xff] %v265_v35  ;;  %v269_v37 = vld [vmem:[%s4686_s26 + $0x350] sm:$0xff]  ;;  %v271_v38 = vld [vmem:[%s4686_s26 + $0x358] sm:$0xff] }
  0x25   : > { %268 = vst [vmem:[%s4691_s27 + $0x120] sm:$0xff] %v267_v36  ;;  %270 = vst [vmem:[%s4691_s27 + $0x128] sm:$0xff] %v269_v37  ;;  %v273_v39 = vld [vmem:[%s4686_s26 + $0x360] sm:$0xff]  ;;  %v275_v40 = vld [vmem:[%s4686_s26 + $0x368] sm:$0xff] }
  0x26   : > { %272 = vst [vmem:[%s4691_s27 + $0x130] sm:$0xff] %v271_v38  ;;  %v277_v41 = vld [vmem:[%s4686_s26 + $0x370] sm:$0xff]  ;;  %274 = vst [vmem:[%s4691_s27 + $0x138] sm:$0xff] %v273_v39  ;;  %v279_v42 = vld [vmem:[%s4686_s26 + $0x378] sm:$0xff] }
  0x27   : > { %276 = vst [vmem:[%s4691_s27 + $0x140] sm:$0xff] %v275_v40  ;;  %278 = vst [vmem:[%s4691_s27 + $0x148] sm:$0xff] %v277_v41  ;;  %v281_v43 = vld [vmem:[%s4686_s26 + $0x380] sm:$0xff]  ;;  %v283_v44 = vld [vmem:[%s4686_s26 + $0x388] sm:$0xff] }
  0x28   : > { %280 = vst [vmem:[%s4691_s27 + $0x150] sm:$0xff] %v279_v42  ;;  %282 = vst [vmem:[%s4691_s27 + $0x158] sm:$0xff] %v281_v43  ;;  %v285_v45 = vld [vmem:[%s4686_s26 + $0x390] sm:$0xff]  ;;  %v287_v46 = vld [vmem:[%s4686_s26 + $0x5c0] sm:$0xff] }
  0x29   : > { %284 = vst [vmem:[%s4691_s27 + $0x160] sm:$0xff] %v283_v44  ;;  %v289_v47 = vld [vmem:[%s4686_s26 + $0x5c8] sm:$0xff]  ;;  %286 = vst [vmem:[%s4691_s27 + $0x168] sm:$0xff] %v285_v45  ;;  %v291_v48 = vld [vmem:[%s4686_s26 + $0x5d0] sm:$0xff] }
  0x2a   : > { %288 = vst [vmem:[%s4691_s27 + $0x170] sm:$0xff] %v287_v46  ;;  %290 = vst [vmem:[%s4691_s27 + $0x178] sm:$0xff] %v289_v47  ;;  %v293_v49 = vld [vmem:[%s4686_s26 + $0x5d8] sm:$0xff]  ;;  %v295_v50 = vld [vmem:[%s4686_s26 + $0x5e0] sm:$0xff] }
  0x2b   : > { %292 = vst [vmem:[%s4691_s27 + $0x180] sm:$0xff] %v291_v48  ;;  %294 = vst [vmem:[%s4691_s27 + $0x188] sm:$0xff] %v293_v49  ;;  %v297_v51 = vld [vmem:[%s4686_s26 + $0x5e8] sm:$0xff]  ;;  %v299_v52 = vld [vmem:[%s4686_s26 + $0x5f0] sm:$0xff] }
  0x2c   : > { %296 = vst [vmem:[%s4691_s27 + $0x190] sm:$0xff] %v295_v50  ;;  %v301_v53 = vld [vmem:[%s4686_s26 + $0x5f8] sm:$0xff]  ;;  %298 = vst [vmem:[%s4691_s27 + $0x198] sm:$0xff] %v297_v51  ;;  %v303_v54 = vld [vmem:[%s4686_s26 + $0x600] sm:$0xff] }
  0x2d   : > { %300 = vst [vmem:[%s4691_s27 + $0x1a0] sm:$0xff] %v299_v52  ;;  %302 = vst [vmem:[%s4691_s27 + $0x1a8] sm:$0xff] %v301_v53  ;;  %v305_v55 = vld [vmem:[%s4686_s26 + $0x608] sm:$0xff]  ;;  %v307_v56 = vld [vmem:[%s4686_s26 + $0x610] sm:$0xff] }
  0x2e   : > { %304 = vst [vmem:[%s4691_s27 + $0x1b0] sm:$0xff] %v303_v54  ;;  %306 = vst [vmem:[%s4691_s27 + $0x1b8] sm:$0xff] %v305_v55  ;;  %v309_v57 = vld [vmem:[%s4686_s26 + $0x618] sm:$0xff]  ;;  %v311_v58 = vld [vmem:[%s4686_s26 + $0x620] sm:$0xff] }
  0x2f   : > { %308 = vst [vmem:[%s4691_s27 + $0x1c0] sm:$0xff] %v307_v56  ;;  %v313_v59 = vld [vmem:[%s4686_s26 + $0x628] sm:$0xff]  ;;  %310 = vst [vmem:[%s4691_s27 + $0x1c8] sm:$0xff] %v309_v57  ;;  %v315_v60 = vld [vmem:[%s4686_s26 + $0x630] sm:$0xff] }
  0x30   : > { %312 = vst [vmem:[%s4691_s27 + $0x1d0] sm:$0xff] %v311_v58  ;;  %314 = vst [vmem:[%s4691_s27 + $0x1d8] sm:$0xff] %v313_v59  ;;  %v317_v61 = vld [vmem:[%s4686_s26 + $0x638] sm:$0xff]  ;;  %v319_v62 = vld [vmem:[%s4686_s26 + $0x640] sm:$0xff] }
  0x31   : > { %316 = vst [vmem:[%s4691_s27 + $0x1e0] sm:$0xff] %v315_v60  ;;  %318 = vst [vmem:[%s4691_s27 + $0x1e8] sm:$0xff] %v317_v61  ;;  %v321_v63 = vld [vmem:[%s4686_s26 + $0x648] sm:$0xff]  ;;  %v323_v0 = vld [vmem:[%s4686_s26 + $0x650] sm:$0xff] }
  0x32   : > { %320 = vst [vmem:[%s4691_s27 + $0x1f0] sm:$0xff] %v319_v62  ;;  %v325_v1 = vld [vmem:[%s4686_s26 + $0x658] sm:$0xff]  ;;  %322 = vst [vmem:[%s4691_s27 + $0x1f8] sm:$0xff] %v321_v63  ;;  %v327_v2 = vld [vmem:[%s4686_s26 + $0x660] sm:$0xff] }
  0x33   : > { %324 = vst [vmem:[%s4691_s27 + $0x200] sm:$0xff] %v323_v0  ;;  %326 = vst [vmem:[%s4691_s27 + $0x208] sm:$0xff] %v325_v1  ;;  %v329_v3 = vld [vmem:[%s4686_s26 + $0x668] sm:$0xff]  ;;  %v331_v4 = vld [vmem:[%s4686_s26 + $0x670] sm:$0xff] }
  0x34   : > { %328 = vst [vmem:[%s4691_s27 + $0x210] sm:$0xff] %v327_v2  ;;  %330 = vst [vmem:[%s4691_s27 + $0x218] sm:$0xff] %v329_v3  ;;  %v333_v5 = vld [vmem:[%s4686_s26 + $0x8a0] sm:$0xff]  ;;  %v335_v6 = vld [vmem:[%s4686_s26 + $0x8a8] sm:$0xff] }
  0x35   : > { %332 = vst [vmem:[%s4691_s27 + $0x220] sm:$0xff] %v331_v4  ;;  %v337_v7 = vld [vmem:[%s4686_s26 + $0x8b0] sm:$0xff]  ;;  %334 = vst [vmem:[%s4691_s27 + $0x228] sm:$0xff] %v333_v5  ;;  %v339_v8 = vld [vmem:[%s4686_s26 + $0x8b8] sm:$0xff] }
  0x36   : > { %336 = vst [vmem:[%s4691_s27 + $0x230] sm:$0xff] %v335_v6  ;;  %338 = vst [vmem:[%s4691_s27 + $0x238] sm:$0xff] %v337_v7  ;;  %v341_v9 = vld [vmem:[%s4686_s26 + $0x8c0] sm:$0xff]  ;;  %v343_v10 = vld [vmem:[%s4686_s26 + $0x8c8] sm:$0xff] }
  0x37   : > { %340 = vst [vmem:[%s4691_s27 + $0x240] sm:$0xff] %v339_v8  ;;  %342 = vst [vmem:[%s4691_s27 + $0x248] sm:$0xff] %v341_v9  ;;  %v345_v11 = vld [vmem:[%s4686_s26 + $0x8d0] sm:$0xff]  ;;  %v347_v12 = vld [vmem:[%s4686_s26 + $0x8d8] sm:$0xff] }
  0x38   : > { %344 = vst [vmem:[%s4691_s27 + $0x250] sm:$0xff] %v343_v10  ;;  %v349_v13 = vld [vmem:[%s4686_s26 + $0x8e0] sm:$0xff]  ;;  %346 = vst [vmem:[%s4691_s27 + $0x258] sm:$0xff] %v345_v11  ;;  %v351_v14 = vld [vmem:[%s4686_s26 + $0x8e8] sm:$0xff] }
  0x39   : > { %348 = vst [vmem:[%s4691_s27 + $0x260] sm:$0xff] %v347_v12  ;;  %350 = vst [vmem:[%s4691_s27 + $0x268] sm:$0xff] %v349_v13  ;;  %v353_v15 = vld [vmem:[%s4686_s26 + $0x8f0] sm:$0xff]  ;;  %v355_v16 = vld [vmem:[%s4686_s26 + $0x8f8] sm:$0xff] }
  0x3a   : > { %352 = vst [vmem:[%s4691_s27 + $0x270] sm:$0xff] %v351_v14  ;;  %354 = vst [vmem:[%s4691_s27 + $0x278] sm:$0xff] %v353_v15  ;;  %v357_v17 = vld [vmem:[%s4686_s26 + $0x900] sm:$0xff]  ;;  %v359_v18 = vld [vmem:[%s4686_s26 + $0x908] sm:$0xff] }
  0x3b   : > { %356 = vst [vmem:[%s4691_s27 + $0x280] sm:$0xff] %v355_v16  ;;  %v361_v19 = vld [vmem:[%s4686_s26 + $0x910] sm:$0xff]  ;;  %358 = vst [vmem:[%s4691_s27 + $0x288] sm:$0xff] %v357_v17  ;;  %v363_v20 = vld [vmem:[%s4686_s26 + $0x918] sm:$0xff] }
  0x3c   : > { %360 = vst [vmem:[%s4691_s27 + $0x290] sm:$0xff] %v359_v18  ;;  %362 = vst [vmem:[%s4691_s27 + $0x298] sm:$0xff] %v361_v19  ;;  %v365_v21 = vld [vmem:[%s4686_s26 + $0x920] sm:$0xff]  ;;  %v367_v22 = vld [vmem:[%s4686_s26 + $0x928] sm:$0xff] }
  0x3d   : > { %364 = vst [vmem:[%s4691_s27 + $0x2a0] sm:$0xff] %v363_v20  ;;  %366 = vst [vmem:[%s4691_s27 + $0x2a8] sm:$0xff] %v365_v21  ;;  %v369_v23 = vld [vmem:[%s4686_s26 + $0x930] sm:$0xff]  ;;  %v371_v24 = vld [vmem:[%s4686_s26 + $0x938] sm:$0xff] }
  0x3e   : > { %368 = vst [vmem:[%s4691_s27 + $0x2b0] sm:$0xff] %v367_v22  ;;  %v373_v25 = vld [vmem:[%s4686_s26 + $0x940] sm:$0xff]  ;;  %370 = vst [vmem:[%s4691_s27 + $0x2b8] sm:$0xff] %v369_v23  ;;  %v375_v26 = vld [vmem:[%s4686_s26 + $0x948] sm:$0xff] }
  0x3f   : > { %372 = vst [vmem:[%s4691_s27 + $0x2c0] sm:$0xff] %v371_v24  ;;  %374 = vst [vmem:[%s4691_s27 + $0x2c8] sm:$0xff] %v373_v25  ;;  %v377_v27 = vld [vmem:[%s4686_s26 + $0x950] sm:$0xff]  ;;  %v379_v28 = vld [vmem:[%s4686_s26 + $0xb80] sm:$0xff] }
  0x40   : > { %376 = vst [vmem:[%s4691_s27 + $0x2d0] sm:$0xff] %v375_v26  ;;  %378 = vst [vmem:[%s4691_s27 + $0x2d8] sm:$0xff] %v377_v27  ;;  %v381_v29 = vld [vmem:[%s4686_s26 + $0xb88] sm:$0xff]  ;;  %v383_v30 = vld [vmem:[%s4686_s26 + $0xb90] sm:$0xff] }
  0x41   : > { %380 = vst [vmem:[%s4691_s27 + $0x2e0] sm:$0xff] %v379_v28  ;;  %v385_v31 = vld [vmem:[%s4686_s26 + $0xb98] sm:$0xff]  ;;  %382 = vst [vmem:[%s4691_s27 + $0x2e8] sm:$0xff] %v381_v29  ;;  %v387_v32 = vld [vmem:[%s4686_s26 + $0xba0] sm:$0xff] }
  0x42   : > { %384 = vst [vmem:[%s4691_s27 + $0x2f0] sm:$0xff] %v383_v30  ;;  %386 = vst [vmem:[%s4691_s27 + $0x2f8] sm:$0xff] %v385_v31  ;;  %v389_v33 = vld [vmem:[%s4686_s26 + $0xba8] sm:$0xff]  ;;  %v391_v34 = vld [vmem:[%s4686_s26 + $0xbb0] sm:$0xff] }
  0x43   : > { %388 = vst [vmem:[%s4691_s27 + $0x300] sm:$0xff] %v387_v32  ;;  %390 = vst [vmem:[%s4691_s27 + $0x308] sm:$0xff] %v389_v33  ;;  %v393_v35 = vld [vmem:[%s4686_s26 + $0xbb8] sm:$0xff]  ;;  %v395_v36 = vld [vmem:[%s4686_s26 + $0xbc0] sm:$0xff] }
  0x44   : > { %392 = vst [vmem:[%s4691_s27 + $0x310] sm:$0xff] %v391_v34  ;;  %v397_v37 = vld [vmem:[%s4686_s26 + $0xbc8] sm:$0xff]  ;;  %394 = vst [vmem:[%s4691_s27 + $0x318] sm:$0xff] %v393_v35  ;;  %v399_v38 = vld [vmem:[%s4686_s26 + $0xbd0] sm:$0xff] }
  0x45   : > { %396 = vst [vmem:[%s4691_s27 + $0x320] sm:$0xff] %v395_v36  ;;  %398 = vst [vmem:[%s4691_s27 + $0x328] sm:$0xff] %v397_v37  ;;  %v401_v39 = vld [vmem:[%s4686_s26 + $0xbd8] sm:$0xff]  ;;  %v403_v40 = vld [vmem:[%s4686_s26 + $0xbe0] sm:$0xff] }
  0x46   : > { %400 = vst [vmem:[%s4691_s27 + $0x330] sm:$0xff] %v399_v38  ;;  %402 = vst [vmem:[%s4691_s27 + $0x338] sm:$0xff] %v401_v39  ;;  %v405_v41 = vld [vmem:[%s4686_s26 + $0xbe8] sm:$0xff]  ;;  %v407_v42 = vld [vmem:[%s4686_s26 + $0xbf0] sm:$0xff] }
  0x47   : > { %404 = vst [vmem:[%s4691_s27 + $0x340] sm:$0xff] %v403_v40  ;;  %v409_v43 = vld [vmem:[%s4686_s26 + $0xbf8] sm:$0xff]  ;;  %406 = vst [vmem:[%s4691_s27 + $0x348] sm:$0xff] %v405_v41  ;;  %v411_v44 = vld [vmem:[%s4686_s26 + $0xc00] sm:$0xff] }
  0x48   : > { %408 = vst [vmem:[%s4691_s27 + $0x350] sm:$0xff] %v407_v42  ;;  %410 = vst [vmem:[%s4691_s27 + $0x358] sm:$0xff] %v409_v43  ;;  %v413_v45 = vld [vmem:[%s4686_s26 + $0xc08] sm:$0xff]  ;;  %v415_v46 = vld [vmem:[%s4686_s26 + $0xc10] sm:$0xff] }
  0x49   : > { %412 = vst [vmem:[%s4691_s27 + $0x360] sm:$0xff] %v411_v44  ;;  %414 = vst [vmem:[%s4691_s27 + $0x368] sm:$0xff] %v413_v45  ;;  %v417_v47 = vld [vmem:[%s4686_s26 + $0xc18] sm:$0xff]  ;;  %v419_v48 = vld [vmem:[%s4686_s26 + $0xc20] sm:$0xff] }
  0x4a   : > { %416 = vst [vmem:[%s4691_s27 + $0x370] sm:$0xff] %v415_v46  ;;  %v421_v49 = vld [vmem:[%s4686_s26 + $0xc28] sm:$0xff]  ;;  %418 = vst [vmem:[%s4691_s27 + $0x378] sm:$0xff] %v417_v47  ;;  %v423_v50 = vld [vmem:[%s4686_s26 + $0xc30] sm:$0xff] }
  0x4b   : > { %420 = vst [vmem:[%s4691_s27 + $0x380] sm:$0xff] %v419_v48  ;;  %422 = vst [vmem:[%s4691_s27 + $0x388] sm:$0xff] %v421_v49  ;;  %v425_v51 = vld [vmem:[%s4686_s26 + $0xe60] sm:$0xff]  ;;  %v427_v52 = vld [vmem:[%s4686_s26 + $0xe68] sm:$0xff] }
  0x4c   : > { %424 = vst [vmem:[%s4691_s27 + $0x390] sm:$0xff] %v423_v50  ;;  %426 = vst [vmem:[%s4691_s27 + $0x398] sm:$0xff] %v425_v51  ;;  %v429_v53 = vld [vmem:[%s4686_s26 + $0xe70] sm:$0xff]  ;;  %v431_v54 = vld [vmem:[%s4686_s26 + $0xe78] sm:$0xff] }
  0x4d   : > { %428 = vst [vmem:[%s4691_s27 + $0x3a0] sm:$0xff] %v427_v52  ;;  %v433_v55 = vld [vmem:[%s4686_s26 + $0xe80] sm:$0xff]  ;;  %430 = vst [vmem:[%s4691_s27 + $0x3a8] sm:$0xff] %v429_v53  ;;  %v435_v56 = vld [vmem:[%s4686_s26 + $0xe88] sm:$0xff] }
  0x4e   : > { %432 = vst [vmem:[%s4691_s27 + $0x3b0] sm:$0xff] %v431_v54  ;;  %434 = vst [vmem:[%s4691_s27 + $0x3b8] sm:$0xff] %v433_v55  ;;  %v437_v57 = vld [vmem:[%s4686_s26 + $0xe90] sm:$0xff]  ;;  %v439_v58 = vld [vmem:[%s4686_s26 + $0xe98] sm:$0xff] }
  0x4f   : > { %436 = vst [vmem:[%s4691_s27 + $0x3c0] sm:$0xff] %v435_v56  ;;  %438 = vst [vmem:[%s4691_s27 + $0x3c8] sm:$0xff] %v437_v57  ;;  %v441_v59 = vld [vmem:[%s4686_s26 + $0xea0] sm:$0xff]  ;;  %v443_v60 = vld [vmem:[%s4686_s26 + $0xea8] sm:$0xff] }
  0x50   : > { %440 = vst [vmem:[%s4691_s27 + $0x3d0] sm:$0xff] %v439_v58  ;;  %v445_v61 = vld [vmem:[%s4686_s26 + $0xeb0] sm:$0xff]  ;;  %442 = vst [vmem:[%s4691_s27 + $0x3d8] sm:$0xff] %v441_v59  ;;  %v447_v62 = vld [vmem:[%s4686_s26 + $0xeb8] sm:$0xff] }
  0x51   : > { %444 = vst [vmem:[%s4691_s27 + $0x3e0] sm:$0xff] %v443_v60  ;;  %446 = vst [vmem:[%s4691_s27 + $0x3e8] sm:$0xff] %v445_v61  ;;  %v449_v63 = vld [vmem:[%s4686_s26 + $0xec0] sm:$0xff]  ;;  %v451_v0 = vld [vmem:[%s4686_s26 + $0xec8] sm:$0xff] }
  0x52   : > { %448 = vst [vmem:[%s4691_s27 + $0x3f0] sm:$0xff] %v447_v62  ;;  %450 = vst [vmem:[%s4691_s27 + $0x3f8] sm:$0xff] %v449_v63  ;;  %v453_v1 = vld [vmem:[%s4686_s26 + $0xed0] sm:$0xff]  ;;  %v455_v2 = vld [vmem:[%s4686_s26 + $0xed8] sm:$0xff] }
  0x53   : > { %452 = vst [vmem:[%s4691_s27 + $0x400] sm:$0xff] %v451_v0  ;;  %v457_v3 = vld [vmem:[%s4686_s26 + $0xee0] sm:$0xff]  ;;  %454 = vst [vmem:[%s4691_s27 + $0x408] sm:$0xff] %v453_v1  ;;  %v459_v4 = vld [vmem:[%s4686_s26 + $0xee8] sm:$0xff] }
  0x54   : > { %456 = vst [vmem:[%s4691_s27 + $0x410] sm:$0xff] %v455_v2  ;;  %458 = vst [vmem:[%s4691_s27 + $0x418] sm:$0xff] %v457_v3  ;;  %v461_v5 = vld [vmem:[%s4686_s26 + $0xef0] sm:$0xff]  ;;  %v463_v6 = vld [vmem:[%s4686_s26 + $0xef8] sm:$0xff] }
  0x55   : > { %460 = vst [vmem:[%s4691_s27 + $0x420] sm:$0xff] %v459_v4  ;;  %462 = vst [vmem:[%s4691_s27 + $0x428] sm:$0xff] %v461_v5  ;;  %v465_v7 = vld [vmem:[%s4686_s26 + $0xf00] sm:$0xff]  ;;  %v467_v8 = vld [vmem:[%s4686_s26 + $0xf08] sm:$0xff] }
  0x56   : > { %464 = vst [vmem:[%s4691_s27 + $0x430] sm:$0xff] %v463_v6  ;;  %v469_v9 = vld [vmem:[%s4686_s26 + $0xf10] sm:$0xff]  ;;  %466 = vst [vmem:[%s4691_s27 + $0x438] sm:$0xff] %v465_v7  ;;  %v471_v10 = vld [vmem:[%s4686_s26 + $0x1140] sm:$0xff] }
  0x57   : > { %468 = vst [vmem:[%s4691_s27 + $0x440] sm:$0xff] %v467_v8  ;;  %470 = vst [vmem:[%s4691_s27 + $0x448] sm:$0xff] %v469_v9  ;;  %v473_v11 = vld [vmem:[%s4686_s26 + $0x1148] sm:$0xff]  ;;  %v475_v12 = vld [vmem:[%s4686_s26 + $0x1150] sm:$0xff] }
  0x58   : > { %472 = vst [vmem:[%s4691_s27 + $0x450] sm:$0xff] %v471_v10  ;;  %474 = vst [vmem:[%s4691_s27 + $0x458] sm:$0xff] %v473_v11  ;;  %v477_v13 = vld [vmem:[%s4686_s26 + $0x1158] sm:$0xff]  ;;  %v479_v14 = vld [vmem:[%s4686_s26 + $0x1160] sm:$0xff] }
  0x59   : > { %476 = vst [vmem:[%s4691_s27 + $0x460] sm:$0xff] %v475_v12  ;;  %v481_v15 = vld [vmem:[%s4686_s26 + $0x1168] sm:$0xff]  ;;  %478 = vst [vmem:[%s4691_s27 + $0x468] sm:$0xff] %v477_v13  ;;  %v483_v16 = vld [vmem:[%s4686_s26 + $0x1170] sm:$0xff] }
  0x5a   : > { %480 = vst [vmem:[%s4691_s27 + $0x470] sm:$0xff] %v479_v14  ;;  %482 = vst [vmem:[%s4691_s27 + $0x478] sm:$0xff] %v481_v15  ;;  %v485_v17 = vld [vmem:[%s4686_s26 + $0x1178] sm:$0xff]  ;;  %v487_v18 = vld [vmem:[%s4686_s26 + $0x1180] sm:$0xff] }
  0x5b   : > { %484 = vst [vmem:[%s4691_s27 + $0x480] sm:$0xff] %v483_v16  ;;  %486 = vst [vmem:[%s4691_s27 + $0x488] sm:$0xff] %v485_v17  ;;  %v489_v19 = vld [vmem:[%s4686_s26 + $0x1188] sm:$0xff]  ;;  %v491_v20 = vld [vmem:[%s4686_s26 + $0x1190] sm:$0xff] }
  0x5c   : > { %488 = vst [vmem:[%s4691_s27 + $0x490] sm:$0xff] %v487_v18  ;;  %v493_v21 = vld [vmem:[%s4686_s26 + $0x1198] sm:$0xff]  ;;  %490 = vst [vmem:[%s4691_s27 + $0x498] sm:$0xff] %v489_v19  ;;  %v495_v22 = vld [vmem:[%s4686_s26 + $0x11a0] sm:$0xff] }
  0x5d   : > { %492 = vst [vmem:[%s4691_s27 + $0x4a0] sm:$0xff] %v491_v20  ;;  %494 = vst [vmem:[%s4691_s27 + $0x4a8] sm:$0xff] %v493_v21  ;;  %v497_v23 = vld [vmem:[%s4686_s26 + $0x11a8] sm:$0xff]  ;;  %v499_v24 = vld [vmem:[%s4686_s26 + $0x11b0] sm:$0xff] }
  0x5e   : > { %496 = vst [vmem:[%s4691_s27 + $0x4b0] sm:$0xff] %v495_v22  ;;  %498 = vst [vmem:[%s4691_s27 + $0x4b8] sm:$0xff] %v497_v23  ;;  %v501_v25 = vld [vmem:[%s4686_s26 + $0x11b8] sm:$0xff]  ;;  %v503_v26 = vld [vmem:[%s4686_s26 + $0x11c0] sm:$0xff] }
  0x5f   : > { %500 = vst [vmem:[%s4691_s27 + $0x4c0] sm:$0xff] %v499_v24  ;;  %v505_v27 = vld [vmem:[%s4686_s26 + $0x11c8] sm:$0xff]  ;;  %502 = vst [vmem:[%s4691_s27 + $0x4c8] sm:$0xff] %v501_v25  ;;  %v507_v28 = vld [vmem:[%s4686_s26 + $0x11d0] sm:$0xff] }
  0x60   : > { %504 = vst [vmem:[%s4691_s27 + $0x4d0] sm:$0xff] %v503_v26  ;;  %506 = vst [vmem:[%s4691_s27 + $0x4d8] sm:$0xff] %v505_v27  ;;  %v509_v29 = vld [vmem:[%s4686_s26 + $0x11d8] sm:$0xff]  ;;  %v511_v30 = vld [vmem:[%s4686_s26 + $0x11e0] sm:$0xff] }
  0x61   : > { %508 = vst [vmem:[%s4691_s27 + $0x4e0] sm:$0xff] %v507_v28  ;;  %510 = vst [vmem:[%s4691_s27 + $0x4e8] sm:$0xff] %v509_v29  ;;  %v513_v31 = vld [vmem:[%s4686_s26 + $0x11e8] sm:$0xff]  ;;  %v515_v32 = vld [vmem:[%s4686_s26 + $0x11f0] sm:$0xff] }
  0x62   : > { %512 = vst [vmem:[%s4691_s27 + $0x4f0] sm:$0xff] %v511_v30  ;;  %v517_v33 = vld [vmem:[%s4686_s26 + $0x1420] sm:$0xff]  ;;  %514 = vst [vmem:[%s4691_s27 + $0x4f8] sm:$0xff] %v513_v31  ;;  %v519_v34 = vld [vmem:[%s4686_s26 + $0x1428] sm:$0xff] }
  0x63   : > { %516 = vst [vmem:[%s4691_s27 + $0x500] sm:$0xff] %v515_v32  ;;  %518 = vst [vmem:[%s4691_s27 + $0x508] sm:$0xff] %v517_v33  ;;  %v521_v35 = vld [vmem:[%s4686_s26 + $0x1430] sm:$0xff]  ;;  %v523_v36 = vld [vmem:[%s4686_s26 + $0x1438] sm:$0xff] }
  0x64   : > { %520 = vst [vmem:[%s4691_s27 + $0x510] sm:$0xff] %v519_v34  ;;  %522 = vst [vmem:[%s4691_s27 + $0x518] sm:$0xff] %v521_v35  ;;  %v525_v37 = vld [vmem:[%s4686_s26 + $0x1440] sm:$0xff]  ;;  %v527_v38 = vld [vmem:[%s4686_s26 + $0x1448] sm:$0xff] }
  0x65   : > { %524 = vst [vmem:[%s4691_s27 + $0x520] sm:$0xff] %v523_v36  ;;  %v529_v39 = vld [vmem:[%s4686_s26 + $0x1450] sm:$0xff]  ;;  %526 = vst [vmem:[%s4691_s27 + $0x528] sm:$0xff] %v525_v37  ;;  %v531_v40 = vld [vmem:[%s4686_s26 + $0x1458] sm:$0xff] }
  0x66   : > { %528 = vst [vmem:[%s4691_s27 + $0x530] sm:$0xff] %v527_v38  ;;  %530 = vst [vmem:[%s4691_s27 + $0x538] sm:$0xff] %v529_v39  ;;  %v533_v41 = vld [vmem:[%s4686_s26 + $0x1460] sm:$0xff]  ;;  %v535_v42 = vld [vmem:[%s4686_s26 + $0x1468] sm:$0xff] }
  0x67   : > { %532 = vst [vmem:[%s4691_s27 + $0x540] sm:$0xff] %v531_v40  ;;  %534 = vst [vmem:[%s4691_s27 + $0x548] sm:$0xff] %v533_v41  ;;  %v537_v43 = vld [vmem:[%s4686_s26 + $0x1470] sm:$0xff]  ;;  %v539_v44 = vld [vmem:[%s4686_s26 + $0x1478] sm:$0xff] }
  0x68   : > { %536 = vst [vmem:[%s4691_s27 + $0x550] sm:$0xff] %v535_v42  ;;  %v541_v45 = vld [vmem:[%s4686_s26 + $0x1480] sm:$0xff]  ;;  %538 = vst [vmem:[%s4691_s27 + $0x558] sm:$0xff] %v537_v43  ;;  %v543_v46 = vld [vmem:[%s4686_s26 + $0x1488] sm:$0xff] }
  0x69   : > { %540 = vst [vmem:[%s4691_s27 + $0x560] sm:$0xff] %v539_v44  ;;  %542 = vst [vmem:[%s4691_s27 + $0x568] sm:$0xff] %v541_v45  ;;  %v545_v47 = vld [vmem:[%s4686_s26 + $0x1490] sm:$0xff]  ;;  %v547_v48 = vld [vmem:[%s4686_s26 + $0x1498] sm:$0xff] }
  0x6a   : > { %544 = vst [vmem:[%s4691_s27 + $0x570] sm:$0xff] %v543_v46  ;;  %546 = vst [vmem:[%s4691_s27 + $0x578] sm:$0xff] %v545_v47  ;;  %v549_v49 = vld [vmem:[%s4686_s26 + $0x14a0] sm:$0xff]  ;;  %v551_v50 = vld [vmem:[%s4686_s26 + $0x14a8] sm:$0xff] }
  0x6b   : > { %548 = vst [vmem:[%s4691_s27 + $0x580] sm:$0xff] %v547_v48  ;;  %v553_v51 = vld [vmem:[%s4686_s26 + $0x14b0] sm:$0xff]  ;;  %550 = vst [vmem:[%s4691_s27 + $0x588] sm:$0xff] %v549_v49  ;;  %v555_v52 = vld [vmem:[%s4686_s26 + $0x14b8] sm:$0xff] }
  0x6c   : > { %552 = vst [vmem:[%s4691_s27 + $0x590] sm:$0xff] %v551_v50  ;;  %554 = vst [vmem:[%s4691_s27 + $0x598] sm:$0xff] %v553_v51  ;;  %v557_v53 = vld [vmem:[%s4686_s26 + $0x14c0] sm:$0xff]  ;;  %v559_v54 = vld [vmem:[%s4686_s26 + $0x14c8] sm:$0xff] }
  0x6d   : > { %556 = vst [vmem:[%s4691_s27 + $0x5a0] sm:$0xff] %v555_v52  ;;  %558 = vst [vmem:[%s4691_s27 + $0x5a8] sm:$0xff] %v557_v53  ;;  %v561_v55 = vld [vmem:[%s4686_s26 + $0x14d0] sm:$0xff]  ;;  %v563_v56 = vld [vmem:[%s4686_s26 + $0x1700] sm:$0xff] }
  0x6e   : > { %560 = vst [vmem:[%s4691_s27 + $0x5b0] sm:$0xff] %v559_v54  ;;  %v565_v57 = vld [vmem:[%s4686_s26 + $0x1708] sm:$0xff]  ;;  %562 = vst [vmem:[%s4691_s27 + $0x5b8] sm:$0xff] %v561_v55  ;;  %v567_v58 = vld [vmem:[%s4686_s26 + $0x1710] sm:$0xff] }
  0x6f   : > { %564 = vst [vmem:[%s4691_s27 + $0x5c0] sm:$0xff] %v563_v56  ;;  %566 = vst [vmem:[%s4691_s27 + $0x5c8] sm:$0xff] %v565_v57  ;;  %v569_v59 = vld [vmem:[%s4686_s26 + $0x1718] sm:$0xff]  ;;  %v571_v60 = vld [vmem:[%s4686_s26 + $0x1720] sm:$0xff] }
  0x70   : > { %568 = vst [vmem:[%s4691_s27 + $0x5d0] sm:$0xff] %v567_v58  ;;  %570 = vst [vmem:[%s4691_s27 + $0x5d8] sm:$0xff] %v569_v59  ;;  %v573_v61 = vld [vmem:[%s4686_s26 + $0x1728] sm:$0xff]  ;;  %v575_v62 = vld [vmem:[%s4686_s26 + $0x1730] sm:$0xff] }
  0x71   : > { %572 = vst [vmem:[%s4691_s27 + $0x5e0] sm:$0xff] %v571_v60  ;;  %v577_v63 = vld [vmem:[%s4686_s26 + $0x1738] sm:$0xff]  ;;  %574 = vst [vmem:[%s4691_s27 + $0x5e8] sm:$0xff] %v573_v61  ;;  %v579_v0 = vld [vmem:[%s4686_s26 + $0x1740] sm:$0xff] }
  0x72   : > { %576 = vst [vmem:[%s4691_s27 + $0x5f0] sm:$0xff] %v575_v62  ;;  %578 = vst [vmem:[%s4691_s27 + $0x5f8] sm:$0xff] %v577_v63  ;;  %v581_v1 = vld [vmem:[%s4686_s26 + $0x1748] sm:$0xff]  ;;  %v583_v2 = vld [vmem:[%s4686_s26 + $0x1750] sm:$0xff] }
  0x73   : > { %580 = vst [vmem:[%s4691_s27 + $0x600] sm:$0xff] %v579_v0  ;;  %582 = vst [vmem:[%s4691_s27 + $0x608] sm:$0xff] %v581_v1  ;;  %v585_v3 = vld [vmem:[%s4686_s26 + $0x1758] sm:$0xff]  ;;  %v587_v4 = vld [vmem:[%s4686_s26 + $0x1760] sm:$0xff] }
  0x74   : > { %584 = vst [vmem:[%s4691_s27 + $0x610] sm:$0xff] %v583_v2  ;;  %v589_v5 = vld [vmem:[%s4686_s26 + $0x1768] sm:$0xff]  ;;  %586 = vst [vmem:[%s4691_s27 + $0x618] sm:$0xff] %v585_v3  ;;  %v591_v6 = vld [vmem:[%s4686_s26 + $0x1770] sm:$0xff] }
  0x75   : > { %588 = vst [vmem:[%s4691_s27 + $0x620] sm:$0xff] %v587_v4  ;;  %590 = vst [vmem:[%s4691_s27 + $0x628] sm:$0xff] %v589_v5  ;;  %v593_v7 = vld [vmem:[%s4686_s26 + $0x1778] sm:$0xff]  ;;  %v595_v8 = vld [vmem:[%s4686_s26 + $0x1780] sm:$0xff] }
  0x76   : > { %592 = vst [vmem:[%s4691_s27 + $0x630] sm:$0xff] %v591_v6  ;;  %594 = vst [vmem:[%s4691_s27 + $0x638] sm:$0xff] %v593_v7  ;;  %v597_v9 = vld [vmem:[%s4686_s26 + $0x1788] sm:$0xff]  ;;  %v599_v10 = vld [vmem:[%s4686_s26 + $0x1790] sm:$0xff] }
  0x77   : > { %596 = vst [vmem:[%s4691_s27 + $0x640] sm:$0xff] %v595_v8  ;;  %v601_v11 = vld [vmem:[%s4686_s26 + $0x1798] sm:$0xff]  ;;  %598 = vst [vmem:[%s4691_s27 + $0x648] sm:$0xff] %v597_v9  ;;  %v603_v12 = vld [vmem:[%s4686_s26 + $0x17a0] sm:$0xff] }
  0x78   : > { %600 = vst [vmem:[%s4691_s27 + $0x650] sm:$0xff] %v599_v10  ;;  %602 = vst [vmem:[%s4691_s27 + $0x658] sm:$0xff] %v601_v11  ;;  %v605_v13 = vld [vmem:[%s4686_s26 + $0x17a8] sm:$0xff]  ;;  %v607_v14 = vld [vmem:[%s4686_s26 + $0x17b0] sm:$0xff] }
  0x79   : > { %604 = vst [vmem:[%s4691_s27 + $0x660] sm:$0xff] %v603_v12  ;;  %606 = vst [vmem:[%s4691_s27 + $0x668] sm:$0xff] %v605_v13  ;;  %v609_v15 = vld [vmem:[%s4686_s26 + $0x19e0] sm:$0xff]  ;;  %v611_v16 = vld [vmem:[%s4686_s26 + $0x19e8] sm:$0xff] }
  0x7a   : > { %608 = vst [vmem:[%s4691_s27 + $0x670] sm:$0xff] %v607_v14  ;;  %v613_v17 = vld [vmem:[%s4686_s26 + $0x19f0] sm:$0xff]  ;;  %610 = vst [vmem:[%s4691_s27 + $0x678] sm:$0xff] %v609_v15  ;;  %v615_v18 = vld [vmem:[%s4686_s26 + $0x19f8] sm:$0xff] }
  0x7b   : > { %612 = vst [vmem:[%s4691_s27 + $0x680] sm:$0xff] %v611_v16  ;;  %614 = vst [vmem:[%s4691_s27 + $0x688] sm:$0xff] %v613_v17  ;;  %v617_v19 = vld [vmem:[%s4686_s26 + $0x1a00] sm:$0xff]  ;;  %v619_v20 = vld [vmem:[%s4686_s26 + $0x1a08] sm:$0xff] }
  0x7c   : > { %616 = vst [vmem:[%s4691_s27 + $0x690] sm:$0xff] %v615_v18  ;;  %618 = vst [vmem:[%s4691_s27 + $0x698] sm:$0xff] %v617_v19  ;;  %v621_v21 = vld [vmem:[%s4686_s26 + $0x1a10] sm:$0xff]  ;;  %v623_v22 = vld [vmem:[%s4686_s26 + $0x1a18] sm:$0xff] }
  0x7d   : > { %620 = vst [vmem:[%s4691_s27 + $0x6a0] sm:$0xff] %v619_v20  ;;  %v625_v23 = vld [vmem:[%s4686_s26 + $0x1a20] sm:$0xff]  ;;  %622 = vst [vmem:[%s4691_s27 + $0x6a8] sm:$0xff] %v621_v21  ;;  %v627_v24 = vld [vmem:[%s4686_s26 + $0x1a28] sm:$0xff] }
  0x7e   : > { %624 = vst [vmem:[%s4691_s27 + $0x6b0] sm:$0xff] %v623_v22  ;;  %626 = vst [vmem:[%s4691_s27 + $0x6b8] sm:$0xff] %v625_v23  ;;  %v629_v25 = vld [vmem:[%s4686_s26 + $0x1a30] sm:$0xff]  ;;  %v631_v26 = vld [vmem:[%s4686_s26 + $0x1a38] sm:$0xff] }
  0x7f   : > { %628 = vst [vmem:[%s4691_s27 + $0x6c0] sm:$0xff] %v627_v24  ;;  %630 = vst [vmem:[%s4691_s27 + $0x6c8] sm:$0xff] %v629_v25  ;;  %v633_v27 = vld [vmem:[%s4686_s26 + $0x1a40] sm:$0xff]  ;;  %v635_v28 = vld [vmem:[%s4686_s26 + $0x1a48] sm:$0xff] }
  0x80   : > { %632 = vst [vmem:[%s4691_s27 + $0x6d0] sm:$0xff] %v631_v26  ;;  %v637_v29 = vld [vmem:[%s4686_s26 + $0x1a50] sm:$0xff]  ;;  %634 = vst [vmem:[%s4691_s27 + $0x6d8] sm:$0xff] %v633_v27  ;;  %v639_v30 = vld [vmem:[%s4686_s26 + $0x1a58] sm:$0xff] }
  0x81   : > { %636 = vst [vmem:[%s4691_s27 + $0x6e0] sm:$0xff] %v635_v28  ;;  %638 = vst [vmem:[%s4691_s27 + $0x6e8] sm:$0xff] %v637_v29  ;;  %v641_v31 = vld [vmem:[%s4686_s26 + $0x1a60] sm:$0xff]  ;;  %v643_v32 = vld [vmem:[%s4686_s26 + $0x1a68] sm:$0xff] }
  0x82   : > { %640 = vst [vmem:[%s4691_s27 + $0x6f0] sm:$0xff] %v639_v30  ;;  %642 = vst [vmem:[%s4691_s27 + $0x6f8] sm:$0xff] %v641_v31  ;;  %v645_v33 = vld [vmem:[%s4686_s26 + $0x1a70] sm:$0xff]  ;;  %v647_v34 = vld [vmem:[%s4686_s26 + $0x1a78] sm:$0xff] }
  0x83   : > { %644 = vst [vmem:[%s4691_s27 + $0x700] sm:$0xff] %v643_v32  ;;  %v649_v35 = vld [vmem:[%s4686_s26 + $0x1a80] sm:$0xff]  ;;  %646 = vst [vmem:[%s4691_s27 + $0x708] sm:$0xff] %v645_v33  ;;  %v651_v36 = vld [vmem:[%s4686_s26 + $0x1a88] sm:$0xff] }
  0x84   : > { %648 = vst [vmem:[%s4691_s27 + $0x710] sm:$0xff] %v647_v34  ;;  %650 = vst [vmem:[%s4691_s27 + $0x718] sm:$0xff] %v649_v35  ;;  %v653_v37 = vld [vmem:[%s4686_s26 + $0x1a90] sm:$0xff]  ;;  %v655_v38 = vld [vmem:[%s4686_s26 + $0x1cc0] sm:$0xff] }
  0x85   : > { %652 = vst [vmem:[%s4691_s27 + $0x720] sm:$0xff] %v651_v36  ;;  %654 = vst [vmem:[%s4691_s27 + $0x728] sm:$0xff] %v653_v37  ;;  %v657_v39 = vld [vmem:[%s4686_s26 + $0x1cc8] sm:$0xff]  ;;  %v659_v40 = vld [vmem:[%s4686_s26 + $0x1cd0] sm:$0xff] }
  0x86   : > { %656 = vst [vmem:[%s4691_s27 + $0x730] sm:$0xff] %v655_v38  ;;  %v661_v41 = vld [vmem:[%s4686_s26 + $0x1cd8] sm:$0xff]  ;;  %658 = vst [vmem:[%s4691_s27 + $0x738] sm:$0xff] %v657_v39  ;;  %v663_v42 = vld [vmem:[%s4686_s26 + $0x1ce0] sm:$0xff] }
  0x87   : > { %660 = vst [vmem:[%s4691_s27 + $0x740] sm:$0xff] %v659_v40  ;;  %662 = vst [vmem:[%s4691_s27 + $0x748] sm:$0xff] %v661_v41  ;;  %v665_v43 = vld [vmem:[%s4686_s26 + $0x1ce8] sm:$0xff]  ;;  %v667_v44 = vld [vmem:[%s4686_s26 + $0x1cf0] sm:$0xff] }
  0x88   : > { %664 = vst [vmem:[%s4691_s27 + $0x750] sm:$0xff] %v663_v42  ;;  %666 = vst [vmem:[%s4691_s27 + $0x758] sm:$0xff] %v665_v43  ;;  %v669_v45 = vld [vmem:[%s4686_s26 + $0x1cf8] sm:$0xff]  ;;  %v671_v46 = vld [vmem:[%s4686_s26 + $0x1d00] sm:$0xff] }
  0x89   : > { %668 = vst [vmem:[%s4691_s27 + $0x760] sm:$0xff] %v667_v44  ;;  %v673_v47 = vld [vmem:[%s4686_s26 + $0x1d08] sm:$0xff]  ;;  %670 = vst [vmem:[%s4691_s27 + $0x768] sm:$0xff] %v669_v45  ;;  %v675_v48 = vld [vmem:[%s4686_s26 + $0x1d10] sm:$0xff] }
  0x8a   : > { %672 = vst [vmem:[%s4691_s27 + $0x770] sm:$0xff] %v671_v46  ;;  %674 = vst [vmem:[%s4691_s27 + $0x778] sm:$0xff] %v673_v47  ;;  %v677_v49 = vld [vmem:[%s4686_s26 + $0x1d18] sm:$0xff]  ;;  %v679_v50 = vld [vmem:[%s4686_s26 + $0x1d20] sm:$0xff] }
  0x8b   : > { %676 = vst [vmem:[%s4691_s27 + $0x780] sm:$0xff] %v675_v48  ;;  %678 = vst [vmem:[%s4691_s27 + $0x788] sm:$0xff] %v677_v49  ;;  %v681_v51 = vld [vmem:[%s4686_s26 + $0x1d28] sm:$0xff]  ;;  %v683_v52 = vld [vmem:[%s4686_s26 + $0x1d30] sm:$0xff] }
  0x8c   : > { %680 = vst [vmem:[%s4691_s27 + $0x790] sm:$0xff] %v679_v50  ;;  %v685_v53 = vld [vmem:[%s4686_s26 + $0x1d38] sm:$0xff]  ;;  %682 = vst [vmem:[%s4691_s27 + $0x798] sm:$0xff] %v681_v51  ;;  %v687_v54 = vld [vmem:[%s4686_s26 + $0x1d40] sm:$0xff] }
  0x8d   : > { %684 = vst [vmem:[%s4691_s27 + $0x7a0] sm:$0xff] %v683_v52  ;;  %686 = vst [vmem:[%s4691_s27 + $0x7a8] sm:$0xff] %v685_v53  ;;  %v689_v55 = vld [vmem:[%s4686_s26 + $0x1d48] sm:$0xff]  ;;  %v691_v56 = vld [vmem:[%s4686_s26 + $0x1d50] sm:$0xff] }
  0x8e   : > { %688 = vst [vmem:[%s4691_s27 + $0x7b0] sm:$0xff] %v687_v54  ;;  %690 = vst [vmem:[%s4691_s27 + $0x7b8] sm:$0xff] %v689_v55  ;;  %v693_v57 = vld [vmem:[%s4686_s26 + $0x1d58] sm:$0xff]  ;;  %v695_v58 = vld [vmem:[%s4686_s26 + $0x1d60] sm:$0xff] }
  0x8f   : > { %692 = vst [vmem:[%s4691_s27 + $0x7c0] sm:$0xff] %v691_v56  ;;  %v697_v59 = vld [vmem:[%s4686_s26 + $0x1d68] sm:$0xff]  ;;  %694 = vst [vmem:[%s4691_s27 + $0x7c8] sm:$0xff] %v693_v57  ;;  %v699_v60 = vld [vmem:[%s4686_s26 + $0x1d70] sm:$0xff] }
  0x90   : > { %696 = vst [vmem:[%s4691_s27 + $0x7d0] sm:$0xff] %v695_v58  ;;  %698 = vst [vmem:[%s4691_s27 + $0x7d8] sm:$0xff] %v697_v59  ;;  %v701_v61 = vld [vmem:[%s4686_s26 + $0x1fa0] sm:$0xff]  ;;  %v703_v62 = vld [vmem:[%s4686_s26 + $0x1fa8] sm:$0xff] }
  0x91   : > { %700 = vst [vmem:[%s4691_s27 + $0x7e0] sm:$0xff] %v699_v60  ;;  %702 = vst [vmem:[%s4691_s27 + $0x7e8] sm:$0xff] %v701_v61  ;;  %v705_v63 = vld [vmem:[%s4686_s26 + $0x1fb0] sm:$0xff]  ;;  %v707_v0 = vld [vmem:[%s4686_s26 + $0x1fb8] sm:$0xff] }
  0x92   : > { %704 = vst [vmem:[%s4691_s27 + $0x7f0] sm:$0xff] %v703_v62  ;;  %v709_v1 = vld [vmem:[%s4686_s26 + $0x1fc0] sm:$0xff]  ;;  %706 = vst [vmem:[%s4691_s27 + $0x7f8] sm:$0xff] %v705_v63  ;;  %v711_v2 = vld [vmem:[%s4686_s26 + $0x1fc8] sm:$0xff] }
  0x93   : > { %708 = vst [vmem:[%s4691_s27 + $0x800] sm:$0xff] %v707_v0  ;;  %710 = vst [vmem:[%s4691_s27 + $0x808] sm:$0xff] %v709_v1  ;;  %v713_v3 = vld [vmem:[%s4686_s26 + $0x1fd0] sm:$0xff]  ;;  %v715_v4 = vld [vmem:[%s4686_s26 + $0x1fd8] sm:$0xff] }
  0x94   : > { %712 = vst [vmem:[%s4691_s27 + $0x810] sm:$0xff] %v711_v2  ;;  %714 = vst [vmem:[%s4691_s27 + $0x818] sm:$0xff] %v713_v3  ;;  %v717_v5 = vld [vmem:[%s4686_s26 + $0x1fe0] sm:$0xff]  ;;  %v719_v6 = vld [vmem:[%s4686_s26 + $0x1fe8] sm:$0xff] }
  0x95   : > { %716 = vst [vmem:[%s4691_s27 + $0x820] sm:$0xff] %v715_v4  ;;  %v721_v7 = vld [vmem:[%s4686_s26 + $0x1ff0] sm:$0xff]  ;;  %718 = vst [vmem:[%s4691_s27 + $0x828] sm:$0xff] %v717_v5  ;;  %v723_v8 = vld [vmem:[%s4686_s26 + $0x1ff8] sm:$0xff] }
  0x96   : > { %720 = vst [vmem:[%s4691_s27 + $0x830] sm:$0xff] %v719_v6  ;;  %722 = vst [vmem:[%s4691_s27 + $0x838] sm:$0xff] %v721_v7  ;;  %v725_v9 = vld [vmem:[%s4686_s26 + $0x2000] sm:$0xff]  ;;  %v727_v10 = vld [vmem:[%s4686_s26 + $0x2008] sm:$0xff] }
  0x97   : > { %724 = vst [vmem:[%s4691_s27 + $0x840] sm:$0xff] %v723_v8  ;;  %726 = vst [vmem:[%s4691_s27 + $0x848] sm:$0xff] %v725_v9  ;;  %v729_v11 = vld [vmem:[%s4686_s26 + $0x2010] sm:$0xff]  ;;  %v731_v12 = vld [vmem:[%s4686_s26 + $0x2018] sm:$0xff] }
  0x98   : > { %728 = vst [vmem:[%s4691_s27 + $0x850] sm:$0xff] %v727_v10  ;;  %v733_v13 = vld [vmem:[%s4686_s26 + $0x2020] sm:$0xff]  ;;  %730 = vst [vmem:[%s4691_s27 + $0x858] sm:$0xff] %v729_v11  ;;  %v735_v14 = vld [vmem:[%s4686_s26 + $0x2028] sm:$0xff] }
  0x99   : > { %732 = vst [vmem:[%s4691_s27 + $0x860] sm:$0xff] %v731_v12  ;;  %734 = vst [vmem:[%s4691_s27 + $0x868] sm:$0xff] %v733_v13  ;;  %v737_v15 = vld [vmem:[%s4686_s26 + $0x2030] sm:$0xff]  ;;  %v739_v16 = vld [vmem:[%s4686_s26 + $0x2038] sm:$0xff] }
  0x9a   : > { %736 = vst [vmem:[%s4691_s27 + $0x870] sm:$0xff] %v735_v14  ;;  %738 = vst [vmem:[%s4691_s27 + $0x878] sm:$0xff] %v737_v15  ;;  %v741_v17 = vld [vmem:[%s4686_s26 + $0x2040] sm:$0xff]  ;;  %v743_v18 = vld [vmem:[%s4686_s26 + $0x2048] sm:$0xff] }
  0x9b   : > { %740 = vst [vmem:[%s4691_s27 + $0x880] sm:$0xff] %v739_v16  ;;  %v745_v19 = vld [vmem:[%s4686_s26 + $0x2050] sm:$0xff]  ;;  %742 = vst [vmem:[%s4691_s27 + $0x888] sm:$0xff] %v741_v17  ;;  %v747_v20 = vld [vmem:[%s4686_s26 + $0x2280] sm:$0xff] }
  0x9c   : > { %744 = vst [vmem:[%s4691_s27 + $0x890] sm:$0xff] %v743_v18  ;;  %746 = vst [vmem:[%s4691_s27 + $0x898] sm:$0xff] %v745_v19  ;;  %v749_v21 = vld [vmem:[%s4686_s26 + $0x2288] sm:$0xff]  ;;  %v751_v22 = vld [vmem:[%s4686_s26 + $0x2290] sm:$0xff] }
  0x9d   : > { %748 = vst [vmem:[%s4691_s27 + $0x8a0] sm:$0xff] %v747_v20  ;;  %750 = vst [vmem:[%s4691_s27 + $0x8a8] sm:$0xff] %v749_v21  ;;  %v753_v23 = vld [vmem:[%s4686_s26 + $0x2298] sm:$0xff]  ;;  %v755_v24 = vld [vmem:[%s4686_s26 + $0x22a0] sm:$0xff] }
  0x9e   : > { %752 = vst [vmem:[%s4691_s27 + $0x8b0] sm:$0xff] %v751_v22  ;;  %v757_v25 = vld [vmem:[%s4686_s26 + $0x22a8] sm:$0xff]  ;;  %754 = vst [vmem:[%s4691_s27 + $0x8b8] sm:$0xff] %v753_v23  ;;  %v759_v26 = vld [vmem:[%s4686_s26 + $0x22b0] sm:$0xff] }
  0x9f   : > { %756 = vst [vmem:[%s4691_s27 + $0x8c0] sm:$0xff] %v755_v24  ;;  %758 = vst [vmem:[%s4691_s27 + $0x8c8] sm:$0xff] %v757_v25  ;;  %v761_v27 = vld [vmem:[%s4686_s26 + $0x22b8] sm:$0xff]  ;;  %v763_v28 = vld [vmem:[%s4686_s26 + $0x22c0] sm:$0xff] }
  0xa0   : > { %760 = vst [vmem:[%s4691_s27 + $0x8d0] sm:$0xff] %v759_v26  ;;  %762 = vst [vmem:[%s4691_s27 + $0x8d8] sm:$0xff] %v761_v27  ;;  %v765_v29 = vld [vmem:[%s4686_s26 + $0x22c8] sm:$0xff]  ;;  %v767_v30 = vld [vmem:[%s4686_s26 + $0x22d0] sm:$0xff] }
  0xa1   : > { %764 = vst [vmem:[%s4691_s27 + $0x8e0] sm:$0xff] %v763_v28  ;;  %v769_v31 = vld [vmem:[%s4686_s26 + $0x22d8] sm:$0xff]  ;;  %766 = vst [vmem:[%s4691_s27 + $0x8e8] sm:$0xff] %v765_v29  ;;  %v771_v32 = vld [vmem:[%s4686_s26 + $0x22e0] sm:$0xff] }
  0xa2   : > { %768 = vst [vmem:[%s4691_s27 + $0x8f0] sm:$0xff] %v767_v30  ;;  %770 = vst [vmem:[%s4691_s27 + $0x8f8] sm:$0xff] %v769_v31  ;;  %v773_v33 = vld [vmem:[%s4686_s26 + $0x22e8] sm:$0xff]  ;;  %v775_v34 = vld [vmem:[%s4686_s26 + $0x22f0] sm:$0xff] }
  0xa3   : > { %772 = vst [vmem:[%s4691_s27 + $0x900] sm:$0xff] %v771_v32  ;;  %774 = vst [vmem:[%s4691_s27 + $0x908] sm:$0xff] %v773_v33  ;;  %v777_v35 = vld [vmem:[%s4686_s26 + $0x22f8] sm:$0xff]  ;;  %v779_v36 = vld [vmem:[%s4686_s26 + $0x2300] sm:$0xff] }
  0xa4   : > { %776 = vst [vmem:[%s4691_s27 + $0x910] sm:$0xff] %v775_v34  ;;  %v781_v37 = vld [vmem:[%s4686_s26 + $0x2308] sm:$0xff]  ;;  %778 = vst [vmem:[%s4691_s27 + $0x918] sm:$0xff] %v777_v35  ;;  %v783_v38 = vld [vmem:[%s4686_s26 + $0x2310] sm:$0xff] }
  0xa5   : > { %780 = vst [vmem:[%s4691_s27 + $0x920] sm:$0xff] %v779_v36  ;;  %782 = vst [vmem:[%s4691_s27 + $0x928] sm:$0xff] %v781_v37  ;;  %v785_v39 = vld [vmem:[%s4686_s26 + $0x2318] sm:$0xff]  ;;  %v787_v40 = vld [vmem:[%s4686_s26 + $0x2320] sm:$0xff] }
  0xa6   : > { %784 = vst [vmem:[%s4691_s27 + $0x930] sm:$0xff] %v783_v38  ;;  %786 = vst [vmem:[%s4691_s27 + $0x938] sm:$0xff] %v785_v39  ;;  %v789_v41 = vld [vmem:[%s4686_s26 + $0x2328] sm:$0xff]  ;;  %v791_v42 = vld [vmem:[%s4686_s26 + $0x2330] sm:$0xff] }
  0xa7   : > { %788 = vst [vmem:[%s4691_s27 + $0x940] sm:$0xff] %v787_v40  ;;  %v793_v43 = vld [vmem:[%s4686_s26 + $0x2560] sm:$0xff]  ;;  %790 = vst [vmem:[%s4691_s27 + $0x948] sm:$0xff] %v789_v41  ;;  %v795_v44 = vld [vmem:[%s4686_s26 + $0x2568] sm:$0xff] }
  0xa8   : > { %792 = vst [vmem:[%s4691_s27 + $0x950] sm:$0xff] %v791_v42  ;;  %794 = vst [vmem:[%s4691_s27 + $0x958] sm:$0xff] %v793_v43  ;;  %v797_v45 = vld [vmem:[%s4686_s26 + $0x2570] sm:$0xff]  ;;  %v799_v46 = vld [vmem:[%s4686_s26 + $0x2578] sm:$0xff] }
  0xa9   : > { %796 = vst [vmem:[%s4691_s27 + $0x960] sm:$0xff] %v795_v44  ;;  %798 = vst [vmem:[%s4691_s27 + $0x968] sm:$0xff] %v797_v45  ;;  %v801_v47 = vld [vmem:[%s4686_s26 + $0x2580] sm:$0xff]  ;;  %v803_v48 = vld [vmem:[%s4686_s26 + $0x2588] sm:$0xff] }
  0xaa   : > { %800 = vst [vmem:[%s4691_s27 + $0x970] sm:$0xff] %v799_v46  ;;  %v805_v49 = vld [vmem:[%s4686_s26 + $0x2590] sm:$0xff]  ;;  %802 = vst [vmem:[%s4691_s27 + $0x978] sm:$0xff] %v801_v47  ;;  %v807_v50 = vld [vmem:[%s4686_s26 + $0x2598] sm:$0xff] }
  0xab   : > { %804 = vst [vmem:[%s4691_s27 + $0x980] sm:$0xff] %v803_v48  ;;  %806 = vst [vmem:[%s4691_s27 + $0x988] sm:$0xff] %v805_v49  ;;  %v809_v51 = vld [vmem:[%s4686_s26 + $0x25a0] sm:$0xff]  ;;  %v811_v52 = vld [vmem:[%s4686_s26 + $0x25a8] sm:$0xff] }
  0xac   : > { %808 = vst [vmem:[%s4691_s27 + $0x990] sm:$0xff] %v807_v50  ;;  %810 = vst [vmem:[%s4691_s27 + $0x998] sm:$0xff] %v809_v51  ;;  %v813_v53 = vld [vmem:[%s4686_s26 + $0x25b0] sm:$0xff]  ;;  %v815_v54 = vld [vmem:[%s4686_s26 + $0x25b8] sm:$0xff] }
  0xad   : > { %812 = vst [vmem:[%s4691_s27 + $0x9a0] sm:$0xff] %v811_v52  ;;  %v817_v55 = vld [vmem:[%s4686_s26 + $0x25c0] sm:$0xff]  ;;  %814 = vst [vmem:[%s4691_s27 + $0x9a8] sm:$0xff] %v813_v53  ;;  %v819_v56 = vld [vmem:[%s4686_s26 + $0x25c8] sm:$0xff] }
  0xae   : > { %816 = vst [vmem:[%s4691_s27 + $0x9b0] sm:$0xff] %v815_v54  ;;  %818 = vst [vmem:[%s4691_s27 + $0x9b8] sm:$0xff] %v817_v55  ;;  %v821_v57 = vld [vmem:[%s4686_s26 + $0x25d0] sm:$0xff]  ;;  %v823_v58 = vld [vmem:[%s4686_s26 + $0x25d8] sm:$0xff] }
  0xaf   : > { %820 = vst [vmem:[%s4691_s27 + $0x9c0] sm:$0xff] %v819_v56  ;;  %822 = vst [vmem:[%s4691_s27 + $0x9c8] sm:$0xff] %v821_v57  ;;  %v825_v59 = vld [vmem:[%s4686_s26 + $0x25e0] sm:$0xff]  ;;  %v827_v60 = vld [vmem:[%s4686_s26 + $0x25e8] sm:$0xff] }
  0xb0   : > { %824 = vst [vmem:[%s4691_s27 + $0x9d0] sm:$0xff] %v823_v58  ;;  %v829_v61 = vld [vmem:[%s4686_s26 + $0x25f0] sm:$0xff]  ;;  %826 = vst [vmem:[%s4691_s27 + $0x9d8] sm:$0xff] %v825_v59  ;;  %v831_v62 = vld [vmem:[%s4686_s26 + $0x25f8] sm:$0xff] }
  0xb1   : > { %828 = vst [vmem:[%s4691_s27 + $0x9e0] sm:$0xff] %v827_v60  ;;  %830 = vst [vmem:[%s4691_s27 + $0x9e8] sm:$0xff] %v829_v61  ;;  %v833_v63 = vld [vmem:[%s4686_s26 + $0x2600] sm:$0xff]  ;;  %v835_v0 = vld [vmem:[%s4686_s26 + $0x2608] sm:$0xff] }
  0xb2   : > { %832 = vst [vmem:[%s4691_s27 + $0x9f0] sm:$0xff] %v831_v62  ;;  %834 = vst [vmem:[%s4691_s27 + $0x9f8] sm:$0xff] %v833_v63  ;;  %v837_v1 = vld [vmem:[%s4686_s26 + $0x2610] sm:$0xff]  ;;  %v839_v2 = vld [vmem:[%s4686_s26 + $0x2840] sm:$0xff] }
  0xb3   : > { %836 = vst [vmem:[%s4691_s27 + $0xa00] sm:$0xff] %v835_v0  ;;  %v841_v3 = vld [vmem:[%s4686_s26 + $0x2848] sm:$0xff]  ;;  %838 = vst [vmem:[%s4691_s27 + $0xa08] sm:$0xff] %v837_v1  ;;  %v843_v4 = vld [vmem:[%s4686_s26 + $0x2850] sm:$0xff] }
  0xb4   : > { %840 = vst [vmem:[%s4691_s27 + $0xa10] sm:$0xff] %v839_v2  ;;  %842 = vst [vmem:[%s4691_s27 + $0xa18] sm:$0xff] %v841_v3  ;;  %v845_v5 = vld [vmem:[%s4686_s26 + $0x2858] sm:$0xff]  ;;  %v847_v6 = vld [vmem:[%s4686_s26 + $0x2860] sm:$0xff] }
  0xb5   : > { %844 = vst [vmem:[%s4691_s27 + $0xa20] sm:$0xff] %v843_v4  ;;  %846 = vst [vmem:[%s4691_s27 + $0xa28] sm:$0xff] %v845_v5  ;;  %v849_v7 = vld [vmem:[%s4686_s26 + $0x2868] sm:$0xff]  ;;  %v851_v8 = vld [vmem:[%s4686_s26 + $0x2870] sm:$0xff] }
  0xb6   : > { %848 = vst [vmem:[%s4691_s27 + $0xa30] sm:$0xff] %v847_v6  ;;  %v853_v9 = vld [vmem:[%s4686_s26 + $0x2878] sm:$0xff]  ;;  %850 = vst [vmem:[%s4691_s27 + $0xa38] sm:$0xff] %v849_v7  ;;  %v855_v10 = vld [vmem:[%s4686_s26 + $0x2880] sm:$0xff] }
  0xb7   : > { %852 = vst [vmem:[%s4691_s27 + $0xa40] sm:$0xff] %v851_v8  ;;  %854 = vst [vmem:[%s4691_s27 + $0xa48] sm:$0xff] %v853_v9  ;;  %v857_v11 = vld [vmem:[%s4686_s26 + $0x2888] sm:$0xff]  ;;  %v859_v12 = vld [vmem:[%s4686_s26 + $0x2890] sm:$0xff] }
  0xb8   : > { %856 = vst [vmem:[%s4691_s27 + $0xa50] sm:$0xff] %v855_v10  ;;  %858 = vst [vmem:[%s4691_s27 + $0xa58] sm:$0xff] %v857_v11  ;;  %v861_v13 = vld [vmem:[%s4686_s26 + $0x2898] sm:$0xff]  ;;  %v863_v14 = vld [vmem:[%s4686_s26 + $0x28a0] sm:$0xff] }
  0xb9   : > { %860 = vst [vmem:[%s4691_s27 + $0xa60] sm:$0xff] %v859_v12  ;;  %v865_v15 = vld [vmem:[%s4686_s26 + $0x28a8] sm:$0xff]  ;;  %862 = vst [vmem:[%s4691_s27 + $0xa68] sm:$0xff] %v861_v13  ;;  %v867_v16 = vld [vmem:[%s4686_s26 + $0x28b0] sm:$0xff] }
  0xba   : > { %864 = vst [vmem:[%s4691_s27 + $0xa70] sm:$0xff] %v863_v14  ;;  %866 = vst [vmem:[%s4691_s27 + $0xa78] sm:$0xff] %v865_v15  ;;  %v869_v17 = vld [vmem:[%s4686_s26 + $0x28b8] sm:$0xff]  ;;  %v871_v18 = vld [vmem:[%s4686_s26 + $0x28c0] sm:$0xff] }
  0xbb   : > { %868 = vst [vmem:[%s4691_s27 + $0xa80] sm:$0xff] %v867_v16  ;;  %870 = vst [vmem:[%s4691_s27 + $0xa88] sm:$0xff] %v869_v17  ;;  %v873_v19 = vld [vmem:[%s4686_s26 + $0x28c8] sm:$0xff]  ;;  %v875_v20 = vld [vmem:[%s4686_s26 + $0x28d0] sm:$0xff] }
  0xbc   : > { %872 = vst [vmem:[%s4691_s27 + $0xa90] sm:$0xff] %v871_v18  ;;  %v877_v21 = vld [vmem:[%s4686_s26 + $0x28d8] sm:$0xff]  ;;  %874 = vst [vmem:[%s4691_s27 + $0xa98] sm:$0xff] %v873_v19  ;;  %v879_v22 = vld [vmem:[%s4686_s26 + $0x28e0] sm:$0xff] }
  0xbd   : > { %876 = vst [vmem:[%s4691_s27 + $0xaa0] sm:$0xff] %v875_v20  ;;  %878 = vst [vmem:[%s4691_s27 + $0xaa8] sm:$0xff] %v877_v21  ;;  %v881_v23 = vld [vmem:[%s4686_s26 + $0x28e8] sm:$0xff]  ;;  %v883_v24 = vld [vmem:[%s4686_s26 + $0x28f0] sm:$0xff] }
  0xbe   : > { %880 = vst [vmem:[%s4691_s27 + $0xab0] sm:$0xff] %v879_v22  ;;  %882 = vst [vmem:[%s4691_s27 + $0xab8] sm:$0xff] %v881_v23  ;;  %v885_v25 = vld [vmem:[%s4686_s26 + $0x2b20] sm:$0xff]  ;;  %v887_v26 = vld [vmem:[%s4686_s26 + $0x2b28] sm:$0xff] }
  0xbf   : > { %884 = vst [vmem:[%s4691_s27 + $0xac0] sm:$0xff] %v883_v24  ;;  %v889_v27 = vld [vmem:[%s4686_s26 + $0x2b30] sm:$0xff]  ;;  %886 = vst [vmem:[%s4691_s27 + $0xac8] sm:$0xff] %v885_v25  ;;  %v891_v28 = vld [vmem:[%s4686_s26 + $0x2b38] sm:$0xff] }
  0xc0   : > { %888 = vst [vmem:[%s4691_s27 + $0xad0] sm:$0xff] %v887_v26  ;;  %890 = vst [vmem:[%s4691_s27 + $0xad8] sm:$0xff] %v889_v27  ;;  %v893_v29 = vld [vmem:[%s4686_s26 + $0x2b40] sm:$0xff]  ;;  %v895_v30 = vld [vmem:[%s4686_s26 + $0x2b48] sm:$0xff] }
  0xc1   : > { %892 = vst [vmem:[%s4691_s27 + $0xae0] sm:$0xff] %v891_v28  ;;  %894 = vst [vmem:[%s4691_s27 + $0xae8] sm:$0xff] %v893_v29  ;;  %v897_v31 = vld [vmem:[%s4686_s26 + $0x2b50] sm:$0xff]  ;;  %v899_v32 = vld [vmem:[%s4686_s26 + $0x2b58] sm:$0xff] }
  0xc2   : > { %896 = vst [vmem:[%s4691_s27 + $0xaf0] sm:$0xff] %v895_v30  ;;  %v901_v33 = vld [vmem:[%s4686_s26 + $0x2b60] sm:$0xff]  ;;  %898 = vst [vmem:[%s4691_s27 + $0xaf8] sm:$0xff] %v897_v31  ;;  %v903_v34 = vld [vmem:[%s4686_s26 + $0x2b68] sm:$0xff] }
  0xc3   : > { %900 = vst [vmem:[%s4691_s27 + $0xb00] sm:$0xff] %v899_v32  ;;  %902 = vst [vmem:[%s4691_s27 + $0xb08] sm:$0xff] %v901_v33  ;;  %v905_v35 = vld [vmem:[%s4686_s26 + $0x2b70] sm:$0xff]  ;;  %v907_v36 = vld [vmem:[%s4686_s26 + $0x2b78] sm:$0xff] }
  0xc4   : > { %904 = vst [vmem:[%s4691_s27 + $0xb10] sm:$0xff] %v903_v34  ;;  %906 = vst [vmem:[%s4691_s27 + $0xb18] sm:$0xff] %v905_v35  ;;  %v909_v37 = vld [vmem:[%s4686_s26 + $0x2b80] sm:$0xff]  ;;  %v911_v38 = vld [vmem:[%s4686_s26 + $0x2b88] sm:$0xff] }
  0xc5   : > { %908 = vst [vmem:[%s4691_s27 + $0xb20] sm:$0xff] %v907_v36  ;;  %v913_v39 = vld [vmem:[%s4686_s26 + $0x2b90] sm:$0xff]  ;;  %910 = vst [vmem:[%s4691_s27 + $0xb28] sm:$0xff] %v909_v37  ;;  %v915_v40 = vld [vmem:[%s4686_s26 + $0x2b98] sm:$0xff] }
  0xc6   : > { %912 = vst [vmem:[%s4691_s27 + $0xb30] sm:$0xff] %v911_v38  ;;  %914 = vst [vmem:[%s4691_s27 + $0xb38] sm:$0xff] %v913_v39  ;;  %v917_v41 = vld [vmem:[%s4686_s26 + $0x2ba0] sm:$0xff]  ;;  %v919_v42 = vld [vmem:[%s4686_s26 + $0x2ba8] sm:$0xff] }
  0xc7   : > { %916 = vst [vmem:[%s4691_s27 + $0xb40] sm:$0xff] %v915_v40  ;;  %918 = vst [vmem:[%s4691_s27 + $0xb48] sm:$0xff] %v917_v41  ;;  %v921_v43 = vld [vmem:[%s4686_s26 + $0x2bb0] sm:$0xff]  ;;  %v923_v44 = vld [vmem:[%s4686_s26 + $0x2bb8] sm:$0xff] }
  0xc8   : > { %920 = vst [vmem:[%s4691_s27 + $0xb50] sm:$0xff] %v919_v42  ;;  %v925_v45 = vld [vmem:[%s4686_s26 + $0x2bc0] sm:$0xff]  ;;  %922 = vst [vmem:[%s4691_s27 + $0xb58] sm:$0xff] %v921_v43  ;;  %v927_v46 = vld [vmem:[%s4686_s26 + $0x2bc8] sm:$0xff] }
  0xc9   : > { %924 = vst [vmem:[%s4691_s27 + $0xb60] sm:$0xff] %v923_v44  ;;  %926 = vst [vmem:[%s4691_s27 + $0xb68] sm:$0xff] %v925_v45  ;;  %v929_v47 = vld [vmem:[%s4686_s26 + $0x2bd0] sm:$0xff]  ;;  %v931_v48 = vld [vmem:[%s4686_s26 + $0x2e00] sm:$0xff] }
  0xca   : > { %928 = vst [vmem:[%s4691_s27 + $0xb70] sm:$0xff] %v927_v46  ;;  %930 = vst [vmem:[%s4691_s27 + $0xb78] sm:$0xff] %v929_v47  ;;  %v933_v49 = vld [vmem:[%s4686_s26 + $0x2e08] sm:$0xff]  ;;  %v935_v50 = vld [vmem:[%s4686_s26 + $0x2e10] sm:$0xff] }
  0xcb   : > { %932 = vst [vmem:[%s4691_s27 + $0xb80] sm:$0xff] %v931_v48  ;;  %v937_v51 = vld [vmem:[%s4686_s26 + $0x2e18] sm:$0xff]  ;;  %934 = vst [vmem:[%s4691_s27 + $0xb88] sm:$0xff] %v933_v49  ;;  %v939_v52 = vld [vmem:[%s4686_s26 + $0x2e20] sm:$0xff] }
  0xcc   : > { %936 = vst [vmem:[%s4691_s27 + $0xb90] sm:$0xff] %v935_v50  ;;  %938 = vst [vmem:[%s4691_s27 + $0xb98] sm:$0xff] %v937_v51  ;;  %v941_v53 = vld [vmem:[%s4686_s26 + $0x2e28] sm:$0xff]  ;;  %v943_v54 = vld [vmem:[%s4686_s26 + $0x2e30] sm:$0xff] }
  0xcd   : > { %940 = vst [vmem:[%s4691_s27 + $0xba0] sm:$0xff] %v939_v52  ;;  %942 = vst [vmem:[%s4691_s27 + $0xba8] sm:$0xff] %v941_v53  ;;  %v945_v55 = vld [vmem:[%s4686_s26 + $0x2e38] sm:$0xff]  ;;  %v947_v56 = vld [vmem:[%s4686_s26 + $0x2e40] sm:$0xff] }
  0xce   : > { %944 = vst [vmem:[%s4691_s27 + $0xbb0] sm:$0xff] %v943_v54  ;;  %v949_v57 = vld [vmem:[%s4686_s26 + $0x2e48] sm:$0xff]  ;;  %946 = vst [vmem:[%s4691_s27 + $0xbb8] sm:$0xff] %v945_v55  ;;  %v951_v58 = vld [vmem:[%s4686_s26 + $0x2e50] sm:$0xff] }
  0xcf   : > { %948 = vst [vmem:[%s4691_s27 + $0xbc0] sm:$0xff] %v947_v56  ;;  %950 = vst [vmem:[%s4691_s27 + $0xbc8] sm:$0xff] %v949_v57  ;;  %v953_v59 = vld [vmem:[%s4686_s26 + $0x2e58] sm:$0xff]  ;;  %v955_v60 = vld [vmem:[%s4686_s26 + $0x2e60] sm:$0xff] }
  0xd0   : > { %952 = vst [vmem:[%s4691_s27 + $0xbd0] sm:$0xff] %v951_v58  ;;  %954 = vst [vmem:[%s4691_s27 + $0xbd8] sm:$0xff] %v953_v59  ;;  %v957_v61 = vld [vmem:[%s4686_s26 + $0x2e68] sm:$0xff]  ;;  %v959_v62 = vld [vmem:[%s4686_s26 + $0x2e70] sm:$0xff] }
  0xd1   : > { %956 = vst [vmem:[%s4691_s27 + $0xbe0] sm:$0xff] %v955_v60  ;;  %v961_v63 = vld [vmem:[%s4686_s26 + $0x2e78] sm:$0xff]  ;;  %958 = vst [vmem:[%s4691_s27 + $0xbe8] sm:$0xff] %v957_v61  ;;  %v963_v0 = vld [vmem:[%s4686_s26 + $0x2e80] sm:$0xff] }
  0xd2   : > { %960 = vst [vmem:[%s4691_s27 + $0xbf0] sm:$0xff] %v959_v62  ;;  %962 = vst [vmem:[%s4691_s27 + $0xbf8] sm:$0xff] %v961_v63  ;;  %v965_v1 = vld [vmem:[%s4686_s26 + $0x2e88] sm:$0xff]  ;;  %v967_v2 = vld [vmem:[%s4686_s26 + $0x2e90] sm:$0xff] }
  0xd3   : > { %964 = vst [vmem:[%s4691_s27 + $0xc00] sm:$0xff] %v963_v0  ;;  %966 = vst [vmem:[%s4691_s27 + $0xc08] sm:$0xff] %v965_v1  ;;  %v969_v3 = vld [vmem:[%s4686_s26 + $0x2e98] sm:$0xff]  ;;  %v971_v4 = vld [vmem:[%s4686_s26 + $0x2ea0] sm:$0xff] }
  0xd4   : > { %968 = vst [vmem:[%s4691_s27 + $0xc10] sm:$0xff] %v967_v2  ;;  %v973_v5 = vld [vmem:[%s4686_s26 + $0x2ea8] sm:$0xff]  ;;  %970 = vst [vmem:[%s4691_s27 + $0xc18] sm:$0xff] %v969_v3  ;;  %v975_v6 = vld [vmem:[%s4686_s26 + $0x2eb0] sm:$0xff] }
  0xd5   : > { %972 = vst [vmem:[%s4691_s27 + $0xc20] sm:$0xff] %v971_v4  ;;  %974 = vst [vmem:[%s4691_s27 + $0xc28] sm:$0xff] %v973_v5  ;;  %v977_v7 = vld [vmem:[%s4686_s26 + $0x30e0] sm:$0xff]  ;;  %v979_v8 = vld [vmem:[%s4686_s26 + $0x30e8] sm:$0xff] }
  0xd6   : > { %976 = vst [vmem:[%s4691_s27 + $0xc30] sm:$0xff] %v975_v6  ;;  %978 = vst [vmem:[%s4691_s27 + $0xc38] sm:$0xff] %v977_v7  ;;  %v981_v9 = vld [vmem:[%s4686_s26 + $0x30f0] sm:$0xff]  ;;  %v983_v10 = vld [vmem:[%s4686_s26 + $0x30f8] sm:$0xff] }
  0xd7   : > { %980 = vst [vmem:[%s4691_s27 + $0xc40] sm:$0xff] %v979_v8  ;;  %v985_v11 = vld [vmem:[%s4686_s26 + $0x3100] sm:$0xff]  ;;  %982 = vst [vmem:[%s4691_s27 + $0xc48] sm:$0xff] %v981_v9  ;;  %v987_v12 = vld [vmem:[%s4686_s26 + $0x3108] sm:$0xff] }
  0xd8   : > { %984 = vst [vmem:[%s4691_s27 + $0xc50] sm:$0xff] %v983_v10  ;;  %986 = vst [vmem:[%s4691_s27 + $0xc58] sm:$0xff] %v985_v11  ;;  %v989_v13 = vld [vmem:[%s4686_s26 + $0x3110] sm:$0xff]  ;;  %v991_v14 = vld [vmem:[%s4686_s26 + $0x3118] sm:$0xff] }
  0xd9   : > { %988 = vst [vmem:[%s4691_s27 + $0xc60] sm:$0xff] %v987_v12  ;;  %990 = vst [vmem:[%s4691_s27 + $0xc68] sm:$0xff] %v989_v13  ;;  %v993_v15 = vld [vmem:[%s4686_s26 + $0x3120] sm:$0xff]  ;;  %v995_v16 = vld [vmem:[%s4686_s26 + $0x3128] sm:$0xff] }
  0xda   : > { %992 = vst [vmem:[%s4691_s27 + $0xc70] sm:$0xff] %v991_v14  ;;  %v997_v17 = vld [vmem:[%s4686_s26 + $0x3130] sm:$0xff]  ;;  %994 = vst [vmem:[%s4691_s27 + $0xc78] sm:$0xff] %v993_v15  ;;  %v999_v18 = vld [vmem:[%s4686_s26 + $0x3138] sm:$0xff] }
  0xdb   : > { %996 = vst [vmem:[%s4691_s27 + $0xc80] sm:$0xff] %v995_v16  ;;  %998 = vst [vmem:[%s4691_s27 + $0xc88] sm:$0xff] %v997_v17  ;;  %v1001_v19 = vld [vmem:[%s4686_s26 + $0x3140] sm:$0xff]  ;;  %v1003_v20 = vld [vmem:[%s4686_s26 + $0x3148] sm:$0xff] }
  0xdc   : > { %1000 = vst [vmem:[%s4691_s27 + $0xc90] sm:$0xff] %v999_v18  ;;  %1002 = vst [vmem:[%s4691_s27 + $0xc98] sm:$0xff] %v1001_v19  ;;  %v1005_v21 = vld [vmem:[%s4686_s26 + $0x3150] sm:$0xff]  ;;  %v1007_v22 = vld [vmem:[%s4686_s26 + $0x3158] sm:$0xff] }
  0xdd   : > { %1004 = vst [vmem:[%s4691_s27 + $0xca0] sm:$0xff] %v1003_v20  ;;  %v1009_v23 = vld [vmem:[%s4686_s26 + $0x3160] sm:$0xff]  ;;  %1006 = vst [vmem:[%s4691_s27 + $0xca8] sm:$0xff] %v1005_v21  ;;  %v1011_v24 = vld [vmem:[%s4686_s26 + $0x3168] sm:$0xff] }
  0xde   : > { %1008 = vst [vmem:[%s4691_s27 + $0xcb0] sm:$0xff] %v1007_v22  ;;  %1010 = vst [vmem:[%s4691_s27 + $0xcb8] sm:$0xff] %v1009_v23  ;;  %v1013_v25 = vld [vmem:[%s4686_s26 + $0x3170] sm:$0xff]  ;;  %v1015_v26 = vld [vmem:[%s4686_s26 + $0x3178] sm:$0xff] }
  0xdf   : > { %1012 = vst [vmem:[%s4691_s27 + $0xcc0] sm:$0xff] %v1011_v24  ;;  %1014 = vst [vmem:[%s4691_s27 + $0xcc8] sm:$0xff] %v1013_v25  ;;  %v1017_v27 = vld [vmem:[%s4686_s26 + $0x3180] sm:$0xff]  ;;  %v1019_v28 = vld [vmem:[%s4686_s26 + $0x3188] sm:$0xff] }
  0xe0   : > { %1016 = vst [vmem:[%s4691_s27 + $0xcd0] sm:$0xff] %v1015_v26  ;;  %v1021_v29 = vld [vmem:[%s4686_s26 + $0x3190] sm:$0xff]  ;;  %1018 = vst [vmem:[%s4691_s27 + $0xcd8] sm:$0xff] %v1017_v27  ;;  %v1023_v30 = vld [vmem:[%s4686_s26 + $0x33c0] sm:$0xff] }
  0xe1   : > { %1020 = vst [vmem:[%s4691_s27 + $0xce0] sm:$0xff] %v1019_v28  ;;  %1022 = vst [vmem:[%s4691_s27 + $0xce8] sm:$0xff] %v1021_v29  ;;  %v1025_v31 = vld [vmem:[%s4686_s26 + $0x33c8] sm:$0xff]  ;;  %v1027_v32 = vld [vmem:[%s4686_s26 + $0x33d0] sm:$0xff] }
  0xe2   : > { %1024 = vst [vmem:[%s4691_s27 + $0xcf0] sm:$0xff] %v1023_v30  ;;  %1026 = vst [vmem:[%s4691_s27 + $0xcf8] sm:$0xff] %v1025_v31  ;;  %v1029_v33 = vld [vmem:[%s4686_s26 + $0x33d8] sm:$0xff]  ;;  %v1031_v34 = vld [vmem:[%s4686_s26 + $0x33e0] sm:$0xff] }
  0xe3   : > { %1028 = vst [vmem:[%s4691_s27 + $0xd00] sm:$0xff] %v1027_v32  ;;  %v1033_v35 = vld [vmem:[%s4686_s26 + $0x33e8] sm:$0xff]  ;;  %1030 = vst [vmem:[%s4691_s27 + $0xd08] sm:$0xff] %v1029_v33  ;;  %v1035_v36 = vld [vmem:[%s4686_s26 + $0x33f0] sm:$0xff] }
  0xe4   : > { %1032 = vst [vmem:[%s4691_s27 + $0xd10] sm:$0xff] %v1031_v34  ;;  %1034 = vst [vmem:[%s4691_s27 + $0xd18] sm:$0xff] %v1033_v35  ;;  %v1037_v37 = vld [vmem:[%s4686_s26 + $0x33f8] sm:$0xff]  ;;  %v1039_v38 = vld [vmem:[%s4686_s26 + $0x3400] sm:$0xff] }
  0xe5   : > { %1036 = vst [vmem:[%s4691_s27 + $0xd20] sm:$0xff] %v1035_v36  ;;  %1038 = vst [vmem:[%s4691_s27 + $0xd28] sm:$0xff] %v1037_v37  ;;  %v1041_v39 = vld [vmem:[%s4686_s26 + $0x3408] sm:$0xff]  ;;  %v1043_v40 = vld [vmem:[%s4686_s26 + $0x3410] sm:$0xff] }
  0xe6   : > { %1040 = vst [vmem:[%s4691_s27 + $0xd30] sm:$0xff] %v1039_v38  ;;  %v1045_v41 = vld [vmem:[%s4686_s26 + $0x3418] sm:$0xff]  ;;  %1042 = vst [vmem:[%s4691_s27 + $0xd38] sm:$0xff] %v1041_v39  ;;  %v1047_v42 = vld [vmem:[%s4686_s26 + $0x3420] sm:$0xff] }
  0xe7   : > { %1044 = vst [vmem:[%s4691_s27 + $0xd40] sm:$0xff] %v1043_v40  ;;  %1046 = vst [vmem:[%s4691_s27 + $0xd48] sm:$0xff] %v1045_v41  ;;  %v1049_v43 = vld [vmem:[%s4686_s26 + $0x3428] sm:$0xff]  ;;  %v1051_v44 = vld [vmem:[%s4686_s26 + $0x3430] sm:$0xff] }
  0xe8   : > { %1048 = vst [vmem:[%s4691_s27 + $0xd50] sm:$0xff] %v1047_v42  ;;  %1050 = vst [vmem:[%s4691_s27 + $0xd58] sm:$0xff] %v1049_v43  ;;  %v1053_v45 = vld [vmem:[%s4686_s26 + $0x3438] sm:$0xff]  ;;  %v1055_v46 = vld [vmem:[%s4686_s26 + $0x3440] sm:$0xff] }
  0xe9   : > { %1052 = vst [vmem:[%s4691_s27 + $0xd60] sm:$0xff] %v1051_v44  ;;  %v1057_v47 = vld [vmem:[%s4686_s26 + $0x3448] sm:$0xff]  ;;  %1054 = vst [vmem:[%s4691_s27 + $0xd68] sm:$0xff] %v1053_v45  ;;  %v1059_v48 = vld [vmem:[%s4686_s26 + $0x3450] sm:$0xff] }
  0xea   : > { %1056 = vst [vmem:[%s4691_s27 + $0xd70] sm:$0xff] %v1055_v46  ;;  %1058 = vst [vmem:[%s4691_s27 + $0xd78] sm:$0xff] %v1057_v47  ;;  %v1061_v49 = vld [vmem:[%s4686_s26 + $0x3458] sm:$0xff]  ;;  %v1063_v50 = vld [vmem:[%s4686_s26 + $0x3460] sm:$0xff] }
  0xeb   : > { %1060 = vst [vmem:[%s4691_s27 + $0xd80] sm:$0xff] %v1059_v48  ;;  %1062 = vst [vmem:[%s4691_s27 + $0xd88] sm:$0xff] %v1061_v49  ;;  %v1065_v51 = vld [vmem:[%s4686_s26 + $0x3468] sm:$0xff]  ;;  %v1067_v52 = vld [vmem:[%s4686_s26 + $0x3470] sm:$0xff] }
  0xec   : > { %1064 = vst [vmem:[%s4691_s27 + $0xd90] sm:$0xff] %v1063_v50  ;;  %v1069_v53 = vld [vmem:[%s4686_s26 + $0x36a0] sm:$0xff]  ;;  %1066 = vst [vmem:[%s4691_s27 + $0xd98] sm:$0xff] %v1065_v51  ;;  %v1071_v54 = vld [vmem:[%s4686_s26 + $0x36a8] sm:$0xff] }
  0xed   : > { %1068 = vst [vmem:[%s4691_s27 + $0xda0] sm:$0xff] %v1067_v52  ;;  %1070 = vst [vmem:[%s4691_s27 + $0xda8] sm:$0xff] %v1069_v53  ;;  %v1073_v55 = vld [vmem:[%s4686_s26 + $0x36b0] sm:$0xff]  ;;  %v1075_v56 = vld [vmem:[%s4686_s26 + $0x36b8] sm:$0xff] }
  0xee   : > { %1072 = vst [vmem:[%s4691_s27 + $0xdb0] sm:$0xff] %v1071_v54  ;;  %1074 = vst [vmem:[%s4691_s27 + $0xdb8] sm:$0xff] %v1073_v55  ;;  %v1077_v57 = vld [vmem:[%s4686_s26 + $0x36c0] sm:$0xff]  ;;  %v1079_v58 = vld [vmem:[%s4686_s26 + $0x36c8] sm:$0xff] }
  0xef   : > { %1076 = vst [vmem:[%s4691_s27 + $0xdc0] sm:$0xff] %v1075_v56  ;;  %v1081_v59 = vld [vmem:[%s4686_s26 + $0x36d0] sm:$0xff]  ;;  %1078 = vst [vmem:[%s4691_s27 + $0xdc8] sm:$0xff] %v1077_v57  ;;  %v1083_v60 = vld [vmem:[%s4686_s26 + $0x36d8] sm:$0xff] }
  0xf0   : > { %1080 = vst [vmem:[%s4691_s27 + $0xdd0] sm:$0xff] %v1079_v58  ;;  %1082 = vst [vmem:[%s4691_s27 + $0xdd8] sm:$0xff] %v1081_v59  ;;  %v1085_v61 = vld [vmem:[%s4686_s26 + $0x36e0] sm:$0xff]  ;;  %v1087_v62 = vld [vmem:[%s4686_s26 + $0x36e8] sm:$0xff] }
  0xf1   : > { %1084 = vst [vmem:[%s4691_s27 + $0xde0] sm:$0xff] %v1083_v60  ;;  %1086 = vst [vmem:[%s4691_s27 + $0xde8] sm:$0xff] %v1085_v61  ;;  %v1089_v63 = vld [vmem:[%s4686_s26 + $0x36f0] sm:$0xff]  ;;  %v1091_v0 = vld [vmem:[%s4686_s26 + $0x36f8] sm:$0xff] }
  0xf2   : > { %1088 = vst [vmem:[%s4691_s27 + $0xdf0] sm:$0xff] %v1087_v62  ;;  %v1093_v1 = vld [vmem:[%s4686_s26 + $0x3700] sm:$0xff]  ;;  %1090 = vst [vmem:[%s4691_s27 + $0xdf8] sm:$0xff] %v1089_v63  ;;  %v1095_v2 = vld [vmem:[%s4686_s26 + $0x3708] sm:$0xff] }
  0xf3   : > { %1092 = vst [vmem:[%s4691_s27 + $0xe00] sm:$0xff] %v1091_v0  ;;  %1094 = vst [vmem:[%s4691_s27 + $0xe08] sm:$0xff] %v1093_v1  ;;  %v1097_v3 = vld [vmem:[%s4686_s26 + $0x3710] sm:$0xff]  ;;  %v1099_v4 = vld [vmem:[%s4686_s26 + $0x3718] sm:$0xff] }
  0xf4   : > { %1096 = vst [vmem:[%s4691_s27 + $0xe10] sm:$0xff] %v1095_v2  ;;  %1098 = vst [vmem:[%s4691_s27 + $0xe18] sm:$0xff] %v1097_v3  ;;  %v1101_v5 = vld [vmem:[%s4686_s26 + $0x3720] sm:$0xff]  ;;  %v1103_v6 = vld [vmem:[%s4686_s26 + $0x3728] sm:$0xff] }
  0xf5   : > { %1100 = vst [vmem:[%s4691_s27 + $0xe20] sm:$0xff] %v1099_v4  ;;  %v1105_v7 = vld [vmem:[%s4686_s26 + $0x3730] sm:$0xff]  ;;  %1102 = vst [vmem:[%s4691_s27 + $0xe28] sm:$0xff] %v1101_v5  ;;  %v1107_v8 = vld [vmem:[%s4686_s26 + $0x3738] sm:$0xff] }
  0xf6   : > { %1104 = vst [vmem:[%s4691_s27 + $0xe30] sm:$0xff] %v1103_v6  ;;  %1106 = vst [vmem:[%s4691_s27 + $0xe38] sm:$0xff] %v1105_v7  ;;  %v1109_v9 = vld [vmem:[%s4686_s26 + $0x3740] sm:$0xff]  ;;  %v1111_v10 = vld [vmem:[%s4686_s26 + $0x3748] sm:$0xff] }
  0xf7   : > { %1108 = vst [vmem:[%s4691_s27 + $0xe40] sm:$0xff] %v1107_v8  ;;  %1110 = vst [vmem:[%s4691_s27 + $0xe48] sm:$0xff] %v1109_v9  ;;  %v1113_v11 = vld [vmem:[%s4686_s26 + $0x3750] sm:$0xff]  ;;  %v1115_v12 = vld [vmem:[%s4686_s26 + $0x3980] sm:$0xff] }
  0xf8   : > { %1112 = vst [vmem:[%s4691_s27 + $0xe50] sm:$0xff] %v1111_v10  ;;  %v1117_v13 = vld [vmem:[%s4686_s26 + $0x3988] sm:$0xff]  ;;  %1114 = vst [vmem:[%s4691_s27 + $0xe58] sm:$0xff] %v1113_v11  ;;  %v1119_v14 = vld [vmem:[%s4686_s26 + $0x3990] sm:$0xff] }
  0xf9   : > { %1116 = vst [vmem:[%s4691_s27 + $0xe60] sm:$0xff] %v1115_v12  ;;  %1118 = vst [vmem:[%s4691_s27 + $0xe68] sm:$0xff] %v1117_v13  ;;  %v1121_v15 = vld [vmem:[%s4686_s26 + $0x3998] sm:$0xff]  ;;  %v1123_v16 = vld [vmem:[%s4686_s26 + $0x39a0] sm:$0xff] }
  0xfa   : > { %1120 = vst [vmem:[%s4691_s27 + $0xe70] sm:$0xff] %v1119_v14  ;;  %1122 = vst [vmem:[%s4691_s27 + $0xe78] sm:$0xff] %v1121_v15  ;;  %v1125_v17 = vld [vmem:[%s4686_s26 + $0x39a8] sm:$0xff]  ;;  %v1127_v18 = vld [vmem:[%s4686_s26 + $0x39b0] sm:$0xff] }
  0xfb   : > { %1124 = vst [vmem:[%s4691_s27 + $0xe80] sm:$0xff] %v1123_v16  ;;  %v1129_v19 = vld [vmem:[%s4686_s26 + $0x39b8] sm:$0xff]  ;;  %1126 = vst [vmem:[%s4691_s27 + $0xe88] sm:$0xff] %v1125_v17  ;;  %v1131_v20 = vld [vmem:[%s4686_s26 + $0x39c0] sm:$0xff] }
  0xfc   : > { %1128 = vst [vmem:[%s4691_s27 + $0xe90] sm:$0xff] %v1127_v18  ;;  %1130 = vst [vmem:[%s4691_s27 + $0xe98] sm:$0xff] %v1129_v19  ;;  %v1133_v21 = vld [vmem:[%s4686_s26 + $0x39c8] sm:$0xff]  ;;  %v1135_v22 = vld [vmem:[%s4686_s26 + $0x39d0] sm:$0xff] }
  0xfd   : > { %1132 = vst [vmem:[%s4691_s27 + $0xea0] sm:$0xff] %v1131_v20  ;;  %1134 = vst [vmem:[%s4691_s27 + $0xea8] sm:$0xff] %v1133_v21  ;;  %v1137_v23 = vld [vmem:[%s4686_s26 + $0x39d8] sm:$0xff]  ;;  %v1139_v24 = vld [vmem:[%s4686_s26 + $0x39e0] sm:$0xff] }
  0xfe   : > { %1136 = vst [vmem:[%s4691_s27 + $0xeb0] sm:$0xff] %v1135_v22  ;;  %v1141_v25 = vld [vmem:[%s4686_s26 + $0x39e8] sm:$0xff]  ;;  %1138 = vst [vmem:[%s4691_s27 + $0xeb8] sm:$0xff] %v1137_v23  ;;  %v1143_v26 = vld [vmem:[%s4686_s26 + $0x39f0] sm:$0xff] }
  0xff   : > { %1140 = vst [vmem:[%s4691_s27 + $0xec0] sm:$0xff] %v1139_v24  ;;  %1142 = vst [vmem:[%s4691_s27 + $0xec8] sm:$0xff] %v1141_v25  ;;  %v1145_v27 = vld [vmem:[%s4686_s26 + $0x39f8] sm:$0xff]  ;;  %v1147_v28 = vld [vmem:[%s4686_s26 + $0x3a00] sm:$0xff] }
 0x100   : > { %1144 = vst [vmem:[%s4691_s27 + $0xed0] sm:$0xff] %v1143_v26  ;;  %1146 = vst [vmem:[%s4691_s27 + $0xed8] sm:$0xff] %v1145_v27  ;;  %v1149_v29 = vld [vmem:[%s4686_s26 + $0x3a08] sm:$0xff]  ;;  %v1151_v30 = vld [vmem:[%s4686_s26 + $0x3a10] sm:$0xff] }
 0x101   : > { %1148 = vst [vmem:[%s4691_s27 + $0xee0] sm:$0xff] %v1147_v28  ;;  %v1153_v31 = vld [vmem:[%s4686_s26 + $0x3a18] sm:$0xff]  ;;  %1150 = vst [vmem:[%s4691_s27 + $0xee8] sm:$0xff] %v1149_v29  ;;  %v1155_v32 = vld [vmem:[%s4686_s26 + $0x3a20] sm:$0xff] }
 0x102   : > { %1152 = vst [vmem:[%s4691_s27 + $0xef0] sm:$0xff] %v1151_v30  ;;  %1154 = vst [vmem:[%s4691_s27 + $0xef8] sm:$0xff] %v1153_v31  ;;  %v1157_v33 = vld [vmem:[%s4686_s26 + $0x3a28] sm:$0xff]  ;;  %v1159_v34 = vld [vmem:[%s4686_s26 + $0x3a30] sm:$0xff] }
 0x103   : > { %1156 = vst [vmem:[%s4691_s27 + $0xf00] sm:$0xff] %v1155_v32  ;;  %1158 = vst [vmem:[%s4691_s27 + $0xf08] sm:$0xff] %v1157_v33  ;;  %v1161_v35 = vld [vmem:[%s4686_s26 + $0x3c60] sm:$0xff]  ;;  %v1163_v36 = vld [vmem:[%s4686_s26 + $0x3c68] sm:$0xff] }
 0x104   : > { %1160 = vst [vmem:[%s4691_s27 + $0xf10] sm:$0xff] %v1159_v34  ;;  %v1165_v37 = vld [vmem:[%s4686_s26 + $0x3c70] sm:$0xff]  ;;  %1162 = vst [vmem:[%s4691_s27 + $0xf18] sm:$0xff] %v1161_v35  ;;  %v1167_v38 = vld [vmem:[%s4686_s26 + $0x3c78] sm:$0xff] }
 0x105   : > { %1164 = vst [vmem:[%s4691_s27 + $0xf20] sm:$0xff] %v1163_v36  ;;  %1166 = vst [vmem:[%s4691_s27 + $0xf28] sm:$0xff] %v1165_v37  ;;  %v1169_v39 = vld [vmem:[%s4686_s26 + $0x3c80] sm:$0xff]  ;;  %v1171_v40 = vld [vmem:[%s4686_s26 + $0x3c88] sm:$0xff] }
 0x106   : > { %1168 = vst [vmem:[%s4691_s27 + $0xf30] sm:$0xff] %v1167_v38  ;;  %1170 = vst [vmem:[%s4691_s27 + $0xf38] sm:$0xff] %v1169_v39  ;;  %v1173_v41 = vld [vmem:[%s4686_s26 + $0x3c90] sm:$0xff]  ;;  %v1175_v42 = vld [vmem:[%s4686_s26 + $0x3c98] sm:$0xff] }
 0x107   : > { %1172 = vst [vmem:[%s4691_s27 + $0xf40] sm:$0xff] %v1171_v40  ;;  %v1177_v43 = vld [vmem:[%s4686_s26 + $0x3ca0] sm:$0xff]  ;;  %1174 = vst [vmem:[%s4691_s27 + $0xf48] sm:$0xff] %v1173_v41  ;;  %v1179_v44 = vld [vmem:[%s4686_s26 + $0x3ca8] sm:$0xff] }
 0x108   : > { %1176 = vst [vmem:[%s4691_s27 + $0xf50] sm:$0xff] %v1175_v42  ;;  %1178 = vst [vmem:[%s4691_s27 + $0xf58] sm:$0xff] %v1177_v43  ;;  %v1181_v45 = vld [vmem:[%s4686_s26 + $0x3cb0] sm:$0xff]  ;;  %v1183_v46 = vld [vmem:[%s4686_s26 + $0x3cb8] sm:$0xff] }
 0x109   : > { %1180 = vst [vmem:[%s4691_s27 + $0xf60] sm:$0xff] %v1179_v44  ;;  %1182 = vst [vmem:[%s4691_s27 + $0xf68] sm:$0xff] %v1181_v45  ;;  %v1185_v47 = vld [vmem:[%s4686_s26 + $0x3cc0] sm:$0xff]  ;;  %v1187_v48 = vld [vmem:[%s4686_s26 + $0x3cc8] sm:$0xff] }
 0x10a   : > { %1184 = vst [vmem:[%s4691_s27 + $0xf70] sm:$0xff] %v1183_v46  ;;  %v1189_v49 = vld [vmem:[%s4686_s26 + $0x3cd0] sm:$0xff]  ;;  %1186 = vst [vmem:[%s4691_s27 + $0xf78] sm:$0xff] %v1185_v47  ;;  %v1191_v50 = vld [vmem:[%s4686_s26 + $0x3cd8] sm:$0xff] }
 0x10b   : > { %1188 = vst [vmem:[%s4691_s27 + $0xf80] sm:$0xff] %v1187_v48  ;;  %1190 = vst [vmem:[%s4691_s27 + $0xf88] sm:$0xff] %v1189_v49  ;;  %v1193_v51 = vld [vmem:[%s4686_s26 + $0x3ce0] sm:$0xff]  ;;  %v1195_v52 = vld [vmem:[%s4686_s26 + $0x3ce8] sm:$0xff] }
 0x10c   : > { %1192 = vst [vmem:[%s4691_s27 + $0xf90] sm:$0xff] %v1191_v50  ;;  %1194 = vst [vmem:[%s4691_s27 + $0xf98] sm:$0xff] %v1193_v51  ;;  %v1197_v53 = vld [vmem:[%s4686_s26 + $0x3cf0] sm:$0xff]  ;;  %v1199_v54 = vld [vmem:[%s4686_s26 + $0x3cf8] sm:$0xff] }
 0x10d   : > { %1196 = vst [vmem:[%s4691_s27 + $0xfa0] sm:$0xff] %v1195_v52  ;;  %v1201_v55 = vld [vmem:[%s4686_s26 + $0x3d00] sm:$0xff]  ;;  %1198 = vst [vmem:[%s4691_s27 + $0xfa8] sm:$0xff] %v1197_v53  ;;  %v1203_v56 = vld [vmem:[%s4686_s26 + $0x3d08] sm:$0xff] }
 0x10e   : > { %1200 = vst [vmem:[%s4691_s27 + $0xfb0] sm:$0xff] %v1199_v54  ;;  %1202 = vst [vmem:[%s4691_s27 + $0xfb8] sm:$0xff] %v1201_v55  ;;  %v1205_v57 = vld [vmem:[%s4686_s26 + $0x3d10] sm:$0xff]  ;;  %v1207_v58 = vld [vmem:[%s4686_s26 + $0x3f40] sm:$0xff] }
 0x10f   : > { %1204 = vst [vmem:[%s4691_s27 + $0xfc0] sm:$0xff] %v1203_v56  ;;  %1206 = vst [vmem:[%s4691_s27 + $0xfc8] sm:$0xff] %v1205_v57  ;;  %v1209_v59 = vld [vmem:[%s4686_s26 + $0x3f48] sm:$0xff]  ;;  %v1211_v60 = vld [vmem:[%s4686_s26 + $0x3f50] sm:$0xff] }
 0x110   : > { %1208 = vst [vmem:[%s4691_s27 + $0xfd0] sm:$0xff] %v1207_v58  ;;  %v1213_v61 = vld [vmem:[%s4686_s26 + $0x3f58] sm:$0xff]  ;;  %1210 = vst [vmem:[%s4691_s27 + $0xfd8] sm:$0xff] %v1209_v59  ;;  %v1215_v62 = vld [vmem:[%s4686_s26 + $0x3f60] sm:$0xff] }
 0x111   : > { %1212 = vst [vmem:[%s4691_s27 + $0xfe0] sm:$0xff] %v1211_v60  ;;  %1214 = vst [vmem:[%s4691_s27 + $0xfe8] sm:$0xff] %v1213_v61  ;;  %v1217_v63 = vld [vmem:[%s4686_s26 + $0x3f68] sm:$0xff]  ;;  %v1219_v0 = vld [vmem:[%s4686_s26 + $0x3f70] sm:$0xff] }
 0x112   : > { %1216 = vst [vmem:[%s4691_s27 + $0xff0] sm:$0xff] %v1215_v62  ;;  %1218 = vst [vmem:[%s4691_s27 + $0xff8] sm:$0xff] %v1217_v63  ;;  %v1221_v1 = vld [vmem:[%s4686_s26 + $0x3f78] sm:$0xff]  ;;  %v1223_v2 = vld [vmem:[%s4686_s26 + $0x3f80] sm:$0xff] }
 0x113   : > { %1220 = vst [vmem:[%s4691_s27 + $0x1000] sm:$0xff] %v1219_v0  ;;  %v1225_v3 = vld [vmem:[%s4686_s26 + $0x3f88] sm:$0xff]  ;;  %1222 = vst [vmem:[%s4691_s27 + $0x1008] sm:$0xff] %v1221_v1  ;;  %v1227_v4 = vld [vmem:[%s4686_s26 + $0x3f90] sm:$0xff] }
 0x114   : > { %1224 = vst [vmem:[%s4691_s27 + $0x1010] sm:$0xff] %v1223_v2  ;;  %1226 = vst [vmem:[%s4691_s27 + $0x1018] sm:$0xff] %v1225_v3  ;;  %v1229_v5 = vld [vmem:[%s4686_s26 + $0x3f98] sm:$0xff]  ;;  %v1231_v6 = vld [vmem:[%s4686_s26 + $0x3fa0] sm:$0xff] }
 0x115   : > { %1228 = vst [vmem:[%s4691_s27 + $0x1020] sm:$0xff] %v1227_v4  ;;  %1230 = vst [vmem:[%s4691_s27 + $0x1028] sm:$0xff] %v1229_v5  ;;  %v1233_v7 = vld [vmem:[%s4686_s26 + $0x3fa8] sm:$0xff]  ;;  %v1235_v8 = vld [vmem:[%s4686_s26 + $0x3fb0] sm:$0xff] }
 0x116   : > { %1232 = vst [vmem:[%s4691_s27 + $0x1030] sm:$0xff] %v1231_v6  ;;  %v1237_v9 = vld [vmem:[%s4686_s26 + $0x3fb8] sm:$0xff]  ;;  %1234 = vst [vmem:[%s4691_s27 + $0x1038] sm:$0xff] %v1233_v7  ;;  %v1239_v10 = vld [vmem:[%s4686_s26 + $0x3fc0] sm:$0xff] }
 0x117   : > { %1236 = vst [vmem:[%s4691_s27 + $0x1040] sm:$0xff] %v1235_v8  ;;  %1238 = vst [vmem:[%s4691_s27 + $0x1048] sm:$0xff] %v1237_v9  ;;  %v1241_v11 = vld [vmem:[%s4686_s26 + $0x3fc8] sm:$0xff]  ;;  %v1243_v12 = vld [vmem:[%s4686_s26 + $0x3fd0] sm:$0xff] }
 0x118   : > { %1240 = vst [vmem:[%s4691_s27 + $0x1050] sm:$0xff] %v1239_v10  ;;  %1242 = vst [vmem:[%s4691_s27 + $0x1058] sm:$0xff] %v1241_v11  ;;  %v1245_v13 = vld [vmem:[%s4686_s26 + $0x3fd8] sm:$0xff]  ;;  %v1247_v14 = vld [vmem:[%s4686_s26 + $0x3fe0] sm:$0xff] }
 0x119   : > { %1244 = vst [vmem:[%s4691_s27 + $0x1060] sm:$0xff] %v1243_v12  ;;  %v1249_v15 = vld [vmem:[%s4686_s26 + $0x3fe8] sm:$0xff]  ;;  %1246 = vst [vmem:[%s4691_s27 + $0x1068] sm:$0xff] %v1245_v13  ;;  %v1251_v16 = vld [vmem:[%s4686_s26 + $0x3ff0] sm:$0xff] }
 0x11a   : > { %1248 = vst [vmem:[%s4691_s27 + $0x1070] sm:$0xff] %v1247_v14  ;;  %1250 = vst [vmem:[%s4691_s27 + $0x1078] sm:$0xff] %v1249_v15  ;;  %v1253_v17 = vld [vmem:[%s4686_s26 + $0x4220] sm:$0xff]  ;;  %v1255_v18 = vld [vmem:[%s4686_s26 + $0x4228] sm:$0xff] }
 0x11b   : > { %1252 = vst [vmem:[%s4691_s27 + $0x1080] sm:$0xff] %v1251_v16  ;;  %1254 = vst [vmem:[%s4691_s27 + $0x1088] sm:$0xff] %v1253_v17  ;;  %v1257_v19 = vld [vmem:[%s4686_s26 + $0x4230] sm:$0xff]  ;;  %v1259_v20 = vld [vmem:[%s4686_s26 + $0x4238] sm:$0xff] }
 0x11c   : > { %1256 = vst [vmem:[%s4691_s27 + $0x1090] sm:$0xff] %v1255_v18  ;;  %v1261_v21 = vld [vmem:[%s4686_s26 + $0x4240] sm:$0xff]  ;;  %1258 = vst [vmem:[%s4691_s27 + $0x1098] sm:$0xff] %v1257_v19  ;;  %v1263_v22 = vld [vmem:[%s4686_s26 + $0x4248] sm:$0xff] }
 0x11d   : > { %1260 = vst [vmem:[%s4691_s27 + $0x10a0] sm:$0xff] %v1259_v20  ;;  %1262 = vst [vmem:[%s4691_s27 + $0x10a8] sm:$0xff] %v1261_v21  ;;  %v1265_v23 = vld [vmem:[%s4686_s26 + $0x4250] sm:$0xff]  ;;  %v1267_v24 = vld [vmem:[%s4686_s26 + $0x4258] sm:$0xff] }
 0x11e   : > { %1264 = vst [vmem:[%s4691_s27 + $0x10b0] sm:$0xff] %v1263_v22  ;;  %1266 = vst [vmem:[%s4691_s27 + $0x10b8] sm:$0xff] %v1265_v23  ;;  %v1269_v25 = vld [vmem:[%s4686_s26 + $0x4260] sm:$0xff]  ;;  %v1271_v26 = vld [vmem:[%s4686_s26 + $0x4268] sm:$0xff] }
 0x11f   : > { %1268 = vst [vmem:[%s4691_s27 + $0x10c0] sm:$0xff] %v1267_v24  ;;  %v1273_v27 = vld [vmem:[%s4686_s26 + $0x4270] sm:$0xff]  ;;  %1270 = vst [vmem:[%s4691_s27 + $0x10c8] sm:$0xff] %v1269_v25  ;;  %v1275_v28 = vld [vmem:[%s4686_s26 + $0x4278] sm:$0xff] }
 0x120   : > { %1272 = vst [vmem:[%s4691_s27 + $0x10d0] sm:$0xff] %v1271_v26  ;;  %1274 = vst [vmem:[%s4691_s27 + $0x10d8] sm:$0xff] %v1273_v27  ;;  %v1277_v29 = vld [vmem:[%s4686_s26 + $0x4280] sm:$0xff]  ;;  %v1279_v30 = vld [vmem:[%s4686_s26 + $0x4288] sm:$0xff] }
 0x121   : > { %1276 = vst [vmem:[%s4691_s27 + $0x10e0] sm:$0xff] %v1275_v28  ;;  %1278 = vst [vmem:[%s4691_s27 + $0x10e8] sm:$0xff] %v1277_v29  ;;  %v1281_v31 = vld [vmem:[%s4686_s26 + $0x4290] sm:$0xff]  ;;  %v1283_v32 = vld [vmem:[%s4686_s26 + $0x4298] sm:$0xff] }
 0x122   : > { %1280 = vst [vmem:[%s4691_s27 + $0x10f0] sm:$0xff] %v1279_v30  ;;  %v1285_v33 = vld [vmem:[%s4686_s26 + $0x42a0] sm:$0xff]  ;;  %1282 = vst [vmem:[%s4691_s27 + $0x10f8] sm:$0xff] %v1281_v31  ;;  %v1287_v34 = vld [vmem:[%s4686_s26 + $0x42a8] sm:$0xff] }
 0x123   : > { %1284 = vst [vmem:[%s4691_s27 + $0x1100] sm:$0xff] %v1283_v32  ;;  %1286 = vst [vmem:[%s4691_s27 + $0x1108] sm:$0xff] %v1285_v33  ;;  %v1289_v35 = vld [vmem:[%s4686_s26 + $0x42b0] sm:$0xff]  ;;  %v1291_v36 = vld [vmem:[%s4686_s26 + $0x42b8] sm:$0xff] }
 0x124   : > { %1288 = vst [vmem:[%s4691_s27 + $0x1110] sm:$0xff] %v1287_v34  ;;  %1290 = vst [vmem:[%s4691_s27 + $0x1118] sm:$0xff] %v1289_v35  ;;  %v1293_v37 = vld [vmem:[%s4686_s26 + $0x42c0] sm:$0xff]  ;;  %v1295_v38 = vld [vmem:[%s4686_s26 + $0x42c8] sm:$0xff] }
 0x125   : > { %1292 = vst [vmem:[%s4691_s27 + $0x1120] sm:$0xff] %v1291_v36  ;;  %v1297_v39 = vld [vmem:[%s4686_s26 + $0x42d0] sm:$0xff]  ;;  %1294 = vst [vmem:[%s4691_s27 + $0x1128] sm:$0xff] %v1293_v37  ;;  %v1299_v40 = vld [vmem:[%s4686_s26 + $0x4500] sm:$0xff] }
 0x126   : > { %1296 = vst [vmem:[%s4691_s27 + $0x1130] sm:$0xff] %v1295_v38  ;;  %1298 = vst [vmem:[%s4691_s27 + $0x1138] sm:$0xff] %v1297_v39  ;;  %v1301_v41 = vld [vmem:[%s4686_s26 + $0x4508] sm:$0xff]  ;;  %v1303_v42 = vld [vmem:[%s4686_s26 + $0x4510] sm:$0xff] }
 0x127   : > { %1300 = vst [vmem:[%s4691_s27 + $0x1140] sm:$0xff] %v1299_v40  ;;  %1302 = vst [vmem:[%s4691_s27 + $0x1148] sm:$0xff] %v1301_v41  ;;  %v1305_v43 = vld [vmem:[%s4686_s26 + $0x4518] sm:$0xff]  ;;  %v1307_v44 = vld [vmem:[%s4686_s26 + $0x4520] sm:$0xff] }
 0x128   : > { %1304 = vst [vmem:[%s4691_s27 + $0x1150] sm:$0xff] %v1303_v42  ;;  %v1309_v45 = vld [vmem:[%s4686_s26 + $0x4528] sm:$0xff]  ;;  %1306 = vst [vmem:[%s4691_s27 + $0x1158] sm:$0xff] %v1305_v43  ;;  %v1311_v46 = vld [vmem:[%s4686_s26 + $0x4530] sm:$0xff] }
 0x129   : > { %1308 = vst [vmem:[%s4691_s27 + $0x1160] sm:$0xff] %v1307_v44  ;;  %1310 = vst [vmem:[%s4691_s27 + $0x1168] sm:$0xff] %v1309_v45  ;;  %v1313_v47 = vld [vmem:[%s4686_s26 + $0x4538] sm:$0xff]  ;;  %v1315_v48 = vld [vmem:[%s4686_s26 + $0x4540] sm:$0xff] }
 0x12a   : > { %1312 = vst [vmem:[%s4691_s27 + $0x1170] sm:$0xff] %v1311_v46  ;;  %1314 = vst [vmem:[%s4691_s27 + $0x1178] sm:$0xff] %v1313_v47  ;;  %v1317_v49 = vld [vmem:[%s4686_s26 + $0x4548] sm:$0xff]  ;;  %v1319_v50 = vld [vmem:[%s4686_s26 + $0x4550] sm:$0xff] }
 0x12b   : > { %1316 = vst [vmem:[%s4691_s27 + $0x1180] sm:$0xff] %v1315_v48  ;;  %v1321_v51 = vld [vmem:[%s4686_s26 + $0x4558] sm:$0xff]  ;;  %1318 = vst [vmem:[%s4691_s27 + $0x1188] sm:$0xff] %v1317_v49  ;;  %v1323_v52 = vld [vmem:[%s4686_s26 + $0x4560] sm:$0xff] }
 0x12c   : > { %1320 = vst [vmem:[%s4691_s27 + $0x1190] sm:$0xff] %v1319_v50  ;;  %1322 = vst [vmem:[%s4691_s27 + $0x1198] sm:$0xff] %v1321_v51  ;;  %v1325_v53 = vld [vmem:[%s4686_s26 + $0x4568] sm:$0xff]  ;;  %v1327_v54 = vld [vmem:[%s4686_s26 + $0x4570] sm:$0xff] }
 0x12d   : > { %1324 = vst [vmem:[%s4691_s27 + $0x11a0] sm:$0xff] %v1323_v52  ;;  %1326 = vst [vmem:[%s4691_s27 + $0x11a8] sm:$0xff] %v1325_v53  ;;  %v1329_v55 = vld [vmem:[%s4686_s26 + $0x4578] sm:$0xff]  ;;  %v1331_v56 = vld [vmem:[%s4686_s26 + $0x4580] sm:$0xff] }
 0x12e   : > { %1328 = vst [vmem:[%s4691_s27 + $0x11b0] sm:$0xff] %v1327_v54  ;;  %v1333_v57 = vld [vmem:[%s4686_s26 + $0x4588] sm:$0xff]  ;;  %1330 = vst [vmem:[%s4691_s27 + $0x11b8] sm:$0xff] %v1329_v55  ;;  %v1335_v58 = vld [vmem:[%s4686_s26 + $0x4590] sm:$0xff] }
 0x12f   : > { %1332 = vst [vmem:[%s4691_s27 + $0x11c0] sm:$0xff] %v1331_v56  ;;  %1334 = vst [vmem:[%s4691_s27 + $0x11c8] sm:$0xff] %v1333_v57  ;;  %v1337_v59 = vld [vmem:[%s4686_s26 + $0x4598] sm:$0xff]  ;;  %v1339_v60 = vld [vmem:[%s4686_s26 + $0x45a0] sm:$0xff] }
 0x130   : > { %1336 = vst [vmem:[%s4691_s27 + $0x11d0] sm:$0xff] %v1335_v58  ;;  %1338 = vst [vmem:[%s4691_s27 + $0x11d8] sm:$0xff] %v1337_v59  ;;  %v1341_v61 = vld [vmem:[%s4686_s26 + $0x45a8] sm:$0xff]  ;;  %v1343_v62 = vld [vmem:[%s4686_s26 + $0x45b0] sm:$0xff] }
 0x131   : > { %1340 = vst [vmem:[%s4691_s27 + $0x11e0] sm:$0xff] %v1339_v60  ;;  %v1345_v63 = vld [vmem:[%s4686_s26 + $0x47e0] sm:$0xff]  ;;  %1342 = vst [vmem:[%s4691_s27 + $0x11e8] sm:$0xff] %v1341_v61  ;;  %v1347_v0 = vld [vmem:[%s4686_s26 + $0x47e8] sm:$0xff] }
 0x132   : > { %1344 = vst [vmem:[%s4691_s27 + $0x11f0] sm:$0xff] %v1343_v62  ;;  %1346 = vst [vmem:[%s4691_s27 + $0x11f8] sm:$0xff] %v1345_v63  ;;  %v1349_v1 = vld [vmem:[%s4686_s26 + $0x47f0] sm:$0xff]  ;;  %v1351_v2 = vld [vmem:[%s4686_s26 + $0x47f8] sm:$0xff] }
 0x133   : > { %1348 = vst [vmem:[%s4691_s27 + $0x1200] sm:$0xff] %v1347_v0  ;;  %1350 = vst [vmem:[%s4691_s27 + $0x1208] sm:$0xff] %v1349_v1  ;;  %v1353_v3 = vld [vmem:[%s4686_s26 + $0x4800] sm:$0xff]  ;;  %v1355_v4 = vld [vmem:[%s4686_s26 + $0x4808] sm:$0xff] }
 0x134   : > { %1352 = vst [vmem:[%s4691_s27 + $0x1210] sm:$0xff] %v1351_v2  ;;  %v1357_v5 = vld [vmem:[%s4686_s26 + $0x4810] sm:$0xff]  ;;  %1354 = vst [vmem:[%s4691_s27 + $0x1218] sm:$0xff] %v1353_v3  ;;  %v1359_v6 = vld [vmem:[%s4686_s26 + $0x4818] sm:$0xff] }
 0x135   : > { %1356 = vst [vmem:[%s4691_s27 + $0x1220] sm:$0xff] %v1355_v4  ;;  %1358 = vst [vmem:[%s4691_s27 + $0x1228] sm:$0xff] %v1357_v5  ;;  %v1361_v7 = vld [vmem:[%s4686_s26 + $0x4820] sm:$0xff]  ;;  %v1363_v8 = vld [vmem:[%s4686_s26 + $0x4828] sm:$0xff] }
 0x136   : > { %1360 = vst [vmem:[%s4691_s27 + $0x1230] sm:$0xff] %v1359_v6  ;;  %1362 = vst [vmem:[%s4691_s27 + $0x1238] sm:$0xff] %v1361_v7  ;;  %v1365_v9 = vld [vmem:[%s4686_s26 + $0x4830] sm:$0xff]  ;;  %v1367_v10 = vld [vmem:[%s4686_s26 + $0x4838] sm:$0xff] }
 0x137   : > { %1364 = vst [vmem:[%s4691_s27 + $0x1240] sm:$0xff] %v1363_v8  ;;  %v1369_v11 = vld [vmem:[%s4686_s26 + $0x4840] sm:$0xff]  ;;  %1366 = vst [vmem:[%s4691_s27 + $0x1248] sm:$0xff] %v1365_v9  ;;  %v1371_v12 = vld [vmem:[%s4686_s26 + $0x4848] sm:$0xff] }
 0x138   : > { %1368 = vst [vmem:[%s4691_s27 + $0x1250] sm:$0xff] %v1367_v10  ;;  %1370 = vst [vmem:[%s4691_s27 + $0x1258] sm:$0xff] %v1369_v11  ;;  %v1373_v13 = vld [vmem:[%s4686_s26 + $0x4850] sm:$0xff]  ;;  %v1375_v14 = vld [vmem:[%s4686_s26 + $0x4858] sm:$0xff] }
 0x139   : > { %1372 = vst [vmem:[%s4691_s27 + $0x1260] sm:$0xff] %v1371_v12  ;;  %1374 = vst [vmem:[%s4691_s27 + $0x1268] sm:$0xff] %v1373_v13  ;;  %v1377_v15 = vld [vmem:[%s4686_s26 + $0x4860] sm:$0xff]  ;;  %v1379_v16 = vld [vmem:[%s4686_s26 + $0x4868] sm:$0xff] }
 0x13a   : > { %1376 = vst [vmem:[%s4691_s27 + $0x1270] sm:$0xff] %v1375_v14  ;;  %v1381_v17 = vld [vmem:[%s4686_s26 + $0x4870] sm:$0xff]  ;;  %1378 = vst [vmem:[%s4691_s27 + $0x1278] sm:$0xff] %v1377_v15  ;;  %v1383_v18 = vld [vmem:[%s4686_s26 + $0x4878] sm:$0xff] }
 0x13b   : > { %1380 = vst [vmem:[%s4691_s27 + $0x1280] sm:$0xff] %v1379_v16  ;;  %1382 = vst [vmem:[%s4691_s27 + $0x1288] sm:$0xff] %v1381_v17  ;;  %v1385_v19 = vld [vmem:[%s4686_s26 + $0x4880] sm:$0xff]  ;;  %v1387_v20 = vld [vmem:[%s4686_s26 + $0x4888] sm:$0xff] }
 0x13c   : > { %1384 = vst [vmem:[%s4691_s27 + $0x1290] sm:$0xff] %v1383_v18  ;;  %1386 = vst [vmem:[%s4691_s27 + $0x1298] sm:$0xff] %v1385_v19  ;;  %v1389_v21 = vld [vmem:[%s4686_s26 + $0x4890] sm:$0xff]  ;;  %v1391_v22 = vld [vmem:[%s4686_s26 + $0x4ac0] sm:$0xff] }
 0x13d   : > { %1388 = vst [vmem:[%s4691_s27 + $0x12a0] sm:$0xff] %v1387_v20  ;;  %v1393_v23 = vld [vmem:[%s4686_s26 + $0x4ac8] sm:$0xff]  ;;  %1390 = vst [vmem:[%s4691_s27 + $0x12a8] sm:$0xff] %v1389_v21  ;;  %v1395_v24 = vld [vmem:[%s4686_s26 + $0x4ad0] sm:$0xff] }
 0x13e   : > { %1392 = vst [vmem:[%s4691_s27 + $0x12b0] sm:$0xff] %v1391_v22  ;;  %1394 = vst [vmem:[%s4691_s27 + $0x12b8] sm:$0xff] %v1393_v23  ;;  %v1397_v25 = vld [vmem:[%s4686_s26 + $0x4ad8] sm:$0xff]  ;;  %v1399_v26 = vld [vmem:[%s4686_s26 + $0x4ae0] sm:$0xff] }
 0x13f   : > { %1396 = vst [vmem:[%s4691_s27 + $0x12c0] sm:$0xff] %v1395_v24  ;;  %1398 = vst [vmem:[%s4691_s27 + $0x12c8] sm:$0xff] %v1397_v25  ;;  %v1401_v27 = vld [vmem:[%s4686_s26 + $0x4ae8] sm:$0xff]  ;;  %v1403_v28 = vld [vmem:[%s4686_s26 + $0x4af0] sm:$0xff] }
 0x140   : > { %1400 = vst [vmem:[%s4691_s27 + $0x12d0] sm:$0xff] %v1399_v26  ;;  %v1405_v29 = vld [vmem:[%s4686_s26 + $0x4af8] sm:$0xff]  ;;  %1402 = vst [vmem:[%s4691_s27 + $0x12d8] sm:$0xff] %v1401_v27  ;;  %v1407_v30 = vld [vmem:[%s4686_s26 + $0x4b00] sm:$0xff] }
 0x141   : > { %1404 = vst [vmem:[%s4691_s27 + $0x12e0] sm:$0xff] %v1403_v28  ;;  %1406 = vst [vmem:[%s4691_s27 + $0x12e8] sm:$0xff] %v1405_v29  ;;  %v1409_v31 = vld [vmem:[%s4686_s26 + $0x4b08] sm:$0xff]  ;;  %v1411_v32 = vld [vmem:[%s4686_s26 + $0x4b10] sm:$0xff] }
 0x142   : > { %1408 = vst [vmem:[%s4691_s27 + $0x12f0] sm:$0xff] %v1407_v30  ;;  %1410 = vst [vmem:[%s4691_s27 + $0x12f8] sm:$0xff] %v1409_v31  ;;  %v1413_v33 = vld [vmem:[%s4686_s26 + $0x4b18] sm:$0xff]  ;;  %v1415_v34 = vld [vmem:[%s4686_s26 + $0x4b20] sm:$0xff] }
 0x143   : > { %1412 = vst [vmem:[%s4691_s27 + $0x1300] sm:$0xff] %v1411_v32  ;;  %v1417_v35 = vld [vmem:[%s4686_s26 + $0x4b28] sm:$0xff]  ;;  %1414 = vst [vmem:[%s4691_s27 + $0x1308] sm:$0xff] %v1413_v33  ;;  %v1419_v36 = vld [vmem:[%s4686_s26 + $0x4b30] sm:$0xff] }
 0x144   : > { %1416 = vst [vmem:[%s4691_s27 + $0x1310] sm:$0xff] %v1415_v34  ;;  %1418 = vst [vmem:[%s4691_s27 + $0x1318] sm:$0xff] %v1417_v35  ;;  %v1421_v37 = vld [vmem:[%s4686_s26 + $0x4b38] sm:$0xff]  ;;  %v1423_v38 = vld [vmem:[%s4686_s26 + $0x4b40] sm:$0xff] }
 0x145   : > { %1420 = vst [vmem:[%s4691_s27 + $0x1320] sm:$0xff] %v1419_v36  ;;  %1422 = vst [vmem:[%s4691_s27 + $0x1328] sm:$0xff] %v1421_v37  ;;  %v1425_v39 = vld [vmem:[%s4686_s26 + $0x4b48] sm:$0xff]  ;;  %v1427_v40 = vld [vmem:[%s4686_s26 + $0x4b50] sm:$0xff] }
 0x146   : > { %1424 = vst [vmem:[%s4691_s27 + $0x1330] sm:$0xff] %v1423_v38  ;;  %v1429_v41 = vld [vmem:[%s4686_s26 + $0x4b58] sm:$0xff]  ;;  %1426 = vst [vmem:[%s4691_s27 + $0x1338] sm:$0xff] %v1425_v39  ;;  %v1431_v42 = vld [vmem:[%s4686_s26 + $0x4b60] sm:$0xff] }
 0x147   : > { %1428 = vst [vmem:[%s4691_s27 + $0x1340] sm:$0xff] %v1427_v40  ;;  %1430 = vst [vmem:[%s4691_s27 + $0x1348] sm:$0xff] %v1429_v41  ;;  %v1433_v43 = vld [vmem:[%s4686_s26 + $0x4b68] sm:$0xff]  ;;  %v1435_v44 = vld [vmem:[%s4686_s26 + $0x4b70] sm:$0xff] }
 0x148   : > { %1432 = vst [vmem:[%s4691_s27 + $0x1350] sm:$0xff] %v1431_v42  ;;  %1434 = vst [vmem:[%s4691_s27 + $0x1358] sm:$0xff] %v1433_v43  ;;  %v1437_v45 = vld [vmem:[%s4686_s26 + $0x4da0] sm:$0xff]  ;;  %v1439_v46 = vld [vmem:[%s4686_s26 + $0x4da8] sm:$0xff] }
 0x149   : > { %1436 = vst [vmem:[%s4691_s27 + $0x1360] sm:$0xff] %v1435_v44  ;;  %v1441_v47 = vld [vmem:[%s4686_s26 + $0x4db0] sm:$0xff]  ;;  %1438 = vst [vmem:[%s4691_s27 + $0x1368] sm:$0xff] %v1437_v45  ;;  %v1443_v48 = vld [vmem:[%s4686_s26 + $0x4db8] sm:$0xff] }
 0x14a   : > { %1440 = vst [vmem:[%s4691_s27 + $0x1370] sm:$0xff] %v1439_v46  ;;  %1442 = vst [vmem:[%s4691_s27 + $0x1378] sm:$0xff] %v1441_v47  ;;  %v1445_v49 = vld [vmem:[%s4686_s26 + $0x4dc0] sm:$0xff]  ;;  %v1447_v50 = vld [vmem:[%s4686_s26 + $0x4dc8] sm:$0xff] }
 0x14b   : > { %1444 = vst [vmem:[%s4691_s27 + $0x1380] sm:$0xff] %v1443_v48  ;;  %1446 = vst [vmem:[%s4691_s27 + $0x1388] sm:$0xff] %v1445_v49  ;;  %v1449_v51 = vld [vmem:[%s4686_s26 + $0x4dd0] sm:$0xff]  ;;  %v1451_v52 = vld [vmem:[%s4686_s26 + $0x4dd8] sm:$0xff] }
 0x14c   : > { %1448 = vst [vmem:[%s4691_s27 + $0x1390] sm:$0xff] %v1447_v50  ;;  %v1453_v53 = vld [vmem:[%s4686_s26 + $0x4de0] sm:$0xff]  ;;  %1450 = vst [vmem:[%s4691_s27 + $0x1398] sm:$0xff] %v1449_v51  ;;  %v1455_v54 = vld [vmem:[%s4686_s26 + $0x4de8] sm:$0xff] }
 0x14d   : > { %1452 = vst [vmem:[%s4691_s27 + $0x13a0] sm:$0xff] %v1451_v52  ;;  %1454 = vst [vmem:[%s4691_s27 + $0x13a8] sm:$0xff] %v1453_v53  ;;  %v1457_v55 = vld [vmem:[%s4686_s26 + $0x4df0] sm:$0xff]  ;;  %v1459_v56 = vld [vmem:[%s4686_s26 + $0x4df8] sm:$0xff] }
 0x14e   : > { %1456 = vst [vmem:[%s4691_s27 + $0x13b0] sm:$0xff] %v1455_v54  ;;  %1458 = vst [vmem:[%s4691_s27 + $0x13b8] sm:$0xff] %v1457_v55  ;;  %v1461_v57 = vld [vmem:[%s4686_s26 + $0x4e00] sm:$0xff]  ;;  %v1463_v58 = vld [vmem:[%s4686_s26 + $0x4e08] sm:$0xff] }
 0x14f   : > { %1460 = vst [vmem:[%s4691_s27 + $0x13c0] sm:$0xff] %v1459_v56  ;;  %v1465_v59 = vld [vmem:[%s4686_s26 + $0x4e10] sm:$0xff]  ;;  %1462 = vst [vmem:[%s4691_s27 + $0x13c8] sm:$0xff] %v1461_v57  ;;  %v1467_v60 = vld [vmem:[%s4686_s26 + $0x4e18] sm:$0xff] }
 0x150   : > { %1464 = vst [vmem:[%s4691_s27 + $0x13d0] sm:$0xff] %v1463_v58  ;;  %1466 = vst [vmem:[%s4691_s27 + $0x13d8] sm:$0xff] %v1465_v59  ;;  %v1469_v61 = vld [vmem:[%s4686_s26 + $0x4e20] sm:$0xff]  ;;  %v1471_v62 = vld [vmem:[%s4686_s26 + $0x4e28] sm:$0xff] }
 0x151   : > { %1468 = vst [vmem:[%s4691_s27 + $0x13e0] sm:$0xff] %v1467_v60  ;;  %1470 = vst [vmem:[%s4691_s27 + $0x13e8] sm:$0xff] %v1469_v61  ;;  %v1473_v63 = vld [vmem:[%s4686_s26 + $0x4e30] sm:$0xff]  ;;  %v1475_v0 = vld [vmem:[%s4686_s26 + $0x4e38] sm:$0xff] }
 0x152   : > { %1472 = vst [vmem:[%s4691_s27 + $0x13f0] sm:$0xff] %v1471_v62  ;;  %v1477_v1 = vld [vmem:[%s4686_s26 + $0x4e40] sm:$0xff]  ;;  %1474 = vst [vmem:[%s4691_s27 + $0x13f8] sm:$0xff] %v1473_v63  ;;  %v1479_v2 = vld [vmem:[%s4686_s26 + $0x4e48] sm:$0xff] }
 0x153   : > { %1476 = vst [vmem:[%s4691_s27 + $0x1400] sm:$0xff] %v1475_v0  ;;  %1478 = vst [vmem:[%s4691_s27 + $0x1408] sm:$0xff] %v1477_v1  ;;  %v1481_v3 = vld [vmem:[%s4686_s26 + $0x4e50] sm:$0xff]  ;;  %v1483_v4 = vld [vmem:[%s4686_s26 + $0x5080] sm:$0xff] }
 0x154   : > { %1480 = vst [vmem:[%s4691_s27 + $0x1410] sm:$0xff] %v1479_v2  ;;  %1482 = vst [vmem:[%s4691_s27 + $0x1418] sm:$0xff] %v1481_v3  ;;  %v1485_v5 = vld [vmem:[%s4686_s26 + $0x5088] sm:$0xff]  ;;  %v1487_v6 = vld [vmem:[%s4686_s26 + $0x5090] sm:$0xff] }
 0x155   : > { %1484 = vst [vmem:[%s4691_s27 + $0x1420] sm:$0xff] %v1483_v4  ;;  %v1489_v7 = vld [vmem:[%s4686_s26 + $0x5098] sm:$0xff]  ;;  %1486 = vst [vmem:[%s4691_s27 + $0x1428] sm:$0xff] %v1485_v5  ;;  %v1491_v8 = vld [vmem:[%s4686_s26 + $0x50a0] sm:$0xff] }
 0x156   : > { %1488 = vst [vmem:[%s4691_s27 + $0x1430] sm:$0xff] %v1487_v6  ;;  %1490 = vst [vmem:[%s4691_s27 + $0x1438] sm:$0xff] %v1489_v7  ;;  %v1493_v9 = vld [vmem:[%s4686_s26 + $0x50a8] sm:$0xff]  ;;  %v1495_v10 = vld [vmem:[%s4686_s26 + $0x50b0] sm:$0xff] }
 0x157   : > { %1492 = vst [vmem:[%s4691_s27 + $0x1440] sm:$0xff] %v1491_v8  ;;  %1494 = vst [vmem:[%s4691_s27 + $0x1448] sm:$0xff] %v1493_v9  ;;  %v1497_v11 = vld [vmem:[%s4686_s26 + $0x50b8] sm:$0xff]  ;;  %v1499_v12 = vld [vmem:[%s4686_s26 + $0x50c0] sm:$0xff] }
 0x158   : > { %1496 = vst [vmem:[%s4691_s27 + $0x1450] sm:$0xff] %v1495_v10  ;;  %v1501_v13 = vld [vmem:[%s4686_s26 + $0x50c8] sm:$0xff]  ;;  %1498 = vst [vmem:[%s4691_s27 + $0x1458] sm:$0xff] %v1497_v11  ;;  %v1503_v14 = vld [vmem:[%s4686_s26 + $0x50d0] sm:$0xff] }
 0x159   : > { %1500 = vst [vmem:[%s4691_s27 + $0x1460] sm:$0xff] %v1499_v12  ;;  %1502 = vst [vmem:[%s4691_s27 + $0x1468] sm:$0xff] %v1501_v13  ;;  %v1505_v15 = vld [vmem:[%s4686_s26 + $0x50d8] sm:$0xff]  ;;  %v1507_v16 = vld [vmem:[%s4686_s26 + $0x50e0] sm:$0xff] }
 0x15a   : > { %1504 = vst [vmem:[%s4691_s27 + $0x1470] sm:$0xff] %v1503_v14  ;;  %1506 = vst [vmem:[%s4691_s27 + $0x1478] sm:$0xff] %v1505_v15  ;;  %v1509_v17 = vld [vmem:[%s4686_s26 + $0x50e8] sm:$0xff]  ;;  %v1511_v18 = vld [vmem:[%s4686_s26 + $0x50f0] sm:$0xff] }
 0x15b   : > { %1508 = vst [vmem:[%s4691_s27 + $0x1480] sm:$0xff] %v1507_v16  ;;  %v1513_v19 = vld [vmem:[%s4686_s26 + $0x50f8] sm:$0xff]  ;;  %1510 = vst [vmem:[%s4691_s27 + $0x1488] sm:$0xff] %v1509_v17  ;;  %v1515_v20 = vld [vmem:[%s4686_s26 + $0x5100] sm:$0xff] }
 0x15c   : > { %1512 = vst [vmem:[%s4691_s27 + $0x1490] sm:$0xff] %v1511_v18  ;;  %1514 = vst [vmem:[%s4691_s27 + $0x1498] sm:$0xff] %v1513_v19  ;;  %v1517_v21 = vld [vmem:[%s4686_s26 + $0x5108] sm:$0xff]  ;;  %v1519_v22 = vld [vmem:[%s4686_s26 + $0x5110] sm:$0xff] }
 0x15d   : > { %1516 = vst [vmem:[%s4691_s27 + $0x14a0] sm:$0xff] %v1515_v20  ;;  %1518 = vst [vmem:[%s4691_s27 + $0x14a8] sm:$0xff] %v1517_v21  ;;  %v1521_v23 = vld [vmem:[%s4686_s26 + $0x5118] sm:$0xff]  ;;  %v1523_v24 = vld [vmem:[%s4686_s26 + $0x5120] sm:$0xff] }
 0x15e   : > { %1520 = vst [vmem:[%s4691_s27 + $0x14b0] sm:$0xff] %v1519_v22  ;;  %v1525_v25 = vld [vmem:[%s4686_s26 + $0x5128] sm:$0xff]  ;;  %1522 = vst [vmem:[%s4691_s27 + $0x14b8] sm:$0xff] %v1521_v23  ;;  %v1527_v26 = vld [vmem:[%s4686_s26 + $0x5130] sm:$0xff] }
 0x15f   : > { %1524 = vst [vmem:[%s4691_s27 + $0x14c0] sm:$0xff] %v1523_v24  ;;  %1526 = vst [vmem:[%s4691_s27 + $0x14c8] sm:$0xff] %v1525_v25  ;;  %v1529_v27 = vld [vmem:[%s4686_s26 + $0x5360] sm:$0xff]  ;;  %v1531_v28 = vld [vmem:[%s4686_s26 + $0x5368] sm:$0xff] }
 0x160   : > { %1528 = vst [vmem:[%s4691_s27 + $0x14d0] sm:$0xff] %v1527_v26  ;;  %1530 = vst [vmem:[%s4691_s27 + $0x14d8] sm:$0xff] %v1529_v27  ;;  %v1533_v29 = vld [vmem:[%s4686_s26 + $0x5370] sm:$0xff]  ;;  %v1535_v30 = vld [vmem:[%s4686_s26 + $0x5378] sm:$0xff] }
 0x161   : > { %1532 = vst [vmem:[%s4691_s27 + $0x14e0] sm:$0xff] %v1531_v28  ;;  %v1537_v31 = vld [vmem:[%s4686_s26 + $0x5380] sm:$0xff]  ;;  %1534 = vst [vmem:[%s4691_s27 + $0x14e8] sm:$0xff] %v1533_v29  ;;  %v1539_v32 = vld [vmem:[%s4686_s26 + $0x5388] sm:$0xff] }
 0x162   : > { %1536 = vst [vmem:[%s4691_s27 + $0x14f0] sm:$0xff] %v1535_v30  ;;  %1538 = vst [vmem:[%s4691_s27 + $0x14f8] sm:$0xff] %v1537_v31  ;;  %v1541_v33 = vld [vmem:[%s4686_s26 + $0x5390] sm:$0xff]  ;;  %v1543_v34 = vld [vmem:[%s4686_s26 + $0x5398] sm:$0xff] }
 0x163   : > { %1540 = vst [vmem:[%s4691_s27 + $0x1500] sm:$0xff] %v1539_v32  ;;  %1542 = vst [vmem:[%s4691_s27 + $0x1508] sm:$0xff] %v1541_v33  ;;  %v1545_v35 = vld [vmem:[%s4686_s26 + $0x53a0] sm:$0xff]  ;;  %v1547_v36 = vld [vmem:[%s4686_s26 + $0x53a8] sm:$0xff] }
 0x164   : > { %1544 = vst [vmem:[%s4691_s27 + $0x1510] sm:$0xff] %v1543_v34  ;;  %v1549_v37 = vld [vmem:[%s4686_s26 + $0x53b0] sm:$0xff]  ;;  %1546 = vst [vmem:[%s4691_s27 + $0x1518] sm:$0xff] %v1545_v35  ;;  %v1551_v38 = vld [vmem:[%s4686_s26 + $0x53b8] sm:$0xff] }
 0x165   : > { %1548 = vst [vmem:[%s4691_s27 + $0x1520] sm:$0xff] %v1547_v36  ;;  %1550 = vst [vmem:[%s4691_s27 + $0x1528] sm:$0xff] %v1549_v37  ;;  %v1553_v39 = vld [vmem:[%s4686_s26 + $0x53c0] sm:$0xff]  ;;  %v1555_v40 = vld [vmem:[%s4686_s26 + $0x53c8] sm:$0xff] }
 0x166   : > { %1552 = vst [vmem:[%s4691_s27 + $0x1530] sm:$0xff] %v1551_v38  ;;  %1554 = vst [vmem:[%s4691_s27 + $0x1538] sm:$0xff] %v1553_v39  ;;  %v1557_v41 = vld [vmem:[%s4686_s26 + $0x53d0] sm:$0xff]  ;;  %v1559_v42 = vld [vmem:[%s4686_s26 + $0x53d8] sm:$0xff] }
 0x167   : > { %1556 = vst [vmem:[%s4691_s27 + $0x1540] sm:$0xff] %v1555_v40  ;;  %v1561_v43 = vld [vmem:[%s4686_s26 + $0x53e0] sm:$0xff]  ;;  %1558 = vst [vmem:[%s4691_s27 + $0x1548] sm:$0xff] %v1557_v41  ;;  %v1563_v44 = vld [vmem:[%s4686_s26 + $0x53e8] sm:$0xff] }
 0x168   : > { %1560 = vst [vmem:[%s4691_s27 + $0x1550] sm:$0xff] %v1559_v42  ;;  %1562 = vst [vmem:[%s4691_s27 + $0x1558] sm:$0xff] %v1561_v43  ;;  %v1565_v45 = vld [vmem:[%s4686_s26 + $0x53f0] sm:$0xff]  ;;  %v1567_v46 = vld [vmem:[%s4686_s26 + $0x53f8] sm:$0xff] }
 0x169   : > { %1564 = vst [vmem:[%s4691_s27 + $0x1560] sm:$0xff] %v1563_v44  ;;  %1566 = vst [vmem:[%s4691_s27 + $0x1568] sm:$0xff] %v1565_v45  ;;  %v1569_v47 = vld [vmem:[%s4686_s26 + $0x5400] sm:$0xff]  ;;  %v1571_v48 = vld [vmem:[%s4686_s26 + $0x5408] sm:$0xff] }
 0x16a   : > { %1568 = vst [vmem:[%s4691_s27 + $0x1570] sm:$0xff] %v1567_v46  ;;  %v1573_v49 = vld [vmem:[%s4686_s26 + $0x5410] sm:$0xff]  ;;  %1570 = vst [vmem:[%s4691_s27 + $0x1578] sm:$0xff] %v1569_v47  ;;  %v1575_v50 = vld [vmem:[%s4686_s26 + $0x5640] sm:$0xff] }
 0x16b   : > { %1572 = vst [vmem:[%s4691_s27 + $0x1580] sm:$0xff] %v1571_v48  ;;  %1574 = vst [vmem:[%s4691_s27 + $0x1588] sm:$0xff] %v1573_v49  ;;  %v1577_v51 = vld [vmem:[%s4686_s26 + $0x5648] sm:$0xff]  ;;  %v1579_v52 = vld [vmem:[%s4686_s26 + $0x5650] sm:$0xff] }
 0x16c   : > { %1576 = vst [vmem:[%s4691_s27 + $0x1590] sm:$0xff] %v1575_v50  ;;  %1578 = vst [vmem:[%s4691_s27 + $0x1598] sm:$0xff] %v1577_v51  ;;  %v1581_v53 = vld [vmem:[%s4686_s26 + $0x5658] sm:$0xff]  ;;  %v1583_v54 = vld [vmem:[%s4686_s26 + $0x5660] sm:$0xff] }
 0x16d   : > { %1580 = vst [vmem:[%s4691_s27 + $0x15a0] sm:$0xff] %v1579_v52  ;;  %v1585_v55 = vld [vmem:[%s4686_s26 + $0x5668] sm:$0xff]  ;;  %1582 = vst [vmem:[%s4691_s27 + $0x15a8] sm:$0xff] %v1581_v53  ;;  %v1587_v56 = vld [vmem:[%s4686_s26 + $0x5670] sm:$0xff] }
 0x16e   : > { %1584 = vst [vmem:[%s4691_s27 + $0x15b0] sm:$0xff] %v1583_v54  ;;  %1586 = vst [vmem:[%s4691_s27 + $0x15b8] sm:$0xff] %v1585_v55  ;;  %v1589_v57 = vld [vmem:[%s4686_s26 + $0x5678] sm:$0xff]  ;;  %v1591_v58 = vld [vmem:[%s4686_s26 + $0x5680] sm:$0xff] }
 0x16f   : > { %1588 = vst [vmem:[%s4691_s27 + $0x15c0] sm:$0xff] %v1587_v56  ;;  %1590 = vst [vmem:[%s4691_s27 + $0x15c8] sm:$0xff] %v1589_v57  ;;  %v1593_v59 = vld [vmem:[%s4686_s26 + $0x5688] sm:$0xff]  ;;  %v1595_v60 = vld [vmem:[%s4686_s26 + $0x5690] sm:$0xff] }
 0x170   : > { %1592 = vst [vmem:[%s4691_s27 + $0x15d0] sm:$0xff] %v1591_v58  ;;  %v1597_v61 = vld [vmem:[%s4686_s26 + $0x5698] sm:$0xff]  ;;  %1594 = vst [vmem:[%s4691_s27 + $0x15d8] sm:$0xff] %v1593_v59  ;;  %v1599_v62 = vld [vmem:[%s4686_s26 + $0x56a0] sm:$0xff] }
 0x171   : > { %1596 = vst [vmem:[%s4691_s27 + $0x15e0] sm:$0xff] %v1595_v60  ;;  %1598 = vst [vmem:[%s4691_s27 + $0x15e8] sm:$0xff] %v1597_v61  ;;  %v1601_v63 = vld [vmem:[%s4686_s26 + $0x56a8] sm:$0xff]  ;;  %v1603_v0 = vld [vmem:[%s4686_s26 + $0x56b0] sm:$0xff] }
 0x172   : > { %1600 = vst [vmem:[%s4691_s27 + $0x15f0] sm:$0xff] %v1599_v62  ;;  %1602 = vst [vmem:[%s4691_s27 + $0x15f8] sm:$0xff] %v1601_v63  ;;  %v1605_v1 = vld [vmem:[%s4686_s26 + $0x56b8] sm:$0xff]  ;;  %v1607_v2 = vld [vmem:[%s4686_s26 + $0x56c0] sm:$0xff] }
 0x173   : > { %1604 = vst [vmem:[%s4691_s27 + $0x1600] sm:$0xff] %v1603_v0  ;;  %v1609_v3 = vld [vmem:[%s4686_s26 + $0x56c8] sm:$0xff]  ;;  %1606 = vst [vmem:[%s4691_s27 + $0x1608] sm:$0xff] %v1605_v1  ;;  %v1611_v4 = vld [vmem:[%s4686_s26 + $0x56d0] sm:$0xff] }
 0x174   : > { %1608 = vst [vmem:[%s4691_s27 + $0x1610] sm:$0xff] %v1607_v2  ;;  %1610 = vst [vmem:[%s4691_s27 + $0x1618] sm:$0xff] %v1609_v3  ;;  %v1613_v5 = vld [vmem:[%s4686_s26 + $0x56d8] sm:$0xff]  ;;  %v1615_v6 = vld [vmem:[%s4686_s26 + $0x56e0] sm:$0xff] }
 0x175   : > { %1612 = vst [vmem:[%s4691_s27 + $0x1620] sm:$0xff] %v1611_v4  ;;  %1614 = vst [vmem:[%s4691_s27 + $0x1628] sm:$0xff] %v1613_v5  ;;  %v1617_v7 = vld [vmem:[%s4686_s26 + $0x56e8] sm:$0xff]  ;;  %v1619_v8 = vld [vmem:[%s4686_s26 + $0x56f0] sm:$0xff] }
 0x176   : > { %1616 = vst [vmem:[%s4691_s27 + $0x1630] sm:$0xff] %v1615_v6  ;;  %v1621_v9 = vld [vmem:[%s4686_s26 + $0x5920] sm:$0xff]  ;;  %1618 = vst [vmem:[%s4691_s27 + $0x1638] sm:$0xff] %v1617_v7  ;;  %v1623_v10 = vld [vmem:[%s4686_s26 + $0x5928] sm:$0xff] }
 0x177   : > { %1620 = vst [vmem:[%s4691_s27 + $0x1640] sm:$0xff] %v1619_v8  ;;  %1622 = vst [vmem:[%s4691_s27 + $0x1648] sm:$0xff] %v1621_v9  ;;  %v1625_v11 = vld [vmem:[%s4686_s26 + $0x5930] sm:$0xff]  ;;  %v1627_v12 = vld [vmem:[%s4686_s26 + $0x5938] sm:$0xff] }
 0x178   : > { %1624 = vst [vmem:[%s4691_s27 + $0x1650] sm:$0xff] %v1623_v10  ;;  %1626 = vst [vmem:[%s4691_s27 + $0x1658] sm:$0xff] %v1625_v11  ;;  %v1629_v13 = vld [vmem:[%s4686_s26 + $0x5940] sm:$0xff]  ;;  %v1631_v14 = vld [vmem:[%s4686_s26 + $0x5948] sm:$0xff] }
 0x179   : > { %1628 = vst [vmem:[%s4691_s27 + $0x1660] sm:$0xff] %v1627_v12  ;;  %v1633_v15 = vld [vmem:[%s4686_s26 + $0x5950] sm:$0xff]  ;;  %1630 = vst [vmem:[%s4691_s27 + $0x1668] sm:$0xff] %v1629_v13  ;;  %v1635_v16 = vld [vmem:[%s4686_s26 + $0x5958] sm:$0xff] }
 0x17a   : > { %1632 = vst [vmem:[%s4691_s27 + $0x1670] sm:$0xff] %v1631_v14  ;;  %1634 = vst [vmem:[%s4691_s27 + $0x1678] sm:$0xff] %v1633_v15  ;;  %v1637_v17 = vld [vmem:[%s4686_s26 + $0x5960] sm:$0xff]  ;;  %v1639_v18 = vld [vmem:[%s4686_s26 + $0x5968] sm:$0xff] }
 0x17b   : > { %1636 = vst [vmem:[%s4691_s27 + $0x1680] sm:$0xff] %v1635_v16  ;;  %1638 = vst [vmem:[%s4691_s27 + $0x1688] sm:$0xff] %v1637_v17  ;;  %v1641_v19 = vld [vmem:[%s4686_s26 + $0x5970] sm:$0xff]  ;;  %v1643_v20 = vld [vmem:[%s4686_s26 + $0x5978] sm:$0xff] }
 0x17c   : > { %1640 = vst [vmem:[%s4691_s27 + $0x1690] sm:$0xff] %v1639_v18  ;;  %v1645_v21 = vld [vmem:[%s4686_s26 + $0x5980] sm:$0xff]  ;;  %1642 = vst [vmem:[%s4691_s27 + $0x1698] sm:$0xff] %v1641_v19  ;;  %v1647_v22 = vld [vmem:[%s4686_s26 + $0x5988] sm:$0xff] }
 0x17d   : > { %1644 = vst [vmem:[%s4691_s27 + $0x16a0] sm:$0xff] %v1643_v20  ;;  %1646 = vst [vmem:[%s4691_s27 + $0x16a8] sm:$0xff] %v1645_v21  ;;  %v1649_v23 = vld [vmem:[%s4686_s26 + $0x5990] sm:$0xff]  ;;  %v1651_v24 = vld [vmem:[%s4686_s26 + $0x5998] sm:$0xff] }
 0x17e   : > { %1648 = vst [vmem:[%s4691_s27 + $0x16b0] sm:$0xff] %v1647_v22  ;;  %1650 = vst [vmem:[%s4691_s27 + $0x16b8] sm:$0xff] %v1649_v23  ;;  %v1653_v25 = vld [vmem:[%s4686_s26 + $0x59a0] sm:$0xff]  ;;  %v1655_v26 = vld [vmem:[%s4686_s26 + $0x59a8] sm:$0xff] }
 0x17f   : > { %1652 = vst [vmem:[%s4691_s27 + $0x16c0] sm:$0xff] %v1651_v24  ;;  %v1657_v27 = vld [vmem:[%s4686_s26 + $0x59b0] sm:$0xff]  ;;  %1654 = vst [vmem:[%s4691_s27 + $0x16c8] sm:$0xff] %v1653_v25  ;;  %v1659_v28 = vld [vmem:[%s4686_s26 + $0x59b8] sm:$0xff] }
 0x180   : > { %1656 = vst [vmem:[%s4691_s27 + $0x16d0] sm:$0xff] %v1655_v26  ;;  %1658 = vst [vmem:[%s4691_s27 + $0x16d8] sm:$0xff] %v1657_v27  ;;  %v1661_v29 = vld [vmem:[%s4686_s26 + $0x59c0] sm:$0xff]  ;;  %v1663_v30 = vld [vmem:[%s4686_s26 + $0x59c8] sm:$0xff] }
 0x181   : > { %1660 = vst [vmem:[%s4691_s27 + $0x16e0] sm:$0xff] %v1659_v28  ;;  %1662 = vst [vmem:[%s4691_s27 + $0x16e8] sm:$0xff] %v1661_v29  ;;  %v1665_v31 = vld [vmem:[%s4686_s26 + $0x59d0] sm:$0xff] }
 0x182   : > { %1664 = vst [vmem:[%s4691_s27 + $0x16f0] sm:$0xff] %v1663_v30  ;;  %1666 = vst [vmem:[%s4691_s27 + $0x16f8] sm:$0xff] %v1665_v31 }
 0x183 PF: > { %p3760_p6 = scmp.ge.s32.totalorder %s4621_s16, 1  ;;  %p1679_p7 = scmp.lt.s32.totalorder %s4621_s16, 5 }
 0x185   : > { %p1680_p8 = pnand %p3760_p6, %p1679_p7 }
 0x186   : > { %s1686_s28 = sand.u32 (!%p1680_p8), 1, %s4605_s12   ;;  %v6168_v32 = vld [vmem:[%s7082_s0 + $0x8] sm:$0xff] (!%p1680_p8)  ;;  %s1738_s12 = smul.u32 (!%p1680_p8), 23, %s4613_s14 }
 0x187   : > { %1683 = sbr.rel (%p1680_p8) target bundleno = 998 (0x3e6), region = 51  ;;  %2605 = vmatprep.mubr.f32.mxu0 (!%p1680_p8), %v6168_v32  ;;  %2676 = vmatprep.mubr.f32.mxu1 (!%p1680_p8), %v6168_v32 }
 0x188   : > { %s4537_s4 = smul.u32 (!%p1680_p8), 5888, %s1686_s28  ;;  %p6739_p9 = scmp.lt.s32.totalorder (!%p1680_p8), %s1738_s12, 91 }
 0x18a   : > { %s6172_s5 = scalar_lea.vmem (!%p1680_p8), [#allocation2], %s4537_s4 }
 0x18b   : > { %v1806_v33 = vld [vmem:[%s6172_s5 + $0x8] sm:$0xff] (!%p1680_p8)  ;;  %v1829_v34 = vld [vmem:[%s6172_s5 + $0xc0] sm:$0xff] (!%p1680_p8)  ;;  %v1828_v37 = vld [vmem:[%s6172_s5 + $0xb8] sm:$0xff] (!%p1680_p8) }
 0x18c   : > { %v1805_v35 = vld [vmem:[%s6172_s5] sm:$0xff] (!%p1680_p8)  ;;  %v3800_v36 = vpack.c.bf16 (!%p1680_p8), %v1829_v34, %v1806_v33  ;;  %v1852_v38 = vld [vmem:[%s6172_s5 + $0x178] sm:$0xff] (!%p1680_p8)  ;;  %v1875_v39 = vld [vmem:[%s6172_s5 + $0x230] sm:$0xff] (!%p1680_p8) }
 0x18d   : > { %v3802_v40 = vpack.c.bf16 (!%p1680_p8), %v1828_v37, %v1805_v35  ;;  %v3804_v41 = vpack.c.bf16 (!%p1680_p8), %v1875_v39, %v1852_v38  ;;  %v1851_v42 = vld [vmem:[%s6172_s5 + $0x170] sm:$0xff] (!%p1680_p8)  ;;  %v1874_v43 = vld [vmem:[%s6172_s5 + $0x228] sm:$0xff] (!%p1680_p8)  ;;  %v1921_v45 = vld [vmem:[%s6172_s5 + $0x3a0] sm:$0xff] (!%p1680_p8) }
 0x18e   : > { %v1898_v44 = vld [vmem:[%s6172_s5 + $0x2e8] sm:$0xff]  ;;  %3801 = vmatprep.subr.bf16.mxu0 %v3800_v36  ;;  %v3806_v46 = vpack.c.bf16 %v1874_v43, %v1851_v42  ;;  %v1897_v48 = vld [vmem:[%s6172_s5 + $0x2e0] sm:$0xff]  ;;  %v1920_v49 = vld [vmem:[%s6172_s5 + $0x398] sm:$0xff]  ;;  %s7094_s12 = smov (!%p6739_p9, %s1738_s12), 91 }
 0x18f   : > { %3803 = vmatpush1.bf16.msra.mxu0 %v3802_v40  ;;  %v3808_v47 = vpack.c.bf16 %v1921_v45, %v1898_v44  ;;  %v1944_v50 = vld [vmem:[%s6172_s5 + $0x458] sm:$0xff]  ;;  %v1967_v51 = vld [vmem:[%s6172_s5 + $0x510] sm:$0xff]  ;;  %v3810_v52 = vpack.c.bf16 %v1920_v49, %v1897_v48  ;;  %v1966_v55 = vld [vmem:[%s6172_s5 + $0x508] sm:$0xff]  ;;  %s6772_s23 = scalar_lea.vmem %s7084_s2, %s7094_s12  ;;  %s3761_s24 = sshll.u32 %s7094_s12, 3 }
 0x190   : > { %3805 = vmatprep.subr.bf16.mxu0 %v3804_v41  ;;  %v3812_v53 = vpack.c.bf16 %v1967_v51, %v1944_v50  ;;  %v1943_v54 = vld [vmem:[%s6172_s5 + $0x450] sm:$0xff]  ;;  %v1990_v56 = vld [vmem:[%s6172_s5 + $0x5c8] sm:$0xff]  ;;  %v2013_v57 = vld [vmem:[%s6172_s5 + $0x680] sm:$0xff]  ;;  %s6808_s27 = scalar_lea.vmem %s7085_s3, %s3761_s24 }
 0x191   : > { %v1808_v58 = vld [vmem:[%s6172_s5 + $0x18] sm:$0xff]  ;;  %v1831_v59 = vld [vmem:[%s6172_s5 + $0xd0] sm:$0xff]  ;;  %v1830_v61 = vld [vmem:[%s6172_s5 + $0xc8] sm:$0xff]  ;;  %v3814_v62 = vpack.c.bf16 %v1966_v55, %v1943_v54  ;;  %v3816_v3 = vpack.c.bf16 %v2013_v57, %v1990_v56 }
 0x192   : > { %v1807_v60 = vld [vmem:[%s6172_s5 + $0x10] sm:$0xff]  ;;  %v1989_v63 = vld [vmem:[%s6172_s5 + $0x5c0] sm:$0xff]  ;;  %v2012_v0 = vld [vmem:[%s6172_s5 + $0x678] sm:$0xff]  ;;  %v3864_v1 = vpack.c.bf16 %v1831_v59, %v1808_v58 }
 0x193   : > { %3807 = vmatpush1.bf16.msra.mxu0 %v3806_v46  ;;  %v3866_v2 = vpack.c.bf16 %v1830_v61, %v1807_v60  ;;  %v2036_v4 = vld [vmem:[%s6172_s5 + $0x738] sm:$0xff]  ;;  %v1854_v5 = vld [vmem:[%s6172_s5 + $0x188] sm:$0xff]  ;;  %v1877_v6 = vld [vmem:[%s6172_s5 + $0x240] sm:$0xff]  ;;  %v3818_v12 = vpack.c.bf16 %v2012_v0, %v1989_v63 }
 0x194   : > { %3809 = vmatprep.subr.bf16.mxu0 %v3808_v47  ;;  %v2059_v7 = vld [vmem:[%s6172_s5 + $0x7f0] sm:$0xff]  ;;  %3865 = vmatprep.subr.bf16.mxu1 %v3864_v1  ;;  %v3868_v8 = vpack.c.bf16 %v1877_v6, %v1854_v5  ;;  %v1853_v9 = vld [vmem:[%s6172_s5 + $0x180] sm:$0xff]  ;;  %v1876_v10 = vld [vmem:[%s6172_s5 + $0x238] sm:$0xff] }
 0x195   : > { %3867 = vmatpush1.bf16.msra.mxu1 %v3866_v2  ;;  %v3870_v11 = vpack.c.bf16 %v1876_v10, %v1853_v9  ;;  %v1900_v13 = vld [vmem:[%s6172_s5 + $0x2f8] sm:$0xff]  ;;  %v1923_v14 = vld [vmem:[%s6172_s5 + $0x3b0] sm:$0xff]  ;;  %v3820_v16 = vpack.c.bf16 %v2059_v7, %v2036_v4  ;;  %v2058_v18 = vld [vmem:[%s6172_s5 + $0x7e8] sm:$0xff] }
 0x196   : > { %3869 = vmatprep.subr.bf16.mxu1 %v3868_v8  ;;  %v1899_v15 = vld [vmem:[%s6172_s5 + $0x2f0] sm:$0xff]  ;;  %v3872_v19 = vpack.c.bf16 %v1923_v14, %v1900_v13  ;;  %v1922_v20 = vld [vmem:[%s6172_s5 + $0x3a8] sm:$0xff]  ;;  %v2105_v22 = vld [vmem:[%s6172_s5 + $0x960] sm:$0xff] }
 0x197   : > { %3811 = vmatpush1.bf16.msra.mxu0 %v3810_v52  ;;  %v2035_v17 = vld [vmem:[%s6172_s5 + $0x730] sm:$0xff]  ;;  %v2082_v21 = vld [vmem:[%s6172_s5 + $0x8a8] sm:$0xff]  ;;  %v3874_v24 = vpack.c.bf16 %v1922_v20, %v1899_v15  ;;  %v1969_v25 = vld [vmem:[%s6172_s5 + $0x520] sm:$0xff] }
 0x198   : > { %3813 = vmatprep.subr.bf16.mxu0 %v3812_v53  ;;  %v1946_v23 = vld [vmem:[%s6172_s5 + $0x468] sm:$0xff]  ;;  %v3822_v26 = vpack.c.bf16 %v2058_v18, %v2035_v17  ;;  %v2081_v27 = vld [vmem:[%s6172_s5 + $0x8a0] sm:$0xff]  ;;  %v1968_v30 = vld [vmem:[%s6172_s5 + $0x518] sm:$0xff]  ;;  %v3824_v31 = vpack.c.bf16 %v2105_v22, %v2082_v21 }
 0x199   : > { %3871 = vmatpush1.bf16.msra.mxu1 %v3870_v11  ;;  %v3876_v28 = vpack.c.bf16 %v1969_v25, %v1946_v23  ;;  %v1945_v29 = vld [vmem:[%s6172_s5 + $0x460] sm:$0xff]  ;;  %v2104_v33 = vld [vmem:[%s6172_s5 + $0x958] sm:$0xff]  ;;  %v2015_v35 = vld [vmem:[%s6172_s5 + $0x690] sm:$0xff] }
 0x19a   : > { %3873 = vmatprep.subr.bf16.mxu1 %v3872_v19  ;;  %v1992_v34 = vld [vmem:[%s6172_s5 + $0x5d8] sm:$0xff]  ;;  %v2151_v37 = vld [vmem:[%s6172_s5 + $0xad0] sm:$0xff]  ;;  %v3878_v38 = vpack.c.bf16 %v1968_v30, %v1945_v29  ;;  %v3826_v39 = vpack.c.bf16 %v2104_v33, %v2081_v27  ;;  %v2014_v43 = vld [vmem:[%s6172_s5 + $0x688] sm:$0xff] }
 0x19b   : > { %3815 = vmatpush1.bf16.msra.mxu0 %v3814_v62  ;;  %v2128_v36 = vld [vmem:[%s6172_s5 + $0xa18] sm:$0xff]  ;;  %v2127_v40 = vld [vmem:[%s6172_s5 + $0xa10] sm:$0xff]  ;;  %v3880_v41 = vpack.c.bf16 %v2015_v35, %v1992_v34  ;;  %v2150_v45 = vld [vmem:[%s6172_s5 + $0xac8] sm:$0xff] }
 0x19c   : > { %3817 = vmatprep.subr.bf16.mxu0 %v3816_v3  ;;  %v1991_v42 = vld [vmem:[%s6172_s5 + $0x5d0] sm:$0xff]  ;;  %v3828_v44 = vpack.c.bf16 %v2151_v37, %v2128_v36  ;;  %v2038_v46 = vld [vmem:[%s6172_s5 + $0x748] sm:$0xff]  ;;  %v2061_v47 = vld [vmem:[%s6172_s5 + $0x800] sm:$0xff]  ;;  %v3830_v51 = vpack.c.bf16 %v2150_v45, %v2127_v40 }
 0x19d   : > { %3875 = vmatpush1.bf16.msra.mxu1 %v3874_v24  ;;  %v2174_v48 = vld [vmem:[%s6172_s5 + $0xb88] sm:$0xff]  ;;  %v2197_v49 = vld [vmem:[%s6172_s5 + $0xc40] sm:$0xff]  ;;  %v3882_v50 = vpack.c.bf16 %v2014_v43, %v1991_v42  ;;  %v3884_v53 = vpack.c.bf16 %v2061_v47, %v2038_v46  ;;  %v2060_v55 = vld [vmem:[%s6172_s5 + $0x7f8] sm:$0xff] }
 0x19e   : > { %3877 = vmatprep.subr.bf16.mxu1 %v3876_v28  ;;  %v2173_v52 = vld [vmem:[%s6172_s5 + $0xb80] sm:$0xff]  ;;  %v3832_v56 = vpack.c.bf16 %v2197_v49, %v2174_v48  ;;  %v2196_v57 = vld [vmem:[%s6172_s5 + $0xc38] sm:$0xff]  ;;  %v2107_v59 = vld [vmem:[%s6172_s5 + $0x970] sm:$0xff] }
 0x19f   : > { %3819 = vmatpush1.bf16.msra.mxu0 %v3818_v12  ;;  %v2037_v54 = vld [vmem:[%s6172_s5 + $0x740] sm:$0xff]  ;;  %v2084_v58 = vld [vmem:[%s6172_s5 + $0x8b8] sm:$0xff]  ;;  %v2243_v61 = vld [vmem:[%s6172_s5 + $0xdb0] sm:$0xff]  ;;  %v3834_v63 = vpack.c.bf16 %v2196_v57, %v2173_v52 }
 0x1a0   : > { %3821 = vmatprep.subr.bf16.mxu0 %v3820_v16  ;;  %v2220_v60 = vld [vmem:[%s6172_s5 + $0xcf8] sm:$0xff]  ;;  %v3886_v62 = vpack.c.bf16 %v2060_v55, %v2037_v54  ;;  %v2219_v0 = vld [vmem:[%s6172_s5 + $0xcf0] sm:$0xff]  ;;  %v3888_v1 = vpack.c.bf16 %v2107_v59, %v2084_v58  ;;  %v2106_v3 = vld [vmem:[%s6172_s5 + $0x968] sm:$0xff] }
 0x1a1   : > { %3879 = vmatpush1.bf16.msra.mxu1 %v3878_v38  ;;  %v2083_v2 = vld [vmem:[%s6172_s5 + $0x8b0] sm:$0xff]  ;;  %v3836_v4 = vpack.c.bf16 %v2243_v61, %v2220_v60  ;;  %v2242_v5 = vld [vmem:[%s6172_s5 + $0xda8] sm:$0xff]  ;;  %v2153_v7 = vld [vmem:[%s6172_s5 + $0xae0] sm:$0xff] }
 0x1a2   : > { %3881 = vmatprep.subr.bf16.mxu1 %v3880_v41  ;;  %v2130_v6 = vld [vmem:[%s6172_s5 + $0xa28] sm:$0xff]  ;;  %v2289_v9 = vld [vmem:[%s6172_s5 + $0xf20] sm:$0xff]  ;;  %v3890_v10 = vpack.c.bf16 %v2106_v3, %v2083_v2  ;;  %v3838_v11 = vpack.c.bf16 %v2242_v5, %v2219_v0  ;;  %v2152_v15 = vld [vmem:[%s6172_s5 + $0xad8] sm:$0xff] }
 0x1a3   : > { %3823 = vmatpush1.bf16.msra.mxu0 %v3822_v26  ;;  %v2266_v8 = vld [vmem:[%s6172_s5 + $0xe68] sm:$0xff]  ;;  %v2265_v12 = vld [vmem:[%s6172_s5 + $0xe60] sm:$0xff]  ;;  %v3892_v13 = vpack.c.bf16 %v2153_v7, %v2130_v6  ;;  %v2288_v17 = vld [vmem:[%s6172_s5 + $0xf18] sm:$0xff] }
 0x1a4   : > { %3825 = vmatprep.subr.bf16.mxu0 %v3824_v31  ;;  %v2129_v14 = vld [vmem:[%s6172_s5 + $0xa20] sm:$0xff]  ;;  %v3840_v16 = vpack.c.bf16 %v2289_v9, %v2266_v8  ;;  %v2176_v18 = vld [vmem:[%s6172_s5 + $0xb98] sm:$0xff]  ;;  %v2199_v19 = vld [vmem:[%s6172_s5 + $0xc50] sm:$0xff]  ;;  %v3842_v23 = vpack.c.bf16 %v2288_v17, %v2265_v12 }
 0x1a5   : > { %3883 = vmatpush1.bf16.msra.mxu1 %v3882_v50  ;;  %v2312_v20 = vld [vmem:[%s6172_s5 + $0xfd8] sm:$0xff]  ;;  %v2335_v21 = vld [vmem:[%s6172_s5 + $0x1090] sm:$0xff]  ;;  %v3894_v22 = vpack.c.bf16 %v2152_v15, %v2129_v14  ;;  %v3896_v25 = vpack.c.bf16 %v2199_v19, %v2176_v18  ;;  %v2198_v27 = vld [vmem:[%s6172_s5 + $0xc48] sm:$0xff] }
 0x1a6   : > { %3885 = vmatprep.subr.bf16.mxu1 %v3884_v53  ;;  %v2311_v24 = vld [vmem:[%s6172_s5 + $0xfd0] sm:$0xff]  ;;  %v3844_v28 = vpack.c.bf16 %v2335_v21, %v2312_v20  ;;  %v2334_v29 = vld [vmem:[%s6172_s5 + $0x1088] sm:$0xff]  ;;  %v2245_v31 = vld [vmem:[%s6172_s5 + $0xdc0] sm:$0xff] }
 0x1a7   : > { %3827 = vmatpush1.bf16.msra.mxu0 %v3826_v39  ;;  %v2175_v26 = vld [vmem:[%s6172_s5 + $0xb90] sm:$0xff]  ;;  %v2222_v30 = vld [vmem:[%s6172_s5 + $0xd08] sm:$0xff]  ;;  %v2381_v34 = vld [vmem:[%s6172_s5 + $0x1200] sm:$0xff]  ;;  %v3846_v36 = vpack.c.bf16 %v2334_v29, %v2311_v24 }
 0x1a8   : > { %3829 = vmatprep.subr.bf16.mxu0 %v3828_v44  ;;  %v2358_v33 = vld [vmem:[%s6172_s5 + $0x1148] sm:$0xff]  ;;  %v3898_v35 = vpack.c.bf16 %v2198_v27, %v2175_v26  ;;  %v2357_v37 = vld [vmem:[%s6172_s5 + $0x1140] sm:$0xff]  ;;  %v3900_v38 = vpack.c.bf16 %v2245_v31, %v2222_v30  ;;  %v2244_v40 = vld [vmem:[%s6172_s5 + $0xdb8] sm:$0xff] }
 0x1a9   : > { %3887 = vmatpush1.bf16.msra.mxu1 %v3886_v62  ;;  %v2221_v39 = vld [vmem:[%s6172_s5 + $0xd00] sm:$0xff]  ;;  %v3848_v41 = vpack.c.bf16 %v2381_v34, %v2358_v33  ;;  %v2380_v42 = vld [vmem:[%s6172_s5 + $0x11f8] sm:$0xff]  ;;  %v2291_v44 = vld [vmem:[%s6172_s5 + $0xf30] sm:$0xff] }
 0x1aa   : > { %3889 = vmatprep.subr.bf16.mxu1 %v3888_v1  ;;  %v2268_v43 = vld [vmem:[%s6172_s5 + $0xe78] sm:$0xff]  ;;  %v2427_v46 = vld [vmem:[%s6172_s5 + $0x1370] sm:$0xff]  ;;  %v3902_v47 = vpack.c.bf16 %v2244_v40, %v2221_v39  ;;  %v3850_v48 = vpack.c.bf16 %v2380_v42, %v2357_v37  ;;  %v2290_v52 = vld [vmem:[%s6172_s5 + $0xf28] sm:$0xff] }
 0x1ab   : > { %3831 = vmatpush1.bf16.msra.mxu0 %v3830_v51  ;;  %v2404_v45 = vld [vmem:[%s6172_s5 + $0x12b8] sm:$0xff]  ;;  %v2403_v49 = vld [vmem:[%s6172_s5 + $0x12b0] sm:$0xff]  ;;  %v3904_v50 = vpack.c.bf16 %v2291_v44, %v2268_v43  ;;  %v2426_v54 = vld [vmem:[%s6172_s5 + $0x1368] sm:$0xff] }
 0x1ac   : > { %3833 = vmatprep.subr.bf16.mxu0 %v3832_v56  ;;  %v2267_v51 = vld [vmem:[%s6172_s5 + $0xe70] sm:$0xff]  ;;  %v3852_v53 = vpack.c.bf16 %v2427_v46, %v2404_v45  ;;  %v2314_v55 = vld [vmem:[%s6172_s5 + $0xfe8] sm:$0xff]  ;;  %v2337_v56 = vld [vmem:[%s6172_s5 + $0x10a0] sm:$0xff]  ;;  %v3854_v60 = vpack.c.bf16 %v2426_v54, %v2403_v49 }
 0x1ad   : > { %3891 = vmatpush1.bf16.msra.mxu1 %v3890_v10  ;;  %v2450_v57 = vld [vmem:[%s6172_s5 + $0x1428] sm:$0xff]  ;;  %v2473_v58 = vld [vmem:[%s6172_s5 + $0x14e0] sm:$0xff]  ;;  %v3906_v59 = vpack.c.bf16 %v2290_v52, %v2267_v51  ;;  %v3908_v62 = vpack.c.bf16 %v2337_v56, %v2314_v55  ;;  %v2336_v0 = vld [vmem:[%s6172_s5 + $0x1098] sm:$0xff] }
 0x1ae   : > { %3893 = vmatprep.subr.bf16.mxu1 %v3892_v13  ;;  %v2449_v61 = vld [vmem:[%s6172_s5 + $0x1420] sm:$0xff]  ;;  %v3856_v1 = vpack.c.bf16 %v2473_v58, %v2450_v57  ;;  %v2472_v2 = vld [vmem:[%s6172_s5 + $0x14d8] sm:$0xff]  ;;  %v2519_v6 = vld [vmem:[%s6172_s5 + $0x1650] sm:$0xff] }
 0x1af   : > { %3835 = vmatpush1.bf16.msra.mxu0 %v3834_v63  ;;  %v2313_v63 = vld [vmem:[%s6172_s5 + $0xfe0] sm:$0xff]  ;;  %v2360_v3 = vld [vmem:[%s6172_s5 + $0x1158] sm:$0xff]  ;;  %v3858_v8 = vpack.c.bf16 %v2472_v2, %v2449_v61  ;;  %v2495_v9 = vld [vmem:[%s6172_s5 + $0x1590] sm:$0xff] }
 0x1b0   : > { %3837 = vmatprep.subr.bf16.mxu0 %v3836_v4  ;;  %v2383_v4 = vld [vmem:[%s6172_s5 + $0x1210] sm:$0xff]  ;;  %v2496_v5 = vld [vmem:[%s6172_s5 + $0x1598] sm:$0xff]  ;;  %v3910_v7 = vpack.c.bf16 %v2336_v0, %v2313_v63  ;;  %v2382_v12 = vld [vmem:[%s6172_s5 + $0x1208] sm:$0xff] }
 0x1b1   : > { %3895 = vmatpush1.bf16.msra.mxu1 %v3894_v22  ;;  %v3912_v10 = vpack.c.bf16 %v2383_v4, %v2360_v3  ;;  %v3860_v13 = vpack.c.bf16 %v2519_v6, %v2496_v5  ;;  %v2518_v14 = vld [vmem:[%s6172_s5 + $0x1648] sm:$0xff]  ;;  %v1833_v18 = vld [vmem:[%s6172_s5 + $0xe0] sm:$0xff]  ;;  %v2428_v24 = vld [vmem:[%s6172_s5 + $0x1378] sm:$0xff] }
 0x1b2   : > { %3897 = vmatprep.subr.bf16.mxu1 %v3896_v25  ;;  %v2406_v15 = vld [vmem:[%s6172_s5 + $0x12c8] sm:$0xff]  ;;  %v3862_v20 = vpack.c.bf16 %v2518_v14, %v2495_v9  ;;  %v1809_v21 = vld [vmem:[%s6172_s5 + $0x20] sm:$0xff]  ;;  %v1832_v26 = vld [vmem:[%s6172_s5 + $0xd8] sm:$0xff] }
 0x1b3   : > { %3839 = vmatpush1.bf16.msra.mxu0 %v3838_v11  ;;  %v2359_v11 = vld [vmem:[%s6172_s5 + $0x1150] sm:$0xff]  ;;  %v1810_v17 = vld [vmem:[%s6172_s5 + $0x28] sm:$0xff]  ;;  %v2452_v27 = vld [vmem:[%s6172_s5 + $0x1438] sm:$0xff]  ;;  %v3930_v34 = vpack.c.bf16 %v1832_v26, %v1809_v21 }
 0x1b4   : > { %3841 = vmatprep.subr.bf16.mxu0 %v3840_v16  ;;  %v2429_v16 = vld [vmem:[%s6172_s5 + $0x1380] sm:$0xff]  ;;  %v3914_v19 = vpack.c.bf16 %v2382_v12, %v2359_v11  ;;  %v3928_v25 = vpack.c.bf16 %v1833_v18, %v1810_v17  ;;  %v1856_v29 = vld [vmem:[%s6172_s5 + $0x198] sm:$0xff]  ;;  %v1879_v30 = vld [vmem:[%s6172_s5 + $0x250] sm:$0xff] }
 0x1b5   : > { %3899 = vmatpush1.bf16.msra.mxu1 %v3898_v35  ;;  %v3916_v22 = vpack.c.bf16 %v2429_v16, %v2406_v15  ;;  %v6305_v31 = vld [vmem:[%s7082_s0] sm:$0xff]  ;;  %v1855_v35 = vld [vmem:[%s6172_s5 + $0x190] sm:$0xff]  ;;  %v3932_v39 = vpack.c.bf16 %v1879_v30, %v1856_v29  ;;  %v1878_v40 = vld [vmem:[%s6172_s5 + $0x248] sm:$0xff] }
 0x1b6   : > { %3901 = vmatprep.subr.bf16.mxu1 %v3900_v38  ;;  %v2451_v37 = vld [vmem:[%s6172_s5 + $0x1430] sm:$0xff]  ;;  %v2474_v38 = vld [vmem:[%s6172_s5 + $0x14e8] sm:$0xff]  ;;  %v2521_v42 = vld [vmem:[%s6172_s5 + $0x1660] sm:$0xff]  ;;  %v3934_v46 = vpack.c.bf16 %v1878_v40, %v1855_v35 }
 0x1b7   : > { %3843 = vmatpush1.bf16.msra.mxu0 %v3842_v23  ;;  %v2405_v23 = vld [vmem:[%s6172_s5 + $0x12c0] sm:$0xff]  ;;  %v1902_v43 = vld [vmem:[%s6172_s5 + $0x308] sm:$0xff]  ;;  %v3922_v45 = vpack.c.bf16 %v2474_v38, %v2451_v37  ;;  %v1924_v52 = vld [vmem:[%s6172_s5 + $0x3b8] sm:$0xff] }
 0x1b8   : > { %3845 = vmatprep.subr.bf16.mxu0 %v3844_v28  ;;  %v2475_v28 = vld [vmem:[%s6172_s5 + $0x14f0] sm:$0xff]  ;;  %v3918_v33 = vpack.c.bf16 %v2428_v24, %v2405_v23  ;;  %v1925_v44 = vld [vmem:[%s6172_s5 + $0x3c0] sm:$0xff]  ;;  %v1948_v55 = vld [vmem:[%s6172_s5 + $0x478] sm:$0xff] }
 0x1b9   : > { %3903 = vmatpush1.bf16.msra.mxu1 %v3902_v47  ;;  %v1901_v47 = vld [vmem:[%s6172_s5 + $0x300] sm:$0xff]  ;;  %v3936_v51 = vpack.c.bf16 %v1925_v44, %v1902_v43  ;;  %v1835_v54 = vld [vmem:[%s6172_s5 + $0xf0] sm:$0xff]  ;;  %v1970_v0 = vld [vmem:[%s6172_s5 + $0x528] sm:$0xff] }
 0x1ba   : > { %3905 = vmatprep.subr.bf16.mxu1 %v3904_v50  ;;  %v2497_v49 = vld [vmem:[%s6172_s5 + $0x15a0] sm:$0xff]  ;;  %v2520_v50 = vld [vmem:[%s6172_s5 + $0x1658] sm:$0xff]  ;;  %v1971_v56 = vld [vmem:[%s6172_s5 + $0x530] sm:$0xff]  ;;  %v3938_v58 = vpack.c.bf16 %v1924_v52, %v1901_v47 }
 0x1bb   : > { %3847 = vmatpush1.bf16.msra.mxu0 %v3846_v36  ;;  %v3920_v36 = vpack.c.bf16 %v2475_v28, %v2452_v27  ;;  %v3926_v57 = vpack.c.bf16 %v2520_v50, %v2497_v49  ;;  %v1811_v61 = vld [vmem:[%s6172_s5 + $0x30] sm:$0xff]  ;;  %v3940_v63 = vpack.c.bf16 %v1971_v56, %v1948_v55  ;;  %v1881_v2 = vld [vmem:[%s6172_s5 + $0x260] sm:$0xff]  ;;  %v1994_v3 = vld [vmem:[%s6172_s5 + $0x5e8] sm:$0xff] }
 0x1bc   : > { %3849 = vmatprep.subr.bf16.mxu0 %v3848_v41  ;;  %v2498_v41 = vld [vmem:[%s6172_s5 + $0x15a8] sm:$0xff]  ;;  %v2017_v4 = vld [vmem:[%s6172_s5 + $0x6a0] sm:$0xff]  ;;  %v2016_v12 = vld [vmem:[%s6172_s5 + $0x698] sm:$0xff] }
 0x1bd   : > { %3907 = vmatpush1.bf16.msra.mxu1 %v3906_v59  ;;  %v1947_v59 = vld [vmem:[%s6172_s5 + $0x470] sm:$0xff]  ;;  %v1857_v9 = vld [vmem:[%s6172_s5 + $0x1a0] sm:$0xff]  ;;  %v3944_v11 = vpack.c.bf16 %v2017_v4, %v1994_v3  ;;  %v2040_v15 = vld [vmem:[%s6172_s5 + $0x758] sm:$0xff] }
 0x1be   : > { %3909 = vmatprep.subr.bf16.mxu1 %v3908_v62  ;;  %v1834_v62 = vld [vmem:[%s6172_s5 + $0xe8] sm:$0xff]  ;;  %v3942_v6 = vpack.c.bf16 %v1970_v0, %v1947_v59  ;;  %v1927_v14 = vld [vmem:[%s6172_s5 + $0x3d0] sm:$0xff]  ;;  %v1973_v26 = vld [vmem:[%s6172_s5 + $0x540] sm:$0xff] }
 0x1bf   : > { %3851 = vmatpush1.bf16.msra.mxu0 %v3850_v48  ;;  %v3924_v48 = vpack.c.bf16 %v2521_v42, %v2498_v41  ;;  %v3994_v5 = vpack.c.bf16 %v1834_v62, %v1811_v61  ;;  %v2063_v16 = vld [vmem:[%s6172_s5 + $0x810] sm:$0xff]  ;;  %v2062_v24 = vld [vmem:[%s6172_s5 + $0x808] sm:$0xff]  ;;  %v2085_v30 = vld [vmem:[%s6172_s5 + $0x8c0] sm:$0xff] }
 0x1c0   : > { %3853 = vmatprep.subr.bf16.mxu0 %v3852_v53  ;;  %v1812_v53 = vld [vmem:[%s6172_s5 + $0x38] sm:$0xff]  ;;  %v1903_v21 = vld [vmem:[%s6172_s5 + $0x310] sm:$0xff]  ;;  %v3948_v23 = vpack.c.bf16 %v2063_v16, %v2040_v15  ;;  %v2086_v27 = vld [vmem:[%s6172_s5 + $0x8c8] sm:$0xff] }
 0x1c1   : > { %3911 = vmatpush1.bf16.msra.mxu1 %v3910_v7  ;;  %v1993_v7 = vld [vmem:[%s6172_s5 + $0x5e0] sm:$0xff]  ;;  %v1972_v35 = vld [vmem:[%s6172_s5 + $0x538] sm:$0xff]  ;;  %v2155_v41 = vld [vmem:[%s6172_s5 + $0xaf0] sm:$0xff] }
 0x1c2   : > { %3913 = vmatprep.subr.bf16.mxu1 %v3912_v10  ;;  %v1880_v10 = vld [vmem:[%s6172_s5 + $0x258] sm:$0xff]  ;;  %v3946_v18 = vpack.c.bf16 %v2016_v12, %v1993_v7  ;;  %v2131_v44 = vld [vmem:[%s6172_s5 + $0xa30] sm:$0xff]  ;;  %v2018_v47 = vld [vmem:[%s6172_s5 + $0x6a8] sm:$0xff] }
 0x1c3   : > { %3855 = vmatpush1.bf16.msra.mxu0 %v3854_v60  ;;  %v3992_v60 = vpack.c.bf16 %v1835_v54, %v1812_v53  ;;  %v3998_v17 = vpack.c.bf16 %v1880_v10, %v1857_v9  ;;  %v2108_v37 = vld [vmem:[%s6172_s5 + $0x978] sm:$0xff]  ;;  %v2154_v49 = vld [vmem:[%s6172_s5 + $0xae8] sm:$0xff]  ;;  %v2201_v53 = vld [vmem:[%s6172_s5 + $0xc60] sm:$0xff] }
 0x1c4   : > { %3857 = vmatprep.subr.bf16.mxu0 %v3856_v1  ;;  %v1858_v1 = vld [vmem:[%s6172_s5 + $0x1a8] sm:$0xff]  ;;  %v1996_v38 = vld [vmem:[%s6172_s5 + $0x5f8] sm:$0xff]  ;;  %v3954_v43 = vpack.c.bf16 %v2108_v37, %v2085_v30  ;;  %v3958_v55 = vpack.c.bf16 %v2154_v49, %v2131_v44  ;;  %v2177_v56 = vld [vmem:[%s6172_s5 + $0xba0] sm:$0xff] }
 0x1c5   : > { %3915 = vmatpush1.bf16.msra.mxu1 %v3914_v19  ;;  %v2039_v19 = vld [vmem:[%s6172_s5 + $0x750] sm:$0xff]  ;;  %v2132_v40 = vld [vmem:[%s6172_s5 + $0xa38] sm:$0xff]  ;;  %v2042_v50 = vld [vmem:[%s6172_s5 + $0x768] sm:$0xff] }
 0x1c6   : > { %3917 = vmatprep.subr.bf16.mxu1 %v3916_v22  ;;  %v1926_v22 = vld [vmem:[%s6172_s5 + $0x3c8] sm:$0xff]  ;;  %v3950_v29 = vpack.c.bf16 %v2062_v24, %v2039_v19  ;;  %v2064_v59 = vld [vmem:[%s6172_s5 + $0x818] sm:$0xff]  ;;  %v2223_v4 = vld [vmem:[%s6172_s5 + $0xd10] sm:$0xff] }
 0x1c7   : > { %3859 = vmatpush1.bf16.msra.mxu0 %v3858_v8  ;;  %v3996_v8 = vpack.c.bf16 %v1881_v2, %v1858_v1  ;;  %v4002_v28 = vpack.c.bf16 %v1926_v22, %v1903_v21  ;;  %v2178_v52 = vld [vmem:[%s6172_s5 + $0xba8] sm:$0xff]  ;;  %v2200_v61 = vld [vmem:[%s6172_s5 + $0xc58] sm:$0xff]  ;;  %v2247_v1 = vld [vmem:[%s6172_s5 + $0xdd0] sm:$0xff] }
 0x1c8   : > { %3861 = vmatprep.subr.bf16.mxu0 %v3860_v13  ;;  %v1904_v13 = vld [vmem:[%s6172_s5 + $0x318] sm:$0xff]  ;;  %v3962_v3 = vpack.c.bf16 %v2200_v61, %v2177_v56  ;;  %v2110_v7 = vld [vmem:[%s6172_s5 + $0x988] sm:$0xff]  ;;  %v2269_v16 = vld [vmem:[%s6172_s5 + $0xe80] sm:$0xff] }
 0x1c9   : > { %3919 = vmatpush1.bf16.msra.mxu1 %v3918_v33  ;;  %v2088_v62 = vld [vmem:[%s6172_s5 + $0x8d8] sm:$0xff]  ;;  %v2246_v9 = vld [vmem:[%s6172_s5 + $0xdc8] sm:$0xff] }
 0x1ca   : > { %3921 = vmatprep.subr.bf16.mxu1 %v3920_v36  ;;  %v2224_v0 = vld [vmem:[%s6172_s5 + $0xd18] sm:$0xff]  ;;  %v2134_v10 = vld [vmem:[%s6172_s5 + $0xa48] sm:$0xff]  ;;  %v3966_v15 = vpack.c.bf16 %v2246_v9, %v2223_v4 }
 0x1cb   : > { %3863 = vmatpush1.bf16.msra.mxu0 %v3862_v20  ;;  %v4000_v20 = vpack.c.bf16 %v1927_v14, %v1904_v13  ;;  %v2270_v12 = vld [vmem:[%s6172_s5 + $0xe88] sm:$0xff]  ;;  %v2293_v13 = vld [vmem:[%s6172_s5 + $0xf40] sm:$0xff]  ;;  %v2156_v19 = vld [vmem:[%s6172_s5 + $0xaf8] sm:$0xff] }
 0x1cc   : > { %3929 = vmatprep.subr.bf16.mxu0 %v3928_v25  ;;  %v1950_v25 = vld [vmem:[%s6172_s5 + $0x488] sm:$0xff]  ;;  %v2292_v21 = vld [vmem:[%s6172_s5 + $0xf38] sm:$0xff] }
 0x1cd   : > { %3923 = vmatpush1.bf16.msra.mxu1 %v3922_v45  ;;  %v4004_v33 = vpack.c.bf16 %v1973_v26, %v1950_v25  ;;  %v2180_v22 = vld [vmem:[%s6172_s5 + $0xbb8] sm:$0xff]  ;;  %v2339_v25 = vld [vmem:[%s6172_s5 + $0x10b0] sm:$0xff]  ;;  %v2202_v30 = vld [vmem:[%s6172_s5 + $0xc68] sm:$0xff] }
 0x1ce   : > { %2606 = vmatmul.mubr.f32.vlgmr.msra.gmra.mrb[0].mxu0 %v6305_v31  ;;  %3925 = vmatprep.subr.bf16.mxu1 %v3924_v48  ;;  %v3956_v48 = vpack.c.bf16 %v2155_v41, %v2132_v40  ;;  %v2316_v24 = vld [vmem:[%s6172_s5 + $0xff8] sm:$0xff]  ;;  %v2362_v37 = vld [vmem:[%s6172_s5 + $0x1168] sm:$0xff]  ;;  %v2361_v41 = vld [vmem:[%s6172_s5 + $0x1160] sm:$0xff] }
 0x1cf   : > { %3931 = vmatpush1.bf16.msra.mxu0 %v3930_v34  ;;  %2747 = vmatprep.mubr.f32.mxu0 %v6168_v32  ;;  %v1949_v34 = vld [vmem:[%s6172_s5 + $0x480] sm:$0xff]  ;;  %v2248_v44 = vld [vmem:[%s6172_s5 + $0xdd8] sm:$0xff]  ;;  %v2294_v56 = vld [vmem:[%s6172_s5 + $0xf48] sm:$0xff] }
 0x1d0   : > { %3933 = vmatprep.subr.bf16.mxu0 %v3932_v39  ;;  %v2019_v39 = vld [vmem:[%s6172_s5 + $0x6b0] sm:$0xff]  ;;  %v4006_v42 = vpack.c.bf16 %v1972_v35, %v1949_v34  ;;  %v2338_v34 = vld [vmem:[%s6172_s5 + $0x10a8] sm:$0xff]  ;;  %v2408_v49 = vld [vmem:[%s6172_s5 + $0x12d8] sm:$0xff] }
 0x1d1   : > { %3927 = vmatpush1.bf16.msra.mxu1 %v3926_v57  ;;  %v4008_v45 = vpack.c.bf16 %v2019_v39, %v1996_v38  ;;  %v2226_v35 = vld [vmem:[%s6172_s5 + $0xd28] sm:$0xff]  ;;  %v2385_v38 = vld [vmem:[%s6172_s5 + $0x1220] sm:$0xff]  ;;  %v2340_v4 = vld [vmem:[%s6172_s5 + $0x10b8] sm:$0xff] }
 0x1d2   : > { %3993 = vmatprep.subr.bf16.mxu1 %v3992_v60  ;;  %v3960_v60 = vpack.c.bf16 %v2201_v53, %v2178_v52  ;;  %v2407_v53 = vld [vmem:[%s6172_s5 + $0x12d0] sm:$0xff]  ;;  %v2454_v61 = vld [vmem:[%s6172_s5 + $0x1448] sm:$0xff]  ;;  %v2500_v9 = vld [vmem:[%s6172_s5 + $0x15b8] sm:$0xff] }
 0x1d3   : > { %3935 = vmatpush1.bf16.msra.mxu0 %v3934_v46  ;;  %v1995_v46 = vld [vmem:[%s6172_s5 + $0x5f0] sm:$0xff] }
 0x1d4   : > { %3937 = vmatprep.subr.bf16.mxu0 %v3936_v51  ;;  %2677 = vmatmul.mubr.f32.vlgmr.msra.gmra.mrb[0].mxu1 %v6305_v31  ;;  %v2065_v51 = vld [vmem:[%s6172_s5 + $0x820] sm:$0xff]  ;;  %v4010_v54 = vpack.c.bf16 %v2018_v47, %v1995_v46  ;;  %v2384_v46 = vld [vmem:[%s6172_s5 + $0x1218] sm:$0xff] }
 0x1d5   : > { %3995 = vmatpush1.bf16.msra.mxu1 %v3994_v5  ;;  %2818 = vmatprep.mubr.f32.mxu1 %v6168_v32  ;;  %v2109_v32 = vld [vmem:[%s6172_s5 + $0x980] sm:$0xff]  ;;  %v4012_v57 = vpack.c.bf16 %v2065_v51, %v2042_v50  ;;  %v2272_v47 = vld [vmem:[%s6172_s5 + $0xe98] sm:$0xff]  ;;  %v2431_v50 = vld [vmem:[%s6172_s5 + $0x1390] sm:$0xff]  ;;  %v3978_v52 = vpack.c.bf16 %v2384_v46, %v2361_v41 }
 0x1d6   : > { %3997 = vmatprep.subr.bf16.mxu1 %v3996_v8  ;;  %v3952_v36 = vpack.c.bf16 %v2109_v32, %v2086_v27  ;;  %v3964_v8 = vpack.c.bf16 %v2247_v1, %v2224_v0  ;;  %v3970_v27 = vpack.c.bf16 %v2292_v21, %v2269_v16  ;;  %v2315_v32 = vld [vmem:[%s6172_s5 + $0xff0] sm:$0xff]  ;;  %v2453_v1 = vld [vmem:[%s6172_s5 + $0x1440] sm:$0xff]  ;;  %v2386_v16 = vld [vmem:[%s6172_s5 + $0x1228] sm:$0xff] }
 0x1d7   : > { %3939 = vmatpush1.bf16.msra.mxu0 %v3938_v58  ;;  %v2041_v58 = vld [vmem:[%s6172_s5 + $0x760] sm:$0xff]  ;;  %v3974_v40 = vpack.c.bf16 %v2338_v34, %v2315_v32  ;;  %v1814_v21 = vld [vmem:[%s6172_s5 + $0x48] sm:$0xff]  ;;  %v2432_v32 = vld [vmem:[%s6172_s5 + $0x1398] sm:$0xff] }
 0x1d8   : > { %3941 = vmatprep.subr.bf16.mxu0 %v3940_v63  ;;  %v2111_v63 = vld [vmem:[%s6172_s5 + $0x990] sm:$0xff]  ;;  %v4014_v2 = vpack.c.bf16 %v2064_v59, %v2041_v58  ;;  %v2430_v58 = vld [vmem:[%s6172_s5 + $0x1388] sm:$0xff]  ;;  %v1860_v34 = vld [vmem:[%s6172_s5 + $0x1b8] sm:$0xff] }
 0x1d9   : > { %3999 = vmatpush1.bf16.msra.mxu1 %v3998_v17  ;;  %v4016_v5 = vpack.c.bf16 %v2111_v63, %v2088_v62  ;;  %v2318_v59 = vld [vmem:[%s6172_s5 + $0x1008] sm:$0xff]  ;;  %v2477_v62 = vld [vmem:[%s6172_s5 + $0x1500] sm:$0xff]  ;;  %v3982_v0 = vpack.c.bf16 %v2430_v58, %v2407_v53  ;;  %v2524_v53 = vld [vmem:[%s6172_s5 + $0x1678] sm:$0xff] }
 0x1da   : > { %4001 = vmatprep.subr.bf16.mxu1 %v4000_v20  ;;  %v3968_v20 = vpack.c.bf16 %v2293_v13, %v2270_v12  ;;  %v2499_v13 = vld [vmem:[%s6172_s5 + $0x15b0] sm:$0xff]  ;;  %v2478_v41 = vld [vmem:[%s6172_s5 + $0x1508] sm:$0xff] }
 0x1db   : > { %3943 = vmatpush1.bf16.msra.mxu0 %v3942_v6  ;;  %v2087_v6 = vld [vmem:[%s6172_s5 + $0x8d0] sm:$0xff]  ;;  %v1906_v46 = vld [vmem:[%s6172_s5 + $0x328] sm:$0xff] }
 0x1dc   : > { %3945 = vmatprep.subr.bf16.mxu0 %v3944_v11  ;;  %v2157_v11 = vld [vmem:[%s6172_s5 + $0xb00] sm:$0xff]  ;;  %v4018_v14 = vpack.c.bf16 %v2110_v7, %v2087_v6  ;;  %v2476_v6 = vld [vmem:[%s6172_s5 + $0x14f8] sm:$0xff]  ;;  %v6457_v58 = vld [vmem:[%s7082_s0 + $0x8] sm:$0xff] }
 0x1dd   : > { %4003 = vmatpush1.bf16.msra.mxu1 %v4002_v28  ;;  %v4020_v17 = vpack.c.bf16 %v2157_v11, %v2134_v10  ;;  %v2364_v7 = vld [vmem:[%s6172_s5 + $0x1178] sm:$0xff]  ;;  %v2523_v10 = vld [vmem:[%s6172_s5 + $0x1670] sm:$0xff]  ;;  %v3986_v12 = vpack.c.bf16 %v2476_v6, %v2453_v1  ;;  %v1885_v6 = vld [vmem:[%s6172_s5 + $0x280] sm:$0xff] }
 0x1de   : > { %4005 = vmatprep.subr.bf16.mxu1 %v4004_v33  ;;  %v3972_v33 = vpack.c.bf16 %v2339_v25, %v2316_v24  ;;  %v1813_v25 = vld [vmem:[%s6172_s5 + $0x40] sm:$0xff]  ;;  %v1815_v1 = vld [vmem:[%s6172_s5 + $0x50] sm:$0xff] }
 0x1df   : > { %3947 = vmatpush1.bf16.msra.mxu0 %v3946_v18  ;;  %v2133_v18 = vld [vmem:[%s6172_s5 + $0xa40] sm:$0xff] }
 0x1e0   : > { %3949 = vmatprep.subr.bf16.mxu0 %v3948_v23  ;;  %v2203_v23 = vld [vmem:[%s6172_s5 + $0xc70] sm:$0xff]  ;;  %v4022_v26 = vpack.c.bf16 %v2156_v19, %v2133_v18  ;;  %v2522_v18 = vld [vmem:[%s6172_s5 + $0x1668] sm:$0xff] }
 0x1e1   : > { %4007 = vmatpush1.bf16.msra.mxu1 %v4006_v42  ;;  %v4024_v28 = vpack.c.bf16 %v2203_v23, %v2180_v22  ;;  %v2410_v19 = vld [vmem:[%s6172_s5 + $0x12e8] sm:$0xff]  ;;  %v1837_v22 = vld [vmem:[%s6172_s5 + $0x100] sm:$0xff]  ;;  %v3990_v24 = vpack.c.bf16 %v2522_v18, %v2499_v13  ;;  %v1931_v18 = vld [vmem:[%s6172_s5 + $0x3f0] sm:$0xff] }
 0x1e2   : > { %4009 = vmatprep.subr.bf16.mxu1 %v4008_v45  ;;  %v3976_v45 = vpack.c.bf16 %v2385_v38, %v2362_v37  ;;  %v1859_v38 = vld [vmem:[%s6172_s5 + $0x1b0] sm:$0xff]  ;;  %v1861_v13 = vld [vmem:[%s6172_s5 + $0x1c0] sm:$0xff] }
 0x1e3   : > { %3951 = vmatpush1.bf16.msra.mxu0 %v3950_v29  ;;  %v2179_v29 = vld [vmem:[%s6172_s5 + $0xbb0] sm:$0xff] }
 0x1e4   : > { %3953 = vmatprep.subr.bf16.mxu0 %v3952_v36  ;;  %v2249_v36 = vld [vmem:[%s6172_s5 + $0xde0] sm:$0xff]  ;;  %v4026_v39 = vpack.c.bf16 %v2202_v30, %v2179_v29  ;;  %v1836_v29 = vld [vmem:[%s6172_s5 + $0xf8] sm:$0xff] }
 0x1e5   : > { %4011 = vmatpush1.bf16.msra.mxu1 %v4010_v54  ;;  %v4028_v42 = vpack.c.bf16 %v2249_v36, %v2226_v35  ;;  %v2456_v30 = vld [vmem:[%s6172_s5 + $0x1458] sm:$0xff]  ;;  %v1883_v35 = vld [vmem:[%s6172_s5 + $0x270] sm:$0xff]  ;;  %v4058_v37 = vpack.c.bf16 %v1836_v29, %v1813_v25  ;;  %v2090_v29 = vld [vmem:[%s6172_s5 + $0x8e8] sm:$0xff] }
 0x1e6   : > { %4013 = vmatprep.subr.bf16.mxu1 %v4012_v57  ;;  %v3980_v57 = vpack.c.bf16 %v2431_v50, %v2408_v49  ;;  %v1905_v50 = vld [vmem:[%s6172_s5 + $0x320] sm:$0xff]  ;;  %v1907_v25 = vld [vmem:[%s6172_s5 + $0x330] sm:$0xff] }
 0x1e7   : > { %3955 = vmatpush1.bf16.msra.mxu0 %v3954_v43  ;;  %v2225_v43 = vld [vmem:[%s6172_s5 + $0xd20] sm:$0xff] }
 0x1e8   : > { %3957 = vmatprep.subr.bf16.mxu0 %v3956_v48  ;;  %v2295_v48 = vld [vmem:[%s6172_s5 + $0xf50] sm:$0xff]  ;;  %v4030_v51 = vpack.c.bf16 %v2248_v44, %v2225_v43  ;;  %v1882_v43 = vld [vmem:[%s6172_s5 + $0x268] sm:$0xff] }
 0x1e9   : > { %4015 = vmatpush1.bf16.msra.mxu1 %v4014_v2  ;;  %v4032_v54 = vpack.c.bf16 %v2295_v48, %v2272_v47  ;;  %v2502_v44 = vld [vmem:[%s6172_s5 + $0x15c8] sm:$0xff]  ;;  %v1929_v47 = vld [vmem:[%s6172_s5 + $0x3e0] sm:$0xff]  ;;  %v4062_v49 = vpack.c.bf16 %v1882_v43, %v1859_v38  ;;  %v1976_v38 = vld [vmem:[%s6172_s5 + $0x558] sm:$0xff] }
 0x1ea   : > { %4017 = vmatprep.subr.bf16.mxu1 %v4016_v5  ;;  %v3984_v5 = vpack.c.bf16 %v2477_v62, %v2454_v61  ;;  %v2136_v43 = vld [vmem:[%s6172_s5 + $0xa58] sm:$0xff] }
 0x1eb   : > { %3959 = vmatpush1.bf16.msra.mxu0 %v3958_v55  ;;  %v2271_v55 = vld [vmem:[%s6172_s5 + $0xe90] sm:$0xff] }
 0x1ec   : > { %3961 = vmatprep.subr.bf16.mxu0 %v3960_v60  ;;  %v2341_v60 = vld [vmem:[%s6172_s5 + $0x10c0] sm:$0xff]  ;;  %v4034_v63 = vpack.c.bf16 %v2294_v56, %v2271_v55  ;;  %v1928_v55 = vld [vmem:[%s6172_s5 + $0x3d8] sm:$0xff] }
 0x1ed   : > { %4019 = vmatpush1.bf16.msra.mxu1 %v4018_v14  ;;  %v4036_v2 = vpack.c.bf16 %v2341_v60, %v2318_v59  ;;  %v1816_v56 = vld [vmem:[%s6172_s5 + $0x58] sm:$0xff]  ;;  %v1975_v60 = vld [vmem:[%s6172_s5 + $0x550] sm:$0xff]  ;;  %v4066_v62 = vpack.c.bf16 %v1928_v55, %v1905_v50  ;;  %v2022_v50 = vld [vmem:[%s6172_s5 + $0x6c8] sm:$0xff] }
 0x1ee   : > { %4021 = vmatprep.subr.bf16.mxu1 %v4020_v17  ;;  %v3988_v17 = vpack.c.bf16 %v2523_v10, %v2500_v9  ;;  %v1952_v59 = vld [vmem:[%s6172_s5 + $0x498] sm:$0xff]  ;;  %v2182_v55 = vld [vmem:[%s6172_s5 + $0xbc8] sm:$0xff] }
 0x1ef   : > { %3963 = vmatpush1.bf16.msra.mxu0 %v3962_v3  ;;  %v2317_v3 = vld [vmem:[%s6172_s5 + $0x1000] sm:$0xff] }
 0x1f0   : > { %3965 = vmatprep.subr.bf16.mxu0 %v3964_v8  ;;  %v2387_v8 = vld [vmem:[%s6172_s5 + $0x1230] sm:$0xff]  ;;  %v4038_v11 = vpack.c.bf16 %v2340_v4, %v2317_v3  ;;  %v4068_v3 = vpack.c.bf16 %v1975_v60, %v1952_v59  ;;  %v1974_v4 = vld [vmem:[%s6172_s5 + $0x548] sm:$0xff]  ;;  %v2181_v60 = vld [vmem:[%s6172_s5 + $0xbc0] sm:$0xff] }
 0x1f1   : > { %4023 = vmatpush1.bf16.msra.mxu1 %v4022_v26  ;;  %v4040_v14 = vpack.c.bf16 %v2387_v8, %v2364_v7  ;;  %v1998_v7 = vld [vmem:[%s6172_s5 + $0x608] sm:$0xff]  ;;  %v2021_v8 = vld [vmem:[%s6172_s5 + $0x6c0] sm:$0xff] }
 0x1f2   : > { %4025 = vmatprep.subr.bf16.mxu1 %v4024_v28  ;;  %v4056_v28 = vpack.c.bf16 %v1837_v22, %v1814_v21 }
 0x1f3   : > { %3967 = vmatpush1.bf16.msra.mxu0 %v3966_v15  ;;  %v2363_v15 = vld [vmem:[%s6172_s5 + $0x1170] sm:$0xff] }
 0x1f4   : > { %3969 = vmatprep.subr.bf16.mxu0 %v3968_v20  ;;  %v2433_v20 = vld [vmem:[%s6172_s5 + $0x13a0] sm:$0xff]  ;;  %v4042_v23 = vpack.c.bf16 %v2386_v16, %v2363_v15  ;;  %v4072_v15 = vpack.c.bf16 %v2021_v8, %v1998_v7  ;;  %v2020_v16 = vld [vmem:[%s6172_s5 + $0x6b8] sm:$0xff]  ;;  %v2227_v8 = vld [vmem:[%s6172_s5 + $0xd30] sm:$0xff] }
 0x1f5   : > { %4027 = vmatpush1.bf16.msra.mxu1 %v4026_v39  ;;  %v4044_v26 = vpack.c.bf16 %v2433_v20, %v2410_v19  ;;  %v2044_v19 = vld [vmem:[%s6172_s5 + $0x778] sm:$0xff]  ;;  %v2067_v20 = vld [vmem:[%s6172_s5 + $0x830] sm:$0xff] }
 0x1f6   : > { %4029 = vmatprep.subr.bf16.mxu1 %v4028_v42  ;;  %v4060_v42 = vpack.c.bf16 %v1883_v35, %v1860_v34  ;;  %v2089_v35 = vld [vmem:[%s6172_s5 + $0x8e0] sm:$0xff] }
 0x1f7   : > { %3971 = vmatpush1.bf16.msra.mxu0 %v3970_v27  ;;  %v2409_v27 = vld [vmem:[%s6172_s5 + $0x12e0] sm:$0xff] }
 0x1f8   : > { %3973 = vmatprep.subr.bf16.mxu0 %v3972_v33  ;;  %v2479_v33 = vld [vmem:[%s6172_s5 + $0x1510] sm:$0xff]  ;;  %v4046_v36 = vpack.c.bf16 %v2432_v32, %v2409_v27  ;;  %v4076_v27 = vpack.c.bf16 %v2067_v20, %v2044_v19  ;;  %v2066_v32 = vld [vmem:[%s6172_s5 + $0x828] sm:$0xff]  ;;  %v2273_v20 = vld [vmem:[%s6172_s5 + $0xea0] sm:$0xff] }
 0x1f9   : > { %4031 = vmatpush1.bf16.msra.mxu1 %v4030_v51  ;;  %v4048_v39 = vpack.c.bf16 %v2479_v33, %v2456_v30  ;;  %v2113_v30 = vld [vmem:[%s6172_s5 + $0x9a0] sm:$0xff] }
 0x1fa   : > { %4033 = vmatprep.subr.bf16.mxu1 %v4032_v54  ;;  %v4064_v54 = vpack.c.bf16 %v1929_v47, %v1906_v46  ;;  %v2135_v47 = vld [vmem:[%s6172_s5 + $0xa50] sm:$0xff] }
 0x1fb   : > { %3975 = vmatpush1.bf16.msra.mxu0 %v3974_v40  ;;  %v2455_v40 = vld [vmem:[%s6172_s5 + $0x1450] sm:$0xff] }
 0x1fc   : > { %3977 = vmatprep.subr.bf16.mxu0 %v3976_v45  ;;  %v2525_v45 = vld [vmem:[%s6172_s5 + $0x1680] sm:$0xff]  ;;  %v4050_v48 = vpack.c.bf16 %v2478_v41, %v2455_v40  ;;  %v2112_v40 = vld [vmem:[%s6172_s5 + $0x998] sm:$0xff] }
 0x1fd   : > { %4035 = vmatpush1.bf16.msra.mxu1 %v4034_v63  ;;  %v4052_v51 = vpack.c.bf16 %v2525_v45, %v2502_v44  ;;  %v1951_v63 = vld [vmem:[%s6172_s5 + $0x490] sm:$0xff]  ;;  %v2000_v41 = vld [vmem:[%s6172_s5 + $0x618] sm:$0xff]  ;;  %v4082_v46 = vpack.c.bf16 %v2112_v40, %v2089_v35  ;;  %v2206_v35 = vld [vmem:[%s6172_s5 + $0xc88] sm:$0xff] }
 0x1fe   : > { %4037 = vmatprep.subr.bf16.mxu1 %v4036_v2  ;;  %v1838_v2 = vld [vmem:[%s6172_s5 + $0x108] sm:$0xff]  ;;  %v4070_v10 = vpack.c.bf16 %v1974_v4, %v1951_v63  ;;  %v2159_v44 = vld [vmem:[%s6172_s5 + $0xb10] sm:$0xff]  ;;  %v2068_v63 = vld [vmem:[%s6172_s5 + $0x838] sm:$0xff] }
 0x1ff   : > { %3979 = vmatpush1.bf16.msra.mxu0 %v3978_v52  ;;  %v2501_v52 = vld [vmem:[%s6172_s5 + $0x15c0] sm:$0xff]  ;;  %v4122_v9 = vpack.c.bf16 %v1838_v2, %v1815_v1  ;;  %v2204_v1 = vld [vmem:[%s6172_s5 + $0xc78] sm:$0xff]  ;;  %v2366_v40 = vld [vmem:[%s6172_s5 + $0x1188] sm:$0xff] }
 0x200   : > { %3981 = vmatprep.subr.bf16.mxu0 %v3980_v57  ;;  %v1839_v57 = vld [vmem:[%s6172_s5 + $0x110] sm:$0xff]  ;;  %v4054_v61 = vpack.c.bf16 %v2524_v53, %v2501_v52  ;;  %v2158_v52 = vld [vmem:[%s6172_s5 + $0xb08] sm:$0xff]  ;;  %v2092_v2 = vld [vmem:[%s6172_s5 + $0x8f8] sm:$0xff]  ;;  %v4090_v7 = vpack.c.bf16 %v2204_v1, %v2181_v60 }
 0x201   : > { %4039 = vmatpush1.bf16.msra.mxu1 %v4038_v11  ;;  %v1997_v11 = vld [vmem:[%s6172_s5 + $0x600] sm:$0xff]  ;;  %v2046_v53 = vld [vmem:[%s6172_s5 + $0x788] sm:$0xff]  ;;  %v4086_v59 = vpack.c.bf16 %v2158_v52, %v2135_v47  ;;  %v2228_v4 = vld [vmem:[%s6172_s5 + $0xd38] sm:$0xff] }
 0x202   : > { %4041 = vmatprep.subr.bf16.mxu1 %v4040_v14  ;;  %v1884_v14 = vld [vmem:[%s6172_s5 + $0x278] sm:$0xff]  ;;  %v4074_v22 = vpack.c.bf16 %v2020_v16, %v1997_v11  ;;  %v2114_v11 = vld [vmem:[%s6172_s5 + $0x9a8] sm:$0xff] }
 0x203   : > { %3983 = vmatpush1.bf16.msra.mxu0 %v3982_v0  ;;  %v4120_v0 = vpack.c.bf16 %v1839_v57, %v1816_v56  ;;  %v4126_v21 = vpack.c.bf16 %v1884_v14, %v1861_v13  ;;  %v2205_v56 = vld [vmem:[%s6172_s5 + $0xc80] sm:$0xff]  ;;  %v2250_v13 = vld [vmem:[%s6172_s5 + $0xde8] sm:$0xff]  ;;  %v2252_v47 = vld [vmem:[%s6172_s5 + $0xdf8] sm:$0xff] }
 0x204   : > { %3985 = vmatprep.subr.bf16.mxu0 %v3984_v5  ;;  %v1862_v5 = vld [vmem:[%s6172_s5 + $0x1c8] sm:$0xff]  ;;  %v4094_v19 = vpack.c.bf16 %v2250_v13, %v2227_v8  ;;  %v2412_v52 = vld [vmem:[%s6172_s5 + $0x12f8] sm:$0xff] }
 0x205   : > { %4043 = vmatpush1.bf16.msra.mxu1 %v4042_v23  ;;  %v2043_v23 = vld [vmem:[%s6172_s5 + $0x770] sm:$0xff]  ;;  %v2138_v14 = vld [vmem:[%s6172_s5 + $0xa68] sm:$0xff]  ;;  %v2344_v8 = vld [vmem:[%s6172_s5 + $0x10d8] sm:$0xff] }
 0x206   : > { %4045 = vmatprep.subr.bf16.mxu1 %v4044_v26  ;;  %v1930_v26 = vld [vmem:[%s6172_s5 + $0x3e8] sm:$0xff]  ;;  %v4078_v34 = vpack.c.bf16 %v2066_v32, %v2043_v23  ;;  %v2160_v23 = vld [vmem:[%s6172_s5 + $0xb18] sm:$0xff] }
 0x207   : > { %3987 = vmatpush1.bf16.msra.mxu0 %v3986_v12  ;;  %v4124_v12 = vpack.c.bf16 %v1885_v6, %v1862_v5  ;;  %v4130_v33 = vpack.c.bf16 %v1930_v26, %v1907_v25  ;;  %v2251_v5 = vld [vmem:[%s6172_s5 + $0xdf0] sm:$0xff]  ;;  %v2274_v16 = vld [vmem:[%s6172_s5 + $0xea8] sm:$0xff]  ;;  %v2296_v25 = vld [vmem:[%s6172_s5 + $0xf58] sm:$0xff] }
 0x208   : > { %3989 = vmatprep.subr.bf16.mxu0 %v3988_v17  ;;  %v1908_v17 = vld [vmem:[%s6172_s5 + $0x338] sm:$0xff]  ;;  %v2298_v60 = vld [vmem:[%s6172_s5 + $0xf68] sm:$0xff] }
 0x209   : > { %4047 = vmatpush1.bf16.msra.mxu1 %v4046_v36  ;;  %v2184_v26 = vld [vmem:[%s6172_s5 + $0xbd8] sm:$0xff]  ;;  %v2458_v1 = vld [vmem:[%s6172_s5 + $0x1468] sm:$0xff] }
 0x20a   : > { %4049 = vmatprep.subr.bf16.mxu1 %v4048_v39  ;;  %v4080_v39 = vpack.c.bf16 %v2113_v30, %v2090_v29  ;;  %v2320_v32 = vld [vmem:[%s6172_s5 + $0x1018] sm:$0xff]  ;;  %v4098_v29 = vpack.c.bf16 %v2296_v25, %v2273_v20  ;;  %v2319_v30 = vld [vmem:[%s6172_s5 + $0x1010] sm:$0xff]  ;;  %v2390_v20 = vld [vmem:[%s6172_s5 + $0x1248] sm:$0xff] }
 0x20b   : > { %3991 = vmatpush1.bf16.msra.mxu0 %v3990_v24  ;;  %v4128_v24 = vpack.c.bf16 %v1931_v18, %v1908_v17  ;;  %v2297_v17 = vld [vmem:[%s6172_s5 + $0xf60] sm:$0xff]  ;;  %v2504_v13 = vld [vmem:[%s6172_s5 + $0x15d8] sm:$0xff]  ;;  %v1818_v25 = vld [vmem:[%s6172_s5 + $0x68] sm:$0xff] }
 0x20c   : > { %4057 = vmatprep.subr.bf16.mxu0 %v4056_v28  ;;  %v1977_v28 = vld [vmem:[%s6172_s5 + $0x560] sm:$0xff] }
 0x20d   : > { %4051 = vmatpush1.bf16.msra.mxu1 %v4050_v48 }
 0x20e   : > { %2748 = vmatmul.mubr.f32.vlgmr.msra.gmra.mrb[2].mxu0 %v6305_v31  ;;  %4053 = vmatprep.subr.bf16.mxu1 %v4052_v51  ;;  %v4084_v51 = vpack.c.bf16 %v2159_v44, %v2136_v43  ;;  %v2365_v44 = vld [vmem:[%s6172_s5 + $0x1180] sm:$0xff] }
 0x20f   : > { %4059 = vmatpush1.bf16.msra.mxu0 %v4058_v37  ;;  %2889 = vmatprep.mubr.f32.mxu0 %v6457_v58  ;;  %v1953_v37 = vld [vmem:[%s6172_s5 + $0x4a0] sm:$0xff] }
 0x210   : > { %4061 = vmatprep.subr.bf16.mxu0 %v4060_v42  ;;  %v2023_v42 = vld [vmem:[%s6172_s5 + $0x6d0] sm:$0xff]  ;;  %v4134_v45 = vpack.c.bf16 %v1976_v38, %v1953_v37  ;;  %v2342_v37 = vld [vmem:[%s6172_s5 + $0x10c8] sm:$0xff] }
 0x211   : > { %4055 = vmatpush1.bf16.msra.mxu1 %v4054_v61  ;;  %v4136_v48 = vpack.c.bf16 %v2023_v42, %v2000_v41  ;;  %v2230_v38 = vld [vmem:[%s6172_s5 + $0xd48] sm:$0xff]  ;;  %v2389_v41 = vld [vmem:[%s6172_s5 + $0x1240] sm:$0xff]  ;;  %v4102_v43 = vpack.c.bf16 %v2342_v37, %v2319_v30  ;;  %v2436_v30 = vld [vmem:[%s6172_s5 + $0x13b8] sm:$0xff] }
 0x212   : > { %4121 = vmatprep.subr.bf16.mxu1 %v4120_v0  ;;  %v4088_v0 = vpack.c.bf16 %v2205_v56, %v2182_v55  ;;  %v2411_v56 = vld [vmem:[%s6172_s5 + $0x12f0] sm:$0xff]  ;;  %v1864_v37 = vld [vmem:[%s6172_s5 + $0x1d8] sm:$0xff] }
 0x213   : > { %4063 = vmatpush1.bf16.msra.mxu0 %v4062_v49  ;;  %v1999_v49 = vld [vmem:[%s6172_s5 + $0x610] sm:$0xff] }
 0x214   : > { %4065 = vmatprep.subr.bf16.mxu0 %v4064_v54  ;;  %2819 = vmatmul.mubr.f32.vlgmr.msra.gmra.mrb[2].mxu1 %v6305_v31  ;;  %v1954_v31 = vld [vmem:[%s6172_s5 + $0x4a8] sm:$0xff]  ;;  %v2069_v54 = vld [vmem:[%s6172_s5 + $0x840] sm:$0xff]  ;;  %v4138_v57 = vpack.c.bf16 %v2022_v50, %v1999_v49  ;;  %v2388_v49 = vld [vmem:[%s6172_s5 + $0x1238] sm:$0xff] }
 0x215   : > { %4123 = vmatpush1.bf16.msra.mxu1 %v4122_v9  ;;  %2960 = vmatprep.mubr.f32.mxu1 %v6457_v58  ;;  %v4132_v36 = vpack.c.bf16 %v1977_v28, %v1954_v31  ;;  %v4140_v61 = vpack.c.bf16 %v2069_v54, %v2046_v53  ;;  %v2343_v31 = vld [vmem:[%s6172_s5 + $0x10d0] sm:$0xff]  ;;  %v2276_v50 = vld [vmem:[%s6172_s5 + $0xeb8] sm:$0xff]  ;;  %v4106_v55 = vpack.c.bf16 %v2388_v49, %v2365_v44  ;;  %v2482_v44 = vld [vmem:[%s6172_s5 + $0x1528] sm:$0xff] }
 0x216   : > { %4125 = vmatprep.subr.bf16.mxu1 %v4124_v12  ;;  %v4092_v12 = vpack.c.bf16 %v2251_v5, %v2228_v4  ;;  %v2435_v53 = vld [vmem:[%s6172_s5 + $0x13b0] sm:$0xff]  ;;  %v2457_v5 = vld [vmem:[%s6172_s5 + $0x1460] sm:$0xff]  ;;  %v1910_v49 = vld [vmem:[%s6172_s5 + $0x348] sm:$0xff] }
 0x217   : > { %4067 = vmatpush1.bf16.msra.mxu0 %v4066_v62  ;;  %v2045_v62 = vld [vmem:[%s6172_s5 + $0x780] sm:$0xff] }
 0x218   : > { %4069 = vmatprep.subr.bf16.mxu0 %v4068_v3  ;;  %v2115_v3 = vld [vmem:[%s6172_s5 + $0x9b0] sm:$0xff]  ;;  %v4142_v6 = vpack.c.bf16 %v2068_v63, %v2045_v62  ;;  %v2434_v62 = vld [vmem:[%s6172_s5 + $0x13a8] sm:$0xff] }
 0x219   : > { %4127 = vmatpush1.bf16.msra.mxu1 %v4126_v21  ;;  %v4144_v9 = vpack.c.bf16 %v2115_v3, %v2092_v2  ;;  %v2322_v63 = vld [vmem:[%s6172_s5 + $0x1028] sm:$0xff]  ;;  %v2481_v2 = vld [vmem:[%s6172_s5 + $0x1520] sm:$0xff]  ;;  %v4110_v4 = vpack.c.bf16 %v2434_v62, %v2411_v56  ;;  %v1843_v62 = vld [vmem:[%s6172_s5 + $0x130] sm:$0xff] }
 0x21a   : > { %4129 = vmatprep.subr.bf16.mxu1 %v4128_v24  ;;  %v4096_v24 = vpack.c.bf16 %v2297_v17, %v2274_v16  ;;  %v2503_v17 = vld [vmem:[%s6172_s5 + $0x15d0] sm:$0xff]  ;;  %v2505_v56 = vld [vmem:[%s6172_s5 + $0x15e0] sm:$0xff] }
 0x21b   : > { %4071 = vmatpush1.bf16.msra.mxu0 %v4070_v10  ;;  %v2091_v10 = vld [vmem:[%s6172_s5 + $0x8f0] sm:$0xff] }
 0x21c   : > { %4073 = vmatprep.subr.bf16.mxu0 %v4072_v15  ;;  %v2161_v15 = vld [vmem:[%s6172_s5 + $0xb20] sm:$0xff]  ;;  %v4146_v18 = vpack.c.bf16 %v2114_v11, %v2091_v10  ;;  %v2480_v10 = vld [vmem:[%s6172_s5 + $0x1518] sm:$0xff] }
 0x21d   : > { %4131 = vmatpush1.bf16.msra.mxu1 %v4130_v33  ;;  %v4148_v21 = vpack.c.bf16 %v2161_v15, %v2138_v14  ;;  %v2368_v11 = vld [vmem:[%s6172_s5 + $0x1198] sm:$0xff]  ;;  %v2527_v14 = vld [vmem:[%s6172_s5 + $0x1690] sm:$0xff]  ;;  %v4114_v16 = vpack.c.bf16 %v2480_v10, %v2457_v5  ;;  %v1889_v10 = vld [vmem:[%s6172_s5 + $0x2a0] sm:$0xff] }
 0x21e   : > { %4133 = vmatprep.subr.bf16.mxu1 %v4132_v36  ;;  %v4100_v36 = vpack.c.bf16 %v2343_v31, %v2320_v32  ;;  %v1817_v31 = vld [vmem:[%s6172_s5 + $0x60] sm:$0xff]  ;;  %v1819_v5 = vld [vmem:[%s6172_s5 + $0x70] sm:$0xff] }
 0x21f   : > { %4075 = vmatpush1.bf16.msra.mxu0 %v4074_v22  ;;  %v2137_v22 = vld [vmem:[%s6172_s5 + $0xa60] sm:$0xff] }
 0x220   : > { %4077 = vmatprep.subr.bf16.mxu0 %v4076_v27  ;;  %v2207_v27 = vld [vmem:[%s6172_s5 + $0xc90] sm:$0xff]  ;;  %v4150_v28 = vpack.c.bf16 %v2160_v23, %v2137_v22  ;;  %v2526_v22 = vld [vmem:[%s6172_s5 + $0x1688] sm:$0xff] }
 0x221   : > { %4135 = vmatpush1.bf16.msra.mxu1 %v4134_v45  ;;  %v4152_v33 = vpack.c.bf16 %v2207_v27, %v2184_v26  ;;  %v2414_v23 = vld [vmem:[%s6172_s5 + $0x1308] sm:$0xff]  ;;  %v1841_v26 = vld [vmem:[%s6172_s5 + $0x120] sm:$0xff]  ;;  %v4118_v32 = vpack.c.bf16 %v2526_v22, %v2503_v17  ;;  %v1935_v22 = vld [vmem:[%s6172_s5 + $0x410] sm:$0xff] }
 0x222   : > { %4137 = vmatprep.subr.bf16.mxu1 %v4136_v48  ;;  %v4104_v48 = vpack.c.bf16 %v2389_v41, %v2366_v40  ;;  %v1863_v41 = vld [vmem:[%s6172_s5 + $0x1d0] sm:$0xff]  ;;  %v1865_v17 = vld [vmem:[%s6172_s5 + $0x1e0] sm:$0xff] }
 0x223   : > { %4079 = vmatpush1.bf16.msra.mxu0 %v4078_v34  ;;  %v2183_v34 = vld [vmem:[%s6172_s5 + $0xbd0] sm:$0xff] }
 0x224   : > { %4081 = vmatprep.subr.bf16.mxu0 %v4080_v39  ;;  %v2253_v39 = vld [vmem:[%s6172_s5 + $0xe00] sm:$0xff]  ;;  %v4154_v42 = vpack.c.bf16 %v2206_v35, %v2183_v34  ;;  %v1840_v34 = vld [vmem:[%s6172_s5 + $0x118] sm:$0xff] }
 0x225   : > { %4139 = vmatpush1.bf16.msra.mxu1 %v4138_v57  ;;  %v4156_v45 = vpack.c.bf16 %v2253_v39, %v2230_v38  ;;  %v2460_v35 = vld [vmem:[%s6172_s5 + $0x1478] sm:$0xff]  ;;  %v1887_v38 = vld [vmem:[%s6172_s5 + $0x290] sm:$0xff]  ;;  %v4186_v40 = vpack.c.bf16 %v1840_v34, %v1817_v31  ;;  %v1981_v34 = vld [vmem:[%s6172_s5 + $0x580] sm:$0xff] }
 0x226   : > { %4141 = vmatprep.subr.bf16.mxu1 %v4140_v61  ;;  %v4108_v61 = vpack.c.bf16 %v2435_v53, %v2412_v52  ;;  %v1911_v31 = vld [vmem:[%s6172_s5 + $0x350] sm:$0xff] }
 0x227   : > { %4083 = vmatpush1.bf16.msra.mxu0 %v4082_v46  ;;  %v2229_v46 = vld [vmem:[%s6172_s5 + $0xd40] sm:$0xff] }
 0x228   : > { %4085 = vmatprep.subr.bf16.mxu0 %v4084_v51  ;;  %v2299_v51 = vld [vmem:[%s6172_s5 + $0xf70] sm:$0xff]  ;;  %v4158_v54 = vpack.c.bf16 %v2252_v47, %v2229_v46  ;;  %v1886_v46 = vld [vmem:[%s6172_s5 + $0x288] sm:$0xff] }
 0x229   : > { %4143 = vmatpush1.bf16.msra.mxu1 %v4142_v6  ;;  %v4160_v57 = vpack.c.bf16 %v2299_v51, %v2276_v50  ;;  %v2506_v47 = vld [vmem:[%s6172_s5 + $0x15e8] sm:$0xff]  ;;  %v1933_v50 = vld [vmem:[%s6172_s5 + $0x400] sm:$0xff]  ;;  %v4190_v53 = vpack.c.bf16 %v1886_v46, %v1863_v41  ;;  %v1980_v41 = vld [vmem:[%s6172_s5 + $0x578] sm:$0xff] }
 0x22a   : > { %4145 = vmatprep.subr.bf16.mxu1 %v4144_v9  ;;  %v4112_v9 = vpack.c.bf16 %v2481_v2, %v2458_v1  ;;  %v6587_v51 = vld [vmem:[%s7082_s0] sm:$0xff]  ;;  %v2140_v46 = vld [vmem:[%s6172_s5 + $0xa78] sm:$0xff] }
 0x22b   : > { %4087 = vmatpush1.bf16.msra.mxu0 %v4086_v59  ;;  %v2275_v59 = vld [vmem:[%s6172_s5 + $0xeb0] sm:$0xff] }
 0x22c   : > { %4089 = vmatprep.subr.bf16.mxu0 %v4088_v0  ;;  %v2345_v0 = vld [vmem:[%s6172_s5 + $0x10e0] sm:$0xff]  ;;  %v4162_v3 = vpack.c.bf16 %v2298_v60, %v2275_v59  ;;  %v4192_v59 = vpack.c.bf16 %v1933_v50, %v1910_v49  ;;  %v1932_v60 = vld [vmem:[%s6172_s5 + $0x3f8] sm:$0xff]  ;;  %v2139_v50 = vld [vmem:[%s6172_s5 + $0xa70] sm:$0xff] }
 0x22d   : > { %4147 = vmatpush1.bf16.msra.mxu1 %v4146_v18  ;;  %v4164_v6 = vpack.c.bf16 %v2345_v0, %v2322_v63  ;;  %v1956_v63 = vld [vmem:[%s6172_s5 + $0x4b8] sm:$0xff]  ;;  %v1979_v0 = vld [vmem:[%s6172_s5 + $0x570] sm:$0xff] }
 0x22e   : > { %4149 = vmatprep.subr.bf16.mxu1 %v4148_v21  ;;  %v4116_v21 = vpack.c.bf16 %v2527_v14, %v2504_v13 }
 0x22f   : > { %4091 = vmatpush1.bf16.msra.mxu0 %v4090_v7  ;;  %v2321_v7 = vld [vmem:[%s6172_s5 + $0x1020] sm:$0xff] }
 0x230   : > { %4093 = vmatprep.subr.bf16.mxu0 %v4092_v12  ;;  %v2391_v12 = vld [vmem:[%s6172_s5 + $0x1250] sm:$0xff]  ;;  %v4166_v15 = vpack.c.bf16 %v2344_v8, %v2321_v7  ;;  %v4196_v7 = vpack.c.bf16 %v1979_v0, %v1956_v63  ;;  %v1978_v8 = vld [vmem:[%s6172_s5 + $0x568] sm:$0xff]  ;;  %v2185_v0 = vld [vmem:[%s6172_s5 + $0xbe0] sm:$0xff] }
 0x231   : > { %4151 = vmatpush1.bf16.msra.mxu1 %v4150_v28  ;;  %v4168_v18 = vpack.c.bf16 %v2391_v12, %v2368_v11  ;;  %v2002_v11 = vld [vmem:[%s6172_s5 + $0x628] sm:$0xff]  ;;  %v2025_v12 = vld [vmem:[%s6172_s5 + $0x6e0] sm:$0xff] }
 0x232   : > { %4153 = vmatprep.subr.bf16.mxu1 %v4152_v33  ;;  %v4184_v33 = vpack.c.bf16 %v1841_v26, %v1818_v25 }
 0x233   : > { %4095 = vmatpush1.bf16.msra.mxu0 %v4094_v19  ;;  %v2367_v19 = vld [vmem:[%s6172_s5 + $0x1190] sm:$0xff] }
 0x234   : > { %4097 = vmatprep.subr.bf16.mxu0 %v4096_v24  ;;  %v2437_v24 = vld [vmem:[%s6172_s5 + $0x13c0] sm:$0xff]  ;;  %v4170_v27 = vpack.c.bf16 %v2390_v20, %v2367_v19  ;;  %v4200_v19 = vpack.c.bf16 %v2025_v12, %v2002_v11  ;;  %v2024_v20 = vld [vmem:[%s6172_s5 + $0x6d8] sm:$0xff]  ;;  %v2231_v12 = vld [vmem:[%s6172_s5 + $0xd50] sm:$0xff] }
 0x235   : > { %4155 = vmatpush1.bf16.msra.mxu1 %v4154_v42  ;;  %v4172_v28 = vpack.c.bf16 %v2437_v24, %v2414_v23  ;;  %v2048_v23 = vld [vmem:[%s6172_s5 + $0x798] sm:$0xff]  ;;  %v2071_v24 = vld [vmem:[%s6172_s5 + $0x850] sm:$0xff] }
 0x236   : > { %4157 = vmatprep.subr.bf16.mxu1 %v4156_v45  ;;  %v4188_v45 = vpack.c.bf16 %v1887_v38, %v1864_v37  ;;  %v2093_v38 = vld [vmem:[%s6172_s5 + $0x900] sm:$0xff] }
 0x237   : > { %4099 = vmatpush1.bf16.msra.mxu0 %v4098_v29  ;;  %v2413_v29 = vld [vmem:[%s6172_s5 + $0x1300] sm:$0xff] }
 0x238   : > { %4101 = vmatprep.subr.bf16.mxu0 %v4100_v36  ;;  %v2483_v36 = vld [vmem:[%s6172_s5 + $0x1530] sm:$0xff]  ;;  %v4174_v39 = vpack.c.bf16 %v2436_v30, %v2413_v29  ;;  %v4204_v29 = vpack.c.bf16 %v2071_v24, %v2048_v23  ;;  %v2070_v30 = vld [vmem:[%s6172_s5 + $0x848] sm:$0xff]  ;;  %v2277_v24 = vld [vmem:[%s6172_s5 + $0xec0] sm:$0xff] }
 0x239   : > { %4159 = vmatpush1.bf16.msra.mxu1 %v4158_v54  ;;  %v4176_v42 = vpack.c.bf16 %v2483_v36, %v2460_v35  ;;  %v1909_v54 = vld [vmem:[%s6172_s5 + $0x340] sm:$0xff]  ;;  %v2094_v35 = vld [vmem:[%s6172_s5 + $0x908] sm:$0xff] }
 0x23a   : > { %4161 = vmatprep.subr.bf16.mxu1 %v4160_v57  ;;  %v2528_v57 = vld [vmem:[%s6172_s5 + $0x1698] sm:$0xff]  ;;  %v4194_v2 = vpack.c.bf16 %v1932_v60, %v1909_v54  ;;  %v2026_v54 = vld [vmem:[%s6172_s5 + $0x6e8] sm:$0xff] }
 0x23b   : > { %4103 = vmatpush1.bf16.msra.mxu0 %v4102_v43  ;;  %v2459_v43 = vld [vmem:[%s6172_s5 + $0x1470] sm:$0xff]  ;;  %v4182_v1 = vpack.c.bf16 %v2528_v57, %v2505_v56  ;;  %v2162_v56 = vld [vmem:[%s6172_s5 + $0xb28] sm:$0xff] }
 0x23c   : > { %4105 = vmatprep.subr.bf16.mxu0 %v4104_v48  ;;  %v2529_v48 = vld [vmem:[%s6172_s5 + $0x16a0] sm:$0xff]  ;;  %v4178_v52 = vpack.c.bf16 %v2482_v44, %v2459_v43  ;;  %v2116_v43 = vld [vmem:[%s6172_s5 + $0x9b8] sm:$0xff]  ;;  %v2050_v57 = vld [vmem:[%s6172_s5 + $0x7a8] sm:$0xff]  ;;  %v4214_v63 = vpack.c.bf16 %v2162_v56, %v2139_v50 }
 0x23d   : > { %4163 = vmatpush1.bf16.msra.mxu1 %v4162_v3  ;;  %v1955_v3 = vld [vmem:[%s6172_s5 + $0x4b0] sm:$0xff]  ;;  %v2004_v44 = vld [vmem:[%s6172_s5 + $0x638] sm:$0xff]  ;;  %v4210_v49 = vpack.c.bf16 %v2116_v43, %v2093_v38  ;;  %v2186_v60 = vld [vmem:[%s6172_s5 + $0xbe8] sm:$0xff] }
 0x23e   : > { %4165 = vmatprep.subr.bf16.mxu1 %v4164_v6  ;;  %v1842_v6 = vld [vmem:[%s6172_s5 + $0x128] sm:$0xff]  ;;  %v4198_v14 = vpack.c.bf16 %v1978_v8, %v1955_v3  ;;  %v2072_v3 = vld [vmem:[%s6172_s5 + $0x858] sm:$0xff] }
 0x23f   : > { %4107 = vmatpush1.bf16.msra.mxu0 %v4106_v55  ;;  %v4180_v55 = vpack.c.bf16 %v2529_v48, %v2506_v47  ;;  %v4250_v13 = vpack.c.bf16 %v1842_v6, %v1819_v5  ;;  %v2163_v47 = vld [vmem:[%s6172_s5 + $0xb30] sm:$0xff]  ;;  %v2208_v5 = vld [vmem:[%s6172_s5 + $0xc98] sm:$0xff]  ;;  %v2210_v38 = vld [vmem:[%s6172_s5 + $0xca8] sm:$0xff] }
 0x240   : > { %4109 = vmatprep.subr.bf16.mxu0 %v4108_v61  ;;  %v1820_v61 = vld [vmem:[%s6172_s5 + $0x78] sm:$0xff]  ;;  %v4218_v11 = vpack.c.bf16 %v2208_v5, %v2185_v0  ;;  %v2370_v43 = vld [vmem:[%s6172_s5 + $0x11a8] sm:$0xff] }
 0x241   : > { %4167 = vmatpush1.bf16.msra.mxu1 %v4166_v15  ;;  %v2001_v15 = vld [vmem:[%s6172_s5 + $0x620] sm:$0xff]  ;;  %v2096_v6 = vld [vmem:[%s6172_s5 + $0x918] sm:$0xff]  ;;  %v2302_v0 = vld [vmem:[%s6172_s5 + $0xf88] sm:$0xff] }
 0x242   : > { %4169 = vmatprep.subr.bf16.mxu1 %v4168_v18  ;;  %v1888_v18 = vld [vmem:[%s6172_s5 + $0x298] sm:$0xff]  ;;  %v4202_v26 = vpack.c.bf16 %v2024_v20, %v2001_v15  ;;  %v2118_v15 = vld [vmem:[%s6172_s5 + $0x9c8] sm:$0xff] }
 0x243   : > { %4111 = vmatpush1.bf16.msra.mxu0 %v4110_v4  ;;  %v4248_v4 = vpack.c.bf16 %v1843_v62, %v1820_v61  ;;  %v4254_v25 = vpack.c.bf16 %v1888_v18, %v1865_v17  ;;  %v2209_v61 = vld [vmem:[%s6172_s5 + $0xca0] sm:$0xff]  ;;  %v2232_v8 = vld [vmem:[%s6172_s5 + $0xd58] sm:$0xff]  ;;  %v2254_v17 = vld [vmem:[%s6172_s5 + $0xe08] sm:$0xff] }
 0x244   : > { %4113 = vmatprep.subr.bf16.mxu0 %v4112_v9  ;;  %v1866_v9 = vld [vmem:[%s6172_s5 + $0x1e8] sm:$0xff]  ;;  %v4222_v23 = vpack.c.bf16 %v2254_v17, %v2231_v12  ;;  %v2256_v50 = vld [vmem:[%s6172_s5 + $0xe18] sm:$0xff] }
 0x245   : > { %4171 = vmatpush1.bf16.msra.mxu1 %v4170_v27  ;;  %v2047_v27 = vld [vmem:[%s6172_s5 + $0x790] sm:$0xff]  ;;  %v2142_v18 = vld [vmem:[%s6172_s5 + $0xa88] sm:$0xff]  ;;  %v2416_v56 = vld [vmem:[%s6172_s5 + $0x1318] sm:$0xff] }
 0x246   : > { %4173 = vmatprep.subr.bf16.mxu1 %v4172_v28  ;;  %v1934_v28 = vld [vmem:[%s6172_s5 + $0x408] sm:$0xff]  ;;  %v4206_v37 = vpack.c.bf16 %v2070_v30, %v2047_v27  ;;  %v2164_v27 = vld [vmem:[%s6172_s5 + $0xb38] sm:$0xff] }
 0x247   : > { %4115 = vmatpush1.bf16.msra.mxu0 %v4114_v16  ;;  %v4252_v16 = vpack.c.bf16 %v1889_v10, %v1866_v9  ;;  %v4258_v36 = vpack.c.bf16 %v1934_v28, %v1911_v31  ;;  %v2255_v9 = vld [vmem:[%s6172_s5 + $0xe10] sm:$0xff]  ;;  %v2278_v20 = vld [vmem:[%s6172_s5 + $0xec8] sm:$0xff]  ;;  %v2300_v31 = vld [vmem:[%s6172_s5 + $0xf78] sm:$0xff] }
 0x248   : > { %4117 = vmatprep.subr.bf16.mxu0 %v4116_v21  ;;  %v1912_v21 = vld [vmem:[%s6172_s5 + $0x358] sm:$0xff]  ;;  %v2462_v5 = vld [vmem:[%s6172_s5 + $0x1488] sm:$0xff] }
 0x249   : > { %4175 = vmatpush1.bf16.msra.mxu1 %v4174_v39  ;;  %v2188_v28 = vld [vmem:[%s6172_s5 + $0xbf8] sm:$0xff] }
 0x24a   : > { %4177 = vmatprep.subr.bf16.mxu1 %v4176_v42  ;;  %v2324_v30 = vld [vmem:[%s6172_s5 + $0x1038] sm:$0xff] }
 0x24b   : > { %4119 = vmatpush1.bf16.msra.mxu0 %v4118_v32  ;;  %v4256_v32 = vpack.c.bf16 %v1935_v22, %v1912_v21  ;;  %v2301_v21 = vld [vmem:[%s6172_s5 + $0xf80] sm:$0xff]  ;;  %v2348_v12 = vld [vmem:[%s6172_s5 + $0x10f8] sm:$0xff] }
 0x24c   : > { %4185 = vmatprep.subr.bf16.mxu0 %v4184_v33  ;;  %v1958_v33 = vld [vmem:[%s6172_s5 + $0x4c8] sm:$0xff]  ;;  %v2508_v17 = vld [vmem:[%s6172_s5 + $0x15f8] sm:$0xff] }
 0x24d   : > { %4179 = vmatpush1.bf16.msra.mxu1 %v4178_v52  ;;  %v4260_v39 = vpack.c.bf16 %v1981_v34, %v1958_v33  ;;  %v2347_v33 = vld [vmem:[%s6172_s5 + $0x10f0] sm:$0xff] }
 0x24e   : > { %2890 = vmatmul.mubr.f32.vlgmr.msra.gmra.mrb[4].mxu0 %v6587_v51  ;;  %4181 = vmatprep.subr.bf16.mxu1 %v4180_v55  ;;  %v4212_v55 = vpack.c.bf16 %v2163_v47, %v2140_v46  ;;  %v2369_v47 = vld [vmem:[%s6172_s5 + $0x11a0] sm:$0xff] }
 0x24f   : > { %4187 = vmatpush1.bf16.msra.mxu0 %v4186_v40  ;;  %3031 = vmatprep.mubr.f32.mxu0 %v6457_v58  ;;  %v1957_v40 = vld [vmem:[%s6172_s5 + $0x4c0] sm:$0xff] }
 0x250   : > { %4189 = vmatprep.subr.bf16.mxu0 %v4188_v45  ;;  %v2027_v45 = vld [vmem:[%s6172_s5 + $0x6f0] sm:$0xff]  ;;  %v4262_v48 = vpack.c.bf16 %v1980_v41, %v1957_v40  ;;  %v2346_v40 = vld [vmem:[%s6172_s5 + $0x10e8] sm:$0xff] }
 0x251   : > { %4183 = vmatpush1.bf16.msra.mxu1 %v4182_v1  ;;  %v4264_v52 = vpack.c.bf16 %v2027_v45, %v2004_v44  ;;  %v2234_v41 = vld [vmem:[%s6172_s5 + $0xd68] sm:$0xff]  ;;  %v2393_v44 = vld [vmem:[%s6172_s5 + $0x1260] sm:$0xff] }
 0x252   : > { %4249 = vmatprep.subr.bf16.mxu1 %v4248_v4  ;;  %v4216_v4 = vpack.c.bf16 %v2209_v61, %v2186_v60  ;;  %v2415_v61 = vld [vmem:[%s6172_s5 + $0x1310] sm:$0xff] }
 0x253   : > { %4191 = vmatpush1.bf16.msra.mxu0 %v4190_v53  ;;  %v2003_v53 = vld [vmem:[%s6172_s5 + $0x630] sm:$0xff] }
 0x254   : > { %4193 = vmatprep.subr.bf16.mxu0 %v4192_v59  ;;  %2961 = vmatmul.mubr.f32.vlgmr.msra.gmra.mrb[4].mxu1 %v6587_v51  ;;  %v2073_v59 = vld [vmem:[%s6172_s5 + $0x860] sm:$0xff]  ;;  %v4266_v62 = vpack.c.bf16 %v2026_v54, %v2003_v53  ;;  %v2392_v53 = vld [vmem:[%s6172_s5 + $0x1258] sm:$0xff] }
 0x255   : > { %4251 = vmatpush1.bf16.msra.mxu1 %v4250_v13  ;;  %3102 = vmatprep.mubr.f32.mxu1 %v6457_v58  ;;  %v2117_v58 = vld [vmem:[%s6172_s5 + $0x9c0] sm:$0xff]  ;;  %v4268_v1 = vpack.c.bf16 %v2073_v59, %v2050_v57  ;;  %v2280_v54 = vld [vmem:[%s6172_s5 + $0xed8] sm:$0xff]  ;;  %v2439_v57 = vld [vmem:[%s6172_s5 + $0x13d0] sm:$0xff]  ;;  %v4234_v60 = vpack.c.bf16 %v2392_v53, %v2369_v47 }
 0x256   : > { %4253 = vmatprep.subr.bf16.mxu1 %v4252_v16  ;;  %v4208_v42 = vpack.c.bf16 %v2117_v58, %v2094_v35  ;;  %v4220_v16 = vpack.c.bf16 %v2255_v9, %v2232_v8  ;;  %v4226_v35 = vpack.c.bf16 %v2300_v31, %v2277_v24  ;;  %v2323_v58 = vld [vmem:[%s6172_s5 + $0x1030] sm:$0xff]  ;;  %v2461_v9 = vld [vmem:[%s6172_s5 + $0x1480] sm:$0xff]  ;;  %v2394_v24 = vld [vmem:[%s6172_s5 + $0x1268] sm:$0xff] }
 0x257   : > { %4195 = vmatpush1.bf16.msra.mxu0 %v4194_v2  ;;  %v2049_v2 = vld [vmem:[%s6172_s5 + $0x7a0] sm:$0xff]  ;;  %v4230_v46 = vpack.c.bf16 %v2346_v40, %v2323_v58  ;;  %v1822_v31 = vld [vmem:[%s6172_s5 + $0x88] sm:$0xff]  ;;  %v2440_v58 = vld [vmem:[%s6172_s5 + $0x13d8] sm:$0xff] }
 0x258   : > { %4197 = vmatprep.subr.bf16.mxu0 %v4196_v7  ;;  %v2119_v7 = vld [vmem:[%s6172_s5 + $0x9d0] sm:$0xff]  ;;  %v4270_v10 = vpack.c.bf16 %v2072_v3, %v2049_v2  ;;  %v2438_v2 = vld [vmem:[%s6172_s5 + $0x13c8] sm:$0xff]  ;;  %v1868_v40 = vld [vmem:[%s6172_s5 + $0x1f8] sm:$0xff] }
 0x259   : > { %4255 = vmatpush1.bf16.msra.mxu1 %v4254_v25  ;;  %v4272_v13 = vpack.c.bf16 %v2119_v7, %v2096_v6  ;;  %v2326_v3 = vld [vmem:[%s6172_s5 + $0x1048] sm:$0xff]  ;;  %v2485_v6 = vld [vmem:[%s6172_s5 + $0x1540] sm:$0xff]  ;;  %v4238_v8 = vpack.c.bf16 %v2438_v2, %v2415_v61  ;;  %v2532_v61 = vld [vmem:[%s6172_s5 + $0x16b8] sm:$0xff] }
 0x25a   : > { %4257 = vmatprep.subr.bf16.mxu1 %v4256_v32  ;;  %v4224_v32 = vpack.c.bf16 %v2301_v21, %v2278_v20  ;;  %v2507_v21 = vld [vmem:[%s6172_s5 + $0x15f0] sm:$0xff]  ;;  %v2486_v47 = vld [vmem:[%s6172_s5 + $0x1548] sm:$0xff] }
 0x25b   : > { %4199 = vmatpush1.bf16.msra.mxu0 %v4198_v14  ;;  %v2095_v14 = vld [vmem:[%s6172_s5 + $0x910] sm:$0xff]  ;;  %v1914_v53 = vld [vmem:[%s6172_s5 + $0x368] sm:$0xff] }
 0x25c   : > { %4201 = vmatprep.subr.bf16.mxu0 %v4200_v19  ;;  %v2165_v19 = vld [vmem:[%s6172_s5 + $0xb40] sm:$0xff]  ;;  %v4274_v22 = vpack.c.bf16 %v2118_v15, %v2095_v14  ;;  %v2484_v14 = vld [vmem:[%s6172_s5 + $0x1538] sm:$0xff]  ;;  %v6732_v2 = vld [vmem:[%s7082_s0 + $0x8] sm:$0xff] }
 0x25d   : > { %4259 = vmatpush1.bf16.msra.mxu1 %v4258_v36  ;;  %v4276_v25 = vpack.c.bf16 %v2165_v19, %v2142_v18  ;;  %v2372_v15 = vld [vmem:[%s6172_s5 + $0x11b8] sm:$0xff]  ;;  %v2531_v18 = vld [vmem:[%s6172_s5 + $0x16b0] sm:$0xff]  ;;  %v4242_v20 = vpack.c.bf16 %v2484_v14, %v2461_v9  ;;  %v1870_v14 = vld [vmem:[%s6172_s5 + $0x208] sm:$0xff] }
 0x25e   : > { %4261 = vmatprep.subr.bf16.mxu1 %v4260_v39  ;;  %v4228_v39 = vpack.c.bf16 %v2347_v33, %v2324_v30  ;;  %v1821_v33 = vld [vmem:[%s6172_s5 + $0x80] sm:$0xff]  ;;  %v1823_v9 = vld [vmem:[%s6172_s5 + $0x90] sm:$0xff] }
 0x25f   : > { %4203 = vmatpush1.bf16.msra.mxu0 %v4202_v26  ;;  %v2141_v26 = vld [vmem:[%s6172_s5 + $0xa80] sm:$0xff] }
 0x260   : > { %4205 = vmatprep.subr.bf16.mxu0 %v4204_v29  ;;  %v2211_v29 = vld [vmem:[%s6172_s5 + $0xcb0] sm:$0xff]  ;;  %v4278_v34 = vpack.c.bf16 %v2164_v27, %v2141_v26  ;;  %v2530_v26 = vld [vmem:[%s6172_s5 + $0x16a8] sm:$0xff] }
 0x261   : > { %4263 = vmatpush1.bf16.msra.mxu1 %v4262_v48  ;;  %v4280_v36 = vpack.c.bf16 %v2211_v29, %v2188_v28  ;;  %v2418_v27 = vld [vmem:[%s6172_s5 + $0x1328] sm:$0xff]  ;;  %v1845_v28 = vld [vmem:[%s6172_s5 + $0x140] sm:$0xff]  ;;  %v4246_v30 = vpack.c.bf16 %v2530_v26, %v2507_v21 }
 0x262   : > { %4265 = vmatprep.subr.bf16.mxu1 %v4264_v52  ;;  %v4232_v52 = vpack.c.bf16 %v2393_v44, %v2370_v43  ;;  %v1867_v44 = vld [vmem:[%s6172_s5 + $0x1f0] sm:$0xff] }
 0x263   : > { %4207 = vmatpush1.bf16.msra.mxu0 %v4206_v37  ;;  %v2187_v37 = vld [vmem:[%s6172_s5 + $0xbf0] sm:$0xff] }
 0x264   : > { %4209 = vmatprep.subr.bf16.mxu0 %v4208_v42  ;;  %v2257_v42 = vld [vmem:[%s6172_s5 + $0xe20] sm:$0xff]  ;;  %v4282_v45 = vpack.c.bf16 %v2210_v38, %v2187_v37  ;;  %v1844_v37 = vld [vmem:[%s6172_s5 + $0x138] sm:$0xff] }
 0x265   : > { %4267 = vmatpush1.bf16.msra.mxu1 %v4266_v62  ;;  %v4284_v48 = vpack.c.bf16 %v2257_v42, %v2234_v41  ;;  %v2464_v38 = vld [vmem:[%s6172_s5 + $0x1498] sm:$0xff]  ;;  %v1891_v41 = vld [vmem:[%s6172_s5 + $0x2b0] sm:$0xff]  ;;  %v4314_v43 = vpack.c.bf16 %v1844_v37, %v1821_v33  ;;  %v2074_v37 = vld [vmem:[%s6172_s5 + $0x868] sm:$0xff] }
 0x266   : > { %4269 = vmatprep.subr.bf16.mxu1 %v4268_v1  ;;  %v4236_v1 = vpack.c.bf16 %v2439_v57, %v2416_v56  ;;  %v1913_v57 = vld [vmem:[%s6172_s5 + $0x360] sm:$0xff]  ;;  %v2051_v33 = vld [vmem:[%s6172_s5 + $0x7b0] sm:$0xff] }
 0x267   : > { %4211 = vmatpush1.bf16.msra.mxu0 %v4210_v49  ;;  %v2233_v49 = vld [vmem:[%s6172_s5 + $0xd60] sm:$0xff] }
 0x268   : > { %4213 = vmatprep.subr.bf16.mxu0 %v4212_v55  ;;  %v2303_v55 = vld [vmem:[%s6172_s5 + $0xf90] sm:$0xff]  ;;  %v4286_v59 = vpack.c.bf16 %v2256_v50, %v2233_v49  ;;  %v1890_v49 = vld [vmem:[%s6172_s5 + $0x2a8] sm:$0xff] }
 0x269   : > { %4271 = vmatpush1.bf16.msra.mxu1 %v4270_v10  ;;  %v4288_v62 = vpack.c.bf16 %v2303_v55, %v2280_v54  ;;  %v2510_v50 = vld [vmem:[%s6172_s5 + $0x1608] sm:$0xff]  ;;  %v1937_v54 = vld [vmem:[%s6172_s5 + $0x420] sm:$0xff]  ;;  %v4318_v56 = vpack.c.bf16 %v1890_v49, %v1867_v44  ;;  %v1984_v49 = vld [vmem:[%s6172_s5 + $0x598] sm:$0xff] }
 0x26a   : > { %4273 = vmatprep.subr.bf16.mxu1 %v4272_v13  ;;  %v4240_v13 = vpack.c.bf16 %v2485_v6, %v2462_v5 }
 0x26b   : > { %4215 = vmatpush1.bf16.msra.mxu0 %v4214_v63  ;;  %v2279_v63 = vld [vmem:[%s6172_s5 + $0xed0] sm:$0xff] }
 0x26c   : > { %4217 = vmatprep.subr.bf16.mxu0 %v4216_v4  ;;  %v2349_v4 = vld [vmem:[%s6172_s5 + $0x1100] sm:$0xff]  ;;  %v4290_v7 = vpack.c.bf16 %v2302_v0, %v2279_v63  ;;  %v1936_v63 = vld [vmem:[%s6172_s5 + $0x418] sm:$0xff] }
 0x26d   : > { %4275 = vmatpush1.bf16.msra.mxu1 %v4274_v22  ;;  %v4292_v10 = vpack.c.bf16 %v2349_v4, %v2326_v3  ;;  %v1824_v0 = vld [vmem:[%s6172_s5 + $0x98] sm:$0xff]  ;;  %v1983_v4 = vld [vmem:[%s6172_s5 + $0x590] sm:$0xff]  ;;  %v4322_v6 = vpack.c.bf16 %v1936_v63, %v1913_v57 }
 0x26e   : > { %4277 = vmatprep.subr.bf16.mxu1 %v4276_v25  ;;  %v4244_v25 = vpack.c.bf16 %v2531_v18, %v2508_v17  ;;  %v1960_v3 = vld [vmem:[%s6172_s5 + $0x4d8] sm:$0xff]  ;;  %v2029_v17 = vld [vmem:[%s6172_s5 + $0x700] sm:$0xff] }
 0x26f   : > { %4219 = vmatpush1.bf16.msra.mxu0 %v4218_v11  ;;  %v2325_v11 = vld [vmem:[%s6172_s5 + $0x1040] sm:$0xff] }
 0x270   : > { %4221 = vmatprep.subr.bf16.mxu0 %v4220_v16  ;;  %v2395_v16 = vld [vmem:[%s6172_s5 + $0x1270] sm:$0xff]  ;;  %v4294_v19 = vpack.c.bf16 %v2348_v12, %v2325_v11  ;;  %v4324_v11 = vpack.c.bf16 %v1983_v4, %v1960_v3  ;;  %v1982_v12 = vld [vmem:[%s6172_s5 + $0x588] sm:$0xff] }
 0x271   : > { %4279 = vmatpush1.bf16.msra.mxu1 %v4278_v34  ;;  %v4296_v22 = vpack.c.bf16 %v2395_v16, %v2372_v15  ;;  %v1893_v15 = vld [vmem:[%s6172_s5 + $0x2c0] sm:$0xff]  ;;  %v2006_v16 = vld [vmem:[%s6172_s5 + $0x648] sm:$0xff]  ;;  %v2007_v3 = vld [vmem:[%s6172_s5 + $0x650] sm:$0xff] }
 0x272   : > { %4281 = vmatprep.subr.bf16.mxu1 %v4280_v36  ;;  %v4312_v36 = vpack.c.bf16 %v1845_v28, %v1822_v31  ;;  %v4380_v21 = vpack.c.bf16 %v1893_v15, %v1870_v14  ;;  %v2052_v31 = vld [vmem:[%s6172_s5 + $0x7b8] sm:$0xff]  ;;  %v2075_v28 = vld [vmem:[%s6172_s5 + $0x870] sm:$0xff]  ;;  %v2030_v4 = vld [vmem:[%s6172_s5 + $0x708] sm:$0xff] }
 0x273   : > { %4223 = vmatpush1.bf16.msra.mxu0 %v4222_v23  ;;  %v2371_v23 = vld [vmem:[%s6172_s5 + $0x11b0] sm:$0xff]  ;;  %v2189_v15 = vld [vmem:[%s6172_s5 + $0xc00] sm:$0xff] }
 0x274   : > { %4225 = vmatprep.subr.bf16.mxu0 %v4224_v32  ;;  %v2441_v32 = vld [vmem:[%s6172_s5 + $0x13e0] sm:$0xff]  ;;  %v4298_v29 = vpack.c.bf16 %v2394_v24, %v2371_v23  ;;  %v1892_v23 = vld [vmem:[%s6172_s5 + $0x2b8] sm:$0xff]  ;;  %v4328_v24 = vpack.c.bf16 %v2029_v17, %v2006_v16 }
 0x275   : > { %4283 = vmatpush1.bf16.msra.mxu1 %v4282_v45  ;;  %v4300_v34 = vpack.c.bf16 %v2441_v32, %v2418_v27  ;;  %v1916_v27 = vld [vmem:[%s6172_s5 + $0x378] sm:$0xff]  ;;  %v1939_v32 = vld [vmem:[%s6172_s5 + $0x430] sm:$0xff] }
 0x276   : > { %4285 = vmatprep.subr.bf16.mxu1 %v4284_v48  ;;  %v4316_v48 = vpack.c.bf16 %v1891_v41, %v1868_v40  ;;  %v6785_v40 = vld [vmem:[%s6772_s23] sm:$0xff] }
 0x277   : > { %4227 = vmatpush1.bf16.msra.mxu0 %v4226_v35  ;;  %v2417_v35 = vld [vmem:[%s6172_s5 + $0x1320] sm:$0xff] }
 0x278   : > { %4229 = vmatprep.subr.bf16.mxu0 %v4228_v39  ;;  %v2487_v39 = vld [vmem:[%s6172_s5 + $0x1550] sm:$0xff]  ;;  %v4302_v42 = vpack.c.bf16 %v2440_v58, %v2417_v35  ;;  %v1938_v35 = vld [vmem:[%s6172_s5 + $0x428] sm:$0xff] }
 0x279   : > { %4287 = vmatpush1.bf16.msra.mxu1 %v4286_v59  ;;  %v4304_v45 = vpack.c.bf16 %v2487_v39, %v2464_v38  ;;  %v1962_v38 = vld [vmem:[%s6172_s5 + $0x4e8] sm:$0xff]  ;;  %v1985_v39 = vld [vmem:[%s6172_s5 + $0x5a0] sm:$0xff] }
 0x27a   : > { %4289 = vmatprep.subr.bf16.mxu1 %v4288_v62  ;;  %v4320_v62 = vpack.c.bf16 %v1937_v54, %v1914_v53  ;;  %v2120_v53 = vld [vmem:[%s6172_s5 + $0x9d8] sm:$0xff] }
 0x27b   : > { %4231 = vmatpush1.bf16.msra.mxu0 %v4230_v46  ;;  %v2463_v46 = vld [vmem:[%s6172_s5 + $0x1490] sm:$0xff]  ;;  %v2008_v54 = vld [vmem:[%s6172_s5 + $0x658] sm:$0xff] }
 0x27c   : > { %4233 = vmatprep.subr.bf16.mxu0 %v4232_v52  ;;  %v2533_v52 = vld [vmem:[%s6172_s5 + $0x16c0] sm:$0xff]  ;;  %v4306_v55 = vpack.c.bf16 %v2486_v47, %v2463_v46  ;;  %v4388_v47 = vpack.c.bf16 %v1985_v39, %v1962_v38  ;;  %v2146_v38 = vld [vmem:[%s6172_s5 + $0xaa8] sm:$0xff] }
 0x27d   : > { %4291 = vmatpush1.bf16.msra.mxu1 %v4290_v7  ;;  %v4308_v59 = vpack.c.bf16 %v2533_v52, %v2510_v50  ;;  %v1959_v7 = vld [vmem:[%s6172_s5 + $0x4d0] sm:$0xff]  ;;  %v2097_v46 = vld [vmem:[%s6172_s5 + $0x920] sm:$0xff] }
 0x27e   : > { %4293 = vmatprep.subr.bf16.mxu1 %v4292_v10  ;;  %v1846_v10 = vld [vmem:[%s6172_s5 + $0x148] sm:$0xff]  ;;  %v4338_v63 = vpack.c.bf16 %v2120_v53, %v2097_v46  ;;  %v2169_v39 = vld [vmem:[%s6172_s5 + $0xb60] sm:$0xff] }
 0x27f   : > { %4235 = vmatpush1.bf16.msra.mxu0 %v4234_v60  ;;  %v2509_v60 = vld [vmem:[%s6172_s5 + $0x1600] sm:$0xff]  ;;  %v4378_v18 = vpack.c.bf16 %v1846_v10, %v1823_v9 }
 0x280   : > { %4237 = vmatprep.subr.bf16.mxu0 %v4236_v1  ;;  %v1847_v1 = vld [vmem:[%s6172_s5 + $0x150] sm:$0xff]  ;;  %v4310_v5 = vpack.c.bf16 %v2532_v61, %v2509_v60  ;;  %v2077_v9 = vld [vmem:[%s6172_s5 + $0x880] sm:$0xff] }
 0x281   : > { %4295 = vmatpush1.bf16.msra.mxu1 %v4294_v19  ;;  %v4326_v19 = vpack.c.bf16 %v1982_v12, %v1959_v7  ;;  %v2167_v60 = vld [vmem:[%s6172_s5 + $0xb50] sm:$0xff]  ;;  %v2166_v7 = vld [vmem:[%s6172_s5 + $0xb48] sm:$0xff]  ;;  %v2213_v12 = vld [vmem:[%s6172_s5 + $0xcc0] sm:$0xff] }
 0x282   : > { %4297 = vmatprep.subr.bf16.mxu1 %v4296_v22  ;;  %v1869_v22 = vld [vmem:[%s6172_s5 + $0x200] sm:$0xff] }
 0x283   : > { %4239 = vmatpush1.bf16.msra.mxu0 %v4238_v8  ;;  %v4376_v8 = vpack.c.bf16 %v1847_v1, %v1824_v0  ;;  %v2143_v0 = vld [vmem:[%s6172_s5 + $0xa90] sm:$0xff] }
 0x284   : > { %4241 = vmatprep.subr.bf16.mxu0 %v4240_v13  ;;  %v3470_v13 = vlaneseq  ;;  %v4342_v14 = vpack.c.bf16 %v2166_v7, %v2143_v0  ;;  %v2261_v7 = vld [vmem:[%s6172_s5 + $0xe40] sm:$0xff] }
 0x285   : > { %4299 = vmatpush1.bf16.msra.mxu1 %v4298_v29  ;;  %v4382_v29 = vpack.c.bf16 %v1892_v23, %v1869_v22  ;;  %v2100_v23 = vld [vmem:[%s6172_s5 + $0x938] sm:$0xff] }
 0x286   : > { %4301 = vmatprep.subr.bf16.mxu1 %v4300_v34  ;;  %v6761_v26 = vshrl.u32 %v3470_v13, 7  ;;  %v4384_v34 = vpack.c.bf16 %v1939_v32, %v1916_v27  ;;  %v4394_v13 = vpack.c.bf16 %v2030_v4, %v2007_v3  ;;  %v2259_v27 = vld [vmem:[%s6172_s5 + $0xe30] sm:$0xff]  ;;  %v2214_v3 = vld [vmem:[%s6172_s5 + $0xcc8] sm:$0xff] }
 0x287   : > { %4243 = vmatpush1.bf16.msra.mxu0 %v4242_v20  ;;  %v2005_v20 = vld [vmem:[%s6172_s5 + $0x640] sm:$0xff] }
 0x288   : > { %4245 = vmatprep.subr.bf16.mxu0 %v4244_v25  ;;  %v2028_v25 = vld [vmem:[%s6172_s5 + $0x6f8] sm:$0xff]  ;;  %v6779_v58 = vsub.s32 0, %v6761_v26  ;;  %v6788_v41 = vsub.s32 1, %v6761_v26  ;;  %v6822_v16 = vsub.s32 2, %v6761_v26  ;;  %v6828_v22 = vsub.s32 3, %v6761_v26 }
 0x289   : > { %4303 = vmatpush1.bf16.msra.mxu1 %v4302_v42  ;;  %v2098_v42 = vld [vmem:[%s6172_s5 + $0x928] sm:$0xff] }
 0x28a   : > { %4305 = vmatprep.subr.bf16.mxu1 %v4304_v45  ;;  %v4334_v45 = vpack.c.bf16 %v2074_v37, %v2051_v33  ;;  %v3473_v50 = vrot.slane %v6785_v40, %v6779_v58  ;;  %v3477_v57 = vrot.slane %v6785_v40, %v6788_v41  ;;  %v2099_v33 = vld [vmem:[%s6172_s5 + $0x930] sm:$0xff]  ;;  %v3485_v37 = vrot.slane %v6785_v40, %v6828_v22 }
 0x28b   : > { %4247 = vmatpush1.bf16.msra.mxu0 %v4246_v30  ;;  %v4330_v30 = vpack.c.bf16 %v2028_v25, %v2005_v20  ;;  %v2236_v25 = vld [vmem:[%s6172_s5 + $0xd78] sm:$0xff] }
 0x28c   : > { %4313 = vmatprep.subr.bf16.mxu0 %v4312_v36  ;;  %v4332_v36 = vpack.c.bf16 %v2075_v28, %v2052_v31  ;;  %v2235_v28 = vld [vmem:[%s6172_s5 + $0xd70] sm:$0xff] }
 0x28d   : > { %4307 = vmatpush1.bf16.msra.mxu1 %v4306_v55  ;;  %v2031_v55 = vld [vmem:[%s6172_s5 + $0x710] sm:$0xff] }
 0x28e   : > { %3032 = vmatmul.mubr.f32.vlgmr.msra.gmra.mrb[6].mxu0 %v6587_v51  ;;  %4309 = vmatprep.subr.bf16.mxu1 %v4308_v59  ;;  %v2144_v59 = vld [vmem:[%s6172_s5 + $0xa98] sm:$0xff]  ;;  %v4392_v1 = vpack.c.bf16 %v2031_v55, %v2008_v54 }
 0x28f   : > { %4315 = vmatpush1.bf16.msra.mxu0 %v4314_v43  ;;  %3173 = vmatprep.mubr.f32.mxu0 %v6732_v2  ;;  %v2121_v43 = vld [vmem:[%s6172_s5 + $0x9e0] sm:$0xff]  ;;  %v2304_v54 = vld [vmem:[%s6172_s5 + $0xf98] sm:$0xff] }
 0x290   : > { %4317 = vmatprep.subr.bf16.mxu0 %v4316_v48  ;;  %v1961_v48 = vld [vmem:[%s6172_s5 + $0x4e0] sm:$0xff]  ;;  %v4336_v52 = vpack.c.bf16 %v2121_v43, %v2098_v42  ;;  %v2282_v42 = vld [vmem:[%s6172_s5 + $0xee8] sm:$0xff] }
 0x291   : > { %4311 = vmatpush1.bf16.msra.mxu1 %v4310_v5  ;;  %v2305_v43 = vld [vmem:[%s6172_s5 + $0xfa0] sm:$0xff] }
 0x292   : > { %4377 = vmatprep.subr.bf16.mxu1 %v4376_v8  ;;  %v2054_v8 = vld [vmem:[%s6172_s5 + $0x7c8] sm:$0xff]  ;;  %v4352_v53 = vpack.c.bf16 %v2305_v43, %v2282_v42  ;;  %v2329_v42 = vld [vmem:[%s6172_s5 + $0x1060] sm:$0xff]  ;;  %v2352_v43 = vld [vmem:[%s6172_s5 + $0x1118] sm:$0xff] }
 0x293   : > { %4319 = vmatpush1.bf16.msra.mxu0 %v4318_v56  ;;  %v4396_v17 = vpack.c.bf16 %v2077_v9, %v2054_v8  ;;  %v2374_v8 = vld [vmem:[%s6172_s5 + $0x11c8] sm:$0xff]  ;;  %v2397_v9 = vld [vmem:[%s6172_s5 + $0x1280] sm:$0xff] }
 0x294   : > { %4321 = vmatprep.subr.bf16.mxu0 %v4320_v62  ;;  %3103 = vmatmul.mubr.f32.vlgmr.msra.gmra.mrb[6].mxu1 %v6587_v51  ;;  %v1915_v51 = vld [vmem:[%s6172_s5 + $0x370] sm:$0xff]  ;;  %v4390_v62 = vpack.c.bf16 %v1984_v49, %v1961_v48  ;;  %v4404_v49 = vpack.c.bf16 %v2169_v39, %v2146_v38  ;;  %v2465_v38 = vld [vmem:[%s6172_s5 + $0x14a0] sm:$0xff] }
 0x295   : > { %4379 = vmatpush1.bf16.msra.mxu1 %v4378_v18  ;;  %3244 = vmatprep.mubr.f32.mxu1 %v6732_v2  ;;  %v4386_v44 = vpack.c.bf16 %v1938_v35, %v1915_v51  ;;  %v2053_v18 = vld [vmem:[%s6172_s5 + $0x7c0] sm:$0xff]  ;;  %v4348_v51 = vpack.c.bf16 %v2259_v27, %v2236_v25  ;;  %v2258_v35 = vld [vmem:[%s6172_s5 + $0xe28] sm:$0xff]  ;;  %v2419_v27 = vld [vmem:[%s6172_s5 + $0x1330] sm:$0xff] }
 0x296   : > { %4381 = vmatprep.subr.bf16.mxu1 %v4380_v21  ;;  %v2212_v21 = vld [vmem:[%s6172_s5 + $0xcb8] sm:$0xff]  ;;  %v4350_v46 = vpack.c.bf16 %v2258_v35, %v2235_v28  ;;  %v2306_v28 = vld [vmem:[%s6172_s5 + $0xfa8] sm:$0xff]  ;;  %v2489_v35 = vld [vmem:[%s6172_s5 + $0x1560] sm:$0xff] }
 0x297   : > { %4323 = vmatpush1.bf16.msra.mxu0 %v4322_v6  ;;  %v4340_v6 = vpack.c.bf16 %v2167_v60, %v2144_v59  ;;  %v4346_v31 = vpack.c.bf16 %v2212_v21, %v2189_v15  ;;  %v2328_v59 = vld [vmem:[%s6172_s5 + $0x1058] sm:$0xff]  ;;  %v2351_v60 = vld [vmem:[%s6172_s5 + $0x1110] sm:$0xff] }
 0x298   : > { %4325 = vmatprep.subr.bf16.mxu0 %v4324_v11  ;;  %v2190_v11 = vld [vmem:[%s6172_s5 + $0xc08] sm:$0xff]  ;;  %v4356_v4 = vpack.c.bf16 %v2351_v60, %v2328_v59  ;;  %v2260_v15 = vld [vmem:[%s6172_s5 + $0xe38] sm:$0xff] }
 0x299   : > { %4383 = vmatpush1.bf16.msra.mxu1 %v4382_v29  ;;  %v4344_v20 = vpack.c.bf16 %v2213_v12, %v2190_v11  ;;  %v3481_v29 = vrot.slane %v6785_v40, %v6822_v16  ;;  %v2373_v12 = vld [vmem:[%s6172_s5 + $0x11c0] sm:$0xff]  ;;  %v2420_v21 = vld [vmem:[%s6172_s5 + $0x1338] sm:$0xff]  ;;  %v2534_v59 = vld [vmem:[%s6172_s5 + $0x16c8] sm:$0xff] }
 0x29a   : > { %4385 = vmatprep.subr.bf16.mxu1 %v4384_v34  ;;  %v2122_v34 = vld [vmem:[%s6172_s5 + $0x9e8] sm:$0xff] }
 0x29b   : > { %4327 = vmatpush1.bf16.msra.mxu0 %v4326_v19  ;;  %v2076_v19 = vld [vmem:[%s6172_s5 + $0x878] sm:$0xff]  ;;  %v2422_v60 = vld [vmem:[%s6172_s5 + $0x1348] sm:$0xff] }
 0x29c   : > { %4329 = vmatprep.subr.bf16.mxu0 %v4328_v24  ;;  %v2123_v24 = vld [vmem:[%s6172_s5 + $0x9f0] sm:$0xff]  ;;  %v4398_v32 = vpack.c.bf16 %v2076_v19, %v2053_v18  ;;  %v2396_v18 = vld [vmem:[%s6172_s5 + $0x1278] sm:$0xff] }
 0x29d   : > { %4387 = vmatpush1.bf16.msra.mxu1 %v4386_v44  ;;  %v2284_v19 = vld [vmem:[%s6172_s5 + $0xef8] sm:$0xff]  ;;  %v4362_v25 = vpack.c.bf16 %v2396_v18, %v2373_v12  ;;  %v1895_v12 = vld [vmem:[%s6172_s5 + $0x2d0] sm:$0xff] }
 0x29e   : > { %4389 = vmatprep.subr.bf16.mxu1 %v4388_v47  ;;  %v2281_v47 = vld [vmem:[%s6172_s5 + $0xee0] sm:$0xff]  ;;  %v2467_v18 = vld [vmem:[%s6172_s5 + $0x14b0] sm:$0xff] }
 0x29f   : > { %4331 = vmatpush1.bf16.msra.mxu0 %v4330_v30  ;;  %v4400_v30 = vpack.c.bf16 %v2123_v24, %v2100_v23  ;;  %v2443_v23 = vld [vmem:[%s6172_s5 + $0x13f0] sm:$0xff] }
 0x2a0   : > { %4333 = vmatprep.subr.bf16.mxu0 %v4332_v36 }
 0x2a1   : > { %v2607_v56 = vpop.f32.mrb[0].mxu0  ;;  %4391 = vmatpush1.bf16.msra.mxu1 %v4390_v62  ;;  %v4354_v62 = vpack.c.bf16 %v2304_v54, %v2281_v47  ;;  %v2399_v47 = vld [vmem:[%s6172_s5 + $0x1290] sm:$0xff] }
 0x2a2   : > { %v2609_v61 = vpop.f32.mrb[1].mxu0  ;;  %v3585_v5 = vadd.f32 %v3473_v50, %v2607_v56  ;;  %4393 = vmatprep.subr.bf16.mxu1 %v4392_v1  ;;  %v2145_v50 = vld [vmem:[%s6172_s5 + $0xaa0] sm:$0xff]  ;;  %v2192_v56 = vld [vmem:[%s6172_s5 + $0xc18] sm:$0xff]  ;;  %v2191_v1 = vld [vmem:[%s6172_s5 + $0xc10] sm:$0xff] }
 0x2a3   : > { %4335 = vmatpush1.bf16.msra.mxu0 %v4334_v45  ;;  %v3586_v10 = vadd.f32 %v3477_v57, %v2609_v61  ;;  %v4402_v45 = vpack.c.bf16 %v2122_v34, %v2099_v33  ;;  %v2215_v57 = vld [vmem:[%s6172_s5 + $0xcd0] sm:$0xff]  ;;  %v2330_v33 = vld [vmem:[%s6172_s5 + $0x1068] sm:$0xff]  ;;  %v2353_v34 = vld [vmem:[%s6172_s5 + $0x1120] sm:$0xff] }
 0x2a4   : > { %4337 = vmatprep.subr.bf16.mxu0 %v4336_v52  ;;  %3608 = vst [vmem:[%s6808_s27] sm:$0xff] %v3585_v5  ;;  %v2168_v52 = vld [vmem:[%s6172_s5 + $0xb58] sm:$0xff]  ;;  %v4408_v0 = vpack.c.bf16 %v2215_v57, %v2192_v56  ;;  %v2350_v5 = vld [vmem:[%s6172_s5 + $0x1108] sm:$0xff]  ;;  %v4420_v39 = vpack.c.bf16 %v2353_v34, %v2330_v33  ;;  %v2513_v33 = vld [vmem:[%s6172_s5 + $0x1620] sm:$0xff] }
 0x2a5   : > { %3609 = vst [vmem:[%s6808_s27 + $0x8] sm:$0xff] %v3586_v10  ;;  %4395 = vmatpush1.bf16.msra.mxu1 %v4394_v13  ;;  %v4406_v61 = vpack.c.bf16 %v2168_v52, %v2145_v50  ;;  %v4410_v10 = vpack.c.bf16 %v2214_v3, %v2191_v1  ;;  %v4422_v50 = vpack.c.bf16 %v2352_v43, %v2329_v42  ;;  %v2398_v56 = vld [vmem:[%s6172_s5 + $0x1288] sm:$0xff]  ;;  %v1825_v3 = vld [vmem:[%s6172_s5 + $0xa0] sm:$0xff]  ;;  %v2536_v34 = vld [vmem:[%s6172_s5 + $0x16d8] sm:$0xff] }
 0x2a6   : > { %4397 = vmatprep.subr.bf16.mxu1 %v4396_v17  ;;  %v4360_v17 = vpack.c.bf16 %v2397_v9, %v2374_v8  ;;  %v1848_v8 = vld [vmem:[%s6172_s5 + $0x158] sm:$0xff]  ;;  %v4438_v42 = vpack.c.bf16 %v2536_v34, %v2513_v33 }
 0x2a7   : > { %4339 = vmatpush1.bf16.msra.mxu0 %v4338_v63  ;;  %v2678_v36 = vpop.f32.mrb[0].mxu1  ;;  %v2327_v63 = vld [vmem:[%s6172_s5 + $0x1050] sm:$0xff]  ;;  %v2468_v9 = vld [vmem:[%s6172_s5 + $0x14b8] sm:$0xff] }
 0x2a8   : > { %4341 = vmatprep.subr.bf16.mxu0 %v4340_v6  ;;  %v2680_v44 = vpop.f32.mrb[1].mxu1  ;;  %v3587_v48 = vadd.f32 %v3481_v29, %v2678_v36  ;;  %v2238_v6 = vld [vmem:[%s6172_s5 + $0xd88] sm:$0xff]  ;;  %v4358_v11 = vpack.c.bf16 %v2350_v5, %v2327_v63  ;;  %v4364_v29 = vpack.c.bf16 %v2443_v23, %v2420_v21  ;;  %v1849_v63 = vld [vmem:[%s6172_s5 + $0x160] sm:$0xff] }
 0x2a9   : > { %4399 = vmatpush1.bf16.msra.mxu1 %v4398_v32  ;;  %v3588_v55 = vadd.f32 %v3485_v37, %v2680_v44  ;;  %v4412_v13 = vpack.c.bf16 %v2261_v7, %v2238_v6  ;;  %v2421_v5 = vld [vmem:[%s6172_s5 + $0x1340] sm:$0xff]  ;;  %v2444_v6 = vld [vmem:[%s6172_s5 + $0x13f8] sm:$0xff]  ;;  %v1894_v21 = vld [vmem:[%s6172_s5 + $0x2c8] sm:$0xff] }
 0x2aa   : > { %4401 = vmatprep.subr.bf16.mxu1 %v4400_v30  ;;  %3610 = vst [vmem:[%s6808_s27 + $0x10] sm:$0xff] %v3587_v48  ;;  %v2442_v30 = vld [vmem:[%s6172_s5 + $0x13e8] sm:$0xff]  ;;  %v2512_v48 = vld [vmem:[%s6172_s5 + $0x1618] sm:$0xff] }
 0x2ab   : > { %4343 = vmatpush1.bf16.msra.mxu0 %v4342_v14  ;;  %3611 = vst [vmem:[%s6808_s27 + $0x18] sm:$0xff] %v3588_v55  ;;  %v2237_v14 = vld [vmem:[%s6172_s5 + $0xd80] sm:$0xff]  ;;  %v4366_v37 = vpack.c.bf16 %v2442_v30, %v2419_v27  ;;  %v2375_v55 = vld [vmem:[%s6172_s5 + $0x11d0] sm:$0xff]  ;;  %v2514_v23 = vld [vmem:[%s6172_s5 + $0x1628] sm:$0xff] }
 0x2ac   : > { %4345 = vmatprep.subr.bf16.mxu0 %v4344_v20  ;;  %v2307_v20 = vld [vmem:[%s6172_s5 + $0xfb0] sm:$0xff]  ;;  %v4414_v24 = vpack.c.bf16 %v2260_v15, %v2237_v14  ;;  %v4442_v14 = vpack.c.bf16 %v1848_v8, %v1825_v3  ;;  %v1941_v27 = vld [vmem:[%s6172_s5 + $0x440] sm:$0xff]  ;;  %v2056_v3 = vld [vmem:[%s6172_s5 + $0x7d8] sm:$0xff] }
 0x2ad   : > { %4403 = vmatpush1.bf16.msra.mxu1 %v4402_v45  ;;  %v4416_v32 = vpack.c.bf16 %v2307_v20, %v2284_v19  ;;  %v2488_v45 = vld [vmem:[%s6172_s5 + $0x1558] sm:$0xff]  ;;  %v1871_v15 = vld [vmem:[%s6172_s5 + $0x210] sm:$0xff]  ;;  %v2490_v19 = vld [vmem:[%s6172_s5 + $0x1568] sm:$0xff] }
 0x2ae   : > { %4405 = vmatprep.subr.bf16.mxu1 %v4404_v49  ;;  %v2535_v49 = vld [vmem:[%s6172_s5 + $0x16d0] sm:$0xff]  ;;  %v4370_v52 = vpack.c.bf16 %v2488_v45, %v2465_v38  ;;  %v1964_v38 = vld [vmem:[%s6172_s5 + $0x4f8] sm:$0xff] }
 0x2af   : > { %4347 = vmatpush1.bf16.msra.mxu0 %v4346_v31  ;;  %v2283_v31 = vld [vmem:[%s6172_s5 + $0xef0] sm:$0xff]  ;;  %v4372_v57 = vpack.c.bf16 %v2535_v49, %v2512_v48  ;;  %v1986_v49 = vld [vmem:[%s6172_s5 + $0x5a8] sm:$0xff] }
 0x2b0   : > { %4349 = vmatprep.subr.bf16.mxu0 %v4348_v51  ;;  %v2466_v51 = vld [vmem:[%s6172_s5 + $0x14a8] sm:$0xff]  ;;  %v4418_v36 = vpack.c.bf16 %v2306_v28, %v2283_v31  ;;  %v4434_v31 = vpack.c.bf16 %v2490_v19, %v2467_v18  ;;  %v4446_v28 = vpack.c.bf16 %v1894_v21, %v1871_v15  ;;  %v2356_v15 = vld [vmem:[%s6172_s5 + $0x1138] sm:$0xff]  ;;  %v2125_v18 = vld [vmem:[%s6172_s5 + $0xa00] sm:$0xff] }
 0x2b1   : > { %4407 = vmatpush1.bf16.msra.mxu1 %v4406_v61  ;;  %v4368_v44 = vpack.c.bf16 %v2489_v35, %v2466_v51  ;;  %v2445_v61 = vld [vmem:[%s6172_s5 + $0x1400] sm:$0xff]  ;;  %v1940_v35 = vld [vmem:[%s6172_s5 + $0x438] sm:$0xff] }
 0x2b2   : > { %4409 = vmatprep.subr.bf16.mxu1 %v4408_v0  ;;  %v4426_v0 = vpack.c.bf16 %v2398_v56, %v2375_v55  ;;  %v2101_v21 = vld [vmem:[%s6172_s5 + $0x940] sm:$0xff] }
 0x2b3   : > { %4351 = vmatpush1.bf16.msra.mxu0 %v4350_v46  ;;  %v2376_v46 = vld [vmem:[%s6172_s5 + $0x11d8] sm:$0xff] }
 0x2b4   : > { %4353 = vmatprep.subr.bf16.mxu0 %v4352_v53  ;;  %v2511_v53 = vld [vmem:[%s6172_s5 + $0x1610] sm:$0xff]  ;;  %v4424_v54 = vpack.c.bf16 %v2399_v47, %v2376_v46  ;;  %v1850_v47 = vld [vmem:[%s6172_s5 + $0x168] sm:$0xff] }
 0x2b5   : > { %4411 = vmatpush1.bf16.msra.mxu1 %v4410_v10  ;;  %v4374_v1 = vpack.c.bf16 %v2534_v59, %v2511_v53  ;;  %v2491_v10 = vld [vmem:[%s6172_s5 + $0x1570] sm:$0xff]  ;;  %v2010_v53 = vld [vmem:[%s6172_s5 + $0x668] sm:$0xff] }
 0x2b6   : > { %4413 = vmatprep.subr.bf16.mxu1 %v4412_v13  ;;  %v4430_v13 = vpack.c.bf16 %v2444_v6, %v2421_v5  ;;  %v1827_v46 = vld [vmem:[%s6172_s5 + $0xb0] sm:$0xff] }
 0x2b7   : > { %4355 = vmatpush1.bf16.msra.mxu0 %v4354_v62  ;;  %v1826_v62 = vld [vmem:[%s6172_s5 + $0xa8] sm:$0xff]  ;;  %v4506_v55 = vpack.c.bf16 %v1850_v47, %v1827_v46 }
 0x2b8   : > { %4357 = vmatprep.subr.bf16.mxu0 %v4356_v4  ;;  %v4428_v4 = vpack.c.bf16 %v2445_v61, %v2422_v60  ;;  %v4440_v7 = vpack.c.bf16 %v1849_v63, %v1826_v62  ;;  %v1873_v60 = vld [vmem:[%s6172_s5 + $0x220] sm:$0xff]  ;;  %v1896_v61 = vld [vmem:[%s6172_s5 + $0x2d8] sm:$0xff]  ;;  %v2170_v47 = vld [vmem:[%s6172_s5 + $0xb68] sm:$0xff] }
 0x2b9   : > { %4415 = vmatpush1.bf16.msra.mxu1 %v4414_v24  ;;  %v2537_v24 = vld [vmem:[%s6172_s5 + $0x16e0] sm:$0xff]  ;;  %v2032_v63 = vld [vmem:[%s6172_s5 + $0x718] sm:$0xff]  ;;  %v4510_v5 = vpack.c.bf16 %v1896_v61, %v1873_v60 }
 0x2ba   : > { %4417 = vmatprep.subr.bf16.mxu1 %v4416_v32  ;;  %v6915_v32 = vld [vmem:[%s7082_s0] sm:$0xff]  ;;  %v4436_v30 = vpack.c.bf16 %v2537_v24, %v2514_v23  ;;  %v2080_v61 = vld [vmem:[%s6172_s5 + $0x898] sm:$0xff] }
 0x2bb   : > { %4359 = vmatpush1.bf16.msra.mxu0 %v4358_v11  ;;  %v1872_v11 = vld [vmem:[%s6172_s5 + $0x218] sm:$0xff]  ;;  %v1965_v24 = vld [vmem:[%s6172_s5 + $0x500] sm:$0xff] }
 0x2bc   : > { %4361 = vmatprep.subr.bf16.mxu0 %v4360_v17  ;;  %v4432_v17 = vpack.c.bf16 %v2491_v10, %v2468_v9  ;;  %v4444_v20 = vpack.c.bf16 %v1895_v12, %v1872_v11  ;;  %v1919_v9 = vld [vmem:[%s6172_s5 + $0x390] sm:$0xff]  ;;  %v1942_v10 = vld [vmem:[%s6172_s5 + $0x448] sm:$0xff]  ;;  %v6949_v11 = vsub.s32 4, %v6761_v26  ;;  %v2057_v60 = vld [vmem:[%s6172_s5 + $0x7e0] sm:$0xff] }
 0x2bd   : > { %4419 = vmatpush1.bf16.msra.mxu1 %v4418_v36  ;;  %v2195_v36 = vld [vmem:[%s6172_s5 + $0xc30] sm:$0xff]  ;;  %v4514_v19 = vpack.c.bf16 %v1942_v10, %v1919_v9 }
 0x2be   : > { %4421 = vmatprep.subr.bf16.mxu1 %v4420_v39  ;;  %v1987_v39 = vld [vmem:[%s6172_s5 + $0x5b0] sm:$0xff] }
 0x2bf   : > { %4363 = vmatpush1.bf16.msra.mxu0 %v4362_v25  ;;  %v1918_v25 = vld [vmem:[%s6172_s5 + $0x388] sm:$0xff]  ;;  %v4452_v48 = vpack.c.bf16 %v1987_v39, %v1964_v38  ;;  %v2147_v39 = vld [vmem:[%s6172_s5 + $0xab0] sm:$0xff] }
 0x2c0   : > { %4365 = vmatprep.subr.bf16.mxu0 %v4364_v29  ;;  %v1917_v29 = vld [vmem:[%s6172_s5 + $0x380] sm:$0xff]  ;;  %v4448_v51 = vpack.c.bf16 %v1941_v27, %v1918_v25  ;;  %v1988_v25 = vld [vmem:[%s6172_s5 + $0x5b8] sm:$0xff]  ;;  %v3489_v27 = vrot.slane %v6785_v40, %v6949_v11 }
 0x2c1   : > { %4423 = vmatpush1.bf16.msra.mxu1 %v4422_v50  ;;  %v4450_v43 = vpack.c.bf16 %v1940_v35, %v1917_v29  ;;  %v2241_v50 = vld [vmem:[%s6172_s5 + $0xda0] sm:$0xff]  ;;  %v2379_v29 = vld [vmem:[%s6172_s5 + $0x11f0] sm:$0xff] }
 0x2c2   : > { %4425 = vmatprep.subr.bf16.mxu1 %v4424_v54  ;;  %v2033_v54 = vld [vmem:[%s6172_s5 + $0x720] sm:$0xff]  ;;  %v2171_v35 = vld [vmem:[%s6172_s5 + $0xb70] sm:$0xff] }
 0x2c3   : > { %4367 = vmatpush1.bf16.msra.mxu0 %v4366_v37  ;;  %v2218_v37 = vld [vmem:[%s6172_s5 + $0xce8] sm:$0xff]  ;;  %v4456_v62 = vpack.c.bf16 %v2033_v54, %v2010_v53  ;;  %v2217_v53 = vld [vmem:[%s6172_s5 + $0xce0] sm:$0xff] }
 0x2c4   : > { %4369 = vmatprep.subr.bf16.mxu0 %v4368_v44  ;;  %v1963_v44 = vld [vmem:[%s6172_s5 + $0x4f0] sm:$0xff]  ;;  %v4504_v45 = vpack.c.bf16 %v2218_v37, %v2195_v36  ;;  %v4518_v37 = vpack.c.bf16 %v1988_v25, %v1965_v24 }
 0x2c5   : > { %4427 = vmatpush1.bf16.msra.mxu1 %v4426_v0  ;;  %v4454_v56 = vpack.c.bf16 %v1986_v49, %v1963_v44  ;;  %v2287_v0 = vld [vmem:[%s6172_s5 + $0xf10] sm:$0xff]  ;;  %v2034_v44 = vld [vmem:[%s6172_s5 + $0x728] sm:$0xff]  ;;  %v2448_v49 = vld [vmem:[%s6172_s5 + $0x1418] sm:$0xff] }
 0x2c6   : > { %4429 = vmatprep.subr.bf16.mxu1 %v4428_v4  ;;  %v2079_v4 = vld [vmem:[%s6172_s5 + $0x890] sm:$0xff] }
 0x2c7   : > { %4371 = vmatpush1.bf16.msra.mxu0 %v4370_v52  ;;  %v2264_v52 = vld [vmem:[%s6172_s5 + $0xe58] sm:$0xff]  ;;  %v4460_v12 = vpack.c.bf16 %v2079_v4, %v2056_v3  ;;  %v2494_v3 = vld [vmem:[%s6172_s5 + $0x1588] sm:$0xff] }
 0x2c8   : > { %4373 = vmatprep.subr.bf16.mxu0 %v4372_v57  ;;  %v2009_v57 = vld [vmem:[%s6172_s5 + $0x660] sm:$0xff]  ;;  %v4508_v59 = vpack.c.bf16 %v2264_v52, %v2241_v50  ;;  %v2194_v52 = vld [vmem:[%s6172_s5 + $0xc28] sm:$0xff]  ;;  %v2240_v4 = vld [vmem:[%s6172_s5 + $0xd98] sm:$0xff] }
 0x2c9   : > { %4431 = vmatpush1.bf16.msra.mxu1 %v4430_v13  ;;  %v4458_v6 = vpack.c.bf16 %v2032_v63, %v2009_v57  ;;  %v2078_v13 = vld [vmem:[%s6172_s5 + $0x888] sm:$0xff]  ;;  %v6983_v57 = vsub.s32 6, %v6761_v26  ;;  %v2216_v63 = vld [vmem:[%s6172_s5 + $0xcd8] sm:$0xff] }
 0x2ca   : > { %4433 = vmatprep.subr.bf16.mxu1 %v4432_v17  ;;  %v2102_v17 = vld [vmem:[%s6172_s5 + $0x948] sm:$0xff] }
 0x2cb   : > { %4375 = vmatpush1.bf16.msra.mxu0 %v4374_v1  ;;  %v2310_v1 = vld [vmem:[%s6172_s5 + $0xfc8] sm:$0xff]  ;;  %v3497_v9 = vrot.slane %v6785_v40, %v6983_v57 }
 0x2cc   : > { %4441 = vmatprep.subr.bf16.mxu0 %v4440_v7  ;;  %v2055_v7 = vld [vmem:[%s6172_s5 + $0x7d0] sm:$0xff]  ;;  %v4512_v8 = vpack.c.bf16 %v2310_v1, %v2287_v0  ;;  %v3500_v0 = vsub.s32 7, %v6761_v26 }
 0x2cd   : > { %4435 = vmatpush1.bf16.msra.mxu1 %v4434_v31  ;;  %v4464_v31 = vpack.c.bf16 %v2125_v18, %v2102_v17  ;;  %v2471_v1 = vld [vmem:[%s6172_s5 + $0x14d0] sm:$0xff] }
 0x2ce   : > { %3174 = vmatmul.mubr.f32.vlgmr.msra.gmra.mrb[8].mxu0 %v6915_v32  ;;  %4437 = vmatprep.subr.bf16.mxu1 %v4436_v30  ;;  %v2402_v30 = vld [vmem:[%s6172_s5 + $0x12a8] sm:$0xff]  ;;  %v4528_v10 = vpack.c.bf16 %v2494_v3, %v2471_v1  ;;  %v3501_v18 = vrot.slane %v6785_v40, %v3500_v0  ;;  %v2492_v1 = vld [vmem:[%s6172_s5 + $0x1578] sm:$0xff] }
 0x2cf   : > { %4443 = vmatpush1.bf16.msra.mxu0 %v4442_v14  ;;  %3315 = vmatprep.mubr.f32.mxu0 %v6732_v2  ;;  %v2333_v14 = vld [vmem:[%s6172_s5 + $0x1080] sm:$0xff]  ;;  %v2516_v3 = vld [vmem:[%s6172_s5 + $0x1638] sm:$0xff] }
 0x2d0   : > { %4445 = vmatprep.subr.bf16.mxu0 %v4444_v20  ;;  %v4462_v20 = vpack.c.bf16 %v2078_v13, %v2055_v7  ;;  %v4516_v23 = vpack.c.bf16 %v2356_v15, %v2333_v14  ;;  %v2126_v13 = vld [vmem:[%s6172_s5 + $0xa08] sm:$0xff] }
 0x2d1   : > { %4439 = vmatpush1.bf16.msra.mxu1 %v4438_v42  ;;  %v4520_v42 = vpack.c.bf16 %v2402_v30, %v2379_v29  ;;  %v2262_v15 = vld [vmem:[%s6172_s5 + $0xe48] sm:$0xff]  ;;  %v2149_v29 = vld [vmem:[%s6172_s5 + $0xac0] sm:$0xff] }
 0x2d2   : > { %4505 = vmatprep.subr.bf16.mxu1 %v4504_v45 }
 0x2d3   : > { %4447 = vmatpush1.bf16.msra.mxu0 %v4446_v28  ;;  %v2124_v28 = vld [vmem:[%s6172_s5 + $0x9f8] sm:$0xff] }
 0x2d4   : > { %4449 = vmatprep.subr.bf16.mxu0 %v4448_v51  ;;  %3245 = vmatmul.mubr.f32.vlgmr.msra.gmra.mrb[8].mxu1 %v6915_v32  ;;  %v2148_v51 = vld [vmem:[%s6172_s5 + $0xab8] sm:$0xff]  ;;  %v4466_v38 = vpack.c.bf16 %v2124_v28, %v2101_v21  ;;  %v2286_v21 = vld [vmem:[%s6172_s5 + $0xf08] sm:$0xff] }
 0x2d5   : > { %4507 = vmatpush3.bf16.msra.mxu1 %v4506_v55  ;;  %3386 = vmatprep.mubr.f32.mxu1 %v6732_v2  ;;  %v6955_v2 = vsub.s32 5, %v6761_v26  ;;  %v4468_v46 = vpack.c.bf16 %v2171_v35, %v2148_v51  ;;  %v4470_v55 = vpack.c.bf16 %v2170_v47, %v2147_v39  ;;  %v2332_v35 = vld [vmem:[%s6172_s5 + $0x1078] sm:$0xff] }
 0x2d6   : > { %4509 = vmatprep.subr.bf16.mxu1 %v4508_v59 }
 0x2d7   : > { %4451 = vmatpush1.bf16.msra.mxu0 %v4450_v43  ;;  %v3493_v34 = vrot.slane %v6785_v40, %v6955_v2  ;;  %v2011_v43 = vld [vmem:[%s6172_s5 + $0x670] sm:$0xff]  ;;  %v2172_v40 = vld [vmem:[%s6172_s5 + $0xb78] sm:$0xff] }
 0x2d8   : > { %4453 = vmatprep.subr.bf16.mxu0 %v4452_v48  ;;  %v2425_v48 = vld [vmem:[%s6172_s5 + $0x1360] sm:$0xff]  ;;  %v4522_v54 = vpack.c.bf16 %v2034_v44, %v2011_v43  ;;  %v2354_v43 = vld [vmem:[%s6172_s5 + $0x1128] sm:$0xff] }
 0x2d9   : > { %4511 = vmatpush3.bf16.msra.mxu1 %v4510_v5  ;;  %v4524_v59 = vpack.c.bf16 %v2448_v49, %v2425_v48  ;;  %v2263_v5 = vld [vmem:[%s6172_s5 + $0xe50] sm:$0xff]  ;;  %v2378_v44 = vld [vmem:[%s6172_s5 + $0x11e8] sm:$0xff]  ;;  %v2377_v48 = vld [vmem:[%s6172_s5 + $0x11e0] sm:$0xff] }
 0x2da   : > { %4513 = vmatprep.subr.bf16.mxu1 %v4512_v8  ;;  %v2239_v8 = vld [vmem:[%s6172_s5 + $0xd90] sm:$0xff]  ;;  %v4476_v14 = vpack.c.bf16 %v2263_v5, %v2240_v4  ;;  %v2400_v49 = vld [vmem:[%s6172_s5 + $0x1298] sm:$0xff] }
 0x2db   : > { %4455 = vmatpush1.bf16.msra.mxu0 %v4454_v56  ;;  %v2193_v56 = vld [vmem:[%s6172_s5 + $0xc20] sm:$0xff]  ;;  %v2539_v4 = vld [vmem:[%s6172_s5 + $0x16f0] sm:$0xff] }
 0x2dc   : > { %4457 = vmatprep.subr.bf16.mxu0 %v4456_v62  ;;  %v4472_v62 = vpack.c.bf16 %v2217_v53, %v2194_v52  ;;  %v4474_v7 = vpack.c.bf16 %v2216_v63, %v2193_v56  ;;  %v2447_v52 = vld [vmem:[%s6172_s5 + $0x1410] sm:$0xff]  ;;  %v4490_v53 = vpack.c.bf16 %v2400_v49, %v2377_v48  ;;  %v2446_v56 = vld [vmem:[%s6172_s5 + $0x1408] sm:$0xff]  ;;  %v2469_v63 = vld [vmem:[%s6172_s5 + $0x14c0] sm:$0xff] }
 0x2dd   : > { %4515 = vmatpush3.bf16.msra.mxu1 %v4514_v19  ;;  %v2517_v19 = vld [vmem:[%s6172_s5 + $0x1640] sm:$0xff]  ;;  %v4498_v5 = vpack.c.bf16 %v2492_v1, %v2469_v63 }
 0x2de   : > { %4517 = vmatprep.subr.bf16.mxu1 %v4516_v23  ;;  %v2309_v23 = vld [vmem:[%s6172_s5 + $0xfc0] sm:$0xff] }
 0x2df   : > { %4459 = vmatpush1.bf16.msra.mxu0 %v4458_v6  ;;  %v4526_v6 = vpack.c.bf16 %v2080_v61, %v2057_v60  ;;  %v4480_v30 = vpack.c.bf16 %v2309_v23, %v2286_v21  ;;  %v2493_v60 = vld [vmem:[%s6172_s5 + $0x1580] sm:$0xff] }
 0x2e0   : > { %4461 = vmatprep.subr.bf16.mxu0 %v4460_v12  ;;  %v2103_v12 = vld [vmem:[%s6172_s5 + $0x950] sm:$0xff] }
 0x2e1   : > { %v2749_v33 = vpop.f32.mrb[2].mxu0  ;;  %4519 = vmatpush3.bf16.msra.mxu1 %v4518_v37  ;;  %v4530_v25 = vpack.c.bf16 %v2126_v13, %v2103_v12  ;;  %v4534_v37 = vpack.c.bf16 %v2172_v40, %v2149_v29 }
 0x2e2   : > { %v2751_v36 = vpop.f32.mrb[3].mxu0  ;;  %v3589_v45 = vadd.f32 %v3489_v27, %v2749_v33  ;;  %4521 = vmatprep.subr.bf16.mxu1 %v4520_v42  ;;  %v4478_v27 = vpack.c.bf16 %v2262_v15, %v2239_v8  ;;  %v2285_v33 = vld [vmem:[%s6172_s5 + $0xf00] sm:$0xff]  ;;  %v2331_v42 = vld [vmem:[%s6172_s5 + $0x1070] sm:$0xff]  ;;  %v2538_v8 = vld [vmem:[%s6172_s5 + $0x16e8] sm:$0xff] }
 0x2e3   : > { %4463 = vmatpush1.bf16.msra.mxu0 %v4462_v20  ;;  %v3590_v50 = vadd.f32 %v3493_v34, %v2751_v36  ;;  %v2540_v20 = vld [vmem:[%s6172_s5 + $0x16f8] sm:$0xff]  ;;  %v2355_v36 = vld [vmem:[%s6172_s5 + $0x1130] sm:$0xff] }
 0x2e4   : > { %4465 = vmatprep.subr.bf16.mxu0 %v4464_v31  ;;  %3612 = vst [vmem:[%s6808_s27 + $0x20] sm:$0xff] %v3589_v45  ;;  %v4532_v28 = vpack.c.bf16 %v2540_v20, %v2517_v19  ;;  %v2308_v34 = vld [vmem:[%s6172_s5 + $0xfb8] sm:$0xff]  ;;  %v4484_v39 = vpack.c.bf16 %v2355_v36, %v2332_v35  ;;  %v2401_v45 = vld [vmem:[%s6172_s5 + $0x12a0] sm:$0xff] }
 0x2e5   : > { %3613 = vst [vmem:[%s6808_s27 + $0x28] sm:$0xff] %v3590_v50  ;;  %4523 = vmatpush3.bf16.msra.mxu1 %v4522_v54  ;;  %v4488_v47 = vpack.c.bf16 %v2401_v45, %v2378_v44  ;;  %v2424_v50 = vld [vmem:[%s6172_s5 + $0x1358] sm:$0xff] }
 0x2e6   : > { %4525 = vmatprep.subr.bf16.mxu1 %v4524_v59  ;;  %v4492_v54 = vpack.c.bf16 %v2447_v52, %v2424_v50  ;;  %v2470_v59 = vld [vmem:[%s6172_s5 + $0x14c8] sm:$0xff] }
 0x2e7   : > { %4467 = vmatpush1.bf16.msra.mxu0 %v4466_v38  ;;  %v2820_v17 = vpop.f32.mrb[2].mxu1  ;;  %v4482_v38 = vpack.c.bf16 %v2308_v34, %v2285_v33 }
 0x2e8   : > { %4469 = vmatprep.subr.bf16.mxu0 %v4468_v46  ;;  %v2822_v24 = vpop.f32.mrb[3].mxu1  ;;  %v3591_v31 = vadd.f32 %v3497_v9, %v2820_v17  ;;  %v4486_v46 = vpack.c.bf16 %v2354_v43, %v2331_v42 }
 0x2e9   : > { %4527 = vmatpush3.bf16.msra.mxu1 %v4526_v6  ;;  %v3592_v51 = vadd.f32 %v3501_v18, %v2822_v24  ;;  %v4500_v6 = vpack.c.bf16 %v2539_v4, %v2516_v3 }
 0x2ea   : > { %4529 = vmatprep.subr.bf16.mxu1 %v4528_v10  ;;  %3614 = vst [vmem:[%s6808_s27 + $0x30] sm:$0xff] %v3591_v31  ;;  %v3465_v10 = vld [vmem:[%s6772_s23 + $0x8] sm:$0xff] }
 0x2eb   : > { %4471 = vmatpush1.bf16.msra.mxu0 %v4470_v55  ;;  %3615 = vst [vmem:[%s6808_s27 + $0x38] sm:$0xff] %v3592_v51  ;;  %v2423_v55 = vld [vmem:[%s6172_s5 + $0x1350] sm:$0xff]  ;;  %v3505_v12 = vrot.slane %v3465_v10, %v6779_v58  ;;  %v3513_v19 = vrot.slane %v3465_v10, %v6822_v16  ;;  %v3525_v31 = vrot.slane %v3465_v10, %v6955_v2 }
 0x2ec   : > { %4473 = vmatprep.subr.bf16.mxu0 %v4472_v62  ;;  %v4494_v61 = vpack.c.bf16 %v2446_v56, %v2423_v55  ;;  %v4496_v62 = vpack.c.bf16 %v2493_v60, %v2470_v59  ;;  %v3533_v34 = vrot.slane %v3465_v10, %v3500_v0 }
 0x2ed   : > { %4531 = vmatpush3.bf16.msra.mxu1 %v4530_v25  ;;  %v3521_v25 = vrot.slane %v3465_v10, %v6949_v11 }
 0x2ee   : > { %4533 = vmatprep.subr.bf16.mxu1 %v4532_v28 }
 0x2ef   : > { %4475 = vmatpush1.bf16.msra.mxu0 %v4474_v7  ;;  %v2515_v7 = vld [vmem:[%s6172_s5 + $0x1630] sm:$0xff] }
 0x2f0   : > { %4477 = vmatprep.subr.bf16.mxu0 %v4476_v14  ;;  %v4502_v9 = vpack.c.bf16 %v2538_v8, %v2515_v7  ;;  %v3509_v14 = vrot.slane %v3465_v10, %v6788_v41 }
 0x2f1   : > { %4535 = vmatpush3.bf16.msra.mxu1 %v4534_v37  ;;  %v3466_v37 = vld [vmem:[%s6772_s23 + $0x10] sm:$0xff] }
 0x2f2   : > { %v3541_v42 = vrot.slane %v3466_v37, %v6788_v41  ;;  %v3545_v26 = vrot.slane %v3466_v37, %v6822_v16  ;;  %v3561_v52 = vrot.slane %v3466_v37, %v6983_v57  ;;  %v3557_v55 = vrot.slane %v3466_v37, %v6955_v2 }
 0x2f3   : > { %4479 = vmatpush1.bf16.msra.mxu0 %v4478_v27 }
 0x2f4   : > { %4481 = vmatprep.subr.bf16.mxu0 %v4480_v30  ;;  %3387 = vmatmul.mubr.f32.vlgmr.msra.gmra.mrb[10].mxu1 %v6915_v32  ;;  %v3529_v30 = vrot.slane %v3465_v10, %v6983_v57 }
 0x2f7   : > { %4483 = vmatpush1.bf16.msra.mxu0 %v4482_v38  ;;  %v3537_v38 = vrot.slane %v3466_v37, %v6779_v58 }
 0x2f8   : > { %4485 = vmatprep.subr.bf16.mxu0 %v4484_v39 }
 0x2fb   : > { %4487 = vmatpush1.bf16.msra.mxu0 %v4486_v46  ;;  %v3549_v46 = vrot.slane %v3466_v37, %v6828_v22 }
 0x2fc   : > { %4489 = vmatprep.subr.bf16.mxu0 %v4488_v47 }
 0x2ff   : > { %4491 = vmatpush1.bf16.msra.mxu0 %v4490_v53 }
 0x300   : > { %4493 = vmatprep.subr.bf16.mxu0 %v4492_v54  ;;  %v3553_v54 = vrot.slane %v3466_v37, %v6949_v11 }
 0x303   : > { %4495 = vmatpush1.bf16.msra.mxu0 %v4494_v61 }
 0x304   : > { %4497 = vmatprep.subr.bf16.mxu0 %v4496_v62 }
 0x307   : > { %4499 = vmatpush1.bf16.msra.mxu0 %v4498_v5 }
 0x308   : > { %4501 = vmatprep.subr.bf16.mxu0 %v4500_v6 }
 0x30b   : > { %4503 = vmatpush1.bf16.msra.mxu0 %v4502_v9 }
 0x30e   : > { %3316 = vmatmul.mubr.f32.vlgmr.msra.gmra.mrb[10].mxu0 %v6915_v32  ;;  %v3517_v32 = vrot.slane %v3465_v10, %v6828_v22 }
 0x321   : > { %v2891_v13 = vpop.f32.mrb[4].mxu0 }
 0x322   : > { %v2893_v15 = vpop.f32.mrb[5].mxu0  ;;  %v3593_v17 = vadd.f32 %v3505_v12, %v2891_v13 }
 0x323   : > { %v3594_v18 = vadd.f32 %v3509_v14, %v2893_v15 }
 0x324   : > { %3616 = vst [vmem:[%s6808_s27 + $0x40] sm:$0xff] %v3593_v17 }
 0x325   : > { %3617 = vst [vmem:[%s6808_s27 + $0x48] sm:$0xff] %v3594_v18 }
 0x327   : > { %v2962_v20 = vpop.f32.mrb[4].mxu1 }
 0x328   : > { %v2964_v21 = vpop.f32.mrb[5].mxu1  ;;  %v3595_v23 = vadd.f32 %v3513_v19, %v2962_v20 }
 0x329   : > { %v3596_v24 = vadd.f32 %v3517_v32, %v2964_v21 }
 0x32a   : > { %3618 = vst [vmem:[%s6808_s27 + $0x50] sm:$0xff] %v3595_v23 }
 0x32b   : > { %3619 = vst [vmem:[%s6808_s27 + $0x58] sm:$0xff] %v3596_v24 }
 0x361   : > { %v3033_v27 = vpop.f32.mrb[6].mxu0 }
 0x362   : > { %v3035_v28 = vpop.f32.mrb[7].mxu0  ;;  %v3597_v29 = vadd.f32 %v3521_v25, %v3033_v27 }
 0x363   : > { %v3598_v40 = vadd.f32 %v3525_v31, %v3035_v28 }
 0x364   : > { %3620 = vst [vmem:[%s6808_s27 + $0x60] sm:$0xff] %v3597_v29 }
 0x365   : > { %3621 = vst [vmem:[%s6808_s27 + $0x68] sm:$0xff] %v3598_v40 }
 0x367   : > { %v3104_v33 = vpop.f32.mrb[6].mxu1 }
 0x368   : > { %v3106_v51 = vpop.f32.mrb[7].mxu1  ;;  %v3599_v35 = vadd.f32 %v3529_v30, %v3104_v33 }
 0x369   : > { %v3600_v36 = vadd.f32 %v3533_v34, %v3106_v51 }
 0x36a   : > { %3622 = vst [vmem:[%s6808_s27 + $0x70] sm:$0xff] %v3599_v35 }
 0x36b   : > { %3623 = vst [vmem:[%s6808_s27 + $0x78] sm:$0xff] %v3600_v36 }
 0x3a1   : > { %v3175_v39 = vpop.f32.mrb[8].mxu0 }
 0x3a2   : > { %v3177_v43 = vpop.f32.mrb[9].mxu0  ;;  %v3601_v44 = vadd.f32 %v3537_v38, %v3175_v39 }
 0x3a3   : > { %v3602_v45 = vadd.f32 %v3541_v42, %v3177_v43 }
 0x3a4   : > { %3624 = vst [vmem:[%s6808_s27 + $0x80] sm:$0xff] %v3601_v44 }
 0x3a5   : > { %3625 = vst [vmem:[%s6808_s27 + $0x88] sm:$0xff] %v3602_v45 }
 0x3a7   : > { %v3246_v0 = vpop.f32.mrb[8].mxu1 }
 0x3a8   : > { %v3248_v47 = vpop.f32.mrb[9].mxu1  ;;  %v3603_v48 = vadd.f32 %v3545_v26, %v3246_v0 }
 0x3a9   : > { %v3604_v49 = vadd.f32 %v3549_v46, %v3248_v47 }
 0x3aa   : > { %3626 = vst [vmem:[%s6808_s27 + $0x90] sm:$0xff] %v3603_v48 }
 0x3ab   : > { %3627 = vst [vmem:[%s6808_s27 + $0x98] sm:$0xff] %v3604_v49 }
 0x3c7   : > { %v3797_v58 = vpop.f32.mrb[10].mxu1 }
 0x3c8   : > { %v3798_v41 = vpop.f32.mrb[11].mxu1 }
 0x3c9   : > { %v3799_v50 = vadd.f32 %v3798_v41, %v3797_v58 }
 0x3cb   : > { %v3607_v53 = vadd.f32 %v3799_v50, %v3561_v52 }
 0x3cd   : > { %3630 = vst [vmem:[%s6808_s27 + $0xb0] sm:$0xff] %v3607_v53 }
 0x3e1   : > { %v3317_v16 = vpop.f32.mrb[10].mxu0 }
 0x3e2   : > { %v3319_v22 = vpop.f32.mrb[11].mxu0  ;;  %v3605_v56 = vadd.f32 %v3553_v54, %v3317_v16 }
 0x3e3   : > { %v3606_v59 = vadd.f32 %v3557_v55, %v3319_v22 }
 0x3e4   : > { %3628 = vst [vmem:[%s6808_s27 + $0xa0] sm:$0xff] %v3605_v56 }
 0x3e5   : > { %3629 = vst [vmem:[%s6808_s27 + $0xa8] sm:$0xff] %v3606_v59 }
 0x3e6 PF: > { %s13_s16 = sadd.s32 1, %s4621_s16   ;;  %s7087_s12 = smov %s4609_s13 }
 0x3e7   : > { %p10_p10 = scmp.ge.s32.totalorder %s13_s16, 6   ;;  %s7088_s13 = smov %s4678_s20 }
 0x3e8   : > { %s7089_s14 = smov %s4617_s15  ;;  %s7090_s15 = smov %s7092_s17 }
 0x3e9   :  { %12 = sbr.rel (!%p10_p10) target bundleno = 3 (0x3), region = 104 }

</bundles_post_ra>
